<compile_context>
chip_gen: v5e
topology: v5e:2x2
jax: 0.10.0
libtpu: 0.0.40
codegen_flags: <defaults>
</compile_context>

<pallas_src>
from functools import partial

import numpy as np
import jax
import jax.numpy as jnp
from jax.experimental import pallas as pl
from jax.experimental.pallas import tpu as pltpu


# ------------------------- in-kernel helpers (traced) ------------------------

def _pad_hw(x, p):
    """Zero-pad the two leading spatial dims of an (H, W, C) value by p."""
    H, W, C = x.shape
    zr = jnp.zeros((p, W, C), x.dtype)
    x = jnp.concatenate([zr, x, zr], axis=0)              # (H+2p, W, C)
    zc = jnp.zeros((H + 2 * p, p, C), x.dtype)
    return jnp.concatenate([zc, x, zc], axis=1)            # (H+2p, W+2p, C)


def _im2col(xp, kh, kw, H, W):
    """(H+kh-1, W+kw-1, C) -> (H*W, kw*kh*C); column order is (dx, dy, c)."""
    C = xp.shape[-1]
    rows = jnp.concatenate([xp[dy:dy + H] for dy in range(kh)], axis=-1)           # (H, W+kw-1, kh*C)
    cols = jnp.concatenate([rows[:, dx:dx + W, :] for dx in range(kw)], axis=-1)   # (H, W, kw*kh*C)
    return cols.reshape(H * W, kw * kh * C)


# --------------------------------- kernel ------------------------------------

def _det_head_kernel(x_ref, w_sh_ref, sc_sh_ref, bi_sh_ref,
                     w_fc1_ref, w_fc2_ref, w_sa_ref,
                     w_br_ref, sc_br_ref, bi_br_ref,
                     w_hd_ref, b_hd_ref, o_ref):
    # x_ref : (H, W, Cin) one image (NHWC)
    # o_ref : (ncls+5, H*W) channel-major output (lane-dense on H*W)
    H, W, _ = x_ref.shape
    C = sc_sh_ref.shape[-1]

    # ---- shared 3x3 conv + folded BN + ReLU (one im2col matmul, K = 9*Cin) ----
    p0 = _im2col(_pad_hw(x_ref[...], 1), 3, 3, H, W)                      # (HW, 9*Cin)
    s = jnp.dot(p0, w_sh_ref[...], preferred_element_type=jnp.float32)
    s = jnp.maximum(s * sc_sh_ref[...] + bi_sh_ref[...], 0.0)             # (HW, C)

    # ---- CBAM channel attention: avg & max descriptors share one MLP pass ----
    desc = jnp.concatenate([jnp.mean(s, axis=0, keepdims=True),
                            jnp.max(s, axis=0, keepdims=True)], axis=0)   # (2, C)
    hmid = jnp.maximum(jnp.dot(desc, w_fc1_ref[...],
                               preferred_element_type=jnp.float32), 0.0)  # (2, C//r)
    mo = jnp.dot(hmid, w_fc2_ref[...], preferred_element_type=jnp.float32)  # (2, C)
    ca = jax.nn.sigmoid(mo[0:1, :] + mo[1:2, :])                          # (1, C)
    x1 = s * ca                                                           # (HW, C)

    # ---- CBAM spatial attention: 7x7 conv over [mean_c, max_c] as one matmul ----
    sp = jnp.concatenate([jnp.mean(x1, axis=1, keepdims=True),
                          jnp.max(x1, axis=1, keepdims=True)], axis=1)    # (HW, 2)
    psa = _im2col(_pad_hw(sp.reshape(H, W, 2), 3), 7, 7, H, W)            # (HW, 98)
    sa = jax.nn.sigmoid(jnp.dot(psa, w_sa_ref[...],
                                preferred_element_type=jnp.float32))      # (HW, 1)
    x2 = x1 * sa                                                          # (HW, C)

    # ---- merged cls/reg 3x3 conv + folded BN + ReLU (K = 9*C, N = 2*C) ----
    p1 = _im2col(_pad_hw(x2.reshape(H, W, C), 1), 3, 3, H, W)             # (HW, 9C)
    hb = jnp.dot(p1, w_br_ref[...], preferred_element_type=jnp.float32)
    hb = jnp.maximum(hb * sc_br_ref[...] + bi_br_ref[...], 0.0)           # (HW, 2C)

    # ---- merged block-diagonal 1x1 heads, channel-major output ----
    # (ncls+5, 2C) x (HW, 2C)^T  ->  (ncls+5, HW): lane-dense store, NCHW-native.
    out = jax.lax.dot_general(w_hd_ref[...], hb, (((1,), (1,)), ((), ())),
                              preferred_element_type=jnp.float32)
    o_ref[...] = (out + b_hd_ref[...]).astype(o_ref.dtype)


# ------------------------------ wrapper / params ----------------------------

@partial(jax.jit, static_argnames=("num_classes",))
def detection_head_forward(x_nchw, kp, *, num_classes):
    B, Cin, H, W = x_nchw.shape
    x = jnp.transpose(x_nchw, (0, 2, 3, 1)).astype(jnp.float32)   # NHWC once at the boundary
    nout = num_classes + 5
    HW = H * W

    out = pl.pallas_call(
        _det_head_kernel,
        out_shape=jax.ShapeDtypeStruct((B, nout, HW), jnp.float32),
        grid=(B,),
        in_specs=[
            pl.BlockSpec((None, H, W, Cin), lambda b: (b, 0, 0, 0)),
            pl.BlockSpec(kp['w_sh'].shape,  lambda b: (0, 0)),
            pl.BlockSpec(kp['sc_sh'].shape, lambda b: (0, 0)),
            pl.BlockSpec(kp['bi_sh'].shape, lambda b: (0, 0)),
            pl.BlockSpec(kp['w_fc1'].shape, lambda b: (0, 0)),
            pl.BlockSpec(kp['w_fc2'].shape, lambda b: (0, 0)),
            pl.BlockSpec(kp['w_sa'].shape,  lambda b: (0, 0)),
            pl.BlockSpec(kp['w_br'].shape,  lambda b: (0, 0)),
            pl.BlockSpec(kp['sc_br'].shape, lambda b: (0, 0)),
            pl.BlockSpec(kp['bi_br'].shape, lambda b: (0, 0)),
            pl.BlockSpec(kp['w_hd'].shape,  lambda b: (0, 0)),
            pl.BlockSpec(kp['b_hd'].shape,  lambda b: (0, 0)),
        ],
        out_specs=pl.BlockSpec((None, nout, HW), lambda b: (b, 0, 0)),
        compiler_params=pltpu.CompilerParams(dimension_semantics=("parallel",)),
        # TODO(synk): at real detection resolutions add H row-block tiling with a
        # halo and set vmem_limit_bytes (v7x has only 64 MiB VMEM).
    )(x, kp['w_sh'], kp['sc_sh'], kp['bi_sh'], kp['w_fc1'], kp['w_fc2'],
      kp['w_sa'], kp['w_br'], kp['sc_br'], kp['bi_br'], kp['w_hd'], kp['b_hd'])

    out = out.reshape(B, nout, H, W)                 # already NCHW channel-major
    return out[:, :num_classes], out[:, num_classes:]


def pack_params(p, num_classes):
    """Repack torch-style params into the fused kernel's layouts (host side, once)."""
    def im2col_w(w):   # HWIO (kh,kw,ci,co) -> (kw*kh*ci, co); matches _im2col (dx,dy,c) order
        kh, kw, ci, co = w.shape
        return jnp.transpose(w, (1, 0, 2, 3)).reshape(kh * kw * ci, co)

    C = p['w_shared'].shape[-1]
    ncls = num_classes
    nout = ncls + 5

    w_hd = jnp.zeros((2 * C, nout), jnp.float32)          # block-diagonal merged 1x1 heads
    w_hd = w_hd.at[:C, :ncls].set(p['w_cls2'])
    w_hd = w_hd.at[C:, ncls:].set(p['w_reg2'])

    return {
        'w_sh':  im2col_w(p['w_shared']),                                        # (9*Cin, C)
        'sc_sh': p['scale_shared'].reshape(1, C),
        'bi_sh': p['bias_shared'].reshape(1, C),
        'w_fc1': p['w_fc1'],                                                     # (C, C//r)
        'w_fc2': p['w_fc2'],                                                     # (C//r, C)
        'w_sa':  im2col_w(p['w_sa']),                                            # (98, 1)
        'w_br':  jnp.concatenate([im2col_w(p['w_cls1']), im2col_w(p['w_reg1'])], axis=1),  # (9C, 2C)
        'sc_br': jnp.concatenate([p['scale_cls'], p['scale_reg']]).reshape(1, 2 * C),
        'bi_br': jnp.concatenate([p['bias_cls'], p['bias_reg']]).reshape(1, 2 * C),
        'w_hd':  w_hd.T,                                                         # (ncls+5, 2C)
        'b_hd':  jnp.concatenate([p['b_cls2'], p['b_reg2']]).reshape(nout, 1),
    }


def init_params(key, in_channels, num_classes, conv_channels, reduction):
    eps = 1e-5
    keys = iter(jax.random.split(key, 32))
    nk = lambda: next(keys)

    def bn_fold(C):  # eval-mode BatchNorm folded into scale/bias
        gamma = 1.0 + 0.1 * jax.random.normal(nk(), (C,), jnp.float32)
        beta = 0.1 * jax.random.normal(nk(), (C,), jnp.float32)
        mean = 0.1 * jax.random.normal(nk(), (C,), jnp.float32)
        var = 1.0 + 0.1 * jnp.abs(jax.random.normal(nk(), (C,), jnp.float32))
        scale = gamma / jnp.sqrt(var + eps)
        return scale, beta - mean * scale

    C = conv_channels
    p = {}
    p['w_shared'] = 0.1 * jax.random.normal(nk(), (3, 3, in_channels, C), jnp.float32)
    p['scale_shared'], p['bias_shared'] = bn_fold(C)
    p['w_fc1'] = 0.1 * jax.random.normal(nk(), (C, C // reduction), jnp.float32)
    p['w_fc2'] = 0.1 * jax.random.normal(nk(), (C // reduction, C), jnp.float32)
    p['w_sa'] = 0.1 * jax.random.normal(nk(), (7, 7, 2, 1), jnp.float32)
    p['w_cls1'] = 0.05 * jax.random.normal(nk(), (3, 3, C, C), jnp.float32)
    p['scale_cls'], p['bias_cls'] = bn_fold(C)
    p['w_cls2'] = 0.1 * jax.random.normal(nk(), (C, num_classes), jnp.float32)
    p['b_cls2'] = 0.1 * jax.random.normal(nk(), (num_classes,), jnp.float32)
    p['w_reg1'] = 0.05 * jax.random.normal(nk(), (3, 3, C, C), jnp.float32)
    p['scale_reg'], p['bias_reg'] = bn_fold(C)
    p['w_reg2'] = 0.1 * jax.random.normal(nk(), (C, 5), jnp.float32)
    p['b_reg2'] = 0.1 * jax.random.normal(nk(), (5,), jnp.float32)
    return p


# ------------------------------ pure-JAX reference --------------------------

def _ref_conv(x, w, pad):
    return jax.lax.conv_general_dilated(
        x, w, window_strides=(1, 1), padding=((pad, pad), (pad, pad)),
        dimension_numbers=('NHWC', 'HWIO', 'NHWC'),
        precision=jax.lax.Precision.HIGHEST)


def reference_forward(x_nchw, p):
    hp = jax.lax.Precision.HIGHEST
    x = jnp.transpose(x_nchw, (0, 2, 3, 1)).astype(jnp.float32)

    def cbr(h, w, scale, bias):
        return jnp.maximum(_ref_conv(h, w, 1) * scale + bias, 0.0)

    s = cbr(x, p['w_shared'], p['scale_shared'], p['bias_shared'])
    avg = jnp.mean(s, axis=(1, 2))
    mx = jnp.max(s, axis=(1, 2))

    def mlp(v):
        h = jnp.maximum(jnp.dot(v, p['w_fc1'], precision=hp), 0.0)
        return jnp.dot(h, p['w_fc2'], precision=hp)

    ca = jax.nn.sigmoid(mlp(avg) + mlp(mx))
    s1 = s * ca[:, None, None, :]
    am = jnp.mean(s1, axis=3, keepdims=True)
    mm = jnp.max(s1, axis=3, keepdims=True)
    sp = jnp.concatenate([am, mm], axis=3)
    sa = jax.nn.sigmoid(_ref_conv(sp, p['w_sa'], 3))
    a = s1 * sa

    def branch(h, w1, sc, bi, w2, b2):
        h = cbr(h, w1, sc, bi)
        return jnp.einsum('bhwc,cd->bhwd', h, w2, precision=hp) + b2

    cls_out = branch(a, p['w_cls1'], p['scale_cls'], p['bias_cls'],
                     p['w_cls2'], p['b_cls2'])
    reg_out = branch(a, p['w_reg1'], p['scale_reg'], p['bias_reg'],
                     p['w_reg2'], p['b_reg2'])
    return (jnp.transpose(cls_out, (0, 3, 1, 2)),
            jnp.transpose(reg_out, (0, 3, 1, 2)))


# ----------------------------------- main ------------------------------------

if __name__ == "__main__":
    B, Cin, H, W = 2, 4, 16, 16
    num_classes, conv_channels, reduction = 3, 32, 8

    key = jax.random.PRNGKey(0)
    kx, kparam = jax.random.split(key)
    x = jax.random.normal(kx, (B, Cin, H, W), jnp.float32)
    params = init_params(kparam, Cin, num_classes, conv_channels, reduction)
    kernel_params = pack_params(params, num_classes)

    cls_out, reg_out = detection_head_forward(x, kernel_params,
                                              num_classes=num_classes)
    (cls_out, reg_out) = jax.block_until_ready((cls_out, reg_out))

    assert cls_out.shape == (B, num_classes, H, W)
    assert reg_out.shape == (B, 5, H, W)

    cls_ref, reg_ref = reference_forward(x, params)
    np.testing.assert_allclose(np.asarray(cls_out), np.asarray(cls_ref),
                               atol=2e-2, rtol=2e-2)
    np.testing.assert_allclose(np.asarray(reg_out), np.asarray(reg_ref),
                               atol=2e-2, rtol=2e-2)

    print("KERNEL_OK")
</pallas_src>

<mosaic_0001>
module attributes {stable_mosaic.version = 11 : i64} {
  func.func @_det_head_kernel(%arg0: i32, %arg1: memref<1x16x16x4xf32, #tpu.memory_space<vmem>>, %arg2: memref<36x32xf32, #tpu.memory_space<vmem>>, %arg3: memref<1x32xf32, #tpu.memory_space<vmem>>, %arg4: memref<1x32xf32, #tpu.memory_space<vmem>>, %arg5: memref<32x4xf32, #tpu.memory_space<vmem>>, %arg6: memref<4x32xf32, #tpu.memory_space<vmem>>, %arg7: memref<98x1xf32, #tpu.memory_space<vmem>>, %arg8: memref<288x64xf32, #tpu.memory_space<vmem>>, %arg9: memref<1x64xf32, #tpu.memory_space<vmem>>, %arg10: memref<1x64xf32, #tpu.memory_space<vmem>>, %arg11: memref<8x64xf32, #tpu.memory_space<vmem>>, %arg12: memref<8x1xf32, #tpu.memory_space<vmem>>, %arg13: memref<1x8x256xf32, #tpu.memory_space<vmem>>) attributes {dimension_semantics = [#tpu.dimension_semantics<parallel>], iteration_bounds = array<i64: 2>, scalar_prefetch = 0 : i64, scratch_operands = 0 : i64, tpu.core_type = #tpu.core_type<tc>, window_params = [{transform_indices = @transform_0, window_bounds = array<i64: 1, 16, 16, 4>}, {pipeline_mode = #tpu.pipeline_mode<synchronous>, transform_indices = @transform_1, window_bounds = array<i64: 36, 32>}, {pipeline_mode = #tpu.pipeline_mode<synchronous>, transform_indices = @transform_2, window_bounds = array<i64: 1, 32>}, {pipeline_mode = #tpu.pipeline_mode<synchronous>, transform_indices = @transform_3, window_bounds = array<i64: 1, 32>}, {pipeline_mode = #tpu.pipeline_mode<synchronous>, transform_indices = @transform_4, window_bounds = array<i64: 32, 4>}, {pipeline_mode = #tpu.pipeline_mode<synchronous>, transform_indices = @transform_5, window_bounds = array<i64: 4, 32>}, {pipeline_mode = #tpu.pipeline_mode<synchronous>, transform_indices = @transform_6, window_bounds = array<i64: 98, 1>}, {pipeline_mode = #tpu.pipeline_mode<synchronous>, transform_indices = @transform_7, window_bounds = array<i64: 288, 64>}, {pipeline_mode = #tpu.pipeline_mode<synchronous>, transform_indices = @transform_8, window_bounds = array<i64: 1, 64>}, {pipeline_mode = #tpu.pipeline_mode<synchronous>, transform_indices = @transform_9, window_bounds = array<i64: 1, 64>}, {pipeline_mode = #tpu.pipeline_mode<synchronous>, transform_indices = @transform_10, window_bounds = array<i64: 8, 64>}, {pipeline_mode = #tpu.pipeline_mode<synchronous>, transform_indices = @transform_11, window_bounds = array<i64: 8, 1>}, {transform_indices = @transform_12, window_bounds = array<i64: 1, 8, 256>}]} {
    %c0 = arith.constant 0 : index
    %c0_0 = arith.constant 0 : index
    %c0_1 = arith.constant 0 : index
    %c0_2 = arith.constant 0 : index
    %0 = vector.load %arg1[%c0, %c0_0, %c0_1, %c0_2] : memref<1x16x16x4xf32, #tpu.memory_space<vmem>>, vector<1x16x16x4xf32>
    %1 = vector.shape_cast %0 : vector<1x16x16x4xf32> to vector<16x16x4xf32>
    %cst = arith.constant 0.000000e+00 : f32
    %2 = vector.broadcast %cst : f32 to vector<1x16x4xf32>
    %3 = tpu.concatenate %2, %1, %2 in 0 : vector<1x16x4xf32>, vector<16x16x4xf32>, vector<1x16x4xf32> -> vector<18x16x4xf32>
    %cst_3 = arith.constant 0.000000e+00 : f32
    %4 = vector.broadcast %cst_3 : f32 to vector<18x1x4xf32>
    %5 = tpu.concatenate %4, %3, %4 in 1 : vector<18x1x4xf32>, vector<18x16x4xf32>, vector<18x1x4xf32> -> vector<18x18x4xf32>
    %6 = vector.extract_strided_slice %5 {offsets = [0, 0, 0], sizes = [16, 18, 4], strides = [1, 1, 1]} : vector<18x18x4xf32> to vector<16x18x4xf32>
    %7 = vector.extract_strided_slice %5 {offsets = [1, 0, 0], sizes = [16, 18, 4], strides = [1, 1, 1]} : vector<18x18x4xf32> to vector<16x18x4xf32>
    %8 = vector.extract_strided_slice %5 {offsets = [2, 0, 0], sizes = [16, 18, 4], strides = [1, 1, 1]} : vector<18x18x4xf32> to vector<16x18x4xf32>
    %9 = tpu.concatenate %6, %7, %8 in 2 : vector<16x18x4xf32>, vector<16x18x4xf32>, vector<16x18x4xf32> -> vector<16x18x12xf32>
    %10 = vector.extract_strided_slice %9 {offsets = [0, 0, 0], sizes = [16, 16, 12], strides = [1, 1, 1]} : vector<16x18x12xf32> to vector<16x16x12xf32>
    %11 = vector.extract_strided_slice %9 {offsets = [0, 1, 0], sizes = [16, 16, 12], strides = [1, 1, 1]} : vector<16x18x12xf32> to vector<16x16x12xf32>
    %12 = vector.extract_strided_slice %9 {offsets = [0, 2, 0], sizes = [16, 16, 12], strides = [1, 1, 1]} : vector<16x18x12xf32> to vector<16x16x12xf32>
    %13 = tpu.concatenate %10, %11, %12 in 2 : vector<16x16x12xf32>, vector<16x16x12xf32>, vector<16x16x12xf32> -> vector<16x16x36xf32>
    %14 = vector.shape_cast %13 : vector<16x16x36xf32> to vector<256x36xf32>
    %c0_4 = arith.constant 0 : index
    %c0_5 = arith.constant 0 : index
    %15 = vector.load %arg2[%c0_4, %c0_5] : memref<36x32xf32, #tpu.memory_space<vmem>>, vector<36x32xf32>
    %cst_6 = arith.constant dense<0.000000e+00> : vector<256x32xf32>
    %16 = tpu.matmul %14, %15, %cst_6 {dimension_numbers = #tpu.dot_dimension_numbers<[1], [0], [0], [1], [0, 0, 1, 1], [], []>} : vector<256x36xf32>, vector<36x32xf32>, vector<256x32xf32> -> vector<256x32xf32>
    %c0_7 = arith.constant 0 : index
    %c0_8 = arith.constant 0 : index
    %17 = vector.load %arg3[%c0_7, %c0_8] : memref<1x32xf32, #tpu.memory_space<vmem>>, vector<1x32xf32>
    %18 = vector.broadcast %17 : vector<1x32xf32> to vector<256x32xf32>
    %19 = arith.mulf %16, %18 : vector<256x32xf32>
    %c0_9 = arith.constant 0 : index
    %c0_10 = arith.constant 0 : index
    %20 = vector.load %arg4[%c0_9, %c0_10] : memref<1x32xf32, #tpu.memory_space<vmem>>, vector<1x32xf32>
    %21 = vector.broadcast %20 : vector<1x32xf32> to vector<256x32xf32>
    %22 = arith.addf %19, %21 : vector<256x32xf32>
    %cst_11 = arith.constant 0.000000e+00 : f32
    %23 = vector.broadcast %cst_11 : f32 to vector<256x32xf32>
    %24 = arith.maximumf %22, %23 : vector<256x32xf32>
    %cst_12 = arith.constant dense<0.000000e+00> : vector<32xf32>
    %25 = vector.multi_reduction <add>, %24, %cst_12 [0] : vector<256x32xf32> to vector<32xf32>
    %26 = vector.shape_cast %25 : vector<32xf32> to vector<1x32xf32>
    %cst_13 = arith.constant 2.560000e+02 : f32
    %27 = vector.broadcast %cst_13 : f32 to vector<1x32xf32>
    %28 = arith.divf %26, %27 : vector<1x32xf32>
    %cst_14 = arith.constant dense<0xFF800000> : vector<32xf32>
    %29 = vector.multi_reduction <maximumf>, %24, %cst_14 [0] : vector<256x32xf32> to vector<32xf32>
    %30 = vector.shape_cast %29 : vector<32xf32> to vector<1x32xf32>
    %31 = tpu.concatenate %28, %30 in 0 : vector<1x32xf32>, vector<1x32xf32> -> vector<2x32xf32>
    %c0_15 = arith.constant 0 : index
    %c0_16 = arith.constant 0 : index
    %32 = vector.load %arg5[%c0_15, %c0_16] : memref<32x4xf32, #tpu.memory_space<vmem>>, vector<32x4xf32>
    %cst_17 = arith.constant dense<0.000000e+00> : vector<2x4xf32>
    %33 = tpu.matmul %31, %32, %cst_17 {dimension_numbers = #tpu.dot_dimension_numbers<[1], [0], [0], [1], [0, 0, 1, 1], [], []>} : vector<2x32xf32>, vector<32x4xf32>, vector<2x4xf32> -> vector<2x4xf32>
    %cst_18 = arith.constant 0.000000e+00 : f32
    %34 = vector.broadcast %cst_18 : f32 to vector<2x4xf32>
    %35 = arith.maximumf %33, %34 : vector<2x4xf32>
    %c0_19 = arith.constant 0 : index
    %c0_20 = arith.constant 0 : index
    %36 = vector.load %arg6[%c0_19, %c0_20] : memref<4x32xf32, #tpu.memory_space<vmem>>, vector<4x32xf32>
    %cst_21 = arith.constant dense<0.000000e+00> : vector<2x32xf32>
    %37 = tpu.matmul %35, %36, %cst_21 {dimension_numbers = #tpu.dot_dimension_numbers<[1], [0], [0], [1], [0, 0, 1, 1], [], []>} : vector<2x4xf32>, vector<4x32xf32>, vector<2x32xf32> -> vector<2x32xf32>
    %38 = vector.extract_strided_slice %37 {offsets = [0, 0], sizes = [1, 32], strides = [1, 1]} : vector<2x32xf32> to vector<1x32xf32>
    %39 = vector.extract_strided_slice %37 {offsets = [1, 0], sizes = [1, 32], strides = [1, 1]} : vector<2x32xf32> to vector<1x32xf32>
    %40 = arith.addf %38, %39 : vector<1x32xf32>
    %41 = arith.negf %40 : vector<1x32xf32>
    %42 = math.exp %41 : vector<1x32xf32>
    %cst_22 = arith.constant 1.000000e+00 : f32
    %43 = vector.broadcast %cst_22 : f32 to vector<1x32xf32>
    %44 = arith.addf %43, %42 : vector<1x32xf32>
    %45 = arith.divf %43, %44 : vector<1x32xf32>
    %46 = vector.broadcast %45 : vector<1x32xf32> to vector<256x32xf32>
    %47 = arith.mulf %24, %46 : vector<256x32xf32>
    %cst_23 = arith.constant dense<0.000000e+00> : vector<256xf32>
    %48 = vector.multi_reduction <add>, %47, %cst_23 [1] : vector<256x32xf32> to vector<256xf32>
    %49 = vector.shape_cast %48 : vector<256xf32> to vector<256x1xf32>
    %cst_24 = arith.constant 3.200000e+01 : f32
    %50 = vector.broadcast %cst_24 : f32 to vector<256x1xf32>
    %51 = arith.divf %49, %50 : vector<256x1xf32>
    %cst_25 = arith.constant dense<0xFF800000> : vector<256xf32>
    %52 = vector.multi_reduction <maximumf>, %47, %cst_25 [1] : vector<256x32xf32> to vector<256xf32>
    %53 = vector.shape_cast %52 : vector<256xf32> to vector<256x1xf32>
    %54 = tpu.concatenate %51, %53 in 1 : vector<256x1xf32>, vector<256x1xf32> -> vector<256x2xf32>
    %55 = vector.shape_cast %54 : vector<256x2xf32> to vector<16x16x2xf32>
    %cst_26 = arith.constant 0.000000e+00 : f32
    %56 = vector.broadcast %cst_26 : f32 to vector<3x16x2xf32>
    %57 = tpu.concatenate %56, %55, %56 in 0 : vector<3x16x2xf32>, vector<16x16x2xf32>, vector<3x16x2xf32> -> vector<22x16x2xf32>
    %cst_27 = arith.constant 0.000000e+00 : f32
    %58 = vector.broadcast %cst_27 : f32 to vector<22x3x2xf32>
    %59 = tpu.concatenate %58, %57, %58 in 1 : vector<22x3x2xf32>, vector<22x16x2xf32>, vector<22x3x2xf32> -> vector<22x22x2xf32>
    %60 = vector.extract_strided_slice %59 {offsets = [0, 0, 0], sizes = [16, 22, 2], strides = [1, 1, 1]} : vector<22x22x2xf32> to vector<16x22x2xf32>
    %61 = vector.extract_strided_slice %59 {offsets = [1, 0, 0], sizes = [16, 22, 2], strides = [1, 1, 1]} : vector<22x22x2xf32> to vector<16x22x2xf32>
    %62 = vector.extract_strided_slice %59 {offsets = [2, 0, 0], sizes = [16, 22, 2], strides = [1, 1, 1]} : vector<22x22x2xf32> to vector<16x22x2xf32>
    %63 = vector.extract_strided_slice %59 {offsets = [3, 0, 0], sizes = [16, 22, 2], strides = [1, 1, 1]} : vector<22x22x2xf32> to vector<16x22x2xf32>
    %64 = vector.extract_strided_slice %59 {offsets = [4, 0, 0], sizes = [16, 22, 2], strides = [1, 1, 1]} : vector<22x22x2xf32> to vector<16x22x2xf32>
    %65 = vector.extract_strided_slice %59 {offsets = [5, 0, 0], sizes = [16, 22, 2], strides = [1, 1, 1]} : vector<22x22x2xf32> to vector<16x22x2xf32>
    %66 = vector.extract_strided_slice %59 {offsets = [6, 0, 0], sizes = [16, 22, 2], strides = [1, 1, 1]} : vector<22x22x2xf32> to vector<16x22x2xf32>
    %67 = tpu.concatenate %60, %61, %62, %63, %64, %65, %66 in 2 : vector<16x22x2xf32>, vector<16x22x2xf32>, vector<16x22x2xf32>, vector<16x22x2xf32>, vector<16x22x2xf32>, vector<16x22x2xf32>, vector<16x22x2xf32> -> vector<16x22x14xf32>
    %68 = vector.extract_strided_slice %67 {offsets = [0, 0, 0], sizes = [16, 16, 14], strides = [1, 1, 1]} : vector<16x22x14xf32> to vector<16x16x14xf32>
    %69 = vector.extract_strided_slice %67 {offsets = [0, 1, 0], sizes = [16, 16, 14], strides = [1, 1, 1]} : vector<16x22x14xf32> to vector<16x16x14xf32>
    %70 = vector.extract_strided_slice %67 {offsets = [0, 2, 0], sizes = [16, 16, 14], strides = [1, 1, 1]} : vector<16x22x14xf32> to vector<16x16x14xf32>
    %71 = vector.extract_strided_slice %67 {offsets = [0, 3, 0], sizes = [16, 16, 14], strides = [1, 1, 1]} : vector<16x22x14xf32> to vector<16x16x14xf32>
    %72 = vector.extract_strided_slice %67 {offsets = [0, 4, 0], sizes = [16, 16, 14], strides = [1, 1, 1]} : vector<16x22x14xf32> to vector<16x16x14xf32>
    %73 = vector.extract_strided_slice %67 {offsets = [0, 5, 0], sizes = [16, 16, 14], strides = [1, 1, 1]} : vector<16x22x14xf32> to vector<16x16x14xf32>
    %74 = vector.extract_strided_slice %67 {offsets = [0, 6, 0], sizes = [16, 16, 14], strides = [1, 1, 1]} : vector<16x22x14xf32> to vector<16x16x14xf32>
    %75 = tpu.concatenate %68, %69, %70, %71, %72, %73, %74 in 2 : vector<16x16x14xf32>, vector<16x16x14xf32>, vector<16x16x14xf32>, vector<16x16x14xf32>, vector<16x16x14xf32>, vector<16x16x14xf32>, vector<16x16x14xf32> -> vector<16x16x98xf32>
    %76 = vector.shape_cast %75 : vector<16x16x98xf32> to vector<256x98xf32>
    %c0_28 = arith.constant 0 : index
    %c0_29 = arith.constant 0 : index
    %77 = vector.load %arg7[%c0_28, %c0_29] : memref<98x1xf32, #tpu.memory_space<vmem>>, vector<98x1xf32>
    %cst_30 = arith.constant dense<0.000000e+00> : vector<256x1xf32>
    %78 = tpu.matmul %76, %77, %cst_30 {dimension_numbers = #tpu.dot_dimension_numbers<[1], [0], [0], [1], [0, 0, 1, 1], [], []>} : vector<256x98xf32>, vector<98x1xf32>, vector<256x1xf32> -> vector<256x1xf32>
    %79 = arith.negf %78 : vector<256x1xf32>
    %80 = math.exp %79 : vector<256x1xf32>
    %cst_31 = arith.constant 1.000000e+00 : f32
    %81 = vector.broadcast %cst_31 : f32 to vector<256x1xf32>
    %82 = arith.addf %81, %80 : vector<256x1xf32>
    %83 = arith.divf %81, %82 : vector<256x1xf32>
    %84 = vector.broadcast %83 : vector<256x1xf32> to vector<256x32xf32>
    %85 = arith.mulf %47, %84 : vector<256x32xf32>
    %86 = vector.shape_cast %85 : vector<256x32xf32> to vector<16x16x32xf32>
    %cst_32 = arith.constant 0.000000e+00 : f32
    %87 = vector.broadcast %cst_32 : f32 to vector<1x16x32xf32>
    %88 = tpu.concatenate %87, %86, %87 in 0 : vector<1x16x32xf32>, vector<16x16x32xf32>, vector<1x16x32xf32> -> vector<18x16x32xf32>
    %cst_33 = arith.constant 0.000000e+00 : f32
    %89 = vector.broadcast %cst_33 : f32 to vector<18x1x32xf32>
    %90 = tpu.concatenate %89, %88, %89 in 1 : vector<18x1x32xf32>, vector<18x16x32xf32>, vector<18x1x32xf32> -> vector<18x18x32xf32>
    %91 = vector.extract_strided_slice %90 {offsets = [0, 0, 0], sizes = [16, 18, 32], strides = [1, 1, 1]} : vector<18x18x32xf32> to vector<16x18x32xf32>
    %92 = vector.extract_strided_slice %90 {offsets = [1, 0, 0], sizes = [16, 18, 32], strides = [1, 1, 1]} : vector<18x18x32xf32> to vector<16x18x32xf32>
    %93 = vector.extract_strided_slice %90 {offsets = [2, 0, 0], sizes = [16, 18, 32], strides = [1, 1, 1]} : vector<18x18x32xf32> to vector<16x18x32xf32>
    %94 = tpu.concatenate %91, %92, %93 in 2 : vector<16x18x32xf32>, vector<16x18x32xf32>, vector<16x18x32xf32> -> vector<16x18x96xf32>
    %95 = vector.extract_strided_slice %94 {offsets = [0, 0, 0], sizes = [16, 16, 96], strides = [1, 1, 1]} : vector<16x18x96xf32> to vector<16x16x96xf32>
    %96 = vector.extract_strided_slice %94 {offsets = [0, 1, 0], sizes = [16, 16, 96], strides = [1, 1, 1]} : vector<16x18x96xf32> to vector<16x16x96xf32>
    %97 = vector.extract_strided_slice %94 {offsets = [0, 2, 0], sizes = [16, 16, 96], strides = [1, 1, 1]} : vector<16x18x96xf32> to vector<16x16x96xf32>
    %98 = tpu.concatenate %95, %96, %97 in 2 : vector<16x16x96xf32>, vector<16x16x96xf32>, vector<16x16x96xf32> -> vector<16x16x288xf32>
    %99 = vector.shape_cast %98 : vector<16x16x288xf32> to vector<256x288xf32>
    %c0_34 = arith.constant 0 : index
    %c0_35 = arith.constant 0 : index
    %100 = vector.load %arg8[%c0_34, %c0_35] : memref<288x64xf32, #tpu.memory_space<vmem>>, vector<288x64xf32>
    %cst_36 = arith.constant dense<0.000000e+00> : vector<256x64xf32>
    %101 = tpu.matmul %99, %100, %cst_36 {dimension_numbers = #tpu.dot_dimension_numbers<[1], [0], [0], [1], [0, 0, 1, 1], [], []>} : vector<256x288xf32>, vector<288x64xf32>, vector<256x64xf32> -> vector<256x64xf32>
    %c0_37 = arith.constant 0 : index
    %c0_38 = arith.constant 0 : index
    %102 = vector.load %arg9[%c0_37, %c0_38] : memref<1x64xf32, #tpu.memory_space<vmem>>, vector<1x64xf32>
    %103 = vector.broadcast %102 : vector<1x64xf32> to vector<256x64xf32>
    %104 = arith.mulf %101, %103 : vector<256x64xf32>
    %c0_39 = arith.constant 0 : index
    %c0_40 = arith.constant 0 : index
    %105 = vector.load %arg10[%c0_39, %c0_40] : memref<1x64xf32, #tpu.memory_space<vmem>>, vector<1x64xf32>
    %106 = vector.broadcast %105 : vector<1x64xf32> to vector<256x64xf32>
    %107 = arith.addf %104, %106 : vector<256x64xf32>
    %cst_41 = arith.constant 0.000000e+00 : f32
    %108 = vector.broadcast %cst_41 : f32 to vector<256x64xf32>
    %109 = arith.maximumf %107, %108 : vector<256x64xf32>
    %c0_42 = arith.constant 0 : index
    %c0_43 = arith.constant 0 : index
    %110 = vector.load %arg11[%c0_42, %c0_43] : memref<8x64xf32, #tpu.memory_space<vmem>>, vector<8x64xf32>
    %cst_44 = arith.constant dense<0.000000e+00> : vector<8x256xf32>
    %111 = tpu.matmul %110, %109, %cst_44 {dimension_numbers = #tpu.dot_dimension_numbers<[1], [1], [0], [0], [0, 0, 1, 0], [], []>} : vector<8x64xf32>, vector<256x64xf32>, vector<8x256xf32> -> vector<8x256xf32>
    %c0_45 = arith.constant 0 : index
    %c0_46 = arith.constant 0 : index
    %112 = vector.load %arg12[%c0_45, %c0_46] : memref<8x1xf32, #tpu.memory_space<vmem>>, vector<8x1xf32>
    %113 = vector.broadcast %112 : vector<8x1xf32> to vector<8x256xf32>
    %114 = arith.addf %111, %113 : vector<8x256xf32>
    %c0_47 = arith.constant 0 : index
    %c0_48 = arith.constant 0 : index
    %c0_49 = arith.constant 0 : index
    %115 = vector.load %arg13[%c0_47, %c0_48, %c0_49] : memref<1x8x256xf32, #tpu.memory_space<vmem>>, vector<1x8x256xf32>
    %116 = vector.shape_cast %115 : vector<1x8x256xf32> to vector<8x256xf32>
    %117 = vector.shape_cast %114 : vector<8x256xf32> to vector<1x8x256xf32>
    tpu.vector_store %arg13[%c0_47, %c0_48, %c0_49], %117 {strides = array<i32>} : memref<1x8x256xf32, #tpu.memory_space<vmem>>, vector<1x8x256xf32>,
    return
  }
  func.func @transform_0(%arg0: i32) -> (i32, i32, i32, i32) {
    %c0_i32 = arith.constant 0 : i32
    %c0_i32_0 = arith.constant 0 : i32
    %c0_i32_1 = arith.constant 0 : i32
    %c0_i32_2 = arith.constant 0 : i32
    return %arg0, %c0_i32, %c0_i32_0, %c0_i32_1 : i32, i32, i32, i32
  }
  func.func @transform_1(%arg0: i32) -> (i32, i32) {
    %c0_i32 = arith.constant 0 : i32
    %c0_i32_0 = arith.constant 0 : i32
    %c0_i32_1 = arith.constant 0 : i32
    return %c0_i32, %c0_i32_0 : i32, i32
  }
  func.func @transform_2(%arg0: i32) -> (i32, i32) {
    %c0_i32 = arith.constant 0 : i32
    %c0_i32_0 = arith.constant 0 : i32
    %c0_i32_1 = arith.constant 0 : i32
    return %c0_i32, %c0_i32_0 : i32, i32
  }
  func.func @transform_3(%arg0: i32) -> (i32, i32) {
    %c0_i32 = arith.constant 0 : i32
    %c0_i32_0 = arith.constant 0 : i32
    %c0_i32_1 = arith.constant 0 : i32
    return %c0_i32, %c0_i32_0 : i32, i32
  }
  func.func @transform_4(%arg0: i32) -> (i32, i32) {
    %c0_i32 = arith.constant 0 : i32
    %c0_i32_0 = arith.constant 0 : i32
    %c0_i32_1 = arith.constant 0 : i32
    return %c0_i32, %c0_i32_0 : i32, i32
  }
  func.func @transform_5(%arg0: i32) -> (i32, i32) {
    %c0_i32 = arith.constant 0 : i32
    %c0_i32_0 = arith.constant 0 : i32
    %c0_i32_1 = arith.constant 0 : i32
    return %c0_i32, %c0_i32_0 : i32, i32
  }
  func.func @transform_6(%arg0: i32) -> (i32, i32) {
    %c0_i32 = arith.constant 0 : i32
    %c0_i32_0 = arith.constant 0 : i32
    %c0_i32_1 = arith.constant 0 : i32
    return %c0_i32, %c0_i32_0 : i32, i32
  }
  func.func @transform_7(%arg0: i32) -> (i32, i32) {
    %c0_i32 = arith.constant 0 : i32
    %c0_i32_0 = arith.constant 0 : i32
    %c0_i32_1 = arith.constant 0 : i32
    return %c0_i32, %c0_i32_0 : i32, i32
  }
  func.func @transform_8(%arg0: i32) -> (i32, i32) {
    %c0_i32 = arith.constant 0 : i32
    %c0_i32_0 = arith.constant 0 : i32
    %c0_i32_1 = arith.constant 0 : i32
    return %c0_i32, %c0_i32_0 : i32, i32
  }
  func.func @transform_9(%arg0: i32) -> (i32, i32) {
    %c0_i32 = arith.constant 0 : i32
    %c0_i32_0 = arith.constant 0 : i32
    %c0_i32_1 = arith.constant 0 : i32
    return %c0_i32, %c0_i32_0 : i32, i32
  }
  func.func @transform_10(%arg0: i32) -> (i32, i32) {
    %c0_i32 = arith.constant 0 : i32
    %c0_i32_0 = arith.constant 0 : i32
    %c0_i32_1 = arith.constant 0 : i32
    return %c0_i32, %c0_i32_0 : i32, i32
  }
  func.func @transform_11(%arg0: i32) -> (i32, i32) {
    %c0_i32 = arith.constant 0 : i32
    %c0_i32_0 = arith.constant 0 : i32
    %c0_i32_1 = arith.constant 0 : i32
    return %c0_i32, %c0_i32_0 : i32, i32
  }
  func.func @transform_12(%arg0: i32) -> (i32, i32, i32) {
    %c0_i32 = arith.constant 0 : i32
    %c0_i32_0 = arith.constant 0 : i32
    %c0_i32_1 = arith.constant 0 : i32
    return %arg0, %c0_i32, %c0_i32_0 : i32, i32, i32
  }
}

</mosaic_0001>

<bundles_post_ra>
// kernel: detection_head_forward.1
= control target key start
LH: loop header
LB: loop body
LE: loop exit
PB: predicated region body
PF: predicated region fallthrough
CT: control target
= control target key end

     0   :  { %s8338_s21 = smov 0   ;;  %s15228_s0 = inlined_call_operand.vmem [shape: f32[2,16,16,4], index: 0, kind: input, shape index: {}]   ;;  %s15229_s1 = inlined_call_operand.vmem [shape: f32[36,32], index: 1, kind: input, shape index: {}]   ;;  %s15230_s2 = inlined_call_operand.vmem [shape: f32[1,32], index: 2, kind: input, shape index: {}]   ;;  %s15231_s3 = inlined_call_operand.vmem [shape: f32[1,32], index: 3, kind: input, shape index: {}]   ;;  %s15232_s4 = inlined_call_operand.vmem [shape: f32[32,4], index: 4, kind: input, shape index: {}]   ;;  %s15233_s5 = inlined_call_operand.vmem [shape: f32[4,32], index: 5, kind: input, shape index: {}]   ;;  %s15234_s6 = inlined_call_operand.vmem [shape: f32[98,1], index: 6, kind: input, shape index: {}]   ;;  %s15235_s7 = inlined_call_operand.vmem [shape: f32[288,64], index: 7, kind: input, shape index: {}]   ;;  %s15236_s8 = inlined_call_operand.vmem [shape: f32[1,64], index: 8, kind: input, shape index: {}]   ;;  %s15237_s9 = inlined_call_operand.vmem [shape: f32[1,64], index: 9, kind: input, shape index: {}]   ;;  %s15238_s10 = inlined_call_operand.vmem [shape: f32[8,64], index: 10, kind: input, shape index: {}]   ;;  %s15239_s11 = inlined_call_operand.vmem [shape: f32[8,1], index: 11, kind: input, shape index: {}]   ;;  %s15240_s12 = inlined_call_operand.vmem [shape: f32[2,8,256], index: 12, kind: output, shape index: {}]  }
   0x1 LB: > { %s7778_s22 = sadd.s32 4294967295, %s8251_s21   ;;  %p7782_p0 = scmp.ge.s32.totalorder %s8251_s21, 1  ;;  %s8251_s21 = sphi %s8338_s21, %s22_s21  }
   0x2   : > { %p362_p1 = scmp.lt.s32.totalorder %s8251_s21, 3 }
   0x4   : > { %p363_p2 = pnand %p7782_p0, %p362_p1 }
   0x6   : > { %366 = sbr.rel (%p363_p2) target bundleno = 3955 (0xf73), region = 68 }
   0xb   : > { %p404_p3 = scmp.lt.s32.totalorder %s7778_s22, 1  ;;  %vm479_vm0 = vcmask 1040384   ;;  %s8253_s27 = smov 4   ;;  %vm2379_vm1 = vcmask 1042432   ;;  %vm935_vm2 = vcmask 31744   ;;  %vm984_vm3 = vcmask 64512  }
   0xc   : > { %s8254_s28 = smov 8   ;;  %vm15386_vm4 = vcmask 1046528   ;;  %s8256_s29 = smov 12   ;;  %vm15387_vm5 = vcmask 1045504   ;;  %vm1603_vm6 = vcmask 1043456   ;;  %vm1435_vm7 = vcmask 97280  }
   0xd   : > { %s16309_s22 = smov (!%p404_p3, %s7778_s22), 1  ;;  %s8257_s30 = smov 24   ;;  %vm1506_vm8 = vcmask 293888   ;;  %vm1468_vm9 = vcmask 195584   ;;  %vm1824_vm10 = vcmask 261120  }
   0xe   : > { %s7957_s23 = sshll.u32 %s16309_s22, 8  ;;  %s8265_s13 = smov 42  }
   0xf   : > { %s8352_s26 = scalar_lea.vmem %s15228_s0, %s7957_s23  ;;  %s8266_s14 = smov 56  }
  0x10   : > { %v416_v0 = vld [vmem:[%s8352_s26 + $0x10] sm:$0xff]  ;;  %v417_v1 = vld [vmem:[%s8352_s26 + $0x18] sm:$0xff]  ;;  %v415_v2 = vld [vmem:[%s8352_s26 + $0x8] sm:$0xff]  ;;  %s8267_s15 = smov 70   ;;  %s8268_s16 = smov 84  }
  0x11   : > { %v485_v3 = vrot.slane %v416_v0, 7  ;;  %v486_v4 = vrot.slane %v417_v1, 7  ;;  %v483_v5 = vrot.slane %v415_v2, 7  ;;  %v414_v6 = vld [vmem:[%s8352_s26] sm:$0xff]  ;;  %v419_v14 = vld [vmem:[%s8352_s26 + $0x28] sm:$0xff]  ;;  %v421_v21 = vld [vmem:[%s8352_s26 + $0x38] sm:$0xff] }
  0x12   : > { %v482_v7 = vrot.slane %v414_v6, 7  ;;  %v418_v15 = vld [vmem:[%s8352_s26 + $0x20] sm:$0xff]  ;;  %v489_v16 = vrot.slane %v419_v14, 7  ;;  %v420_v22 = vld [vmem:[%s8352_s26 + $0x30] sm:$0xff]  ;;  %v492_v23 = vrot.slane %v421_v21, 7  ;;  %v423_v28 = vld [vmem:[%s8352_s26 + $0x48] sm:$0xff] }
  0x13   : > { %v8359_v8 = vsel %vm479_vm0, %v485_v3, %v486_v4  ;;  %v8362_v9 = vsel %vm479_vm0, %v483_v5, 0.0  ;;  %v8374_v11 = vsel %vm479_vm0, %v486_v4, 0.0  ;;  %v8377_v12 = vsel %vm479_vm0, 0.0, %v485_v3  ;;  %v422_v29 = vld [vmem:[%s8352_s26 + $0x40] sm:$0xff]  ;;  %v425_v35 = vld [vmem:[%s8352_s26 + $0x58] sm:$0xff]  ;;  %v424_v36 = vld [vmem:[%s8352_s26 + $0x50] sm:$0xff] }
  0x14   : > { %653 = vrot.lane.b32.xlu2 %v8359_v8, %s8253_s27  ;;  %649 = vrot.lane.b32.xlu1 %v8362_v9, %s8253_s27  ;;  %v8369_v10 = vsel %vm479_vm0, 0.0, %v482_v7  ;;  %v8380_v13 = vsel %vm479_vm0, %v482_v7, %v483_v5  ;;  %v488_v17 = vrot.slane %v418_v15, 7  ;;  %v8391_v18 = vsel %vm479_vm0, %v489_v16, 0.0  ;;  %v427_v42 = vld [vmem:[%s8352_s26 + $0x68] sm:$0xff]  ;;  %v426_v43 = vld [vmem:[%s8352_s26 + $0x60] sm:$0xff] }
  0x15   : > { %645 = vrot.lane.b32.xlu0 %v8369_v10, %s8253_s27  ;;  %v491_v24 = vrot.slane %v420_v22, 7  ;;  %v8408_v25 = vsel %vm479_vm0, %v492_v23, 0.0  ;;  %v495_v30 = vrot.slane %v423_v28, 7  ;;  %v494_v31 = vrot.slane %v422_v29, 7  ;;  %v429_v49 = vld [vmem:[%s8352_s26 + $0x78] sm:$0xff]  ;;  %v428_v50 = vld [vmem:[%s8352_s26 + $0x70] sm:$0xff] }
  0x16   : > { %v8394_v19 = vsel %vm479_vm0, %v488_v17, %v489_v16  ;;  %v8397_v20 = vsel %vm479_vm0, 0.0, %v488_v17  ;;  %v498_v37 = vrot.slane %v425_v35, 7  ;;  %v497_v38 = vrot.slane %v424_v36, 7  ;;  %v431_v56 = vld [vmem:[%s8352_s26 + $0x88] sm:$0xff]  ;;  %v430_v57 = vld [vmem:[%s8352_s26 + $0x80] sm:$0xff]  ;;  %v433_v63 = vld [vmem:[%s8352_s26 + $0x98] sm:$0xff] }
  0x17   : > { %v8411_v26 = vsel %vm479_vm0, %v491_v24, %v492_v23  ;;  %v8414_v27 = vsel %vm479_vm0, 0.0, %v491_v24  ;;  %v8425_v32 = vsel %vm479_vm0, %v495_v30, 0.0  ;;  %v8428_v33 = vsel %vm479_vm0, %v494_v31, %v495_v30  ;;  %v432_v0 = vld [vmem:[%s8352_s26 + $0x90] sm:$0xff]  ;;  %v435_v6 = vld [vmem:[%s8352_s26 + $0xa8] sm:$0xff]  ;;  %v434_v7 = vld [vmem:[%s8352_s26 + $0xa0] sm:$0xff] }
  0x18   : > { %15392 = vst [vmem:[#allocation2_spill] sm:$0xff] %v8411_v26  ;;  %v8431_v34 = vsel %vm479_vm0, 0.0, %v494_v31  ;;  %v8442_v39 = vsel %vm479_vm0, %v498_v37, 0.0  ;;  %v8445_v40 = vsel %vm479_vm0, %v497_v38, %v498_v37  ;;  %v8448_v41 = vsel %vm479_vm0, 0.0, %v497_v38  ;;  %v437_v22 = vld [vmem:[%s8352_s26 + $0xb8] sm:$0xff]  ;;  %v436_v23 = vld [vmem:[%s8352_s26 + $0xb0] sm:$0xff] }
  0x19   : > { %15393 = vst [vmem:[#allocation3_spill] sm:$0xff] %v8414_v27  ;;  %v501_v44 = vrot.slane %v427_v42, 7  ;;  %v500_v45 = vrot.slane %v426_v43, 7  ;;  %v504_v51 = vrot.slane %v429_v49, 7  ;;  %v503_v52 = vrot.slane %v428_v50, 7  ;;  %v439_v35 = vld [vmem:[%s8352_s26 + $0xc8] sm:$0xff] }
  0x1a   : > { %15394 = vst [vmem:[#allocation4_spill] sm:$0xff] %v8428_v33  ;;  %v507_v58 = vrot.slane %v431_v56, 7  ;;  %v506_v59 = vrot.slane %v430_v57, 7  ;;  %v510_v1 = vrot.slane %v433_v63, 7  ;;  %v509_v2 = vrot.slane %v432_v0, 7  ;;  %v438_v36 = vld [vmem:[%s8352_s26 + $0xc0] sm:$0xff] }
  0x1b   : > { %15395 = vst [vmem:[#allocation5_spill] sm:$0xff] %v8431_v34  ;;  %v8459_v46 = vsel %vm479_vm0, %v501_v44, 0.0  ;;  %v8462_v47 = vsel %vm479_vm0, %v500_v45, %v501_v44  ;;  %v8465_v48 = vsel %vm479_vm0, 0.0, %v500_v45  ;;  %v8476_v53 = vsel %vm479_vm0, %v504_v51, 0.0  ;;  %v441_v49 = vld [vmem:[%s8352_s26 + $0xd8] sm:$0xff]  ;;  %v440_v50 = vld [vmem:[%s8352_s26 + $0xd0] sm:$0xff] }
  0x1c   : > { %655 = vrot.lane.b32.xlu2 %v8374_v11, %s8253_s27  ;;  %651 = vrot.lane.b32.xlu1 %v8377_v12, %s8253_s27  ;;  %15396 = vst [vmem:[#allocation6_spill] sm:$0xff] %v8445_v40  ;;  %v8479_v54 = vsel %vm479_vm0, %v503_v52, %v504_v51  ;;  %v8482_v55 = vsel %vm479_vm0, 0.0, %v503_v52  ;;  %v8493_v60 = vsel %vm479_vm0, %v507_v58, 0.0  ;;  %v8496_v61 = vsel %vm479_vm0, %v506_v59, %v507_v58  ;;  %v443_v63 = vld [vmem:[%s8352_s26 + $0xe8] sm:$0xff]  ;;  %v442_v0 = vld [vmem:[%s8352_s26 + $0xe0] sm:$0xff] }
  0x1d   : > { %647 = vrot.lane.b32.xlu0 %v8380_v13, %s8253_s27  ;;  %15397 = vst [vmem:[#allocation7_spill] sm:$0xff] %v8448_v41  ;;  %v8499_v62 = vsel %vm479_vm0, 0.0, %v506_v59  ;;  %v8510_v3 = vsel %vm479_vm0, %v510_v1, 0.0  ;;  %v8513_v4 = vsel %vm479_vm0, %v509_v2, %v510_v1  ;;  %v8516_v5 = vsel %vm479_vm0, 0.0, %v509_v2 }
  0x1e   : > { %15398 = vst [vmem:[#allocation8_spill] sm:$0xff] %v8462_v47  ;;  %v513_v14 = vrot.slane %v435_v6, 7  ;;  %v512_v15 = vrot.slane %v434_v7, 7  ;;  %v516_v24 = vrot.slane %v437_v22, 7  ;;  %v515_v28 = vrot.slane %v436_v23, 7  ;;  %v445_v22 = vld [vmem:[%s8352_s26 + $0xf8] sm:$0xff] }
  0x1f   : > { %15399 = vst [vmem:[#allocation9_spill] sm:$0xff] %v8465_v48  ;;  %v519_v37 = vrot.slane %v439_v35, 7  ;;  %v518_v38 = vrot.slane %v438_v36, 7  ;;  %v522_v51 = vrot.slane %v441_v49, 7  ;;  %v521_v52 = vrot.slane %v440_v50, 7  ;;  %v444_v23 = vld [vmem:[%s8352_s26 + $0xf0] sm:$0xff] }
  0x20   : > { %15400 = vst [vmem:[#allocation10_spill] sm:$0xff] %v8479_v54  ;;  %v8527_v16 = vsel %vm479_vm0, %v513_v14, 0.0  ;;  %v8530_v17 = vsel %vm479_vm0, %v512_v15, %v513_v14  ;;  %v8533_v21 = vsel %vm479_vm0, 0.0, %v512_v15  ;;  %v8544_v29 = vsel %vm479_vm0, %v516_v24, 0.0  ;;  %s8259_s26 = smov 2  }
  0x21   : > { %15401 = vst [vmem:[#allocation11_spill] sm:$0xff] %v8482_v55  ;;  %v8547_v30 = vsel %vm479_vm0, %v515_v28, %v516_v24  ;;  %v8550_v31 = vsel %vm479_vm0, 0.0, %v515_v28  ;;  %v8563_v43 = vsel %vm479_vm0, %v519_v37, 0.0  ;;  %v8566_v44 = vsel %vm479_vm0, %v518_v38, %v519_v37 }
  0x22   : > { %15402 = vst [vmem:[#allocation12_spill] sm:$0xff] %v8496_v61  ;;  %v8569_v45 = vsel %vm479_vm0, 0.0, %v518_v38  ;;  %v8582_v57 = vsel %vm479_vm0, %v522_v51, 0.0  ;;  %v8585_v58 = vsel %vm479_vm0, %v521_v52, %v522_v51  ;;  %v8588_v59 = vsel %vm479_vm0, 0.0, %v521_v52 }
  0x23   : > { %15403 = vst [vmem:[#allocation13_spill] sm:$0xff] %v8499_v62  ;;  %v525_v1 = vrot.slane %v443_v63, 7  ;;  %v524_v2 = vrot.slane %v442_v0, 7  ;;  %v528_v24 = vrot.slane %v445_v22, 7  ;;  %v527_v28 = vrot.slane %v444_v23, 7 }
  0x24   : > { %661 = vrot.lane.b32.xlu2 %v8391_v18, %s8253_s27  ;;  %659 = vrot.lane.b32.xlu1 %v8394_v19, %s8253_s27  ;;  %15404 = vst [vmem:[#allocation14_spill] sm:$0xff] %v8513_v4 }
  0x25   : > { %657 = vrot.lane.b32.xlu0 %v8397_v20, %s8253_s27  ;;  %15405 = vst [vmem:[#allocation15_spill] sm:$0xff] %v8516_v5  ;;  %v8601_v7 = vsel %vm479_vm0, %v525_v1, 0.0  ;;  %v8604_v14 = vsel %vm479_vm0, %v524_v2, %v525_v1  ;;  %v8607_v15 = vsel %vm479_vm0, 0.0, %v524_v2  ;;  %v8624_v38 = vsel %vm479_vm0, %v528_v24, 0.0 }
  0x26   : > { %15406 = vst [vmem:[#allocation16_spill] sm:$0xff] %v8530_v17  ;;  %v8627_v49 = vsel %vm479_vm0, %v527_v28, %v528_v24  ;;  %v8630_v50 = vsel %vm479_vm0, 0.0, %v527_v28 }
  0x27   : > { %15407 = vst [vmem:[#allocation17_spill] sm:$0xff] %v8533_v21 }
  0x28   : > { %15408 = vst [vmem:[#allocation18_spill] sm:$0xff] %v8544_v29 }
  0x29   : > { %15409 = vst [vmem:[#allocation19_spill] sm:$0xff] %v8547_v30 }
  0x2a   : > { %15410 = vst [vmem:[#allocation20_spill] sm:$0xff] %v8563_v43 }
  0x2b   : > { %15411 = vst [vmem:[#allocation21_spill] sm:$0xff] %v8566_v44 }
  0x2c   : > { %667 = vrot.lane.b32.xlu2 %v8408_v25, %s8253_s27  ;;  %665 = vrot.lane.b32.xlu1 %v8411_v26, %s8253_s27  ;;  %15412 = vst [vmem:[#allocation22_spill] sm:$0xff] %v8569_v45 }
  0x2d   : > { %663 = vrot.lane.b32.xlu0 %v8414_v27, %s8253_s27  ;;  %15413 = vst [vmem:[#allocation23_spill] sm:$0xff] %v8582_v57 }
  0x2e   : > { %15414 = vst [vmem:[#allocation24_spill] sm:$0xff] %v8585_v58 }
  0x2f   : > { %15415 = vst [vmem:[#allocation25_spill] sm:$0xff] %v8588_v59 }
  0x30   : > { %15416 = vst [vmem:[#allocation26_spill] sm:$0xff] %v8601_v7 }
  0x31   : > { %15417 = vst [vmem:[#allocation27_spill] sm:$0xff] %v8604_v14 }
  0x32   : > { %15418 = vst [vmem:[#allocation28_spill] sm:$0xff] %v8607_v15 }
  0x34   : > { %673 = vrot.lane.b32.xlu2 %v8425_v32, %s8253_s27  ;;  %671 = vrot.lane.b32.xlu1 %v8428_v33, %s8253_s27 }
  0x35   : > { %669 = vrot.lane.b32.xlu0 %v8431_v34, %s8253_s27 }
  0x3c   : > { %679 = vrot.lane.b32.xlu2 %v8442_v39, %s8253_s27  ;;  %677 = vrot.lane.b32.xlu1 %v8445_v40, %s8253_s27 }
  0x3d   : > { %675 = vrot.lane.b32.xlu0 %v8448_v41, %s8253_s27 }
  0x44   : > { %685 = vrot.lane.b32.xlu2 %v8459_v46, %s8253_s27  ;;  %683 = vrot.lane.b32.xlu1 %v8462_v47, %s8253_s27 }
  0x45   : > { %681 = vrot.lane.b32.xlu0 %v8465_v48, %s8253_s27 }
  0x4c   : > { %691 = vrot.lane.b32.xlu2 %v8476_v53, %s8253_s27  ;;  %689 = vrot.lane.b32.xlu1 %v8479_v54, %s8253_s27 }
  0x4d   : > { %687 = vrot.lane.b32.xlu0 %v8482_v55, %s8253_s27 }
  0x54   : > { %697 = vrot.lane.b32.xlu2 %v8493_v60, %s8253_s27  ;;  %695 = vrot.lane.b32.xlu1 %v8496_v61, %s8253_s27 }
  0x55   : > { %693 = vrot.lane.b32.xlu0 %v8499_v62, %s8253_s27 }
  0x5c   : > { %703 = vrot.lane.b32.xlu2 %v8510_v3, %s8253_s27  ;;  %701 = vrot.lane.b32.xlu1 %v8513_v4, %s8253_s27 }
  0x5d   : > { %699 = vrot.lane.b32.xlu0 %v8516_v5, %s8253_s27 }
  0x64   : > { %709 = vrot.lane.b32.xlu2 %v8527_v16, %s8253_s27  ;;  %707 = vrot.lane.b32.xlu1 %v8530_v17, %s8253_s27 }
  0x65   : > { %705 = vrot.lane.b32.xlu0 %v8533_v21, %s8253_s27 }
  0x6c   : > { %715 = vrot.lane.b32.xlu2 %v8544_v29, %s8253_s27  ;;  %713 = vrot.lane.b32.xlu1 %v8547_v30, %s8253_s27 }
  0x6d   : > { %711 = vrot.lane.b32.xlu0 %v8550_v31, %s8253_s27 }
  0x6e   : > { %v8560_v42 = vpop.permute.xlu2 %653 }
  0x74   : > { %721 = vrot.lane.b32.xlu2 %v8563_v43, %s8253_s27  ;;  %719 = vrot.lane.b32.xlu1 %v8566_v44, %s8253_s27 }
  0x75   : > { %717 = vrot.lane.b32.xlu0 %v8569_v45, %s8253_s27 }
  0x76   : > { %v8579_v56 = vpop.permute.xlu2 %655 }
  0x7c   : > { %727 = vrot.lane.b32.xlu2 %v8582_v57, %s8253_s27  ;;  %725 = vrot.lane.b32.xlu1 %v8585_v58, %s8253_s27 }
  0x7d   : > { %723 = vrot.lane.b32.xlu0 %v8588_v59, %s8253_s27 }
  0x7e   : > { %v8598_v6 = vpop.permute.xlu2 %661 }
  0x84   : > { %733 = vrot.lane.b32.xlu2 %v8601_v7, %s8253_s27  ;;  %731 = vrot.lane.b32.xlu1 %v8604_v14, %s8253_s27 }
  0x85   : > { %729 = vrot.lane.b32.xlu0 %v8607_v15, %s8253_s27 }
  0x86   : > { %v8617_v35 = vpop.permute.xlu2 %667  ;;  %v8619_v36 = vpop.permute.xlu1 %649 }
  0x87   : > { %v8621_v37 = vpop.permute.xlu0 %645 }
  0x8c   : > { %739 = vrot.lane.b32.xlu2 %v8624_v38, %s8253_s27  ;;  %737 = vrot.lane.b32.xlu1 %v8627_v49, %s8253_s27 }
  0x8d   : > { %735 = vrot.lane.b32.xlu0 %v8630_v50, %s8253_s27 }
  0x8e   : > { %v8638_v51 = vpop.permute.xlu2 %673  ;;  %v8640_v52 = vpop.permute.xlu1 %651 }
  0x8f   : > { %15419 = vst [vmem:[#allocation29_spill] sm:$0xff] %v8638_v51  ;;  %v8642_v63 = vpop.permute.xlu0 %647 }
  0x94   : > { %795 = vrot.lane.b32.xlu2 %v8374_v11, %s8254_s28  ;;  %793 = vrot.lane.b32.xlu1 %v8359_v8, %s8254_s28 }
  0x95   : > { %791 = vrot.lane.b32.xlu0 %v8377_v12, %s8254_s28 }
  0x96   : > { %v8650_v0 = vpop.permute.xlu2 %679  ;;  %v8652_v1 = vpop.permute.xlu1 %659 }
  0x97   : > { %15420 = vst [vmem:[#allocation30_spill] sm:$0xff] %v8650_v0  ;;  %v8654_v2 = vpop.permute.xlu0 %657 }
  0x9c   : > { %801 = vrot.lane.b32.xlu2 %v8391_v18, %s8254_s28  ;;  %799 = vrot.lane.b32.xlu1 %v8394_v19, %s8254_s28 }
  0x9d   : > { %797 = vrot.lane.b32.xlu0 %v8397_v20, %s8254_s28 }
  0x9e   : > { %v8662_v22 = vpop.permute.xlu2 %685  ;;  %v8664_v23 = vpop.permute.xlu1 %665 }
  0x9f   : > { %15421 = vst [vmem:[#allocation31_spill] sm:$0xff] %v8662_v22  ;;  %v8666_v24 = vpop.permute.xlu0 %663 }
  0xa4   : > { %807 = vrot.lane.b32.xlu2 %v8408_v25, %s8254_s28  ;;  %805 = vrot.lane.b32.xlu1 %v8411_v26, %s8254_s28 }
  0xa5   : > { %803 = vrot.lane.b32.xlu0 %v8414_v27, %s8254_s28 }
  0xa6   : > { %v8674_v28 = vpop.permute.xlu2 %691  ;;  %v8676_v0 = vpop.permute.xlu1 %671 }
  0xa7   : > { %15422 = vst [vmem:[#allocation32_spill] sm:$0xff] %v8674_v28  ;;  %v8678_v51 = vpop.permute.xlu0 %669 }
  0xac   : > { %813 = vrot.lane.b32.xlu2 %v8425_v32, %s8254_s28  ;;  %811 = vrot.lane.b32.xlu1 %v8428_v33, %s8254_s28 }
  0xad   : > { %809 = vrot.lane.b32.xlu0 %v8431_v34, %s8254_s28 }
  0xae   : > { %v8686_v22 = vpop.permute.xlu2 %697  ;;  %v8688_v26 = vpop.permute.xlu1 %677 }
  0xaf   : > { %15423 = vst [vmem:[#allocation33_spill] sm:$0xff] %v8686_v22  ;;  %v8690_v27 = vpop.permute.xlu0 %675 }
  0xb4   : > { %819 = vrot.lane.b32.xlu2 %v8442_v39, %s8254_s28  ;;  %817 = vrot.lane.b32.xlu1 %v8445_v40, %s8254_s28 }
  0xb5   : > { %815 = vrot.lane.b32.xlu0 %v8448_v41, %s8254_s28 }
  0xb6   : > { %v8698_v28 = vpop.permute.xlu2 %703  ;;  %v8700_v33 = vpop.permute.xlu1 %683 }
  0xb7   : > { %15424 = vst [vmem:[#allocation34_spill] sm:$0xff] %v8698_v28  ;;  %v8702_v34 = vpop.permute.xlu0 %681 }
  0xbc   : > { %825 = vrot.lane.b32.xlu2 %v8459_v46, %s8254_s28  ;;  %823 = vrot.lane.b32.xlu1 %v8462_v47, %s8254_s28 }
  0xbd   : > { %821 = vrot.lane.b32.xlu0 %v8465_v48, %s8254_s28 }
  0xbe   : > { %v8710_v22 = vpop.permute.xlu2 %709  ;;  %v8712_v40 = vpop.permute.xlu1 %689 }
  0xbf   : > { %15425 = vst [vmem:[#allocation35_spill] sm:$0xff] %v8710_v22  ;;  %v8714_v41 = vpop.permute.xlu0 %687 }
  0xc4   : > { %831 = vrot.lane.b32.xlu2 %v8476_v53, %s8254_s28  ;;  %829 = vrot.lane.b32.xlu1 %v8479_v54, %s8254_s28 }
  0xc5   : > { %827 = vrot.lane.b32.xlu0 %v8482_v55, %s8254_s28 }
  0xc6   : > { %v8722_v28 = vpop.permute.xlu2 %715  ;;  %v8724_v47 = vpop.permute.xlu1 %695 }
  0xc7   : > { %15426 = vst [vmem:[#allocation36_spill] sm:$0xff] %v8722_v28  ;;  %v8726_v48 = vpop.permute.xlu0 %693 }
  0xcc   : > { %837 = vrot.lane.b32.xlu2 %v8493_v60, %s8254_s28  ;;  %835 = vrot.lane.b32.xlu1 %v8496_v61, %s8254_s28 }
  0xcd   : > { %833 = vrot.lane.b32.xlu0 %v8499_v62, %s8254_s28 }
  0xce   : > { %v8734_v22 = vpop.permute.xlu2 %721  ;;  %v8736_v54 = vpop.permute.xlu1 %701 }
  0xcf   : > { %15427 = vst [vmem:[#allocation37_spill] sm:$0xff] %v8734_v22  ;;  %v8738_v55 = vpop.permute.xlu0 %699 }
  0xd4   : > { %843 = vrot.lane.b32.xlu2 %v8510_v3, %s8254_s28  ;;  %841 = vrot.lane.b32.xlu1 %v8513_v4, %s8254_s28 }
  0xd5   : > { %839 = vrot.lane.b32.xlu0 %v8516_v5, %s8254_s28 }
  0xd6   : > { %v8746_v28 = vpop.permute.xlu2 %727  ;;  %v8748_v61 = vpop.permute.xlu1 %707 }
  0xd7   : > { %15428 = vst [vmem:[#allocation38_spill] sm:$0xff] %v8746_v28  ;;  %v8750_v62 = vpop.permute.xlu0 %705 }
  0xdc   : > { %849 = vrot.lane.b32.xlu2 %v8527_v16, %s8254_s28  ;;  %847 = vrot.lane.b32.xlu1 %v8530_v17, %s8254_s28 }
  0xdd   : > { %845 = vrot.lane.b32.xlu0 %v8533_v21, %s8254_s28 }
  0xde   : > { %v8758_v22 = vpop.permute.xlu2 %733  ;;  %v8760_v4 = vpop.permute.xlu1 %713 }
  0xdf   : > { %15429 = vst [vmem:[#allocation39_spill] sm:$0xff] %v8758_v22  ;;  %v8762_v5 = vpop.permute.xlu0 %711 }
  0xe4   : > { %855 = vrot.lane.b32.xlu2 %v8544_v29, %s8254_s28  ;;  %853 = vrot.lane.b32.xlu1 %v8547_v30, %s8254_s28 }
  0xe5   : > { %851 = vrot.lane.b32.xlu0 %v8550_v31, %s8254_s28 }
  0xe6   : > { %v8770_v28 = vpop.permute.xlu2 %739  ;;  %v8772_v17 = vpop.permute.xlu1 %719 }
  0xe7   : > { %15430 = vst [vmem:[#allocation40_spill] sm:$0xff] %v8770_v28  ;;  %v8774_v21 = vpop.permute.xlu0 %717 }
  0xec   : > { %861 = vrot.lane.b32.xlu2 %v8563_v43, %s8254_s28  ;;  %859 = vrot.lane.b32.xlu1 %v8566_v44, %s8254_s28 }
  0xed   : > { %857 = vrot.lane.b32.xlu0 %v8569_v45, %s8254_s28 }
  0xee   : > { %v796_v22 = vpop.permute.xlu2 %795  ;;  %v8782_v30 = vpop.permute.xlu1 %725 }
  0xef   : > { %15431 = vst [vmem:[#allocation41_spill] sm:$0xff] %v8782_v30  ;;  %v8784_v29 = vpop.permute.xlu0 %723 }
  0xf0   : > { %15432 = vst [vmem:[#allocation42_spill] sm:$0xff] %v8784_v29 }
  0xf4   : > { %867 = vrot.lane.b32.xlu2 %v8582_v57, %s8254_s28  ;;  %865 = vrot.lane.b32.xlu1 %v8585_v58, %s8254_s28 }
  0xf5   : > { %863 = vrot.lane.b32.xlu0 %v8588_v59, %s8254_s28  ;;  %v8255_v59 = vmov 0.0  }
  0xf6   : > { %v802_v28 = vpop.permute.xlu2 %801  ;;  %v8792_v43 = vpop.permute.xlu1 %731  ;;  %v8806_v29 = vrot.slane %v8255_v59, 7 }
  0xf7   : > { %15433 = vst [vmem:[#allocation43_spill] sm:$0xff] %v8792_v43  ;;  %v8794_v44 = vpop.permute.xlu0 %729  ;;  %v8808_v43 = vrot.slane %v8255_v59, 5 }
  0xf8   : > { %15434 = vst [vmem:[#allocation44_spill] sm:$0xff] %v8794_v44  ;;  %v937_v59 = vsel %vm935_vm2, %v8806_v29, %v8642_v63 }
  0xf9   : > { %15437 = vst [vmem:[#allocation47_spill] sm:$0xff] %v8806_v29 }
  0xfa   : > { %15438 = vst [vmem:[#allocation48_spill] sm:$0xff] %v8808_v43 }
  0xfc   : > { %873 = vrot.lane.b32.xlu2 %v8601_v7, %s8254_s28  ;;  %871 = vrot.lane.b32.xlu1 %v8604_v14, %s8254_s28 }
  0xfd   : > { %869 = vrot.lane.b32.xlu0 %v8607_v15, %s8254_s28  ;;  %v8816_v15 = vsel %vm479_vm0, 0.0, %v8806_v29 }
  0xfe   : > { %v808_v57 = vpop.permute.xlu2 %807  ;;  %v8802_v45 = vpop.permute.xlu1 %737  ;;  %15439 = vst [vmem:[#allocation49_spill] sm:$0xff] %v8816_v15  ;;  %v8845_v30 = vpack.i.bf16 %v8806_v29, %v8816_v15 }
  0xff   : > { %15435 = vst [vmem:[#allocation45_spill] sm:$0xff] %v8802_v45  ;;  %v8804_v58 = vpop.permute.xlu0 %735 }
 0x100   : > { %15436 = vst [vmem:[#allocation46_spill] sm:$0xff] %v8804_v58  ;;  %v8822_v58 = vsel %vm2379_vm1, 0.0, %v8808_v43 }
 0x101   : > { %15440 = vst [vmem:[#allocation50_spill] sm:$0xff] %v8822_v58 }
 0x102   : > { %15442 = vst [vmem:[#allocation52_spill] sm:$0xff] %v8845_v30 }
 0x104   : > { %879 = vrot.lane.b32.xlu2 %v8624_v38, %s8254_s28  ;;  %877 = vrot.lane.b32.xlu1 %v8627_v49, %s8254_s28  ;;  %v8829_v49 = vsel %vm479_vm0, %v8806_v29, 0.0 }
 0x105   : > { %875 = vrot.lane.b32.xlu0 %v8630_v50, %s8254_s28  ;;  %15441 = vst [vmem:[#allocation51_spill] sm:$0xff] %v8829_v49  ;;  %v936_v50 = vsel %vm935_vm2, %v8816_v15, %v8621_v37  ;;  %v8007_v63 = vpack.i.bf16 %v8822_v58, %v8829_v49 }
 0x106   : > { %v814_v38 = vpop.permute.xlu2 %813  ;;  %v794_v14 = vpop.permute.xlu1 %793 }
 0x107   : > { %v8832_v45 = vsel %vm984_vm3, %v937_v59, %v794_v14  ;;  %v792_v7 = vpop.permute.xlu0 %791  ;;  %v941_v59 = vsel %vm935_vm2, %v8362_v9, %v8579_v56  ;;  %v938_v9 = vsel %vm935_vm2, %v8829_v49, %v8619_v36 }
 0x108   : > { %v1083_v43 = vrot.slane %v8832_v45, 1  ;;  %v8841_v44 = vsel %vm984_vm3, %v936_v50, %v792_v7  ;;  %v8854_v58 = vsel %vm984_vm3, %v941_v59, %v802_v28  ;;  %v940_v7 = vsel %vm935_vm2, %v8380_v13, %v8560_v42 }
 0x109   : > { %v1082_v14 = vrot.slane %v8841_v44, 1  ;;  %v939_v59 = vsel %vm935_vm2, %v8369_v10, %v8640_v52  ;;  %v944_v10 = vsel %vm935_vm2, %v8374_v11, %v8598_v6  ;;  %v943_v52 = vsel %vm935_vm2, %v8359_v8, %v8652_v1 }
 0x10a   : > { %v942_v11 = vsel %vm935_vm2, %v8377_v12, %v8654_v2  ;;  %v946_v2 = vsel %vm935_vm2, %v8394_v19, %v8664_v23 }
 0x10b   : > { %v1084_v37 = vsel %vm15386_vm4, %v1082_v14, %v1083_v43 }
 0x10c   : > { %8008 = vrot.lane.b32.xlu1 %v8007_v63, %s8254_s28  ;;  %1162 = vrot.lane.b32.xlu2 %v1084_v37, %s8256_s29  ;;  %v8866_v63 = vsel %vm984_vm3, %v938_v9, %v796_v22  ;;  %v1090_v37 = vrot.slane %v8854_v58, 1 }
 0x10d   : > { %8003 = vrot.lane.b32.xlu0 %v8845_v30, %s8254_s28  ;;  %v1085_v36 = vrot.slane %v8866_v63, 1 }
 0x10e   : > { %v820_v56 = vpop.permute.xlu2 %819  ;;  %v800_v50 = vpop.permute.xlu1 %799 }
 0x10f   : > { %v8869_v28 = vsel %vm984_vm3, %v940_v7, %v800_v50  ;;  %v798_v14 = vpop.permute.xlu0 %797  ;;  %v1086_v7 = vsel %vm15386_vm4, %v1083_v43, %v1085_v36 }
 0x110   : > { %v1088_v13 = vrot.slane %v8869_v28, 1  ;;  %v8877_v42 = vsel %vm984_vm3, %v939_v59, %v798_v14  ;;  %v8893_v14 = vsel %vm984_vm3, %v944_v10, %v808_v57 }
 0x111   : > { %v1087_v22 = vrot.slane %v8877_v42, 1  ;;  %v1095_v36 = vrot.slane %v8893_v14, 1 }
 0x112   : > { %v1091_v9 = vsel %vm15386_vm4, %v1088_v13, %v1090_v37 }
 0x113   : > { %v1089_v50 = vsel %vm15386_vm4, %v1087_v22, %v1088_v13  ;;  %v947_v22 = vsel %vm935_vm2, %v8391_v18, %v8617_v35  ;;  %v945_v18 = vsel %vm935_vm2, %v8397_v20, %v8666_v24  ;;  %v15444_v24 = vld [vmem:[#allocation2_spill] sm:$0xff] }
 0x114   : > { %1168 = vrot.lane.b32.xlu2 %v1091_v9, %s8256_s29  ;;  %1166 = vrot.lane.b32.xlu1 %v1089_v50, %s8256_s29  ;;  %v8914_v12 = vsel %vm984_vm3, %v947_v22, %v814_v38 }
 0x115   : > { %1164 = vrot.lane.b32.xlu0 %v1086_v7, %s8256_s29  ;;  %v1100_v35 = vrot.slane %v8914_v12, 1 }
 0x116   : > { %v806_v43 = vpop.permute.xlu1 %805  ;;  %v826_v6 = vpop.permute.xlu2 %825 }
 0x117   : > { %v8897_v59 = vsel %vm984_vm3, %v943_v52, %v806_v43  ;;  %v804_v37 = vpop.permute.xlu0 %803 }
 0x118   : > { %v1093_v13 = vrot.slane %v8897_v59, 1  ;;  %v8905_v8 = vsel %vm984_vm3, %v942_v11, %v804_v37  ;;  %v15443_v37 = vld [vmem:[#allocation29_spill] sm:$0xff] }
 0x119   : > { %v1092_v57 = vrot.slane %v8905_v8, 1  ;;  %v950_v11 = vsel %vm935_vm2, %v8408_v25, %v15443_v37  ;;  %v15445_v25 = vld [vmem:[#allocation3_spill] sm:$0xff] }
 0x11a   : > { %v1096_v1 = vsel %vm15386_vm4, %v1093_v13, %v1095_v36  ;;  %v8939_v20 = vsel %vm984_vm3, %v950_v11, %v820_v56  ;;  %v949_v36 = vsel %vm935_vm2, %v15444_v24, %v8676_v0 }
 0x11b   : > { %v1094_v9 = vsel %vm15386_vm4, %v1092_v57, %v1093_v13  ;;  %v1105_v56 = vrot.slane %v8939_v20, 1 }
 0x11c   : > { %1172 = vrot.lane.b32.xlu1 %v1096_v1, %s8256_s29 }
 0x11d   : > { %1170 = vrot.lane.b32.xlu0 %v1094_v9, %s8256_s29  ;;  %v948_v9 = vsel %vm935_vm2, %v15445_v25, %v8678_v51 }
 0x11e   : > { %v812_v7 = vpop.permute.xlu1 %811  ;;  %v832_v43 = vpop.permute.xlu2 %831 }
 0x11f   : > { %v8922_v50 = vsel %vm984_vm3, %v946_v2, %v812_v7  ;;  %v810_v10 = vpop.permute.xlu0 %809 }
 0x120   : > { %v1098_v38 = vrot.slane %v8922_v50, 1  ;;  %v8930_v52 = vsel %vm984_vm3, %v945_v18, %v810_v10  ;;  %v15446_v18 = vld [vmem:[#allocation30_spill] sm:$0xff] }
 0x121   : > { %v1097_v19 = vrot.slane %v8930_v52, 1 }
 0x122   : > { %v1101_v23 = vsel %vm15386_vm4, %v1098_v38, %v1100_v35  ;;  %v953_v35 = vsel %vm935_vm2, %v8425_v32, %v15446_v18  ;;  %v15448_v32 = vld [vmem:[#allocation5_spill] sm:$0xff] }
 0x123   : > { %v1099_v13 = vsel %vm15386_vm4, %v1097_v19, %v1098_v38  ;;  %v8964_v51 = vsel %vm984_vm3, %v953_v35, %v826_v6 }
 0x124   : > { %1174 = vrot.lane.b32.xlu2 %v1099_v13, %s8256_s29  ;;  %v1110_v6 = vrot.slane %v8964_v51, 1 }
 0x125   : > { %1176 = vrot.lane.b32.xlu0 %v1101_v23, %s8256_s29  ;;  %v15447_v23 = vld [vmem:[#allocation4_spill] sm:$0xff] }
 0x126   : > { %v818_v57 = vpop.permute.xlu1 %817  ;;  %v838_v38 = vpop.permute.xlu2 %837  ;;  %v952_v37 = vsel %vm935_vm2, %v15447_v23, %v8688_v26 }
 0x127   : > { %v8947_v1 = vsel %vm984_vm3, %v949_v36, %v818_v57  ;;  %v816_v22 = vpop.permute.xlu0 %815  ;;  %v951_v36 = vsel %vm935_vm2, %v15448_v32, %v8690_v27  ;;  %v15450_v27 = vld [vmem:[#allocation6_spill] sm:$0xff] }
 0x128   : > { %v1103_v2 = vrot.slane %v8947_v1, 1  ;;  %v8955_v7 = vsel %vm984_vm3, %v948_v9, %v816_v22  ;;  %v15449_v9 = vld [vmem:[#allocation31_spill] sm:$0xff] }
 0x129   : > { %v1102_v10 = vrot.slane %v8955_v7, 1 }
 0x12a   : > { %v1106_v0 = vsel %vm15386_vm4, %v1103_v2, %v1105_v56  ;;  %v956_v56 = vsel %vm935_vm2, %v8442_v39, %v15449_v9  ;;  %v15451_v39 = vld [vmem:[#allocation7_spill] sm:$0xff] }
 0x12b   : > { %v1104_v19 = vsel %vm15386_vm4, %v1102_v10, %v1103_v2  ;;  %v8989_v10 = vsel %vm984_vm3, %v956_v56, %v832_v43 }
 0x12c   : > { %1180 = vrot.lane.b32.xlu2 %v1106_v0, %s8256_s29  ;;  %1178 = vrot.lane.b32.xlu1 %v1104_v19, %s8256_s29  ;;  %v955_v0 = vsel %vm935_vm2, %v15450_v27, %v8700_v33  ;;  %v1115_v43 = vrot.slane %v8989_v10, 1 }
 0x12e   : > { %v824_v11 = vpop.permute.xlu1 %823  ;;  %v844_v18 = vpop.permute.xlu2 %843 }
 0x12f   : > { %v8972_v13 = vsel %vm984_vm3, %v952_v37, %v824_v11  ;;  %v822_v24 = vpop.permute.xlu0 %821  ;;  %v954_v37 = vsel %vm935_vm2, %v15451_v39, %v8702_v34  ;;  %v15453_v34 = vld [vmem:[#allocation8_spill] sm:$0xff] }
 0x130   : > { %v1108_v57 = vrot.slane %v8972_v13, 1  ;;  %v8980_v22 = vsel %vm984_vm3, %v951_v36, %v822_v24  ;;  %v15452_v36 = vld [vmem:[#allocation32_spill] sm:$0xff] }
 0x131   : > { %v1107_v25 = vrot.slane %v8980_v22, 1 }
 0x132   : > { %v1111_v26 = vsel %vm15386_vm4, %v1108_v57, %v1110_v6  ;;  %v959_v6 = vsel %vm935_vm2, %v8459_v46, %v15452_v36  ;;  %v15454_v46 = vld [vmem:[#allocation9_spill] sm:$0xff] }
 0x133   : > { %v1109_v2 = vsel %vm15386_vm4, %v1107_v25, %v1108_v57  ;;  %v9014_v25 = vsel %vm984_vm3, %v959_v6, %v838_v38  ;;  %v957_v27 = vsel %vm935_vm2, %v15454_v46, %v8714_v41 }
 0x134   : > { %1182 = vrot.lane.b32.xlu0 %v1109_v2, %s8256_s29  ;;  %1184 = vrot.lane.b32.xlu1 %v1111_v26, %s8256_s29  ;;  %v958_v26 = vsel %vm935_vm2, %v15453_v34, %v8712_v40  ;;  %v1120_v38 = vrot.slane %v9014_v25, 1 }
 0x136   : > { %v830_v35 = vpop.permute.xlu1 %829 }
 0x137   : > { %v8997_v19 = vsel %vm984_vm3, %v955_v0, %v830_v35  ;;  %v828_v23 = vpop.permute.xlu0 %827  ;;  %v850_v0 = vpop.permute.xlu2 %849 }
 0x138   : > { %v1113_v11 = vrot.slane %v8997_v19, 1  ;;  %v9005_v24 = vsel %vm984_vm3, %v954_v37, %v828_v23  ;;  %v15455_v37 = vld [vmem:[#allocation33_spill] sm:$0xff] }
 0x139   : > { %v1112_v32 = vrot.slane %v9005_v24, 1 }
 0x13a   : > { %v1116_v33 = vsel %vm15386_vm4, %v1113_v11, %v1115_v43  ;;  %v962_v43 = vsel %vm935_vm2, %v8476_v53, %v15455_v37  ;;  %v15458_v53 = vld [vmem:[#allocation11_spill] sm:$0xff] }
 0x13b   : > { %v1114_v57 = vsel %vm15386_vm4, %v1112_v32, %v1113_v11  ;;  %v9039_v41 = vsel %vm984_vm3, %v962_v43, %v844_v18  ;;  %v15456_v32 = vld [vmem:[#allocation10_spill] sm:$0xff]  ;;  %v960_v34 = vsel %vm935_vm2, %v15458_v53, %v8726_v48  ;;  %v15462_v53 = vld [vmem:[#allocation35_spill] sm:$0xff] }
 0x13c   : > { %1188 = vrot.lane.b32.xlu0 %v1116_v33, %s8256_s29  ;;  %1186 = vrot.lane.b32.xlu2 %v1114_v57, %s8256_s29  ;;  %v961_v33 = vsel %vm935_vm2, %v15456_v32, %v8724_v47  ;;  %v1125_v18 = vrot.slane %v9039_v41, 1 }
 0x13e   : > { %v836_v9 = vpop.permute.xlu1 %835 }
 0x13f   : > { %v9022_v56 = vsel %vm984_vm3, %v958_v26, %v836_v9  ;;  %v834_v2 = vpop.permute.xlu0 %833 }
 0x140   : > { %v1118_v35 = vrot.slane %v9022_v56, 1  ;;  %v9030_v23 = vsel %vm984_vm3, %v957_v27, %v834_v2  ;;  %v856_v2 = vpop.permute.xlu2 %855  ;;  %v15459_v27 = vld [vmem:[#allocation34_spill] sm:$0xff] }
 0x141   : > { %v1117_v39 = vrot.slane %v9030_v23, 1 }
 0x142   : > { %v1121_v40 = vsel %vm15386_vm4, %v1118_v35, %v1120_v38  ;;  %v965_v38 = vsel %vm935_vm2, %v8493_v60, %v15459_v27  ;;  %v15461_v60 = vld [vmem:[#allocation13_spill] sm:$0xff] }
 0x143   : > { %v1119_v11 = vsel %vm15386_vm4, %v1117_v39, %v1118_v35  ;;  %v9064_v48 = vsel %vm984_vm3, %v965_v38, %v850_v0  ;;  %v15460_v39 = vld [vmem:[#allocation12_spill] sm:$0xff]  ;;  %v963_v32 = vsel %vm935_vm2, %v15461_v60, %v8738_v55 }
 0x144   : > { %1192 = vrot.lane.b32.xlu2 %v1121_v40, %s8256_s29  ;;  %1190 = vrot.lane.b32.xlu1 %v1119_v11, %s8256_s29  ;;  %v964_v40 = vsel %vm935_vm2, %v15460_v39, %v8736_v54  ;;  %v1130_v0 = vrot.slane %v9064_v48, 1  ;;  %v15465_v60 = vld [vmem:[#allocation36_spill] sm:$0xff] }
 0x146   : > { %v842_v36 = vpop.permute.xlu1 %841 }
 0x147   : > { %v9047_v6 = vsel %vm984_vm3, %v961_v33, %v842_v36  ;;  %v840_v57 = vpop.permute.xlu0 %839 }
 0x148   : > { %15457 = vst [vmem:[#allocation29_spill] sm:$0xff] %v9047_v6  ;;  %v1123_v26 = vrot.slane %v9047_v6, 1  ;;  %v9055_v9 = vsel %vm984_vm3, %v960_v34, %v840_v57  ;;  %v968_v34 = vsel %vm935_vm2, %v8510_v3, %v15462_v53  ;;  %v15464_v3 = vld [vmem:[#allocation15_spill] sm:$0xff] }
 0x149   : > { %v1122_v46 = vrot.slane %v9055_v9, 1  ;;  %v9089_v55 = vsel %vm984_vm3, %v968_v34, %v856_v2  ;;  %v966_v39 = vsel %vm935_vm2, %v15464_v3, %v8750_v62  ;;  %v15466_v62 = vld [vmem:[#allocation16_spill] sm:$0xff]  ;;  %v15468_v3 = vld [vmem:[#allocation37_spill] sm:$0xff] }
 0x14a   : > { %v1126_v47 = vsel %vm15386_vm4, %v1123_v26, %v1125_v18  ;;  %v862_v18 = vpop.permute.xlu2 %861  ;;  %v1135_v2 = vrot.slane %v9089_v55, 1 }
 0x14b   : > { %v1124_v35 = vsel %vm15386_vm4, %v1122_v46, %v1123_v26  ;;  %v15463_v46 = vld [vmem:[#allocation14_spill] sm:$0xff] }
 0x14c   : > { %1194 = vrot.lane.b32.xlu0 %v1124_v35, %s8256_s29  ;;  %1196 = vrot.lane.b32.xlu1 %v1126_v47, %s8256_s29  ;;  %v967_v47 = vsel %vm935_vm2, %v15463_v46, %v8748_v61 }
 0x14e   : > { %v848_v37 = vpop.permute.xlu1 %847 }
 0x14f   : > { %v9072_v43 = vsel %vm984_vm3, %v964_v40, %v848_v37  ;;  %v846_v11 = vpop.permute.xlu0 %845 }
 0x150   : > { %v1128_v33 = vrot.slane %v9072_v43, 1  ;;  %v9080_v36 = vsel %vm984_vm3, %v963_v32, %v846_v11  ;;  %v971_v32 = vsel %vm935_vm2, %v8527_v16, %v15465_v60  ;;  %v15467_v16 = vld [vmem:[#allocation17_spill] sm:$0xff] }
 0x151   : > { %v1127_v57 = vrot.slane %v9080_v36, 1  ;;  %v969_v46 = vsel %vm935_vm2, %v15467_v16, %v8762_v5  ;;  %v15470_v5 = vld [vmem:[#allocation19_spill] sm:$0xff] }
 0x152   : > { %v1131_v54 = vsel %vm15386_vm4, %v1128_v33, %v1130_v0 }
 0x153   : > { %v1129_v26 = vsel %vm15386_vm4, %v1127_v57, %v1128_v33  ;;  %v9114_v33 = vsel %vm984_vm3, %v971_v32, %v862_v18  ;;  %v970_v57 = vsel %vm935_vm2, %v15466_v62, %v8760_v4  ;;  %v972_v32 = vsel %vm935_vm2, %v8550_v31, %v8774_v21  ;;  %v15473_v21 = vld [vmem:[#allocation20_spill] sm:$0xff] }
 0x154   : > { %1200 = vrot.lane.b32.xlu0 %v1131_v54, %s8256_s29  ;;  %1198 = vrot.lane.b32.xlu2 %v1129_v26, %s8256_s29  ;;  %v868_v54 = vpop.permute.xlu2 %867  ;;  %v1140_v18 = vrot.slane %v9114_v33, 1 }
 0x156   : > { %v854_v27 = vpop.permute.xlu1 %853 }
 0x157   : > { %v9097_v38 = vsel %vm984_vm3, %v967_v47, %v854_v27  ;;  %v852_v35 = vpop.permute.xlu0 %851 }
 0x158   : > { %v1133_v40 = vrot.slane %v9097_v38, 1  ;;  %v9105_v37 = vsel %vm984_vm3, %v966_v39, %v852_v35  ;;  %v15469_v39 = vld [vmem:[#allocation18_spill] sm:$0xff] }
 0x159   : > { %v1132_v11 = vrot.slane %v9105_v37, 1 }
 0x15a   : > { %v1136_v61 = vsel %vm15386_vm4, %v1133_v40, %v1135_v2  ;;  %v974_v2 = vsel %vm935_vm2, %v15469_v39, %v15468_v3 }
 0x15b   : > { %v1134_v0 = vsel %vm15386_vm4, %v1132_v11, %v1133_v40  ;;  %v9139_v11 = vsel %vm984_vm3, %v974_v2, %v868_v54  ;;  %v15476_v2 = vld [vmem:[#allocation42_spill] sm:$0xff] }
 0x15c   : > { %1204 = vrot.lane.b32.xlu2 %v1136_v61, %s8256_s29  ;;  %1202 = vrot.lane.b32.xlu1 %v1134_v0, %s8256_s29  ;;  %v973_v61 = vsel %vm935_vm2, %v15470_v5, %v8772_v17  ;;  %v874_v54 = vpop.permute.xlu2 %873 }
 0x15e   : > { %v860_v53 = vpop.permute.xlu1 %859 }
 0x15f   : > { %v9122_v34 = vsel %vm984_vm3, %v970_v57, %v860_v53  ;;  %v858_v26 = vpop.permute.xlu0 %857  ;;  %v1145_v57 = vrot.slane %v9139_v11, 1 }
 0x160   : > { %v1138_v47 = vrot.slane %v9122_v34, 1  ;;  %v9130_v27 = vsel %vm984_vm3, %v969_v46, %v858_v26 }
 0x161   : > { %v1137_v35 = vrot.slane %v9130_v27, 1 }
 0x162   : > { %v1141_v4 = vsel %vm15386_vm4, %v1138_v47, %v1140_v18  ;;  %v15472_v18 = vld [vmem:[#allocation38_spill] sm:$0xff] }
 0x163   : > { %v1139_v40 = vsel %vm15386_vm4, %v1137_v35, %v1138_v47  ;;  %v977_v31 = vsel %vm935_vm2, %v15473_v21, %v15472_v18  ;;  %v15474_v35 = vld [vmem:[#allocation41_spill] sm:$0xff]  ;;  %v15480_v18 = vld [vmem:[#allocation23_spill] sm:$0xff] }
 0x164   : > { %1206 = vrot.lane.b32.xlu0 %v1139_v40, %s8256_s29  ;;  %1208 = vrot.lane.b32.xlu1 %v1141_v4, %s8256_s29  ;;  %v9165_v47 = vsel %vm984_vm3, %v977_v31, %v874_v54  ;;  %v15475_v4 = vld [vmem:[#allocation21_spill] sm:$0xff]  ;;  %v15477_v40 = vld [vmem:[#allocation22_spill] sm:$0xff] }
 0x165   : > { %v976_v3 = vsel %vm935_vm2, %v15475_v4, %v15474_v35  ;;  %v975_v5 = vsel %vm935_vm2, %v15477_v40, %v15476_v2  ;;  %v15481_v35 = vld [vmem:[#allocation43_spill] sm:$0xff]  ;;  %v15482_v4 = vld [vmem:[#allocation24_spill] sm:$0xff]  ;;  %v15484_v40 = vld [vmem:[#allocation25_spill] sm:$0xff] }
 0x166   : > { %v866_v60 = vpop.permute.xlu1 %865  ;;  %v15483_v2 = vld [vmem:[#allocation44_spill] sm:$0xff] }
 0x167   : > { %v9150_v0 = vsel %vm984_vm3, %v973_v61, %v866_v60  ;;  %v864_v62 = vpop.permute.xlu0 %863 }
 0x168   : > { %15471 = vst [vmem:[#allocation2_spill] sm:$0xff] %v9150_v0  ;;  %v1143_v53 = vrot.slane %v9150_v0, 1  ;;  %v9155_v26 = vsel %vm984_vm3, %v972_v32, %v864_v62  ;;  %v1150_v32 = vrot.slane %v9165_v47, 1 }
 0x169   : > { %v1142_v16 = vrot.slane %v9155_v26, 1 }
 0x16a   : > { %v1146_v17 = vsel %vm15386_vm4, %v1143_v53, %v1145_v57 }
 0x16b   : > { %v1144_v46 = vsel %vm15386_vm4, %v1142_v16, %v1143_v53  ;;  %v880_v53 = vpop.permute.xlu2 %879 }
 0x16c   : > { %1210 = vrot.lane.b32.xlu2 %v1144_v46, %s8256_s29  ;;  %1212 = vrot.lane.b32.xlu0 %v1146_v17, %s8256_s29  ;;  %v15479_v46 = vld [vmem:[#allocation39_spill] sm:$0xff] }
 0x16d   : > { %v980_v21 = vsel %vm935_vm2, %v15480_v18, %v15479_v46 }
 0x16e   : > { %v872_v39 = vpop.permute.xlu1 %871  ;;  %v9191_v31 = vsel %vm984_vm3, %v980_v21, %v880_v53  ;;  %v1260_v21 = vrot.slane %v8832_v45, 2 }
 0x16f   : > { %v9175_v61 = vsel %vm984_vm3, %v976_v3, %v872_v39  ;;  %v870_v60 = vpop.permute.xlu0 %869  ;;  %v979_v3 = vsel %vm935_vm2, %v15482_v4, %v15481_v35  ;;  %v1259_v35 = vrot.slane %v8841_v44, 2 }
 0x170   : > { %15478 = vst [vmem:[#allocation3_spill] sm:$0xff] %v9175_v61  ;;  %v1148_v62 = vrot.slane %v9175_v61, 1  ;;  %v9180_v57 = vsel %vm984_vm3, %v975_v5, %v870_v60  ;;  %v978_v5 = vsel %vm935_vm2, %v15484_v40, %v15483_v2  ;;  %v15489_v2 = vld [vmem:[#allocation26_spill] sm:$0xff] }
 0x171   : > { %v1147_v54 = vrot.slane %v9180_v57, 1 }
 0x172   : > { %v1151_v16 = vsel %vm15386_vm4, %v1148_v62, %v1150_v32 }
 0x173   : > { %v1149_v17 = vsel %vm15386_vm4, %v1147_v54, %v1148_v62  ;;  %v1155_v62 = vrot.slane %v9191_v31, 1 }
 0x174   : > { %1216 = vrot.lane.b32.xlu2 %v1151_v16, %s8256_s29  ;;  %1214 = vrot.lane.b32.xlu1 %v1149_v17, %s8256_s29 }
 0x176   : > { %v878_v39 = vpop.permute.xlu1 %877 }
 0x177   : > { %v9200_v60 = vsel %vm984_vm3, %v979_v3, %v878_v39  ;;  %v876_v32 = vpop.permute.xlu0 %875  ;;  %v15488_v39 = vld [vmem:[#allocation40_spill] sm:$0xff] }
 0x178   : > { %15485 = vst [vmem:[#allocation30_spill] sm:$0xff] %v9200_v60  ;;  %v1153_v54 = vrot.slane %v9200_v60, 1  ;;  %v9205_v53 = vsel %vm984_vm3, %v978_v5, %v876_v32  ;;  %v983_v40 = vsel %vm935_vm2, %v15489_v2, %v15488_v39  ;;  %v1261_v39 = vsel %vm15387_vm5, %v1259_v35, %v1260_v21 }
 0x179   : > { %15486 = vst [vmem:[#allocation4_spill] sm:$0xff] %v9205_v53  ;;  %v1152_v16 = vrot.slane %v9205_v53, 1  ;;  %v1267_v35 = vrot.slane %v8854_v58, 2  ;;  %v1274_v58 = vrot.slane %v8930_v52, 2 }
 0x17a   : > { %v1156_v17 = vsel %vm15386_vm4, %v1153_v54, %v1155_v62  ;;  %v15490_v62 = vld [vmem:[#allocation45_spill] sm:$0xff] }
 0x17b   : > { %v1154_v46 = vsel %vm15386_vm4, %v1152_v16, %v1153_v54  ;;  %v15491_v54 = vld [vmem:[#allocation27_spill] sm:$0xff] }
 0x17c   : > { %1218 = vrot.lane.b32.xlu0 %v1154_v46, %s8256_s29  ;;  %1220 = vrot.lane.b32.xlu1 %v1156_v17, %s8256_s29  ;;  %v982_v16 = vsel %vm935_vm2, %v15491_v54, %v15490_v62  ;;  %v15492_v17 = vld [vmem:[#allocation46_spill] sm:$0xff]  ;;  %v15493_v46 = vld [vmem:[#allocation28_spill] sm:$0xff]  ;;  %v1262_v54 = vrot.slane %v8866_v63, 2  ;;  %v1270_v63 = vrot.slane %v8897_v59, 2 }
 0x17d   : > { %v981_v30 = vsel %vm935_vm2, %v15493_v46, %v15492_v17 }
 0x17e   : > { %v9212_v18 = vpop.permute.xlu1 %8008  ;;  %v1263_v46 = vsel %vm15387_vm5, %v1260_v21, %v1262_v54  ;;  %v1277_v54 = vrot.slane %v8914_v12, 2  ;;  %v1289_v12 = vrot.slane %v9005_v24, 2 }
 0x17f   : > { %15487 = vst [vmem:[#allocation5_spill] sm:$0xff] %v9212_v18  ;;  %v8010_v4 = vunpack.i.l.bf16 %v9212_v18  ;;  %v8004_v3 = vpop.permute.xlu0 %8003 }
 0x180   : > { %v8006_v5 = vunpack.i.h.bf16 %v8004_v3  ;;  %v8005_v32 = vunpack.i.l.bf16 %v8004_v3 }
 0x181   : > { %v9227_v49 = vsel %vm984_vm3, %v983_v40, %v8010_v4 }
 0x182   : > { %v9230_v29 = vsel %vm984_vm3, %v982_v16, %v8006_v5  ;;  %v9233_v15 = vsel %vm984_vm3, %v981_v30, %v8005_v32  ;;  %v1160_v3 = vrot.slane %v9227_v49, 1  ;;  %v9242_v5 = vpop.permute.xlu2 %1162  ;;  %v1265_v30 = vrot.slane %v8869_v28, 2 }
 0x183   : > { %15494 = vst [vmem:[#allocation31_spill] sm:$0xff] %v9230_v29  ;;  %v1158_v2 = vrot.slane %v9230_v29, 1  ;;  %v1157_v62 = vrot.slane %v9233_v15, 1  ;;  %v1264_v32 = vrot.slane %v8877_v42, 2 }
 0x184   : > { %15495 = vst [vmem:[#allocation6_spill] sm:$0xff] %v9233_v15  ;;  %1339 = vrot.lane.b32.xlu1 %v1261_v39, %s8257_s30  ;;  %v1268_v16 = vsel %vm15387_vm5, %v1265_v30, %v1267_v35 }
 0x185   : > { %v1161_v4 = vsel %vm15386_vm4, %v1158_v2, %v1160_v3  ;;  %v1159_v40 = vsel %vm15386_vm4, %v1157_v62, %v1158_v2  ;;  %v1266_v17 = vsel %vm15387_vm5, %v1264_v32, %v1265_v30  ;;  %v1275_v3 = vrot.slane %v8922_v50, 2 }
 0x186   : > { %1224 = vrot.lane.b32.xlu0 %v1161_v4, %s8256_s29  ;;  %1222 = vrot.lane.b32.xlu2 %v1159_v40, %s8256_s29  ;;  %v1269_v2 = vrot.slane %v8905_v8, 2  ;;  %v1272_v62 = vrot.slane %v8893_v14, 2  ;;  %v1280_v30 = vrot.slane %v8947_v1, 2  ;;  %v1282_v32 = vrot.slane %v8939_v20, 2 }
 0x187   : > { %v1276_v4 = vsel %vm15387_vm5, %v1274_v58, %v1275_v3  ;;  %v1279_v14 = vrot.slane %v8955_v7, 2  ;;  %v9279_v58 = vpop.permute.xlu0 %1164  ;;  %v1290_v20 = vrot.slane %v8997_v19, 2 }
 0x188   : > { %v1273_v21 = vsel %vm15387_vm5, %v1270_v63, %v1272_v62  ;;  %v1271_v40 = vsel %vm15387_vm5, %v1269_v2, %v1270_v63  ;;  %v9281_v63 = vpop.permute.xlu1 %1166  ;;  %v1285_v2 = vrot.slane %v8972_v13, 2  ;;  %v1284_v62 = vrot.slane %v8980_v22, 2 }
 0x18a   : > { %v9258_v39 = vpop.permute.xlu2 %1168 }
 0x18c   : > { %1345 = vrot.lane.b32.xlu1 %v1268_v16, %s8257_s30  ;;  %v1283_v16 = vsel %vm15387_vm5, %v1280_v30, %v1282_v32  ;;  %v1295_v32 = vrot.slane %v9022_v56, 2 }
 0x18e   : > { %1343 = vrot.lane.b32.xlu0 %v1266_v17, %s8257_s30  ;;  %1341 = vrot.lane.b32.xlu2 %v1263_v46, %s8257_s30  ;;  %v1281_v17 = vsel %vm15387_vm5, %v1279_v14, %v1280_v30  ;;  %v1278_v46 = vsel %vm15387_vm5, %v1275_v3, %v1277_v54  ;;  %v1287_v3 = vrot.slane %v8964_v51, 2  ;;  %v1286_v30 = vsel %vm15387_vm5, %v1284_v62, %v1285_v2 }
 0x18f   : > { %v9299_v14 = vpop.permute.xlu0 %1170  ;;  %v1297_v51 = vrot.slane %v9014_v25, 2  ;;  %v1305_v25 = vrot.slane %v9072_v43, 2 }
 0x190   : > { %v9301_v54 = vpop.permute.xlu1 %1172 }
 0x192   : > { %v9270_v35 = vpop.permute.xlu2 %1174 }
 0x194   : > { %1351 = vrot.lane.b32.xlu1 %v1276_v4, %s8257_s30 }
 0x196   : > { %1349 = vrot.lane.b32.xlu0 %v1273_v21, %s8257_s30  ;;  %1347 = vrot.lane.b32.xlu2 %v1271_v40, %s8257_s30  ;;  %v1291_v21 = vsel %vm15387_vm5, %v1289_v12, %v1290_v20  ;;  %v1288_v40 = vsel %vm15387_vm5, %v1285_v2, %v1287_v3  ;;  %v1298_v12 = vsel %vm15387_vm5, %v1295_v32, %v1297_v51  ;;  %v1304_v3 = vrot.slane %v9080_v36, 2 }
 0x19a   : > { %v9289_v4 = vpop.permute.xlu2 %1180 }
 0x19c   : > { %1357 = vrot.lane.b32.xlu1 %v1283_v16, %s8257_s30  ;;  %v1294_v16 = vrot.slane %v9030_v23, 2 }
 0x19e   : > { %1355 = vrot.lane.b32.xlu0 %v1281_v17, %s8257_s30  ;;  %1353 = vrot.lane.b32.xlu2 %v1278_v46, %s8257_s30  ;;  %v1292_v46 = vrot.slane %v8989_v10, 2  ;;  %v1296_v2 = vsel %vm15387_vm5, %v1294_v16, %v1295_v32  ;;  %v1300_v10 = vrot.slane %v9047_v6, 2  ;;  %v1302_v32 = vrot.slane %v9039_v41, 2 }
 0x19f   : > { %v1309_v41 = vrot.slane %v9105_v37, 2 }
 0x1a0   : > { %v1293_v62 = vsel %vm15387_vm5, %v1290_v20, %v1292_v46  ;;  %v1306_v20 = vsel %vm15387_vm5, %v1304_v3, %v1305_v25  ;;  %v1303_v16 = vsel %vm15387_vm5, %v1300_v10, %v1302_v32 }
 0x1a2   : > { %v9305_v17 = vpop.permute.xlu2 %1186 }
 0x1a4   : > { %1363 = vrot.lane.b32.xlu1 %v1291_v21, %s8257_s30  ;;  %v9316_v21 = vpop.permute.xlu1 %1178 }
 0x1a6   : > { %1361 = vrot.lane.b32.xlu0 %v1288_v40, %s8257_s30  ;;  %1359 = vrot.lane.b32.xlu2 %v1286_v30, %s8257_s30  ;;  %v1299_v40 = vrot.slane %v9055_v9, 2  ;;  %v9320_v30 = vpop.permute.xlu0 %1176 }
 0x1a8   : > { %v1301_v46 = vsel %vm15387_vm5, %v1299_v40, %v1300_v10 }
 0x1aa   : > { %v9324_v51 = vpop.permute.xlu2 %1192 }
 0x1ac   : > { %1369 = vrot.lane.b32.xlu1 %v1298_v12, %s8257_s30  ;;  %v1310_v12 = vrot.slane %v9097_v38, 2  ;;  %v9336_v3 = vpop.permute.xlu1 %1184 }
 0x1ae   : > { %1367 = vrot.lane.b32.xlu0 %v1296_v2, %s8257_s30  ;;  %1365 = vrot.lane.b32.xlu2 %v1293_v62, %s8257_s30  ;;  %v1312_v2 = vrot.slane %v9089_v55, 2  ;;  %v9334_v62 = vpop.permute.xlu0 %1182  ;;  %v1311_v10 = vsel %vm15387_vm5, %v1309_v41, %v1310_v12  ;;  %v1320_v55 = vrot.slane %v9150_v0, 2  ;;  %v1322_v0 = vrot.slane %v9139_v11, 2 }
 0x1af   : > { %v1334_v11 = vrot.slane %v9233_v15, 2 }
 0x1b0   : > { %v1313_v32 = vsel %vm15387_vm5, %v1310_v12, %v1312_v2 }
 0x1b2   : > { %v9340_v18 = vpop.permute.xlu2 %1198 }
 0x1b4   : > { %1375 = vrot.lane.b32.xlu1 %v1306_v20, %s8257_s30  ;;  %v1307_v20 = vrot.slane %v9064_v48, 2  ;;  %v1315_v48 = vrot.slane %v9122_v34, 2 }
 0x1b6   : > { %1373 = vrot.lane.b32.xlu0 %v1303_v16, %s8257_s30  ;;  %1371 = vrot.lane.b32.xlu2 %v1301_v46, %s8257_s30  ;;  %v1308_v40 = vsel %vm15387_vm5, %v1305_v25, %v1307_v20  ;;  %v1319_v16 = vrot.slane %v9155_v26, 2  ;;  %v1314_v46 = vrot.slane %v9130_v27, 2  ;;  %v9351_v2 = vpop.permute.xlu1 %1190  ;;  %v9355_v41 = vpop.permute.xlu0 %1188 }
 0x1b8   : > { %v1321_v12 = vsel %vm15387_vm5, %v1319_v16, %v1320_v55  ;;  %v1316_v20 = vsel %vm15387_vm5, %v1314_v46, %v1315_v48  ;;  %v1324_v16 = vrot.slane %v9180_v57, 2  ;;  %v1323_v46 = vsel %vm15387_vm5, %v1320_v55, %v1322_v0  ;;  %v1504_v0 = vld [vmem:[%s15229_s1 + $0x18] sm:$0xff] }
 0x1b9   : > { %v1330_v55 = vrot.slane %v9200_v60, 2 }
 0x1bc   : > { %1381 = vrot.lane.b32.xlu1 %v1313_v32, %s8257_s30  ;;  %v1317_v32 = vrot.slane %v9114_v33, 2  ;;  %v1327_v33 = vrot.slane %v9165_v47, 2  ;;  %v1335_v47 = vrot.slane %v9230_v29, 2 }
 0x1be   : > { %1379 = vrot.lane.b32.xlu0 %v1311_v10, %s8257_s30  ;;  %1377 = vrot.lane.b32.xlu2 %v1308_v40, %s8257_s30  ;;  %v1318_v25 = vsel %vm15387_vm5, %v1315_v48, %v1317_v32  ;;  %v9360_v10 = vpop.permute.xlu2 %1204  ;;  %v1325_v40 = vrot.slane %v9175_v61, 2  ;;  %v9369_v6 = vpop.permute.xlu0 %1194 }
 0x1bf   : > { %v9371_v32 = vpop.permute.xlu1 %1196 }
 0x1c0   : > { %v1326_v48 = vsel %vm15387_vm5, %v1324_v16, %v1325_v40  ;;  %v1332_v16 = vrot.slane %v9191_v31, 2 }
 0x1c2   : > { %v1333_v29 = vsel %vm15387_vm5, %v1330_v55, %v1332_v16 }
 0x1c4   : > { %1387 = vrot.lane.b32.xlu1 %v1321_v12, %s8257_s30  ;;  %v1328_v12 = vsel %vm15387_vm5, %v1325_v40, %v1327_v33  ;;  %v1329_v40 = vrot.slane %v9205_v53, 2  ;;  %v1503_v33 = vld [vmem:[%s15229_s1 + $0x10] sm:$0xff] }
 0x1c6   : > { %1385 = vrot.lane.b32.xlu0 %v1318_v25, %s8257_s30  ;;  %1383 = vrot.lane.b32.xlu2 %v1316_v20, %s8257_s30  ;;  %v9376_v25 = vpop.permute.xlu2 %1210  ;;  %v1505_v20 = vld [vmem:[%s15229_s1 + $0x20] sm:$0xf]  ;;  %v9407_v31 = vpop.permute.xlu0 %1200 }
 0x1c7   : > { %7787 = vmatpush.msk.msra.mxu0 %vm1603_vm6, %v1505_v20  ;;  %7959 = vmatpush.msk.msra.mxu1 %vm1603_vm6, %v1505_v20 }
 0x1c8   : > { %7961 = vmatpush.msk.msra.mxu3 %vm1603_vm6, %v1505_v20  ;;  %7960 = vmatpush.msk.msra.mxu2 %vm1603_vm6, %v1505_v20  ;;  %v1331_v20 = vsel %vm15387_vm5, %v1329_v40, %v1330_v55  ;;  %v1337_v55 = vrot.slane %v9227_v49, 2 }
 0x1c9   : > { %1619 = vmatpush.msra.mxu0 %v1504_v0  ;;  %7962 = vmatpush.msra.mxu1 %v1504_v0 }
 0x1ca   : > { %7964 = vmatpush.msra.mxu3 %v1504_v0  ;;  %7963 = vmatpush.msra.mxu2 %v1504_v0 }
 0x1cb   : > { %1620 = vmatpush.msra.mxu0 %v1503_v33  ;;  %7965 = vmatpush.msra.mxu1 %v1503_v33 }
 0x1cc   : > { %1393 = vrot.lane.b32.xlu1 %v1328_v12, %s8257_s30  ;;  %v1336_v12 = vsel %vm15387_vm5, %v1334_v11, %v1335_v47  ;;  %7967 = vmatpush.msra.mxu3 %v1503_v33  ;;  %v1501_v11 = vld [vmem:[%s15229_s1] sm:$0xff] }
 0x1cd   : > { %7966 = vmatpush.msra.mxu2 %v1503_v33 }
 0x1ce   : > { %1391 = vrot.lane.b32.xlu0 %v1326_v48, %s8257_s30  ;;  %1389 = vrot.lane.b32.xlu2 %v1323_v46, %s8257_s30  ;;  %v9399_v48 = vpop.permute.xlu1 %1202  ;;  %v1502_v46 = vld [vmem:[%s15229_s1 + $0x8] sm:$0xff]  ;;  %v9414_v0 = vpop.permute.xlu2 %1216 }
 0x1cf   : > { %1621 = vmatpush.msra.mxu0 %v1502_v46  ;;  %7968 = vmatpush.msra.mxu1 %v1502_v46  ;;  %15496 = vst [vmem:[#allocation7_spill] sm:$0xff] %v9414_v0 }
 0x1d0   : > { %7970 = vmatpush.msra.mxu3 %v1502_v46  ;;  %7969 = vmatpush.msra.mxu2 %v1502_v46 }
 0x1d1   : > { %1622 = vmatpush.msra.mxu0 %v1501_v11  ;;  %7971 = vmatpush.msra.mxu1 %v1501_v11 }
 0x1d2   : > { %7973 = vmatpush.msra.mxu3 %v1501_v11  ;;  %7972 = vmatpush.msra.mxu2 %v1501_v11 }
 0x1d4   : > { %1399 = vrot.lane.b32.xlu1 %v1336_v12, %s8257_s30 }
 0x1d6   : > { %1397 = vrot.lane.b32.xlu0 %v1333_v29, %s8257_s30  ;;  %1395 = vrot.lane.b32.xlu2 %v1331_v20, %s8257_s30  ;;  %v1338_v29 = vsel %vm15387_vm5, %v1335_v47, %v1337_v55  ;;  %v1207_v40 = vpop.permute.xlu0 %1206  ;;  %v9418_v16 = vpop.permute.xlu1 %1208  ;;  %v1436_v47 = vsel %vm1435_vm7, %v8841_v44, %v9242_v5  ;;  %v1438_v44 = vsel %vm1435_vm7, %v8877_v42, %v9281_v63 }
 0x1d7   : > { %v1440_v42 = vsel %vm1435_vm7, %v8905_v8, %v9299_v14 }
 0x1de   : > { %1401 = vrot.lane.b32.xlu2 %v1338_v29, %s8257_s30  ;;  %v9425_v15 = vpop.permute.xlu0 %1212  ;;  %s8261_s30 = smov 6  }
 0x1e0   : > { %v9421_v12 = vpop.permute.xlu2 %1222 }
 0x1e1   : > { %15497 = vst [vmem:[#allocation32_spill] sm:$0xff] %v9421_v12 }
 0x1e6   : > { %v9423_v20 = vpop.permute.xlu1 %1214 }
 0x1e8   : > { %v1342_v33 = vpop.permute.xlu2 %1341 }
 0x1ee   : > { %v9427_v49 = vpop.permute.xlu1 %1220  ;;  %v9429_v60 = vpop.permute.xlu0 %1218 }
 0x1ef   : > { %15498 = vst [vmem:[#allocation8_spill] sm:$0xff] %v9427_v49  ;;  %v1437_v49 = vsel %vm1435_vm7, %v8832_v45, %v9279_v58  ;;  %v1439_v45 = vsel %vm1435_vm7, %v8869_v28, %v9258_v39  ;;  %v1447_v28 = vsel %vm1435_vm7, %v8972_v13, %v9336_v3  ;;  %v1458_v13 = vsel %vm1435_vm7, %v9130_v27, %v1207_v40 }
 0x1f0   : > { %15499 = vst [vmem:[#allocation9_spill] sm:$0xff] %v9429_v60  ;;  %v1348_v46 = vpop.permute.xlu2 %1347  ;;  %v1470_v60 = vsel %vm1468_vm9, %v1437_v49, %v1342_v33  ;;  %v1449_v40 = vsel %vm1435_vm7, %v8997_v19, %v9355_v41  ;;  %v1450_v41 = vsel %vm1435_vm7, %v9030_v23, %v9351_v2 }
 0x1f1   : > { %v1473_v63 = vsel %vm1468_vm9, %v1440_v42, %v1348_v46  ;;  %v1448_v46 = vsel %vm1435_vm7, %v9005_v24, %v9305_v17  ;;  %v1454_v24 = vsel %vm1435_vm7, %v9080_v36, %v9340_v18  ;;  %v1443_v36 = vsel %vm1435_vm7, %v8922_v50, %v9320_v30 }
 0x1f2   : > { %v1455_v18 = vsel %vm1435_vm7, %v9072_v43, %v9407_v31  ;;  %v1444_v43 = vsel %vm1435_vm7, %v8955_v7, %v9316_v21  ;;  %v1456_v30 = vsel %vm1435_vm7, %v9105_v37, %v9399_v48  ;;  %v1451_v31 = vsel %vm1435_vm7, %v9022_v56, %v9324_v51 }
 0x1f3   : > { %v1445_v56 = vsel %vm1435_vm7, %v8947_v1, %v9289_v4  ;;  %v15500_v4 = vld [vmem:[#allocation29_spill] sm:$0xff] }
 0x1f6   : > { %v1340_v11 = vpop.permute.xlu1 %1339 }
 0x1f7   : > { %v1469_v55 = vsel %vm1468_vm9, %v1436_v47, %v1340_v11 }
 0x1f8   : > { %v9435_v29 = vpop.permute.xlu0 %1224  ;;  %v1354_v12 = vpop.permute.xlu2 %1353  ;;  %7788 = vmatmul.msk.f32.vlgmr.msra.gmra.mxu0 %vm1506_vm8, %v1469_v55 }
 0x1fe   : > { %v1346_v53 = vpop.permute.xlu1 %1345 }
 0x1ff   : > { %v1472_v33 = vsel %vm1468_vm9, %v1439_v45, %v1346_v53 }
 0x200   : > { %v1344_v61 = vpop.permute.xlu0 %1343  ;;  %v9442_v0 = vpop.permute.xlu2 %1359  ;;  %7789 = vmatmul.msk.f32.gmra.mxu0 %vm1506_vm8, %v1470_v60 }
 0x201   : > { %v1471_v47 = vsel %vm1468_vm9, %v1438_v44, %v1344_v61 }
 0x206   : > { %v1352_v5 = vpop.permute.xlu1 %1351 }
 0x208   : > { %v1350_v11 = vpop.permute.xlu0 %1349  ;;  %v1366_v55 = vpop.permute.xlu2 %1365  ;;  %7790 = vmatmul.msk.f32.gmra.mxu0 %vm1506_vm8, %v1471_v47  ;;  %v1441_v47 = vsel %vm1435_vm7, %v8897_v59, %v9301_v54  ;;  %v1442_v59 = vsel %vm1435_vm7, %v8930_v52, %v9270_v35  ;;  %v1476_v35 = vsel %vm1468_vm9, %v1443_v36, %v1354_v12  ;;  %v1459_v12 = vsel %vm1435_vm7, %v9122_v34, %v9418_v16 }
 0x209   : > { %v1474_v14 = vsel %vm1468_vm9, %v1441_v47, %v1350_v11  ;;  %v1475_v54 = vsel %vm1468_vm9, %v1442_v59, %v1352_v5  ;;  %v1482_v52 = vsel %vm1468_vm9, %v1449_v40, %v1366_v55  ;;  %v1457_v34 = vsel %vm1435_vm7, %v9097_v38, %v9360_v10  ;;  %v15504_v47 = vld [vmem:[#allocation9_spill] sm:$0xff]  ;;  %v15509_v59 = vld [vmem:[#allocation6_spill] sm:$0xff]  ;;  %v15510_v40 = vld [vmem:[#allocation31_spill] sm:$0xff] }
 0x20a   : > { %v1452_v16 = vsel %vm1435_vm7, %v9055_v9, %v9369_v6  ;;  %v1446_v6 = vsel %vm1435_vm7, %v8980_v22, %v9334_v62  ;;  %v1453_v10 = vsel %vm1435_vm7, %v15500_v4, %v9371_v32  ;;  %v1462_v62 = vsel %vm1435_vm7, %v9180_v57, %v9423_v20 }
 0x20e   : > { %v9453_v58 = vpop.permute.xlu1 %1357 }
 0x20f   : > { %v1478_v51 = vsel %vm1468_vm9, %v1445_v56, %v9453_v58 }
 0x210   : > { %v1356_v60 = vpop.permute.xlu0 %1355  ;;  %v9456_v49 = vpop.permute.xlu2 %1371  ;;  %7791 = vmatmul.msk.f32.gmra.mxu0 %vm1506_vm8, %v1472_v33 }
 0x211   : > { %v1477_v23 = vsel %vm1468_vm9, %v1444_v43, %v1356_v60  ;;  %v1460_v60 = vsel %vm1435_vm7, %v9155_v26, %v9376_v25  ;;  %v1485_v1 = vsel %vm1468_vm9, %v1452_v16, %v9456_v49  ;;  %v1479_v26 = vsel %vm1468_vm9, %v1446_v6, %v9442_v0  ;;  %v15501_v25 = vld [vmem:[#allocation2_spill] sm:$0xff]  ;;  %v15502_v0 = vld [vmem:[#allocation7_spill] sm:$0xff] }
 0x212   : > { %v1461_v58 = vsel %vm1435_vm7, %v15501_v25, %v9425_v15 }
 0x216   : > { %v1364_v61 = vpop.permute.xlu1 %1363 }
 0x217   : > { %v1481_v33 = vsel %vm1468_vm9, %v1448_v46, %v1364_v61  ;;  %v15506_v46 = vld [vmem:[#allocation8_spill] sm:$0xff] }
 0x218   : > { %v1362_v39 = vpop.permute.xlu0 %1361  ;;  %v1378_v44 = vpop.permute.xlu2 %1377  ;;  %7792 = vmatmul.msk.f32.gmra.mxu0 %vm1506_vm8, %v1473_v63 }
 0x219   : > { %v1480_v53 = vsel %vm1468_vm9, %v1447_v28, %v1362_v39  ;;  %v1488_v19 = vsel %vm1468_vm9, %v1455_v18, %v1378_v44  ;;  %v15503_v28 = vld [vmem:[#allocation3_spill] sm:$0xff] }
 0x21a   : > { %7799 = vmatmul.msk.f32.vlgmr.msra.gmra.mxu1 %vm1506_vm8, %v1480_v53  ;;  %v1463_v39 = vsel %vm1435_vm7, %v15503_v28, %v15502_v0 }
 0x21e   : > { %v1370_v8 = vpop.permute.xlu1 %1369 }
 0x21f   : > { %v1484_v7 = vsel %vm1468_vm9, %v1451_v31, %v1370_v8  ;;  %v15505_v8 = vld [vmem:[#allocation4_spill] sm:$0xff]  ;;  %v9613_v31 = vld [vmem:[%s15231_s3] ss:$0 sm:$0xff] }
 0x220   : > { %v1368_v3 = vpop.permute.xlu0 %1367  ;;  %v1384_v45 = vpop.permute.xlu2 %1383  ;;  %7793 = vmatmul.msk.f32.gmra.mxu0 %vm1506_vm8, %v1474_v14  ;;  %v1464_v14 = vsel %vm1435_vm7, %v15505_v8, %v15504_v47 }
 0x221   : > { %v1491_v42 = vsel %vm1468_vm9, %v1458_v13, %v1384_v45  ;;  %v1483_v55 = vsel %vm1468_vm9, %v1450_v41, %v1368_v3  ;;  %v15507_v13 = vld [vmem:[#allocation30_spill] sm:$0xff] }
 0x222   : > { %7800 = vmatmul.msk.f32.gmra.mxu1 %vm1506_vm8, %v1481_v33  ;;  %7810 = vmatmul.msk.f32.vlgmr.msra.gmra.mxu3 %vm1506_vm8, %v1491_v42  ;;  %v1465_v3 = vsel %vm1435_vm7, %v15507_v13, %v15506_v46  ;;  %v15508_v42 = vld [vmem:[#allocation32_spill] sm:$0xff] }
 0x226   : > { %v1376_v27 = vpop.permute.xlu1 %1375 }
 0x227   : > { %v1487_v17 = vsel %vm1468_vm9, %v1454_v24, %v1376_v27  ;;  %v1466_v24 = vsel %vm1435_vm7, %v15509_v59, %v15508_v42 }
 0x228   : > { %v1374_v11 = vpop.permute.xlu0 %1373  ;;  %7794 = vmatmul.msk.f32.gmra.mxu0 %vm1506_vm8, %v1475_v54  ;;  %7806 = vmatmul.msk.f32.vlgmr.msra.gmra.mxu2 %vm1506_vm8, %v1487_v17  ;;  %v1390_v9 = vpop.permute.xlu2 %1389 }
 0x229   : > { %v1486_v49 = vsel %vm1468_vm9, %v1453_v10, %v1374_v11  ;;  %v1494_v63 = vsel %vm1468_vm9, %v1461_v58, %v1390_v9  ;;  %v1467_v11 = vsel %vm1435_vm7, %v15510_v40, %v9435_v29 }
 0x22a   : > { %7801 = vmatmul.msk.f32.gmra.mxu1 %vm1506_vm8, %v1482_v52 }
 0x22e   : > { %v1382_v50 = vpop.permute.xlu1 %1381 }
 0x22f   : > { %v1490_v48 = vsel %vm1468_vm9, %v1457_v34, %v1382_v50 }
 0x230   : > { %v1380_v5 = vpop.permute.xlu0 %1379  ;;  %7795 = vmatmul.msk.f32.gmra.mxu0 %vm1506_vm8, %v1476_v35  ;;  %7807 = vmatmul.msk.f32.gmra.mxu2 %vm1506_vm8, %v1488_v19  ;;  %v1396_v53 = vpop.permute.xlu2 %1395 }
 0x231   : > { %v1489_v2 = vsel %vm1468_vm9, %v1456_v30, %v1380_v5  ;;  %v1497_v57 = vsel %vm1468_vm9, %v1464_v14, %v1396_v53  ;;  %v9606_v30 = vld [vmem:[%s15230_s2] ss:$0 sm:$0xff] }
 0x232   : > { %7802 = vmatmul.msk.f32.gmra.mxu1 %vm1506_vm8, %v1483_v55 }
 0x236   : > { %v1388_v21 = vpop.permute.xlu1 %1387 }
 0x237   : > { %v1493_v38 = vsel %vm1468_vm9, %v1460_v60, %v1388_v21 }
 0x238   : > { %v1386_v61 = vpop.permute.xlu0 %1385  ;;  %7796 = vmatmul.msk.f32.gmra.mxu0 %vm1506_vm8, %v1477_v23  ;;  %7808 = vmatmul.msk.f32.gmra.mxu2 %vm1506_vm8, %v1489_v2  ;;  %v1402_v17 = vpop.permute.xlu2 %1401 }
 0x239   : > { %v1492_v37 = vsel %vm1468_vm9, %v1459_v12, %v1386_v61  ;;  %v1500_v52 = vsel %vm1468_vm9, %v1467_v11, %v1402_v17 }
 0x23a   : > { %7803 = vmatmul.msk.f32.gmra.mxu1 %vm1506_vm8, %v1484_v7  ;;  %7811 = vmatmul.msk.f32.gmra.mxu3 %vm1506_vm8, %v1492_v37 }
 0x23e   : > { %v1394_v15 = vpop.permute.xlu1 %1393 }
 0x23f   : > { %v1496_v44 = vsel %vm1468_vm9, %v1463_v39, %v1394_v15 }
 0x240   : > { %7797 = vmatmul.msk.f32.gmra.mxu0 %vm1506_vm8, %v1478_v51  ;;  %7809 = vmatmul.msk.f32.gmra.mxu2 %vm1506_vm8, %v1490_v48  ;;  %v1392_v22 = vpop.permute.xlu0 %1391 }
 0x241   : > { %v1495_v32 = vsel %vm1468_vm9, %v1462_v62, %v1392_v22 }
 0x242   : > { %7804 = vmatmul.msk.f32.gmra.mxu1 %vm1506_vm8, %v1485_v1  ;;  %7812 = vmatmul.msk.f32.gmra.mxu3 %vm1506_vm8, %v1493_v38 }
 0x246   : > { %v1400_v33 = vpop.permute.xlu1 %1399 }
 0x247   : > { %v1499_v27 = vsel %vm1468_vm9, %v1466_v24, %v1400_v33 }
 0x248   : > { %7798 = vmatmul.msk.f32.gmra.mxu0 %vm1506_vm8, %v1479_v26  ;;  %v1398_v20 = vpop.permute.xlu0 %1397 }
 0x249   : > { %v1498_v45 = vsel %vm1468_vm9, %v1465_v3, %v1398_v20  ;;  %vm2314_vm9 = vcmask 7168  }
 0x24a   : > { %7805 = vmatmul.msk.f32.gmra.mxu1 %vm1506_vm8, %v1486_v49  ;;  %7813 = vmatmul.msk.f32.gmra.mxu3 %vm1506_vm8, %v1494_v63 }
 0x252   : > { %7814 = vmatmul.msk.f32.gmra.mxu3 %vm1506_vm8, %v1495_v32 }
 0x25a   : > { %7815 = vmatmul.msk.f32.gmra.mxu3 %vm1506_vm8, %v1496_v44 }
 0x262   : > { %7816 = vmatmul.msk.f32.gmra.mxu3 %vm1506_vm8, %v1497_v57 }
 0x26a   : > { %7817 = vmatmul.msk.f32.gmra.mxu3 %vm1506_vm8, %v1498_v45 }
 0x272   : > { %7818 = vmatmul.msk.f32.gmra.mxu3 %vm1506_vm8, %v1499_v27 }
 0x275   : > { %v1624_v54 = vpop.f32.mrf.mxu0 }
 0x276   : > { %v1724_v2 = vmul.f32 %v9606_v30, %v1624_v54 }
 0x278   : > { %v1760_v56 = vadd.f32 %v9613_v31, %v1724_v2 }
 0x27a   : > { %7819 = vmatmul.msk.f32.gmra.mxu3 %vm1506_vm8, %v1500_v52  ;;  %v9627_v38 = vmax.f32 %v1760_v56, 0.0 }
 0x27c   : > { %v1825_v22 = vsel %vm1824_vm10, %v9627_v38, 0.0 }
 0x27d   : > { %v1627_v36 = vpop.f32.mrf.mxu0 }
 0x27e   : > { %v1725_v29 = vmul.f32 %v9606_v30, %v1627_v36 }
 0x280   : > { %v1761_v7 = vadd.f32 %v9613_v31, %v1725_v29 }
 0x282   : > { %v9621_v51 = vmax.f32 %v1761_v7, 0.0 }
 0x284   : > { %v1826_v25 = vsel %vm1824_vm10, %v9621_v51, 0.0 }
 0x285   : > { %v1630_v18 = vpop.f32.mrf.mxu0  ;;  %v1827_v28 = vadd.f32 %v1826_v25, %v1825_v22 }
 0x286   : > { %v1726_v12 = vmul.f32 %v9606_v30, %v1630_v18 }
 0x288   : > { %v1762_v34 = vadd.f32 %v9613_v31, %v1726_v12 }
 0x28a   : > { %v9631_v9 = vmax.f32 %v1762_v34, 0.0 }
 0x28c   : > { %v1828_v62 = vsel %vm1824_vm10, %v9631_v9, 0.0 }
 0x28d   : > { %v1633_v35 = vpop.f32.mrf.mxu0  ;;  %v1829_v14 = vadd.f32 %v1828_v62, %v1827_v28 }
 0x28e   : > { %v1727_v37 = vmul.f32 %v9606_v30, %v1633_v35 }
 0x290   : > { %v1763_v48 = vadd.f32 %v9613_v31, %v1727_v37 }
 0x292   : > { %v9637_v58 = vmax.f32 %v1763_v48, 0.0 }
 0x294   : > { %v1830_v39 = vsel %vm1824_vm10, %v9637_v58, 0.0 }
 0x295   : > { %v1636_v19 = vpop.f32.mrf.mxu0  ;;  %v1831_v3 = vadd.f32 %v1830_v39, %v1829_v14 }
 0x296   : > { %v1728_v21 = vmul.f32 %v9606_v30, %v1636_v19 }
 0x297   : > { %v1657_v41 = vpop.f32.mrf.mxu1 }
 0x298   : > { %v1764_v26 = vadd.f32 %v9613_v31, %v1728_v21  ;;  %v1735_v54 = vmul.f32 %v9606_v30, %v1657_v41 }
 0x29a   : > { %v9645_v32 = vmax.f32 %v1764_v26, 0.0 }
 0x29c   : > { %v1832_v20 = vsel %vm1824_vm10, %v9645_v32, 0.0 }
 0x29d   : > { %v1639_v5 = vpop.f32.mrf.mxu0  ;;  %v1833_v24 = vadd.f32 %v1832_v20, %v1831_v3 }
 0x29e   : > { %v1729_v16 = vmul.f32 %v9606_v30, %v1639_v5 }
 0x29f   : > { %v1660_v55 = vpop.f32.mrf.mxu1 }
 0x2a0   : > { %v1765_v49 = vadd.f32 %v9613_v31, %v1729_v16  ;;  %v1736_v52 = vmul.f32 %v9606_v30, %v1660_v55 }
 0x2a2   : > { %v9651_v44 = vmax.f32 %v1765_v49, 0.0  ;;  %v1772_v2 = vadd.f32 %v9613_v31, %v1736_v52 }
 0x2a4   : > { %v1834_v33 = vsel %vm1824_vm10, %v9651_v44, 0.0 }
 0x2a5   : > { %v1642_v50 = vpop.f32.mrf.mxu0  ;;  %v9625_v60 = vpop.f32.mrf.mxu3  ;;  %v1835_v11 = vadd.f32 %v1834_v33, %v1833_v24 }
 0x2a6   : > { %v1730_v4 = vmul.f32 %v9606_v30, %v1642_v50  ;;  %v1771_v50 = vadd.f32 %v9613_v31, %v1735_v54 }
 0x2a7   : > { %v9601_v43 = vpop.f32.mrf.mxu1 }
 0x2a8   : > { %v1766_v15 = vadd.f32 %v9613_v31, %v1730_v4  ;;  %v1737_v41 = vmul.f32 %v9606_v30, %v9601_v43  ;;  %v9690_v21 = vmax.f32 %v1771_v50, 0.0  ;;  %v9696_v4 = vmax.f32 %v1772_v2, 0.0 }
 0x2aa   : > { %v9659_v46 = vmax.f32 %v1766_v15, 0.0  ;;  %v1773_v43 = vadd.f32 %v9613_v31, %v1737_v41  ;;  %v1846_v62 = vsel %vm1824_vm10, %v9690_v21, 0.0  ;;  %v1848_v39 = vsel %vm1824_vm10, %v9696_v4, 0.0 }
 0x2ab   : > { %v9629_v6 = vpop.f32.mrf.mxu2 }
 0x2ac   : > { %v1836_v17 = vsel %vm1824_vm10, %v9659_v46, 0.0  ;;  %v9704_v15 = vmax.f32 %v1773_v43, 0.0 }
 0x2ad   : > { %v1645_v23 = vpop.f32.mrf.mxu0  ;;  %v1837_v5 = vadd.f32 %v1836_v17, %v1835_v11 }
 0x2ae   : > { %v1731_v63 = vmul.f32 %v9606_v30, %v1645_v23  ;;  %v1850_v20 = vsel %vm1824_vm10, %v9704_v15, 0.0 }
 0x2af   : > { %v1666_v61 = vpop.f32.mrf.mxu1 }
 0x2b0   : > { %v1767_v53 = vadd.f32 %v9613_v31, %v1731_v63  ;;  %v1738_v12 = vmul.f32 %v9606_v30, %v1666_v61 }
 0x2b2   : > { %v9664_v42 = vmax.f32 %v1767_v53, 0.0  ;;  %v1774_v61 = vadd.f32 %v9613_v31, %v1738_v12  ;;  %v1742_v53 = vmul.f32 %v9606_v30, %v9629_v6 }
 0x2b3   : > { %v1681_v45 = vpop.f32.mrf.mxu2 }
 0x2b4   : > { %v1838_v36 = vsel %vm1824_vm10, %v9664_v42, 0.0 }
 0x2b5   : > { %v1648_v1 = vpop.f32.mrf.mxu0  ;;  %v1839_v55 = vadd.f32 %v1838_v36, %v1837_v5 }
 0x2b6   : > { %v1732_v0 = vmul.f32 %v9606_v30, %v1648_v1 }
 0x2b7   : > { %v1669_v10 = vpop.f32.mrf.mxu1 }
 0x2b8   : > { %v1768_v13 = vadd.f32 %v9613_v31, %v1732_v0  ;;  %v1739_v48 = vmul.f32 %v9606_v30, %v1669_v10 }
 0x2ba   : > { %v9670_v40 = vmax.f32 %v1768_v13, 0.0  ;;  %v1775_v10 = vadd.f32 %v9613_v31, %v1739_v48  ;;  %v1743_v13 = vmul.f32 %v9606_v30, %v1681_v45 }
 0x2bb   : > { %v1684_v34 = vpop.f32.mrf.mxu2 }
 0x2bc   : > { %v1840_v29 = vsel %vm1824_vm10, %v9670_v40, 0.0  ;;  %v9718_v3 = vmax.f32 %v1775_v10, 0.0  ;;  %v1744_v54 = vmul.f32 %v9606_v30, %v1684_v34  ;;  %v1779_v36 = vadd.f32 %v9613_v31, %v1743_v13 }
 0x2bd   : > { %v1651_v47 = vpop.f32.mrf.mxu0  ;;  %v9654_v8 = vpop.f32.mrf.mxu3  ;;  %v1841_v56 = vadd.f32 %v1840_v29, %v1839_v55  ;;  %v1746_v55 = vmul.f32 %v9606_v30, %v9625_v60 }
 0x2be   : > { %v1733_v57 = vmul.f32 %v9606_v30, %v1651_v47  ;;  %v9712_v47 = vmax.f32 %v1774_v61, 0.0  ;;  %v1854_v45 = vsel %vm1824_vm10, %v9718_v3, 0.0  ;;  %v1780_v29 = vadd.f32 %v9613_v31, %v1744_v54  ;;  %v1975_v54 = vld [vmem:[%s15232_s4 + $0x18] sm:$0xff] }
 0x2bf   : > { %v1672_v27 = vpop.f32.mrf.mxu1  ;;  %v9740_v12 = vmax.f32 %v1779_v36, 0.0  ;;  %v1747_v60 = vmul.f32 %v9606_v30, %v9654_v8  ;;  %1991 = vmatpush.msrb.mxu1 %v1975_v54 }
 0x2c0   : > { %v1769_v59 = vadd.f32 %v9613_v31, %v1733_v57  ;;  %v1740_v25 = vmul.f32 %v9606_v30, %v1672_v27  ;;  %v1778_v27 = vadd.f32 %v9613_v31, %v1742_v53  ;;  %v1852_v6 = vsel %vm1824_vm10, %v9712_v47, 0.0 }
 0x2c1   : > { %v9747_v43 = vmax.f32 %v1780_v29, 0.0  ;;  %v1862_v61 = vsel %vm1824_vm10, %v9740_v12, 0.0  ;;  %v1783_v10 = vadd.f32 %v9613_v31, %v1747_v60  ;;  %v1902_v29 = vsel %vm1824_vm10, %v9627_v38, -inf }
 0x2c2   : > { %v9675_v18 = vmax.f32 %v1769_v59, 0.0  ;;  %v1776_v14 = vadd.f32 %v9613_v31, %v1740_v25  ;;  %v9733_v41 = vmax.f32 %v1778_v27, 0.0  ;;  %v1910_v60 = vsel %vm1824_vm10, %v9659_v46, -inf }
 0x2c3   : > { %v1687_v59 = vpop.f32.mrf.mxu2 }
 0x2c4   : > { %v1842_v7 = vsel %vm1824_vm10, %v9675_v18, 0.0  ;;  %v9725_v17 = vmax.f32 %v1776_v14, 0.0  ;;  %v1860_v34 = vsel %vm1824_vm10, %v9733_v41, 0.0 }
 0x2c5   : > { %v1654_v35 = vpop.f32.mrf.mxu0  ;;  %v9677_v19 = vpop.f32.mrf.mxu3  ;;  %v1843_v1 = vadd.f32 %v1842_v7, %v1841_v56 }
 0x2c6   : > { %v1734_v23 = vmul.f32 %v9606_v30, %v1654_v35  ;;  %v1745_v35 = vmul.f32 %v9606_v30, %v1687_v59 }
 0x2c7   : > { %v1675_v26 = vpop.f32.mrf.mxu1 }
 0x2c8   : > { %v1770_v37 = vadd.f32 %v9613_v31, %v1734_v23  ;;  %v1741_v0 = vmul.f32 %v9606_v30, %v1675_v26  ;;  %v1856_v23 = vsel %vm1824_vm10, %v9725_v17, 0.0  ;;  %v1781_v7 = vadd.f32 %v9613_v31, %v1745_v35 }
 0x2ca   : > { %v9694_v16 = vmax.f32 %v1770_v37, 0.0  ;;  %v1777_v33 = vadd.f32 %v9613_v31, %v1741_v0  ;;  %v9754_v25 = vmax.f32 %v1781_v7, 0.0  ;;  %v1748_v0 = vmul.f32 %v9606_v30, %v9677_v19 }
 0x2cb   : > { %v1904_v7 = vsel %vm1824_vm10, %v9631_v9, -inf }
 0x2cc   : > { %v1844_v49 = vsel %vm1824_vm10, %v9694_v16, 0.0  ;;  %v9731_v5 = vmax.f32 %v1777_v33, 0.0  ;;  %v1866_v8 = vsel %vm1824_vm10, %v9754_v25, 0.0 }
 0x2cd   : > { %v1699_v63 = vpop.f32.mrf.mxu3  ;;  %v1845_v22 = vadd.f32 %v1844_v49, %v1843_v1  ;;  %v1782_v1 = vadd.f32 %v9613_v31, %v1746_v55 }
 0x2ce   : > { %v1858_v37 = vsel %vm1824_vm10, %v9731_v5, 0.0  ;;  %v1749_v13 = vmul.f32 %v9606_v30, %v1699_v63  ;;  %v1906_v63 = vsel %vm1824_vm10, %v9645_v32, -inf }
 0x2cf   : > { %v1847_v28 = vadd.f32 %v1846_v62, %v1845_v22  ;;  %v1864_v22 = vsel %vm1824_vm10, %v9747_v43, 0.0  ;;  %v9758_v62 = vmax.f32 %v1782_v1, 0.0  ;;  %v1908_v1 = vsel %vm1824_vm10, %v9651_v44, -inf }
 0x2d0   : > { %v1785_v27 = vadd.f32 %v9613_v31, %v1749_v13  ;;  %v1911_v13 = vmax.f32 %v1904_v7, %v1910_v60  ;;  %v1936_v7 = vsel %vm1824_vm10, %v9740_v12, -inf }
 0x2d1   : > { %v1849_v57 = vadd.f32 %v1848_v39, %v1847_v28  ;;  %v1868_v14 = vsel %vm1824_vm10, %v9758_v62, 0.0 }
 0x2d2   : > { %v9796_v55 = vmax.f32 %v1785_v27, 0.0 }
 0x2d3   : > { %v1851_v24 = vadd.f32 %v1850_v20, %v1849_v57  ;;  %v9767_v57 = vmax.f32 %v1783_v10, 0.0  ;;  %v1784_v20 = vadd.f32 %v9613_v31, %v1748_v0  ;;  %v1918_v0 = vsel %vm1824_vm10, %v9694_v16, -inf }
 0x2d5   : > { %v1702_v11 = vpop.f32.mrf.mxu3  ;;  %v1853_v52 = vadd.f32 %v1852_v6, %v1851_v24  ;;  %v1870_v19 = vsel %vm1824_vm10, %v9767_v57, 0.0  ;;  %v9774_v24 = vmax.f32 %v1784_v20, 0.0 }
 0x2d6   : > { %v1750_v59 = vmul.f32 %v9606_v30, %v1702_v11  ;;  %v1912_v11 = vsel %vm1824_vm10, %v9664_v42, -inf }
 0x2d7   : > { %v1855_v50 = vadd.f32 %v1854_v45, %v1853_v52  ;;  %v1974_v52 = vld [vmem:[%s15232_s4 + $0x10] sm:$0xff] }
 0x2d8   : > { %v1786_v36 = vadd.f32 %v9613_v31, %v1750_v59  ;;  %1992 = vmatpush.msrb.mxu1 %v1974_v52  ;;  %v1922_v59 = vsel %vm1824_vm10, %v9696_v4, -inf  ;;  %v1919_v52 = vmax.f32 %v1911_v13, %v1918_v0  ;;  %v1934_v13 = vsel %vm1824_vm10, %v9733_v41, -inf }
 0x2d9   : > { %v1857_v2 = vadd.f32 %v1856_v23, %v1855_v50  ;;  %v1973_v50 = vld [vmem:[%s15232_s4 + $0x8] sm:$0xff]  ;;  %v1872_v23 = vsel %vm1824_vm10, %v9774_v24, 0.0 }
 0x2da   : > { %1993 = vmatpush.msrb.mxu1 %v1973_v50  ;;  %v1924_v50 = vsel %vm1824_vm10, %v9704_v15, -inf }
 0x2db   : > { %v1859_v56 = vadd.f32 %v1858_v37, %v1857_v2  ;;  %v1903_v2 = vsel %vm1824_vm10, %v9621_v51, -inf  ;;  %v1905_v37 = vsel %vm1824_vm10, %v9637_v58, -inf }
 0x2dc   : > { %v1909_v20 = vmax.f32 %v1903_v2, %v1908_v1 }
 0x2dd   : > { %v1705_v48 = vpop.f32.mrf.mxu3  ;;  %v1861_v26 = vadd.f32 %v1860_v34, %v1859_v56  ;;  %v1972_v34 = vld [vmem:[%s15232_s4] sm:$0xff] }
 0x2de   : > { %v1751_v45 = vmul.f32 %v9606_v30, %v1705_v48  ;;  %v1907_v48 = vmax.f32 %v1902_v29, %v1906_v63  ;;  %1994 = vmatpush.msrb.mxu1 %v1972_v34  ;;  %v1926_v29 = vsel %vm1824_vm10, %v9712_v47, -inf }
 0x2df   : > { %v1863_v49 = vadd.f32 %v1862_v61, %v1861_v26  ;;  %v1913_v26 = vmax.f32 %v1905_v37, %v1912_v11  ;;  %v1914_v61 = vsel %vm1824_vm10, %v9670_v40, -inf  ;;  %v1930_v37 = vsel %vm1824_vm10, %v9725_v17, -inf }
 0x2e0   : > { %v1787_v10 = vadd.f32 %v9613_v31, %v1751_v45  ;;  %v1927_v1 = vmax.f32 %v1919_v52, %v1926_v29 }
 0x2e1   : > { %v1865_v28 = vadd.f32 %v1864_v22, %v1863_v49  ;;  %v1916_v49 = vsel %vm1824_vm10, %v9675_v18, -inf  ;;  %v9815_v22 = vmax.f32 %v1786_v36, 0.0 }
 0x2e2   : > { %v1917_v54 = vmax.f32 %v1909_v20, %v1916_v49  ;;  %v9832_v63 = vmax.f32 %v1787_v10, 0.0  ;;  %v1942_v20 = vsel %vm1824_vm10, %v9758_v62, -inf }
 0x2e3   : > { %v1867_v39 = vadd.f32 %v1866_v8, %v1865_v28  ;;  %v1874_v28 = vsel %vm1824_vm10, %v9796_v55, 0.0 }
 0x2e4   : > { %v1925_v60 = vmax.f32 %v1917_v54, %v1924_v50  ;;  %v1878_v49 = vsel %vm1824_vm10, %v9832_v63, 0.0  ;;  %v1935_v54 = vmax.f32 %v1927_v1, %v1934_v13 }
 0x2e5   : > { %v1708_v53 = vpop.f32.mrf.mxu3  ;;  %v1869_v33 = vadd.f32 %v1868_v14, %v1867_v39  ;;  %v1920_v14 = vsel %vm1824_vm10, %v9690_v21, -inf }
 0x2e6   : > { %v1752_v8 = vmul.f32 %v9606_v30, %v1708_v53  ;;  %v1921_v27 = vmax.f32 %v1913_v26, %v1920_v14  ;;  %v1876_v53 = vsel %vm1824_vm10, %v9815_v22, 0.0  ;;  %v8258_v26 = vmov 256.0  }
 0x2e7   : > { %v1871_v6 = vadd.f32 %v1870_v19, %v1869_v33  ;;  %v1915_v19 = vmax.f32 %v1907_v48, %v1914_v61  ;;  %8109 = vrcp.f32 %v8258_v26  ;;  %v1944_v61 = vsel %vm1824_vm10, %v9767_v57, -inf }
 0x2e8   : > { %v1788_v36 = vadd.f32 %v9613_v31, %v1752_v8  ;;  %v1943_v1 = vmax.f32 %v1935_v54, %v1942_v20 }
 0x2e9   : > { %v1873_v56 = vadd.f32 %v1872_v23, %v1871_v6  ;;  %v1928_v6 = vsel %vm1824_vm10, %v9718_v3, -inf  ;;  %v1923_v48 = vmax.f32 %v1915_v19, %v1922_v59 }
 0x2ea   : > { %v1929_v23 = vmax.f32 %v1921_v27, %v1928_v6  ;;  %v9852_v10 = vmax.f32 %v1788_v36, 0.0  ;;  %v1940_v27 = vsel %vm1824_vm10, %v9754_v25, -inf  ;;  %v1946_v6 = vsel %vm1824_vm10, %v9774_v24, -inf }
 0x2eb   : > { %v1875_v33 = vadd.f32 %v1874_v28, %v1873_v56  ;;  %v1932_v56 = vsel %vm1824_vm10, %v9731_v5, -inf  ;;  %v1931_v8 = vmax.f32 %v1923_v48, %v1930_v37 }
 0x2ec   : > { %v1937_v28 = vmax.f32 %v1929_v23, %v1936_v7  ;;  %v1950_v23 = vsel %vm1824_vm10, %v9815_v22, -inf  ;;  %v1952_v7 = vsel %vm1824_vm10, %v9832_v63, -inf  ;;  %v1954_v26 = vsel %vm1824_vm10, %v9852_v10, -inf }
 0x2ed   : > { %v1711_v35 = vpop.f32.mrf.mxu3  ;;  %v1877_v2 = vadd.f32 %v1876_v53, %v1875_v33  ;;  %v1938_v33 = vsel %vm1824_vm10, %v9747_v43, -inf  ;;  %v1948_v53 = vsel %vm1824_vm10, %v9796_v55, -inf }
 0x2ee   : > { %v1753_v39 = vmul.f32 %v9606_v30, %v1711_v35  ;;  %v1945_v19 = vmax.f32 %v1937_v28, %v1944_v61  ;;  %v1939_v50 = vmax.f32 %v1931_v8, %v1938_v33  ;;  %v1951_v8 = vmax.f32 %v1943_v1, %v1950_v23 }
 0x2ef   : > { %v1879_v14 = vadd.f32 %v1878_v49, %v1877_v2 }
 0x2f0   : > { %v1789_v45 = vadd.f32 %v9613_v31, %v1753_v39  ;;  %v1933_v39 = vmax.f32 %v1925_v60, %v1932_v56  ;;  %v1947_v48 = vmax.f32 %v1939_v50, %v1946_v6 }
 0x2f2   : > { %v9854_v0 = vmax.f32 %v1789_v45, 0.0  ;;  %v1941_v29 = vmax.f32 %v1933_v39, %v1940_v27  ;;  %v1953_v39 = vmax.f32 %v1945_v19, %v1952_v7  ;;  %v1955_v33 = vmax.f32 %v1947_v48, %v1954_v26 }
 0x2f4   : > { %v1882_v36 = vsel %vm1824_vm10, %v9854_v0, 0.0  ;;  %v1956_v37 = vsel %vm1824_vm10, %v9854_v0, -inf }
 0x2f5   : > { %v1714_v11 = vpop.f32.mrf.mxu3 }
 0x2f6   : > { %v1754_v35 = vmul.f32 %v9606_v30, %v1714_v11  ;;  %v1880_v11 = vsel %vm1824_vm10, %v9852_v10, 0.0 }
 0x2f7   : > { %v1881_v2 = vadd.f32 %v1880_v11, %v1879_v14 }
 0x2f8   : > { %v1790_v34 = vadd.f32 %v9613_v31, %v1754_v35  ;;  %v8110_v35 = vpop.eup %8109 }
 0x2f9   : > { %v1883_v60 = vadd.f32 %v1882_v36, %v1881_v2  ;;  %v1895_v28 = vmul.f32 256.0, %v8110_v35  ;;  %vm1899_vm11 = vweird.f32 %v8110_v35 }
 0x2fa   : > { %v9862_v59 = vmax.f32 %v1790_v34, 0.0 }
 0x2fc   : > { %v1884_v56 = vsel %vm1824_vm10, %v9862_v59, 0.0  ;;  %v1958_v61 = vsel %vm1824_vm10, %v9862_v59, -inf }
 0x2fd   : > { %v1717_v52 = vpop.f32.mrf.mxu3  ;;  %v1885_v13 = vadd.f32 %v1884_v56, %v1883_v60  ;;  %v1959_v27 = vmax.f32 %v1951_v8, %v1958_v61  ;;  %v2000_v8 = vld [vmem:[%s15233_s5] sm:$0xf] }
 0x2fe   : > { %v1755_v45 = vmul.f32 %v9606_v30, %v1717_v52  ;;  %v1949_v30 = vmax.f32 %v1941_v29, %v1948_v53  ;;  %v1896_v52 = vsub.f32 1.0, %v1895_v28  ;;  %7821 = vmatpush.msk.msrb.mxu2 %vm1603_vm6, %v2000_v8 }
 0x300   : > { %v1791_v34 = vadd.f32 %v9613_v31, %v1755_v45  ;;  %v1957_v14 = vmax.f32 %v1949_v30, %v1956_v37  ;;  %v1897_v29 = vmul.f32 %v8110_v35, %v1896_v52 }
 0x302   : > { %v9888_v49 = vmax.f32 %v1791_v34, 0.0  ;;  %v1962_v53 = vmax.f32 %v1955_v33, %v1957_v14  ;;  %v1898_v37 = vadd.f32 %v8110_v35, %v1897_v29 }
 0x304   : > { %v1886_v31 = vsel %vm1824_vm10, %v9888_v49, 0.0  ;;  %v1960_v20 = vsel %vm1824_vm10, %v9888_v49, -inf  ;;  %v1900_v1 = vsel %vm1899_vm11, %v8110_v35, %v1898_v37  ;;  %vm3373_vm11 = vcmask 15360  }
 0x305   : > { %v1887_v6 = vadd.f32 %v1886_v31, %v1885_v13  ;;  %v1961_v54 = vmax.f32 %v1953_v39, %v1960_v20  ;;  %v15511_v39 = vld [vmem:[#allocation48_spill] sm:$0xff]  ;;  %v15512_v13 = vld [vmem:[#allocation50_spill] sm:$0xff] }
 0x306   : > { %v9902_v14 = vsel %vm2379_vm1, %v15511_v39, 0.0  ;;  %v9906_v35 = vpack.i.bf16 %v15511_v39, %v15512_v13 }
 0x307   : > { %v1888_v11 = vrot.slane %v1887_v6, 4  ;;  %v1963_v36 = vmax.f32 %v1959_v27, %v1961_v54  ;;  %2545 = vrot.lane.b32.xlu1 %v9902_v14, %s8259_s26  ;;  %2682 = vrot.lane.b32.xlu2 %v9902_v14, %s8253_s27 }
 0x308   : > { %8013 = vrot.lane.b32.xlu0 %v9906_v35, %s8259_s26 }
 0x309   : > { %v1889_v45 = vadd.f32 %v1888_v11, %v1887_v6  ;;  %v1964_v50 = vmax.f32 %v1962_v53, %v1963_v36 }
 0x30b   : > { %v1890_v19 = vrot.slane %v1889_v45, 2  ;;  %v1965_v23 = vrot.slane %v1964_v50, 4 }
 0x30d   : > { %v1891_v2 = vadd.f32 %v1890_v19, %v1889_v45  ;;  %v1966_v7 = vmax.f32 %v1964_v50, %v1965_v23 }
 0x30f   : > { %v1892_v56 = vrot.slane %v1891_v2, 1  ;;  %v1967_v34 = vrot.slane %v1966_v7, 2 }
 0x310   : > { %8018 = vrot.lane.b32.xlu0 %v9906_v35, %s8253_s27 }
 0x311   : > { %v1893_v30 = vadd.f32 %v1892_v56, %v1891_v2  ;;  %v1968_v48 = vmax.f32 %v1966_v7, %v1967_v34 }
 0x313   : > { %v1969_v60 = vrot.slane %v1968_v48, 1  ;;  %v1901_v26 = vmul.f32 %v1900_v1, %v1893_v30 }
 0x315   : > { %v1970_v61 = vmax.f32 %v1968_v48, %v1969_v60 }
 0x317   : > { %v1971_v28 = vsel %vm479_vm0, %v1901_v26, %v1970_v61 }
 0x318   : > { %7820 = vmatmul.msk.f32.vlgmr.msrb.gmra.mxu1 %vm1824_vm10, %v1971_v28 }
 0x395   : > { %v1996_v31 = vpop.f32.mrf.mxu1 }
 0x396   : > { %v1999_v20 = vmax.f32 %v1996_v31, 0.0 }
 0x398   : > { %7822 = vmatmul.msk.f32.vlgmr.msrb.gmra.mxu2 %vm935_vm2, %v1999_v20 }
 0x41b   : > { %v2024_v33 = vpop.f32.mrf.mxu2 }
 0x41c   : > { %v2028_v27 = vrot.slane %v2024_v33, 1 }
 0x41e   : > { %v2030_v6 = vadd.f32 %v2028_v27, %v2024_v33 }
 0x420   : > { %v7823_v54 = vmul.f32 -1.442695, %v2030_v6 }
 0x422   : > { %8111 = vpow2.f32 %v7823_v54 }
 0x428   : > { %v8112_v52 = vpop.eup %8111 }
 0x429   : > { %v2034_v53 = vadd.f32 1.0, %v8112_v52 }
 0x42b   : > { %8113 = vrcp.f32 %v2034_v53  ;;  %v2046_v50 = vand.u32 2147483648, %v2034_v53  ;;  %v2044_v19 = vand.u32 2147483647, %v2034_v53  ;;  %vm2040_vm13 = vweird.f32 %v2034_v53 }
 0x42d   : > { %v2047_v2 = vor.u32 1.1754944e-38, %v2046_v50  ;;  %vm2045_vm15 = vcmp.eq.f32.partialorder %v2044_v19, 8.507059e+37 }
 0x431   : > { %v8114_v11 = vpop.eup %8113 }
 0x432   : > { %v2036_v36 = vmul.f32 %v8114_v11, %v2034_v53  ;;  %vm2041_vm12 = vweird.f32 %v8114_v11 }
 0x433   : > { %vm2042_vm14 = vmor %vm2040_vm13, %vm2041_vm12  ;;  %vm3467_vm12 = vcmask 48128   ;;  %vm3564_vm13 = vcmask 80896  }
 0x434   : > { %v2037_v45 = vsub.f32 1.0, %v2036_v36 }
 0x436   : > { %v2038_v29 = vmul.f32 %v8114_v11, %v2037_v45 }
 0x438   : > { %v2039_v23 = vadd.f32 %v8114_v11, %v2038_v29 }
 0x43a   : > { %v2043_v7 = vsel %vm2042_vm14, %v8114_v11, %v2039_v23  ;;  %vm4800_vm14 = vcmask 228352  }
 0x43b   : > { %v2048_v37 = vsel %vm2045_vm15, %v2047_v2, %v2043_v7  ;;  %vm4866_vm15 = vcmask 457728  }
 0x43c   : > { %v9917_v56 = vperm.slane %v2048_v37, 0 }
 0x43e   : > { %v9921_v34 = vmul.f32 %v9917_v56, %v9631_v9  ;;  %v9925_v30 = vmul.f32 %v9917_v56, %v9621_v51  ;;  %v9929_v48 = vmul.f32 %v9917_v56, %v9627_v38  ;;  %v9939_v51 = vmul.f32 %v9917_v56, %v9637_v58 }
 0x43f   : > { %v9943_v38 = vmul.f32 %v9917_v56, %v9651_v44  ;;  %v9947_v9 = vmul.f32 %v9917_v56, %v9645_v32  ;;  %v9957_v44 = vmul.f32 %v9917_v56, %v9659_v46  ;;  %v9961_v32 = vmul.f32 %v9917_v56, %v9670_v40 }
 0x440   : > { %15513 = vst [vmem:[#allocation33_spill] sm:$0xff] %v9921_v34  ;;  %v2089_v1 = vsel %vm1824_vm10, %v9921_v34, 0.0  ;;  %v2086_v60 = vsel %vm1824_vm10, %v9925_v30, 0.0  ;;  %v2083_v26 = vsel %vm1824_vm10, %v9929_v48, 0.0  ;;  %v2092_v61 = vsel %vm1824_vm10, %v9939_v51, 0.0 }
 0x441   : > { %15514 = vst [vmem:[#allocation10_spill] sm:$0xff] %v9925_v30  ;;  %2090 = vadd.xlane.f32.xlu2 %v2089_v1  ;;  %2087 = vadd.xlane.f32.xlu1 %v2086_v60  ;;  %v2098_v28 = vsel %vm1824_vm10, %v9943_v38, 0.0  ;;  %v2095_v58 = vsel %vm1824_vm10, %v9947_v9, 0.0  ;;  %v9965_v8 = vmul.f32 %v9917_v56, %v9664_v42  ;;  %v2101_v31 = vsel %vm1824_vm10, %v9957_v44, 0.0 }
 0x442   : > { %15515 = vst [vmem:[#allocation11_spill] sm:$0xff] %v9929_v48  ;;  %2084 = vadd.xlane.f32.xlu0 %v2083_v26  ;;  %v2107_v20 = vsel %vm1824_vm10, %v9961_v32, 0.0  ;;  %v9975_v40 = vmul.f32 %v9917_v56, %v9675_v18  ;;  %v9979_v42 = vmul.f32 %v9917_v56, %v9690_v21  ;;  %v9983_v33 = vmul.f32 %v9917_v56, %v9694_v16 }
 0x443   : > { %15516 = vst [vmem:[#allocation34_spill] sm:$0xff] %v9939_v51  ;;  %v2104_v46 = vsel %vm1824_vm10, %v9965_v8, 0.0  ;;  %v9993_v21 = vmul.f32 %v9917_v56, %v9696_v4  ;;  %v9997_v16 = vmul.f32 %v9917_v56, %v9712_v47  ;;  %v10001_v54 = vmul.f32 %v9917_v56, %v9704_v15 }
 0x444   : > { %15517 = vst [vmem:[#allocation12_spill] sm:$0xff] %v9943_v38  ;;  %v2110_v27 = vsel %vm1824_vm10, %v9975_v40, 0.0  ;;  %v2116_v6 = vsel %vm1824_vm10, %v9979_v42, 0.0  ;;  %v2113_v18 = vsel %vm1824_vm10, %v9983_v33, 0.0  ;;  %v10011_v47 = vmul.f32 %v9917_v56, %v9718_v3 }
 0x445   : > { %15518 = vst [vmem:[#allocation13_spill] sm:$0xff] %v9947_v9  ;;  %v2119_v52 = vsel %vm1824_vm10, %v9993_v21, 0.0  ;;  %v2125_v53 = vsel %vm1824_vm10, %v9997_v16, 0.0  ;;  %v2122_v4 = vsel %vm1824_vm10, %v10001_v54, 0.0  ;;  %v10015_v15 = vmul.f32 %v9917_v56, %v9731_v5 }
 0x446   : > { %15519 = vst [vmem:[#allocation35_spill] sm:$0xff] %v9957_v44  ;;  %v10019_v11 = vmul.f32 %v9917_v56, %v9725_v17  ;;  %v2128_v36 = vsel %vm1824_vm10, %v10011_v47, 0.0  ;;  %v10029_v5 = vmul.f32 %v9917_v56, %v9733_v41  ;;  %v10033_v17 = vmul.f32 %v9917_v56, %v9747_v43 }
 0x447   : > { %15520 = vst [vmem:[#allocation14_spill] sm:$0xff] %v9961_v32  ;;  %v2134_v45 = vsel %vm1824_vm10, %v10015_v15, 0.0  ;;  %v10037_v50 = vmul.f32 %v9917_v56, %v9740_v12  ;;  %v10047_v43 = vmul.f32 %v9917_v56, %v9754_v25  ;;  %v10051_v12 = vmul.f32 %v9917_v56, %v9767_v57 }
 0x448   : > { %15521 = vst [vmem:[#allocation15_spill] sm:$0xff] %v9965_v8  ;;  %v2131_v3 = vsel %vm1824_vm10, %v10019_v11, 0.0  ;;  %v2137_v29 = vsel %vm1824_vm10, %v10029_v5, 0.0  ;;  %v2143_v19 = vsel %vm1824_vm10, %v10033_v17, 0.0  ;;  %v10055_v23 = vmul.f32 %v9917_v56, %v9758_v62 }
 0x449   : > { %2093 = vadd.xlane.f32.xlu2 %v2092_v61  ;;  %2099 = vadd.xlane.f32.xlu1 %v2098_v28  ;;  %15522 = vst [vmem:[#allocation36_spill] sm:$0xff] %v9975_v40  ;;  %v2140_v41 = vsel %vm1824_vm10, %v10037_v50, 0.0  ;;  %v2146_v2 = vsel %vm1824_vm10, %v10047_v43, 0.0  ;;  %v2152_v7 = vsel %vm1824_vm10, %v10051_v12, 0.0  ;;  %v10065_v57 = vmul.f32 %v9917_v56, %v9774_v24 }
 0x44a   : > { %2096 = vadd.xlane.f32.xlu0 %v2095_v58  ;;  %15523 = vst [vmem:[#allocation16_spill] sm:$0xff] %v9979_v42  ;;  %v2149_v25 = vsel %vm1824_vm10, %v10055_v23, 0.0  ;;  %v10069_v62 = vmul.f32 %v9917_v56, %v9815_v22  ;;  %v10073_v37 = vmul.f32 %v9917_v56, %v9796_v55  ;;  %v10083_v22 = vmul.f32 %v9917_v56, %v9832_v63 }
 0x44b   : > { %15524 = vst [vmem:[#allocation17_spill] sm:$0xff] %v9983_v33  ;;  %v2155_v1 = vsel %vm1824_vm10, %v10065_v57, 0.0  ;;  %v10087_v55 = vmul.f32 %v9917_v56, %v9854_v0  ;;  %v10091_v26 = vmul.f32 %v9917_v56, %v9852_v10  ;;  %v10101_v0 = vmul.f32 %v9917_v56, %v9862_v59 }
 0x44c   : > { %15525 = vst [vmem:[#allocation37_spill] sm:$0xff] %v9993_v21  ;;  %v2161_v60 = vsel %vm1824_vm10, %v10069_v62, 0.0  ;;  %v2158_v24 = vsel %vm1824_vm10, %v10073_v37, 0.0  ;;  %v2164_v61 = vsel %vm1824_vm10, %v10083_v22, 0.0  ;;  %v10105_v10 = vmul.f32 %v9917_v56, %v9888_v49 }
 0x44d   : > { %15526 = vst [vmem:[#allocation18_spill] sm:$0xff] %v9997_v16  ;;  %v2170_v28 = vsel %vm1824_vm10, %v10087_v55, 0.0  ;;  %v2167_v63 = vsel %vm1824_vm10, %v10091_v26, 0.0  ;;  %v2173_v58 = vsel %vm1824_vm10, %v10101_v0, 0.0  ;;  %v2221_v59 = vsel %vm1824_vm10, %v9925_v30, -inf }
 0x44e   : > { %15527 = vst [vmem:[#allocation19_spill] sm:$0xff] %v10001_v54  ;;  %v2224_v49 = vsel %vm1824_vm10, %v9921_v34, -inf  ;;  %v2230_v56 = vsel %vm1824_vm10, %v9947_v9, -inf }
 0x44f   : > { %15528 = vst [vmem:[#allocation38_spill] sm:$0xff] %v10011_v47 }
 0x450   : > { %15529 = vst [vmem:[#allocation20_spill] sm:$0xff] %v10015_v15 }
 0x451   : > { %2102 = vadd.xlane.f32.xlu2 %v2101_v31  ;;  %2108 = vadd.xlane.f32.xlu1 %v2107_v20  ;;  %15530 = vst [vmem:[#allocation41_spill] sm:$0xff] %v10019_v11  ;;  %v2218_v31 = vsel %vm1824_vm10, %v9929_v48, -inf  ;;  %v2176_v20 = vsel %vm1824_vm10, %v10105_v10, 0.0 }
 0x452   : > { %2105 = vadd.xlane.f32.xlu0 %v2104_v46  ;;  %15531 = vst [vmem:[#allocation21_spill] sm:$0xff] %v10029_v5  ;;  %v2227_v46 = vsel %vm1824_vm10, %v9939_v51, -inf }
 0x453   : > { %15532 = vst [vmem:[#allocation42_spill] sm:$0xff] %v10033_v17 }
 0x454   : > { %15533 = vst [vmem:[#allocation22_spill] sm:$0xff] %v10037_v50 }
 0x455   : > { %15534 = vst [vmem:[#allocation39_spill] sm:$0xff] %v10047_v43 }
 0x456   : > { %15535 = vst [vmem:[#allocation23_spill] sm:$0xff] %v10051_v12 }
 0x457   : > { %15536 = vst [vmem:[#allocation43_spill] sm:$0xff] %v10055_v23 }
 0x458   : > { %15537 = vst [vmem:[#allocation24_spill] sm:$0xff] %v10065_v57 }
 0x459   : > { %2111 = vadd.xlane.f32.xlu2 %v2110_v27  ;;  %2117 = vadd.xlane.f32.xlu1 %v2116_v6  ;;  %15538 = vst [vmem:[#allocation44_spill] sm:$0xff] %v10069_v62  ;;  %v2236_v27 = vsel %vm1824_vm10, %v9957_v44, -inf  ;;  %v2233_v6 = vsel %vm1824_vm10, %v9943_v38, -inf }
 0x45a   : > { %2114 = vadd.xlane.f32.xlu0 %v2113_v18  ;;  %15539 = vst [vmem:[#allocation25_spill] sm:$0xff] %v10073_v37  ;;  %v10125_v18 = vpop.permute.xlu0 %8013 }
 0x45b   : > { %15540 = vst [vmem:[#allocation40_spill] sm:$0xff] %v10083_v22 }
 0x45c   : > { %15541 = vst [vmem:[#allocation26_spill] sm:$0xff] %v10087_v55 }
 0x45d   : > { %15542 = vst [vmem:[#allocation45_spill] sm:$0xff] %v10091_v26 }
 0x45e   : > { %15543 = vst [vmem:[#allocation27_spill] sm:$0xff] %v10101_v0 }
 0x45f   : > { %15544 = vst [vmem:[#allocation46_spill] sm:$0xff] %v10105_v10 }
 0x461   : > { %2120 = vadd.xlane.f32.xlu2 %v2119_v52  ;;  %2126 = vadd.xlane.f32.xlu1 %v2125_v53  ;;  %v2239_v52 = vsel %vm1824_vm10, %v9965_v8, -inf  ;;  %v2245_v53 = vsel %vm1824_vm10, %v9975_v40, -inf }
 0x462   : > { %2123 = vadd.xlane.f32.xlu0 %v2122_v4  ;;  %v2242_v4 = vsel %vm1824_vm10, %v9961_v32, -inf }
 0x469   : > { %2129 = vadd.xlane.f32.xlu2 %v2128_v36  ;;  %2135 = vadd.xlane.f32.xlu1 %v2134_v45  ;;  %v10133_v36 = vpop.permute.xlu1 %2545  ;;  %v10135_v45 = vpop.permute.xlu2 %2682 }
 0x46a   : > { %2132 = vadd.xlane.f32.xlu0 %v2131_v3  ;;  %15545 = vst [vmem:[#allocation28_spill] sm:$0xff] %v10135_v45  ;;  %v10137_v3 = vpop.permute.xlu0 %8018 }
 0x46b   : > { %15546 = vst [vmem:[#allocation29_spill] sm:$0xff] %v10137_v3 }
 0x471   : > { %2138 = vadd.xlane.f32.xlu2 %v2137_v29  ;;  %2144 = vadd.xlane.f32.xlu1 %v2143_v19  ;;  %v2248_v29 = vsel %vm1824_vm10, %v9983_v33, -inf  ;;  %v2254_v19 = vsel %vm1824_vm10, %v9993_v21, -inf }
 0x472   : > { %2141 = vadd.xlane.f32.xlu0 %v2140_v41  ;;  %v2251_v41 = vsel %vm1824_vm10, %v9979_v42, -inf }
 0x479   : > { %2147 = vadd.xlane.f32.xlu2 %v2146_v2  ;;  %2153 = vadd.xlane.f32.xlu1 %v2152_v7 }
 0x47a   : > { %2150 = vadd.xlane.f32.xlu0 %v2149_v25 }
 0x481   : > { %2156 = vadd.xlane.f32.xlu2 %v2155_v1  ;;  %2162 = vadd.xlane.f32.xlu1 %v2161_v60  ;;  %v2257_v1 = vsel %vm1824_vm10, %v10001_v54, -inf  ;;  %v2263_v60 = vsel %vm1824_vm10, %v10011_v47, -inf }
 0x482   : > { %2159 = vadd.xlane.f32.xlu0 %v2158_v24  ;;  %v2260_v24 = vsel %vm1824_vm10, %v9997_v16, -inf }
 0x489   : > { %2165 = vadd.xlane.f32.xlu2 %v2164_v61  ;;  %2171 = vadd.xlane.f32.xlu1 %v2170_v28 }
 0x48a   : > { %2168 = vadd.xlane.f32.xlu0 %v2167_v63 }
 0x491   : > { %2174 = vadd.xlane.f32.xlu2 %v2173_v58  ;;  %2219 = vmax.xlane.f32.xlu1 %v2218_v31  ;;  %v2266_v58 = vsel %vm1824_vm10, %v10019_v11, -inf  ;;  %v2272_v31 = vsel %vm1824_vm10, %v10029_v5, -inf }
 0x492   : > { %2177 = vadd.xlane.f32.xlu0 %v2176_v20  ;;  %v2269_v20 = vsel %vm1824_vm10, %v10015_v15, -inf }
 0x499   : > { %2222 = vmax.xlane.f32.xlu2 %v2221_v59  ;;  %2228 = vmax.xlane.f32.xlu1 %v2227_v46 }
 0x49a   : > { %2225 = vmax.xlane.f32.xlu0 %v2224_v49 }
 0x4a1   : > { %2231 = vmax.xlane.f32.xlu2 %v2230_v56  ;;  %2237 = vmax.xlane.f32.xlu1 %v2236_v27  ;;  %v2275_v56 = vsel %vm1824_vm10, %v10037_v50, -inf  ;;  %v2281_v27 = vsel %vm1824_vm10, %v10047_v43, -inf }
 0x4a2   : > { %2234 = vmax.xlane.f32.xlu0 %v2233_v6  ;;  %v2278_v6 = vsel %vm1824_vm10, %v10033_v17, -inf }
 0x4a9   : > { %2240 = vmax.xlane.f32.xlu2 %v2239_v52  ;;  %2246 = vmax.xlane.f32.xlu1 %v2245_v53 }
 0x4aa   : > { %2243 = vmax.xlane.f32.xlu0 %v2242_v4 }
 0x4b1   : > { %2249 = vmax.xlane.f32.xlu2 %v2248_v29  ;;  %2255 = vmax.xlane.f32.xlu1 %v2254_v19  ;;  %v2284_v29 = vsel %vm1824_vm10, %v10055_v23, -inf  ;;  %v2290_v19 = vsel %vm1824_vm10, %v10065_v57, -inf }
 0x4b2   : > { %2252 = vmax.xlane.f32.xlu0 %v2251_v41  ;;  %v2287_v41 = vsel %vm1824_vm10, %v10051_v12, -inf }
 0x4b4   : > { %v10145_v2 = vpop.xlane.xlu2 %2090  ;;  %v10147_v7 = vpop.xlane.xlu1 %2087 }
 0x4b5   : > { %v10149_v25 = vpop.xlane.xlu0 %2084 }
 0x4b9   : > { %2258 = vmax.xlane.f32.xlu2 %v2257_v1  ;;  %2264 = vmax.xlane.f32.xlu1 %v2263_v60 }
 0x4ba   : > { %2261 = vmax.xlane.f32.xlu0 %v2260_v24 }
 0x4bc   : > { %v10157_v61 = vpop.xlane.xlu2 %2093  ;;  %v10159_v28 = vpop.xlane.xlu1 %2099 }
 0x4bd   : > { %v10161_v63 = vpop.xlane.xlu0 %2096 }
 0x4c1   : > { %2267 = vmax.xlane.f32.xlu2 %v2266_v58  ;;  %2273 = vmax.xlane.f32.xlu1 %v2272_v31  ;;  %v2293_v58 = vsel %vm1824_vm10, %v10073_v37, -inf  ;;  %v2299_v31 = vsel %vm1824_vm10, %v10083_v22, -inf  ;;  %v8260_v22 = vmov 32.0  }
 0x4c2   : > { %2270 = vmax.xlane.f32.xlu0 %v2269_v20  ;;  %v2296_v20 = vsel %vm1824_vm10, %v10069_v62, -inf  ;;  %8115 = vrcp.f32 %v8260_v22 }
 0x4c4   : > { %v10169_v59 = vpop.xlane.xlu2 %2102  ;;  %v10171_v46 = vpop.xlane.xlu1 %2108 }
 0x4c5   : > { %v10173_v49 = vpop.xlane.xlu0 %2105 }
 0x4c9   : > { %2276 = vmax.xlane.f32.xlu2 %v2275_v56  ;;  %2282 = vmax.xlane.f32.xlu1 %v2281_v27 }
 0x4ca   : > { %2279 = vmax.xlane.f32.xlu0 %v2278_v6 }
 0x4cc   : > { %v10181_v52 = vpop.xlane.xlu2 %2111  ;;  %v10183_v53 = vpop.xlane.xlu1 %2117 }
 0x4cd   : > { %v10185_v4 = vpop.xlane.xlu0 %2114 }
 0x4d1   : > { %2285 = vmax.xlane.f32.xlu2 %v2284_v29  ;;  %2291 = vmax.xlane.f32.xlu1 %v2290_v19  ;;  %v2302_v29 = vsel %vm1824_vm10, %v10091_v26, -inf  ;;  %v2308_v19 = vsel %vm1824_vm10, %v10101_v0, -inf  ;;  %v2311_v26 = vsel %vm1824_vm10, %v10105_v10, -inf }
 0x4d2   : > { %2288 = vmax.xlane.f32.xlu0 %v2287_v41  ;;  %v2305_v41 = vsel %vm1824_vm10, %v10087_v55, -inf }
 0x4d4   : > { %v10193_v1 = vpop.xlane.xlu2 %2120  ;;  %v10195_v60 = vpop.xlane.xlu1 %2126 }
 0x4d5   : > { %v10197_v24 = vpop.xlane.xlu0 %2123 }
 0x4d9   : > { %2294 = vmax.xlane.f32.xlu2 %v2293_v58  ;;  %2300 = vmax.xlane.f32.xlu1 %v2299_v31 }
 0x4da   : > { %2297 = vmax.xlane.f32.xlu0 %v2296_v20 }
 0x4dc   : > { %v10205_v56 = vpop.xlane.xlu2 %2129  ;;  %v10207_v27 = vpop.xlane.xlu1 %2135 }
 0x4dd   : > { %v10209_v6 = vpop.xlane.xlu0 %2132 }
 0x4e1   : > { %2303 = vmax.xlane.f32.xlu2 %v2302_v29  ;;  %2309 = vmax.xlane.f32.xlu1 %v2308_v19  ;;  %v8116_v19 = vpop.eup %8115 }
 0x4e2   : > { %2306 = vmax.xlane.f32.xlu0 %v2305_v41  ;;  %v2180_v41 = vmul.f32 32.0, %v8116_v19  ;;  %vm2184_vm8 = vweird.f32 %v8116_v19 }
 0x4e4   : > { %v10217_v58 = vpop.xlane.xlu2 %2138  ;;  %v10219_v31 = vpop.xlane.xlu1 %2144  ;;  %v2181_v55 = vsub.f32 1.0, %v2180_v41 }
 0x4e5   : > { %v10221_v20 = vpop.xlane.xlu0 %2141 }
 0x4e6   : > { %v2182_v22 = vmul.f32 %v8116_v19, %v2181_v55 }
 0x4e8   : > { %v2183_v12 = vadd.f32 %v8116_v19, %v2182_v22 }
 0x4e9   : > { %2312 = vmax.xlane.f32.xlu2 %v2311_v26 }
 0x4ea   : > { %v10243_v17 = vsel %vm2184_vm8, %v8116_v19, %v2183_v12  ;;  %vm4833_vm8 = vcmask 343040  }
 0x4eb   : > { %v2186_v41 = vmul.f32 %v10243_v17, %v10149_v25  ;;  %v2187_v12 = vmul.f32 %v10243_v17, %v10147_v7  ;;  %v2189_v25 = vmul.f32 %v10243_v17, %v10157_v61  ;;  %v2188_v19 = vmul.f32 %v10243_v17, %v10145_v2 }
 0x4ec   : > { %v10225_v62 = vpop.xlane.xlu2 %2147  ;;  %v10227_v29 = vpop.xlane.xlu1 %2153  ;;  %v2195_v32 = vmul.f32 %v10243_v17, %v10181_v52  ;;  %v2200_v8 = vmul.f32 %v10243_v17, %v10195_v60  ;;  %v2201_v9 = vmul.f32 %v10243_v17, %v10205_v56  ;;  %v2206_v48 = vmul.f32 %v10243_v17, %v10219_v31 }
 0x4ed   : > { %v10229_v0 = vpop.xlane.xlu0 %2150  ;;  %v2207_v30 = vmul.f32 %v10243_v17, %v10225_v62 }
 0x4f4   : > { %v10231_v37 = vpop.xlane.xlu2 %2156  ;;  %v10233_v57 = vpop.xlane.xlu1 %2162 }
 0x4f5   : > { %v10235_v23 = vpop.xlane.xlu0 %2159  ;;  %v2212_v13 = vmul.f32 %v10243_v17, %v10233_v57 }
 0x4fc   : > { %v10237_v43 = vpop.xlane.xlu2 %2165  ;;  %v10239_v26 = vpop.xlane.xlu1 %2171 }
 0x4fd   : > { %v10241_v10 = vpop.xlane.xlu0 %2168  ;;  %v2213_v3 = vmul.f32 %v10243_v17, %v10237_v43 }
 0x504   : > { %v10247_v50 = vpop.xlane.xlu2 %2174  ;;  %v2220_v5 = vpop.xlane.xlu1 %2219 }
 0x505   : > { %v10249_v15 = vpop.xlane.xlu0 %2177  ;;  %v2315_v55 = vsel %vm2314_vm9, %v2186_v41, %v2220_v5 }
 0x506   : > { %v2382_v22 = vrot.slane %v2315_v55, 5 }
 0x508   : > { %v10253_v11 = vsel %vm2379_vm1, 0.0, %v2382_v22 }
 0x509   : > { %15547 = vst [vmem:[#allocation2_spill] sm:$0xff] %v10253_v11  ;;  %2547 = vrot.lane.b32.xlu2 %v10253_v11, %s8259_s26 }
 0x50c   : > { %v2223_v16 = vpop.xlane.xlu2 %2222  ;;  %v2229_v47 = vpop.xlane.xlu1 %2228 }
 0x50d   : > { %v2316_v5 = vsel %vm2314_vm9, %v2187_v12, %v2223_v16  ;;  %v2226_v41 = vpop.xlane.xlu0 %2225  ;;  %v2318_v55 = vsel %vm2314_vm9, %v2189_v25, %v2229_v47  ;;  %v2191_v47 = vmul.f32 %v10243_v17, %v10159_v28 }
 0x50e   : > { %v2383_v54 = vrot.slane %v2316_v5, 5  ;;  %v2317_v21 = vsel %vm2314_vm9, %v2188_v19, %v2226_v41  ;;  %v2386_v42 = vrot.slane %v2318_v55, 5 }
 0x50f   : > { %v2385_v33 = vrot.slane %v2317_v21, 5  ;;  %v2190_v21 = vmul.f32 %v10243_v17, %v10161_v63  ;;  %v2192_v63 = vmul.f32 %v10243_v17, %v10169_v59 }
 0x510   : > { %v10267_v7 = vsel %vm2379_vm1, %v2383_v54, 0.0  ;;  %v10270_v61 = vsel %vm2379_vm1, %v2382_v22, %v2383_v54  ;;  %v10291_v55 = vsel %vm2379_vm1, %v2386_v42, 0.0 }
 0x511   : > { %15548 = vst [vmem:[#allocation7_spill] sm:$0xff] %v10267_v7  ;;  %2551 = vrot.lane.b32.xlu1 %v10267_v7, %s8259_s26  ;;  %2549 = vrot.lane.b32.xlu0 %v10270_v61, %s8259_s26  ;;  %v10277_v16 = vsel %vm2379_vm1, %v2385_v33, %v2386_v42  ;;  %v10288_v41 = vsel %vm2379_vm1, 0.0, %v2385_v33  ;;  %v2193_v33 = vmul.f32 %v10243_v17, %v10173_v49 }
 0x512   : > { %15549 = vst [vmem:[#allocation3_spill] sm:$0xff] %v10270_v61  ;;  %2555 = vrot.lane.b32.xlu2 %v10277_v16, %s8259_s26 }
 0x513   : > { %15550 = vst [vmem:[#allocation9_spill] sm:$0xff] %v10277_v16 }
 0x514   : > { %v2232_v54 = vpop.xlane.xlu2 %2231  ;;  %v2238_v12 = vpop.xlane.xlu1 %2237  ;;  %15551 = vst [vmem:[#allocation4_spill] sm:$0xff] %v10288_v41 }
 0x515   : > { %v2319_v2 = vsel %vm2314_vm9, %v2190_v21, %v2232_v54  ;;  %v2235_v22 = vpop.xlane.xlu0 %2234  ;;  %15552 = vst [vmem:[#allocation8_spill] sm:$0xff] %v10291_v55  ;;  %v2321_v42 = vsel %vm2314_vm9, %v2192_v63, %v2238_v12 }
 0x516   : > { %v2388_v25 = vrot.slane %v2319_v2, 5  ;;  %v2320_v19 = vsel %vm2314_vm9, %v2191_v47, %v2235_v22  ;;  %v2391_v54 = vrot.slane %v2321_v42, 5  ;;  %v2194_v22 = vmul.f32 %v10243_v17, %v10171_v46 }
 0x517   : > { %v2389_v5 = vrot.slane %v2320_v19, 5  ;;  %v2196_v42 = vmul.f32 %v10243_v17, %v10185_v4 }
 0x518   : > { %v10313_v40 = vsel %vm2379_vm1, 0.0, %v2388_v25 }
 0x519   : > { %v10296_v28 = vsel %vm2379_vm1, %v2388_v25, %v2389_v5  ;;  %2553 = vrot.lane.b32.xlu0 %v10288_v41, %s8259_s26  ;;  %2557 = vrot.lane.b32.xlu1 %v10291_v55, %s8259_s26  ;;  %15554 = vst [vmem:[#allocation32_spill] sm:$0xff] %v10313_v40  ;;  %v10316_v49 = vsel %vm2379_vm1, %v2389_v5, 0.0 }
 0x51a   : > { %15553 = vst [vmem:[#allocation30_spill] sm:$0xff] %v10296_v28  ;;  %2561 = vrot.lane.b32.xlu2 %v10296_v28, %s8259_s26 }
 0x51b   : > { %15555 = vst [vmem:[#allocation6_spill] sm:$0xff] %v10316_v49 }
 0x51c   : > { %v2241_v21 = vpop.xlane.xlu2 %2240  ;;  %v2247_v19 = vpop.xlane.xlu1 %2246 }
 0x51d   : > { %v2322_v59 = vsel %vm2314_vm9, %v2193_v33, %v2241_v21  ;;  %v2244_v47 = vpop.xlane.xlu0 %2243  ;;  %v2324_v63 = vsel %vm2314_vm9, %v2195_v32, %v2247_v19  ;;  %v2197_v21 = vmul.f32 %v10243_v17, %v10183_v53 }
 0x51e   : > { %v2392_v2 = vrot.slane %v2322_v59, 5  ;;  %v2323_v46 = vsel %vm2314_vm9, %v2194_v22, %v2244_v47  ;;  %v2395_v5 = vrot.slane %v2324_v63, 5  ;;  %v10334_v59 = vsel %vm2379_vm1, 0.0, %v2391_v54 }
 0x51f   : > { %v2394_v25 = vrot.slane %v2323_v46, 5  ;;  %15556 = vst [vmem:[#allocation31_spill] sm:$0xff] %v10334_v59  ;;  %v2199_v46 = vmul.f32 %v10243_v17, %v10197_v24 }
 0x520   : > { %v10319_v12 = vsel %vm2379_vm1, %v2391_v54, %v2392_v2  ;;  %v10337_v47 = vsel %vm2379_vm1, %v2392_v2, 0.0  ;;  %v10356_v44 = vsel %vm2379_vm1, %v2395_v5, 0.0 }
 0x521   : > { %2559 = vrot.lane.b32.xlu0 %v10313_v40, %s8259_s26  ;;  %2563 = vrot.lane.b32.xlu1 %v10316_v49, %s8259_s26  ;;  %15557 = vst [vmem:[#allocation48_spill] sm:$0xff] %v10337_v47  ;;  %v10340_v32 = vsel %vm2379_vm1, %v2394_v25, %v2395_v5  ;;  %v10353_v63 = vsel %vm2379_vm1, 0.0, %v2394_v25 }
 0x522   : > { %2567 = vrot.lane.b32.xlu2 %v10319_v12, %s8259_s26  ;;  %15558 = vst [vmem:[#allocation53_spill] sm:$0xff] %v10340_v32 }
 0x523   : > { %15559 = vst [vmem:[#allocation54_spill] sm:$0xff] %v10353_v63 }
 0x524   : > { %v2250_v52 = vpop.xlane.xlu2 %2249  ;;  %v2256_v19 = vpop.xlane.xlu1 %2255  ;;  %15560 = vst [vmem:[#allocation55_spill] sm:$0xff] %v10356_v44 }
 0x525   : > { %v2253_v33 = vpop.xlane.xlu0 %2252  ;;  %v2325_v4 = vsel %vm2314_vm9, %v2196_v42, %v2250_v52 }
 0x526   : > { %v2326_v22 = vsel %vm2314_vm9, %v2197_v21, %v2253_v33  ;;  %v2397_v54 = vrot.slane %v2325_v4, 5  ;;  %v2198_v33 = vmul.f32 %v10243_v17, %v10193_v1 }
 0x527   : > { %v2398_v2 = vrot.slane %v2326_v22, 5 }
 0x528   : > { %v2327_v25 = vsel %vm2314_vm9, %v2198_v33, %v2256_v19  ;;  %v10376_v1 = vsel %vm2379_vm1, 0.0, %v2397_v54 }
 0x529   : > { %2569 = vrot.lane.b32.xlu1 %v10337_v47, %s8259_s26  ;;  %2565 = vrot.lane.b32.xlu0 %v10334_v59, %s8259_s26  ;;  %v10359_v52 = vsel %vm2379_vm1, %v2397_v54, %v2398_v2  ;;  %v2400_v4 = vrot.slane %v2327_v25, 5  ;;  %15562 = vst [vmem:[#allocation57_spill] sm:$0xff] %v10376_v1  ;;  %v2203_v25 = vmul.f32 %v10243_v17, %v10207_v27 }
 0x52a   : > { %2573 = vrot.lane.b32.xlu2 %v10340_v32, %s8259_s26  ;;  %15561 = vst [vmem:[#allocation56_spill] sm:$0xff] %v10359_v52 }
 0x52b   : > { %v10397_v38 = vsel %vm2379_vm1, 0.0, %v2400_v4 }
 0x52c   : > { %v2259_v53 = vpop.xlane.xlu2 %2258  ;;  %v2265_v22 = vpop.xlane.xlu1 %2264  ;;  %15565 = vst [vmem:[#allocation60_spill] sm:$0xff] %v10397_v38 }
 0x52d   : > { %v2328_v24 = vsel %vm2314_vm9, %v2199_v46, %v2259_v53  ;;  %v2262_v21 = vpop.xlane.xlu0 %2261  ;;  %v10379_v53 = vsel %vm2379_vm1, %v2398_v2, 0.0  ;;  %v2330_v19 = vsel %vm2314_vm9, %v2201_v9, %v2265_v22 }
 0x52e   : > { %v2401_v42 = vrot.slane %v2328_v24, 5  ;;  %15563 = vst [vmem:[#allocation58_spill] sm:$0xff] %v10379_v53  ;;  %v2329_v60 = vsel %vm2314_vm9, %v2200_v8, %v2262_v21  ;;  %v2404_v2 = vrot.slane %v2330_v19, 5  ;;  %v2202_v24 = vmul.f32 %v10243_v17, %v10209_v6 }
 0x52f   : > { %v2403_v54 = vrot.slane %v2329_v60, 5  ;;  %v2205_v60 = vmul.f32 %v10243_v17, %v10221_v20 }
 0x530   : > { %v10382_v46 = vsel %vm2379_vm1, %v2400_v4, %v2401_v42  ;;  %v10400_v8 = vsel %vm2379_vm1, %v2401_v42, 0.0  ;;  %v10419_v51 = vsel %vm2379_vm1, %v2404_v2, 0.0 }
 0x531   : > { %2571 = vrot.lane.b32.xlu0 %v10353_v63, %s8259_s26  ;;  %2575 = vrot.lane.b32.xlu1 %v10356_v44, %s8259_s26  ;;  %15564 = vst [vmem:[#allocation59_spill] sm:$0xff] %v10382_v46  ;;  %v10403_v9 = vsel %vm2379_vm1, %v2403_v54, %v2404_v2  ;;  %v10416_v19 = vsel %vm2379_vm1, 0.0, %v2403_v54 }
 0x532   : > { %2579 = vrot.lane.b32.xlu2 %v10359_v52, %s8259_s26  ;;  %15566 = vst [vmem:[#allocation61_spill] sm:$0xff] %v10400_v8 }
 0x533   : > { %15567 = vst [vmem:[#allocation62_spill] sm:$0xff] %v10403_v9 }
 0x534   : > { %v2268_v5 = vpop.xlane.xlu2 %2267  ;;  %v2274_v22 = vpop.xlane.xlu1 %2273  ;;  %15568 = vst [vmem:[#allocation63_spill] sm:$0xff] %v10416_v19 }
 0x535   : > { %v2271_v33 = vpop.xlane.xlu0 %2270  ;;  %v2331_v6 = vsel %vm2314_vm9, %v2202_v24, %v2268_v5  ;;  %15569 = vst [vmem:[#allocation64_spill] sm:$0xff] %v10419_v51 }
 0x536   : > { %v2332_v21 = vsel %vm2314_vm9, %v2203_v25, %v2271_v33  ;;  %v2406_v4 = vrot.slane %v2331_v6, 5  ;;  %v2204_v33 = vmul.f32 %v10243_v17, %v10217_v58 }
 0x537   : > { %v2407_v42 = vrot.slane %v2332_v21, 5 }
 0x538   : > { %v2333_v54 = vsel %vm2314_vm9, %v2204_v33, %v2274_v22  ;;  %v10439_v58 = vsel %vm2379_vm1, 0.0, %v2406_v4 }
 0x539   : > { %2577 = vrot.lane.b32.xlu0 %v10376_v1, %s8259_s26  ;;  %2581 = vrot.lane.b32.xlu1 %v10379_v53, %s8259_s26  ;;  %v10422_v5 = vsel %vm2379_vm1, %v2406_v4, %v2407_v42  ;;  %v2409_v6 = vrot.slane %v2333_v54, 5  ;;  %15571 = vst [vmem:[#allocation66_spill] sm:$0xff] %v10439_v58  ;;  %v2209_v54 = vmul.f32 %v10243_v17, %v10227_v29 }
 0x53a   : > { %2585 = vrot.lane.b32.xlu2 %v10382_v46, %s8259_s26  ;;  %15570 = vst [vmem:[#allocation65_spill] sm:$0xff] %v10422_v5 }
 0x53b   : > { %v10462_v34 = vsel %vm2379_vm1, 0.0, %v2409_v6 }
 0x53c   : > { %v2277_v56 = vpop.xlane.xlu2 %2276  ;;  %v2283_v21 = vpop.xlane.xlu1 %2282  ;;  %15574 = vst [vmem:[#allocation69_spill] sm:$0xff] %v10462_v34 }
 0x53d   : > { %v2334_v20 = vsel %vm2314_vm9, %v2205_v60, %v2277_v56  ;;  %v2280_v25 = vpop.xlane.xlu0 %2279  ;;  %v10442_v56 = vsel %vm2379_vm1, %v2407_v42, 0.0  ;;  %v2336_v22 = vsel %vm2314_vm9, %v2207_v30, %v2283_v21 }
 0x53e   : > { %v2410_v24 = vrot.slane %v2334_v20, 5  ;;  %15572 = vst [vmem:[#allocation67_spill] sm:$0xff] %v10442_v56  ;;  %v2335_v31 = vsel %vm2314_vm9, %v2206_v48, %v2280_v25  ;;  %v2413_v42 = vrot.slane %v2336_v22, 5  ;;  %v2208_v20 = vmul.f32 %v10243_v17, %v10229_v0 }
 0x53f   : > { %v2412_v4 = vrot.slane %v2335_v31, 5  ;;  %v2211_v31 = vmul.f32 %v10243_v17, %v10235_v23 }
 0x540   : > { %v10445_v60 = vsel %vm2379_vm1, %v2409_v6, %v2410_v24  ;;  %v10465_v48 = vsel %vm2379_vm1, %v2410_v24, 0.0  ;;  %v10486_v45 = vsel %vm2379_vm1, %v2413_v42, 0.0 }
 0x541   : > { %2587 = vrot.lane.b32.xlu1 %v10400_v8, %s8259_s26  ;;  %2583 = vrot.lane.b32.xlu0 %v10397_v38, %s8259_s26  ;;  %15573 = vst [vmem:[#allocation68_spill] sm:$0xff] %v10445_v60  ;;  %v10468_v30 = vsel %vm2379_vm1, %v2412_v4, %v2413_v42  ;;  %v10483_v22 = vsel %vm2379_vm1, 0.0, %v2412_v4 }
 0x542   : > { %2591 = vrot.lane.b32.xlu2 %v10403_v9, %s8259_s26  ;;  %15575 = vst [vmem:[#allocation70_spill] sm:$0xff] %v10465_v48 }
 0x543   : > { %15576 = vst [vmem:[#allocation71_spill] sm:$0xff] %v10468_v30 }
 0x544   : > { %v2286_v27 = vpop.xlane.xlu2 %2285  ;;  %v2292_v21 = vpop.xlane.xlu1 %2291  ;;  %15577 = vst [vmem:[#allocation72_spill] sm:$0xff] %v10483_v22 }
 0x545   : > { %v2289_v33 = vpop.xlane.xlu0 %2288  ;;  %v2337_v0 = vsel %vm2314_vm9, %v2208_v20, %v2286_v27  ;;  %15578 = vst [vmem:[#allocation73_spill] sm:$0xff] %v10486_v45 }
 0x546   : > { %v2338_v25 = vsel %vm2314_vm9, %v2209_v54, %v2289_v33  ;;  %v2415_v24 = vrot.slane %v2337_v0, 5  ;;  %v2210_v33 = vmul.f32 %v10243_v17, %v10231_v37 }
 0x547   : > { %v2416_v6 = vrot.slane %v2338_v25, 5 }
 0x548   : > { %v2339_v4 = vsel %vm2314_vm9, %v2210_v33, %v2292_v21  ;;  %v10508_v37 = vsel %vm2379_vm1, 0.0, %v2415_v24 }
 0x549   : > { %2589 = vrot.lane.b32.xlu0 %v10416_v19, %s8259_s26  ;;  %2593 = vrot.lane.b32.xlu1 %v10419_v51, %s8259_s26  ;;  %v10489_v27 = vsel %vm2379_vm1, %v2415_v24, %v2416_v6  ;;  %v2418_v54 = vrot.slane %v2339_v4, 5  ;;  %15581 = vst [vmem:[#allocation76_spill] sm:$0xff] %v10508_v37 }
 0x54a   : > { %2597 = vrot.lane.b32.xlu2 %v10422_v5, %s8259_s26  ;;  %15579 = vst [vmem:[#allocation74_spill] sm:$0xff] %v10489_v27 }
 0x54b   : > { %v10527_v33 = vsel %vm2379_vm1, 0.0, %v2418_v54 }
 0x54c   : > { %v2295_v2 = vpop.xlane.xlu2 %2294  ;;  %v2301_v25 = vpop.xlane.xlu1 %2300  ;;  %15585 = vst [vmem:[#allocation80_spill] sm:$0xff] %v10527_v33 }
 0x54d   : > { %v2340_v23 = vsel %vm2314_vm9, %v2211_v31, %v2295_v2  ;;  %v2298_v0 = vpop.xlane.xlu0 %2297  ;;  %v10511_v2 = vsel %vm2379_vm1, %v2416_v6, 0.0  ;;  %v2342_v31 = vsel %vm2314_vm9, %v2213_v3, %v2301_v25 }
 0x54e   : > { %v2419_v20 = vrot.slane %v2340_v23, 5  ;;  %15582 = vst [vmem:[#allocation77_spill] sm:$0xff] %v10511_v2  ;;  %v2341_v57 = vsel %vm2314_vm9, %v2212_v13, %v2298_v0  ;;  %v2422_v6 = vrot.slane %v2342_v31, 5 }
 0x54f   : > { %v2421_v24 = vrot.slane %v2341_v57, 5 }
 0x550   : > { %v10514_v21 = vsel %vm2379_vm1, %v2418_v54, %v2419_v20  ;;  %v10530_v23 = vsel %vm2379_vm1, %v2419_v20, 0.0  ;;  %v10547_v20 = vsel %vm2379_vm1, %v2422_v6, 0.0 }
 0x551   : > { %2595 = vrot.lane.b32.xlu0 %v10439_v58, %s8259_s26  ;;  %2599 = vrot.lane.b32.xlu1 %v10442_v56, %s8259_s26  ;;  %15583 = vst [vmem:[#allocation78_spill] sm:$0xff] %v10514_v21  ;;  %v10533_v4 = vsel %vm2379_vm1, %v2421_v24, %v2422_v6  ;;  %v10544_v3 = vsel %vm2379_vm1, 0.0, %v2421_v24 }
 0x552   : > { %2603 = vrot.lane.b32.xlu2 %v10445_v60, %s8259_s26  ;;  %15586 = vst [vmem:[#allocation81_spill] sm:$0xff] %v10530_v23 }
 0x554   : > { %v10455_v62 = vpop.xlane.xlu2 %2303  ;;  %v10557_v0 = vpop.xlane.xlu1 %2309 }
 0x555   : > { %v10555_v54 = vpop.xlane.xlu0 %2306 }
 0x559   : > { %2605 = vrot.lane.b32.xlu1 %v10465_v48, %s8259_s26  ;;  %2601 = vrot.lane.b32.xlu0 %v10462_v34, %s8259_s26 }
 0x55a   : > { %2609 = vrot.lane.b32.xlu2 %v10468_v30, %s8259_s26 }
 0x55c   : > { %v10478_v29 = vpop.xlane.xlu2 %2312 }
 0x561   : > { %2607 = vrot.lane.b32.xlu0 %v10483_v22, %s8259_s26  ;;  %2611 = vrot.lane.b32.xlu1 %v10486_v45, %s8259_s26 }
 0x562   : > { %2615 = vrot.lane.b32.xlu2 %v10489_v27, %s8259_s26 }
 0x564   : > { %v10501_v42 = vpop.permute.xlu2 %2547 }
 0x565   : > { %15580 = vst [vmem:[#allocation75_spill] sm:$0xff] %v10501_v42 }
 0x569   : > { %2613 = vrot.lane.b32.xlu0 %v10508_v37, %s8259_s26  ;;  %2617 = vrot.lane.b32.xlu1 %v10511_v2, %s8259_s26 }
 0x56a   : > { %2621 = vrot.lane.b32.xlu2 %v10514_v21, %s8259_s26 }
 0x56c   : > { %v10524_v43 = vpop.permute.xlu2 %2555 }
 0x56d   : > { %15584 = vst [vmem:[#allocation79_spill] sm:$0xff] %v10524_v43 }
 0x571   : > { %2623 = vrot.lane.b32.xlu1 %v10530_v23, %s8259_s26  ;;  %2619 = vrot.lane.b32.xlu0 %v10527_v33, %s8259_s26 }
 0x572   : > { %2627 = vrot.lane.b32.xlu2 %v10533_v4, %s8259_s26 }
 0x574   : > { %v10541_v13 = vpop.permute.xlu2 %2561 }
 0x575   : > { %15587 = vst [vmem:[#allocation82_spill] sm:$0xff] %v10541_v13 }
 0x579   : > { %2625 = vrot.lane.b32.xlu0 %v10544_v3, %s8259_s26  ;;  %2629 = vrot.lane.b32.xlu1 %v10547_v20, %s8259_s26 }
 0x57a   : > { %2688 = vrot.lane.b32.xlu2 %v10267_v7, %s8253_s27 }
 0x57c   : > { %v10559_v25 = vpop.permute.xlu2 %2567 }
 0x57d   : > { %15588 = vst [vmem:[#allocation83_spill] sm:$0xff] %v10559_v25 }
 0x581   : > { %2686 = vrot.lane.b32.xlu0 %v10270_v61, %s8253_s27  ;;  %2684 = vrot.lane.b32.xlu1 %v10253_v11, %s8253_s27 }
 0x582   : > { %2694 = vrot.lane.b32.xlu2 %v10291_v55, %s8253_s27 }
 0x583   : > { %v10567_v57 = vpop.permute.xlu0 %2549  ;;  %v10569_v31 = vpop.permute.xlu1 %2551 }
 0x584   : > { %15589 = vst [vmem:[#allocation84_spill] sm:$0xff] %v10567_v57  ;;  %v10571_v24 = vpop.permute.xlu2 %2573 }
 0x585   : > { %15590 = vst [vmem:[#allocation85_spill] sm:$0xff] %v10569_v31 }
 0x586   : > { %15591 = vst [vmem:[#allocation86_spill] sm:$0xff] %v10571_v24 }
 0x589   : > { %2692 = vrot.lane.b32.xlu0 %v10277_v16, %s8253_s27  ;;  %2690 = vrot.lane.b32.xlu1 %v10288_v41, %s8253_s27 }
 0x58a   : > { %2700 = vrot.lane.b32.xlu2 %v10316_v49, %s8253_s27 }
 0x58b   : > { %v10579_v6 = vpop.permute.xlu0 %2553  ;;  %v10581_v25 = vpop.permute.xlu1 %2557 }
 0x58c   : > { %15592 = vst [vmem:[#allocation87_spill] sm:$0xff] %v10579_v6  ;;  %v10583_v13 = vpop.permute.xlu2 %2579 }
 0x58d   : > { %15593 = vst [vmem:[#allocation88_spill] sm:$0xff] %v10581_v25 }
 0x58e   : > { %15594 = vst [vmem:[#allocation89_spill] sm:$0xff] %v10583_v13 }
 0x591   : > { %2698 = vrot.lane.b32.xlu0 %v10296_v28, %s8253_s27  ;;  %2696 = vrot.lane.b32.xlu1 %v10313_v40, %s8253_s27 }
 0x592   : > { %2706 = vrot.lane.b32.xlu2 %v10337_v47, %s8253_s27 }
 0x593   : > { %v10591_v24 = vpop.permute.xlu0 %2559  ;;  %v10593_v43 = vpop.permute.xlu1 %2563 }
 0x594   : > { %15595 = vst [vmem:[#allocation90_spill] sm:$0xff] %v10591_v24  ;;  %v10595_v57 = vpop.permute.xlu2 %2585 }
 0x595   : > { %15596 = vst [vmem:[#allocation91_spill] sm:$0xff] %v10593_v43 }
 0x596   : > { %15597 = vst [vmem:[#allocation92_spill] sm:$0xff] %v10595_v57 }
 0x599   : > { %2704 = vrot.lane.b32.xlu0 %v10319_v12, %s8253_s27  ;;  %2702 = vrot.lane.b32.xlu1 %v10334_v59, %s8253_s27 }
 0x59a   : > { %2712 = vrot.lane.b32.xlu2 %v10356_v44, %s8253_s27 }
 0x59b   : > { %v10603_v13 = vpop.permute.xlu0 %2565  ;;  %v10605_v6 = vpop.permute.xlu1 %2569 }
 0x59c   : > { %15598 = vst [vmem:[#allocation93_spill] sm:$0xff] %v10603_v13  ;;  %v10607_v25 = vpop.permute.xlu2 %2591 }
 0x59d   : > { %15599 = vst [vmem:[#allocation94_spill] sm:$0xff] %v10605_v6 }
 0x59e   : > { %15600 = vst [vmem:[#allocation95_spill] sm:$0xff] %v10607_v25 }
 0x5a1   : > { %2710 = vrot.lane.b32.xlu0 %v10340_v32, %s8253_s27  ;;  %2708 = vrot.lane.b32.xlu1 %v10353_v63, %s8253_s27 }
 0x5a2   : > { %2718 = vrot.lane.b32.xlu2 %v10379_v53, %s8253_s27 }
 0x5a3   : > { %v10615_v57 = vpop.permute.xlu0 %2571  ;;  %v10617_v24 = vpop.permute.xlu1 %2575 }
 0x5a4   : > { %15601 = vst [vmem:[#allocation96_spill] sm:$0xff] %v10615_v57  ;;  %v10619_v43 = vpop.permute.xlu2 %2597 }
 0x5a5   : > { %15602 = vst [vmem:[#allocation97_spill] sm:$0xff] %v10617_v24 }
 0x5a6   : > { %15603 = vst [vmem:[#allocation98_spill] sm:$0xff] %v10619_v43 }
 0x5a9   : > { %2716 = vrot.lane.b32.xlu0 %v10359_v52, %s8253_s27  ;;  %2714 = vrot.lane.b32.xlu1 %v10376_v1, %s8253_s27 }
 0x5aa   : > { %2724 = vrot.lane.b32.xlu2 %v10400_v8, %s8253_s27 }
 0x5ab   : > { %v10627_v25 = vpop.permute.xlu0 %2577  ;;  %v10629_v13 = vpop.permute.xlu1 %2581 }
 0x5ac   : > { %15604 = vst [vmem:[#allocation99_spill] sm:$0xff] %v10627_v25  ;;  %v10631_v6 = vpop.permute.xlu2 %2603 }
 0x5ad   : > { %15605 = vst [vmem:[#allocation100_spill] sm:$0xff] %v10629_v13 }
 0x5ae   : > { %15606 = vst [vmem:[#allocation101_spill] sm:$0xff] %v10631_v6 }
 0x5b1   : > { %2722 = vrot.lane.b32.xlu0 %v10382_v46, %s8253_s27  ;;  %2720 = vrot.lane.b32.xlu1 %v10397_v38, %s8253_s27 }
 0x5b2   : > { %2730 = vrot.lane.b32.xlu2 %v10419_v51, %s8253_s27 }
 0x5b3   : > { %v10639_v43 = vpop.permute.xlu0 %2583  ;;  %v10641_v57 = vpop.permute.xlu1 %2587 }
 0x5b4   : > { %15607 = vst [vmem:[#allocation102_spill] sm:$0xff] %v10639_v43  ;;  %v10643_v24 = vpop.permute.xlu2 %2609 }
 0x5b5   : > { %15608 = vst [vmem:[#allocation103_spill] sm:$0xff] %v10641_v57 }
 0x5b6   : > { %15609 = vst [vmem:[#allocation104_spill] sm:$0xff] %v10643_v24 }
 0x5b9   : > { %2728 = vrot.lane.b32.xlu0 %v10403_v9, %s8253_s27  ;;  %2726 = vrot.lane.b32.xlu1 %v10416_v19, %s8253_s27 }
 0x5ba   : > { %2736 = vrot.lane.b32.xlu2 %v10442_v56, %s8253_s27 }
 0x5bb   : > { %v10651_v6 = vpop.permute.xlu0 %2589  ;;  %v10653_v25 = vpop.permute.xlu1 %2593 }
 0x5bc   : > { %15610 = vst [vmem:[#allocation105_spill] sm:$0xff] %v10651_v6  ;;  %v10655_v13 = vpop.permute.xlu2 %2615 }
 0x5bd   : > { %15611 = vst [vmem:[#allocation106_spill] sm:$0xff] %v10653_v25 }
 0x5be   : > { %15612 = vst [vmem:[#allocation107_spill] sm:$0xff] %v10655_v13 }
 0x5c1   : > { %2734 = vrot.lane.b32.xlu0 %v10422_v5, %s8253_s27  ;;  %2732 = vrot.lane.b32.xlu1 %v10439_v58, %s8253_s27 }
 0x5c2   : > { %2742 = vrot.lane.b32.xlu2 %v10465_v48, %s8253_s27 }
 0x5c3   : > { %v10663_v24 = vpop.permute.xlu0 %2595  ;;  %v10665_v43 = vpop.permute.xlu1 %2599 }
 0x5c4   : > { %15613 = vst [vmem:[#allocation108_spill] sm:$0xff] %v10663_v24  ;;  %v10667_v57 = vpop.permute.xlu2 %2621 }
 0x5c5   : > { %15614 = vst [vmem:[#allocation109_spill] sm:$0xff] %v10665_v43 }
 0x5c6   : > { %15615 = vst [vmem:[#allocation110_spill] sm:$0xff] %v10667_v57 }
 0x5c9   : > { %2740 = vrot.lane.b32.xlu0 %v10445_v60, %s8253_s27  ;;  %2738 = vrot.lane.b32.xlu1 %v10462_v34, %s8253_s27 }
 0x5ca   : > { %2748 = vrot.lane.b32.xlu2 %v10486_v45, %s8253_s27 }
 0x5cb   : > { %v10675_v13 = vpop.permute.xlu0 %2601  ;;  %v10677_v6 = vpop.permute.xlu1 %2605 }
 0x5cc   : > { %15616 = vst [vmem:[#allocation111_spill] sm:$0xff] %v10675_v13  ;;  %v10679_v25 = vpop.permute.xlu2 %2627 }
 0x5cd   : > { %15617 = vst [vmem:[#allocation112_spill] sm:$0xff] %v10677_v6 }
 0x5ce   : > { %15618 = vst [vmem:[#allocation113_spill] sm:$0xff] %v10679_v25 }
 0x5d1   : > { %2746 = vrot.lane.b32.xlu0 %v10468_v30, %s8253_s27  ;;  %2744 = vrot.lane.b32.xlu1 %v10483_v22, %s8253_s27 }
 0x5d2   : > { %2754 = vrot.lane.b32.xlu2 %v10511_v2, %s8253_s27 }
 0x5d3   : > { %v10687_v57 = vpop.permute.xlu0 %2607  ;;  %v10689_v24 = vpop.permute.xlu1 %2611 }
 0x5d4   : > { %15619 = vst [vmem:[#allocation114_spill] sm:$0xff] %v10687_v57  ;;  %v10691_v43 = vpop.permute.xlu2 %2688  ;;  %v2215_v57 = vmul.f32 %v10243_v17, %v10239_v26  ;;  %v2214_v26 = vmul.f32 %v10243_v17, %v10241_v10 }
 0x5d5   : > { %15620 = vst [vmem:[#allocation115_spill] sm:$0xff] %v10689_v24 }
 0x5d6   : > { %15621 = vst [vmem:[#allocation116_spill] sm:$0xff] %v10691_v43  ;;  %v2344_v24 = vsel %vm2314_vm9, %v2215_v57, %v10555_v54  ;;  %v2343_v31 = vsel %vm2314_vm9, %v2214_v26, %v10455_v62 }
 0x5d7   : > { %v2425_v42 = vrot.slane %v2344_v24, 5  ;;  %v2424_v10 = vrot.slane %v2343_v31, 5 }
 0x5d9   : > { %2752 = vrot.lane.b32.xlu0 %v10489_v27, %s8253_s27  ;;  %2750 = vrot.lane.b32.xlu1 %v10508_v37, %s8253_s27  ;;  %v10726_v43 = vsel %vm2379_vm1, %v2425_v42, 0.0  ;;  %v10741_v62 = vsel %vm2379_vm1, 0.0, %v2424_v10  ;;  %v10744_v26 = vsel %vm2379_vm1, %v2424_v10, %v2425_v42 }
 0x5da   : > { %2760 = vrot.lane.b32.xlu2 %v10530_v23, %s8253_s27 }
 0x5db   : > { %v10699_v25 = vpop.permute.xlu0 %2613  ;;  %v10701_v13 = vpop.permute.xlu1 %2617 }
 0x5dc   : > { %15622 = vst [vmem:[#allocation117_spill] sm:$0xff] %v10699_v25  ;;  %v10703_v6 = vpop.permute.xlu2 %2694 }
 0x5dd   : > { %15623 = vst [vmem:[#allocation118_spill] sm:$0xff] %v10701_v13 }
 0x5de   : > { %15624 = vst [vmem:[#allocation119_spill] sm:$0xff] %v10703_v6 }
 0x5e1   : > { %2758 = vrot.lane.b32.xlu0 %v10514_v21, %s8253_s27  ;;  %2756 = vrot.lane.b32.xlu1 %v10527_v33, %s8253_s27 }
 0x5e2   : > { %2766 = vrot.lane.b32.xlu2 %v10547_v20, %s8253_s27 }
 0x5e3   : > { %v10715_v25 = vpop.permute.xlu0 %2619  ;;  %v10717_v13 = vpop.permute.xlu1 %2623 }
 0x5e4   : > { %15625 = vst [vmem:[#allocation120_spill] sm:$0xff] %v10715_v25  ;;  %v10719_v6 = vpop.permute.xlu2 %2700 }
 0x5e5   : > { %15626 = vst [vmem:[#allocation121_spill] sm:$0xff] %v10717_v13 }
 0x5e6   : > { %15627 = vst [vmem:[#allocation122_spill] sm:$0xff] %v10719_v6 }
 0x5e9   : > { %2762 = vrot.lane.b32.xlu1 %v10544_v3, %s8253_s27  ;;  %2764 = vrot.lane.b32.xlu0 %v10533_v4, %s8253_s27 }
 0x5ea   : > { %2772 = vrot.lane.b32.xlu2 %v10726_v43, %s8253_s27 }
 0x5eb   : > { %v10734_v54 = vpop.permute.xlu0 %2625  ;;  %v10736_v57 = vpop.permute.xlu1 %2629 }
 0x5ec   : > { %15628 = vst [vmem:[#allocation123_spill] sm:$0xff] %v10734_v54  ;;  %v10738_v24 = vpop.permute.xlu2 %2706 }
 0x5ed   : > { %15629 = vst [vmem:[#allocation124_spill] sm:$0xff] %v10736_v57 }
 0x5ee   : > { %15630 = vst [vmem:[#allocation125_spill] sm:$0xff] %v10738_v24 }
 0x5f1   : > { %2768 = vrot.lane.b32.xlu1 %v10741_v62, %s8253_s27  ;;  %2770 = vrot.lane.b32.xlu0 %v10744_v26, %s8253_s27  ;;  %s8262_s27 = smov 10  }
 0x5f2   : > { %2828 = vrot.lane.b32.xlu2 %v10267_v7, %s8261_s30 }
 0x5f3   : > { %v10752_v57 = vpop.permute.xlu0 %2686  ;;  %v10754_v31 = vpop.permute.xlu1 %2684 }
 0x5f4   : > { %v10756_v54 = vpop.permute.xlu2 %2712 }
 0x5f5   : > { %15631 = vst [vmem:[#allocation126_spill] sm:$0xff] %v10756_v54 }
 0x5f9   : > { %2824 = vrot.lane.b32.xlu1 %v10253_v11, %s8261_s30  ;;  %2826 = vrot.lane.b32.xlu0 %v10270_v61, %s8261_s30 }
 0x5fa   : > { %2834 = vrot.lane.b32.xlu2 %v10291_v55, %s8261_s30 }
 0x5fb   : > { %v10764_v42 = vpop.permute.xlu0 %2692  ;;  %v10766_v10 = vpop.permute.xlu1 %2690 }
 0x5fc   : > { %15632 = vst [vmem:[#allocation127_spill] sm:$0xff] %v10764_v42  ;;  %v10768_v13 = vpop.permute.xlu2 %2718 }
 0x5fd   : > { %15633 = vst [vmem:[#allocation128_spill] sm:$0xff] %v10766_v10 }
 0x5fe   : > { %15634 = vst [vmem:[#allocation129_spill] sm:$0xff] %v10768_v13 }
 0x601   : > { %2830 = vrot.lane.b32.xlu1 %v10288_v41, %s8261_s30  ;;  %2832 = vrot.lane.b32.xlu0 %v10277_v16, %s8261_s30 }
 0x602   : > { %2840 = vrot.lane.b32.xlu2 %v10316_v49, %s8261_s30 }
 0x603   : > { %v10776_v25 = vpop.permute.xlu0 %2698  ;;  %v10778_v54 = vpop.permute.xlu1 %2696 }
 0x604   : > { %15635 = vst [vmem:[#allocation130_spill] sm:$0xff] %v10776_v25  ;;  %v10780_v24 = vpop.permute.xlu2 %2724 }
 0x605   : > { %15636 = vst [vmem:[#allocation131_spill] sm:$0xff] %v10778_v54 }
 0x606   : > { %15637 = vst [vmem:[#allocation132_spill] sm:$0xff] %v10780_v24 }
 0x609   : > { %2836 = vrot.lane.b32.xlu1 %v10313_v40, %s8261_s30  ;;  %2838 = vrot.lane.b32.xlu0 %v10296_v28, %s8261_s30 }
 0x60a   : > { %2846 = vrot.lane.b32.xlu2 %v10337_v47, %s8261_s30 }
 0x60b   : > { %v10788_v13 = vpop.permute.xlu0 %2704  ;;  %v10790_v11 = vpop.permute.xlu1 %2702 }
 0x60c   : > { %15638 = vst [vmem:[#allocation133_spill] sm:$0xff] %v10788_v13  ;;  %v10792_v6 = vpop.permute.xlu2 %2730 }
 0x60d   : > { %15639 = vst [vmem:[#allocation134_spill] sm:$0xff] %v10790_v11 }
 0x60e   : > { %15640 = vst [vmem:[#allocation135_spill] sm:$0xff] %v10792_v6 }
 0x611   : > { %2842 = vrot.lane.b32.xlu1 %v10334_v59, %s8261_s30  ;;  %2844 = vrot.lane.b32.xlu0 %v10319_v12, %s8261_s30 }
 0x612   : > { %2852 = vrot.lane.b32.xlu2 %v10356_v44, %s8261_s30 }
 0x613   : > { %v10800_v24 = vpop.permute.xlu0 %2710  ;;  %v10802_v54 = vpop.permute.xlu1 %2708 }
 0x614   : > { %15641 = vst [vmem:[#allocation136_spill] sm:$0xff] %v10800_v24  ;;  %v10804_v25 = vpop.permute.xlu2 %2736 }
 0x615   : > { %15642 = vst [vmem:[#allocation137_spill] sm:$0xff] %v10802_v54 }
 0x616   : > { %15643 = vst [vmem:[#allocation138_spill] sm:$0xff] %v10804_v25 }
 0x619   : > { %2848 = vrot.lane.b32.xlu1 %v10353_v63, %s8261_s30  ;;  %2850 = vrot.lane.b32.xlu0 %v10340_v32, %s8261_s30 }
 0x61a   : > { %2858 = vrot.lane.b32.xlu2 %v10379_v53, %s8261_s30 }
 0x61b   : > { %v10812_v6 = vpop.permute.xlu0 %2716  ;;  %v10814_v11 = vpop.permute.xlu1 %2714 }
 0x61c   : > { %15644 = vst [vmem:[#allocation139_spill] sm:$0xff] %v10812_v6  ;;  %v10816_v13 = vpop.permute.xlu2 %2742 }
 0x61d   : > { %15645 = vst [vmem:[#allocation140_spill] sm:$0xff] %v10814_v11 }
 0x61e   : > { %15646 = vst [vmem:[#allocation141_spill] sm:$0xff] %v10816_v13 }
 0x621   : > { %2854 = vrot.lane.b32.xlu1 %v10376_v1, %s8261_s30  ;;  %2856 = vrot.lane.b32.xlu0 %v10359_v52, %s8261_s30 }
 0x622   : > { %2864 = vrot.lane.b32.xlu2 %v10400_v8, %s8261_s30 }
 0x623   : > { %v10824_v25 = vpop.permute.xlu0 %2722  ;;  %v10826_v54 = vpop.permute.xlu1 %2720 }
 0x624   : > { %15647 = vst [vmem:[#allocation142_spill] sm:$0xff] %v10824_v25  ;;  %v10828_v24 = vpop.permute.xlu2 %2748 }
 0x625   : > { %15648 = vst [vmem:[#allocation143_spill] sm:$0xff] %v10826_v54 }
 0x626   : > { %15649 = vst [vmem:[#allocation144_spill] sm:$0xff] %v10828_v24 }
 0x629   : > { %2860 = vrot.lane.b32.xlu1 %v10397_v38, %s8261_s30  ;;  %2862 = vrot.lane.b32.xlu0 %v10382_v46, %s8261_s30 }
 0x62a   : > { %2870 = vrot.lane.b32.xlu2 %v10419_v51, %s8261_s30 }
 0x62b   : > { %v10836_v13 = vpop.permute.xlu0 %2728  ;;  %v10838_v11 = vpop.permute.xlu1 %2726 }
 0x62c   : > { %15650 = vst [vmem:[#allocation145_spill] sm:$0xff] %v10836_v13  ;;  %v10840_v6 = vpop.permute.xlu2 %2754 }
 0x62d   : > { %15651 = vst [vmem:[#allocation146_spill] sm:$0xff] %v10838_v11 }
 0x62e   : > { %15652 = vst [vmem:[#allocation147_spill] sm:$0xff] %v10840_v6 }
 0x631   : > { %2866 = vrot.lane.b32.xlu1 %v10416_v19, %s8261_s30  ;;  %2868 = vrot.lane.b32.xlu0 %v10403_v9, %s8261_s30 }
 0x632   : > { %2876 = vrot.lane.b32.xlu2 %v10442_v56, %s8261_s30 }
 0x633   : > { %v10848_v24 = vpop.permute.xlu0 %2734  ;;  %v10850_v54 = vpop.permute.xlu1 %2732 }
 0x634   : > { %15653 = vst [vmem:[#allocation148_spill] sm:$0xff] %v10848_v24  ;;  %v10852_v25 = vpop.permute.xlu2 %2760 }
 0x635   : > { %15654 = vst [vmem:[#allocation149_spill] sm:$0xff] %v10850_v54 }
 0x636   : > { %15655 = vst [vmem:[#allocation150_spill] sm:$0xff] %v10852_v25 }
 0x639   : > { %2872 = vrot.lane.b32.xlu1 %v10439_v58, %s8261_s30  ;;  %2874 = vrot.lane.b32.xlu0 %v10422_v5, %s8261_s30 }
 0x63a   : > { %2882 = vrot.lane.b32.xlu2 %v10465_v48, %s8261_s30 }
 0x63b   : > { %v10860_v6 = vpop.permute.xlu0 %2740  ;;  %v10862_v11 = vpop.permute.xlu1 %2738 }
 0x63c   : > { %15656 = vst [vmem:[#allocation151_spill] sm:$0xff] %v10860_v6  ;;  %v10864_v13 = vpop.permute.xlu2 %2766 }
 0x63d   : > { %15657 = vst [vmem:[#allocation152_spill] sm:$0xff] %v10862_v11 }
 0x63e   : > { %15658 = vst [vmem:[#allocation153_spill] sm:$0xff] %v10864_v13 }
 0x641   : > { %2878 = vrot.lane.b32.xlu1 %v10462_v34, %s8261_s30  ;;  %2880 = vrot.lane.b32.xlu0 %v10445_v60, %s8261_s30 }
 0x642   : > { %2888 = vrot.lane.b32.xlu2 %v10486_v45, %s8261_s30 }
 0x643   : > { %v10872_v25 = vpop.permute.xlu0 %2746  ;;  %v10874_v54 = vpop.permute.xlu1 %2744 }
 0x644   : > { %15659 = vst [vmem:[#allocation154_spill] sm:$0xff] %v10872_v25  ;;  %v10876_v24 = vpop.permute.xlu2 %2772 }
 0x645   : > { %15660 = vst [vmem:[#allocation155_spill] sm:$0xff] %v10874_v54 }
 0x646   : > { %15661 = vst [vmem:[#allocation156_spill] sm:$0xff] %v10876_v24 }
 0x649   : > { %2884 = vrot.lane.b32.xlu1 %v10483_v22, %s8261_s30  ;;  %2886 = vrot.lane.b32.xlu0 %v10468_v30, %s8261_s30 }
 0x64a   : > { %2894 = vrot.lane.b32.xlu2 %v10511_v2, %s8261_s30 }
 0x64b   : > { %v10884_v13 = vpop.permute.xlu0 %2752  ;;  %v10886_v11 = vpop.permute.xlu1 %2750 }
 0x64c   : > { %15662 = vst [vmem:[#allocation157_spill] sm:$0xff] %v10884_v13  ;;  %v10888_v6 = vpop.permute.xlu2 %2828 }
 0x64d   : > { %15663 = vst [vmem:[#allocation158_spill] sm:$0xff] %v10886_v11 }
 0x651   : > { %2890 = vrot.lane.b32.xlu1 %v10508_v37, %s8261_s30  ;;  %2892 = vrot.lane.b32.xlu0 %v10489_v27, %s8261_s30 }
 0x652   : > { %2900 = vrot.lane.b32.xlu2 %v10530_v23, %s8261_s30 }
 0x653   : > { %v10896_v24 = vpop.permute.xlu0 %2758  ;;  %v10898_v54 = vpop.permute.xlu1 %2756 }
 0x654   : > { %15664 = vst [vmem:[#allocation159_spill] sm:$0xff] %v10896_v24  ;;  %v10900_v25 = vpop.permute.xlu2 %2834 }
 0x655   : > { %15665 = vst [vmem:[#allocation160_spill] sm:$0xff] %v10898_v54  ;;  %v2217_v54 = vmul.f32 %v10243_v17, %v10249_v15  ;;  %v2216_v15 = vmul.f32 %v10243_v17, %v10247_v50 }
 0x657   : > { %v2346_v24 = vsel %vm2314_vm9, %v2217_v54, %v10478_v29  ;;  %v2345_v42 = vsel %vm2314_vm9, %v2216_v15, %v10557_v0  ;;  %vm4899_vm9 = vcmask 572416  }
 0x658   : > { %v2428_v10 = vrot.slane %v2346_v24, 5  ;;  %v2427_v17 = vrot.slane %v2345_v42, 5 }
 0x659   : > { %2896 = vrot.lane.b32.xlu1 %v10527_v33, %s8261_s30  ;;  %2898 = vrot.lane.b32.xlu0 %v10514_v21, %s8261_s30 }
 0x65a   : > { %2906 = vrot.lane.b32.xlu2 %v10547_v20, %s8261_s30  ;;  %v10939_v29 = vsel %vm2379_vm1, %v2428_v10, 0.0  ;;  %v10950_v0 = vsel %vm2379_vm1, 0.0, %v2427_v17  ;;  %v10953_v15 = vsel %vm2379_vm1, %v2427_v17, %v2428_v10 }
 0x65b   : > { %v10908_v11 = vpop.permute.xlu0 %2764  ;;  %v10910_v13 = vpop.permute.xlu1 %2762 }
 0x65c   : > { %15666 = vst [vmem:[#allocation161_spill] sm:$0xff] %v10908_v11  ;;  %v10912_v61 = vpop.permute.xlu2 %2840 }
 0x65d   : > { %15667 = vst [vmem:[#allocation162_spill] sm:$0xff] %v10910_v13 }
 0x65e   : > { %15668 = vst [vmem:[#allocation163_spill] sm:$0xff] %v10912_v61 }
 0x661   : > { %2902 = vrot.lane.b32.xlu1 %v10544_v3, %s8261_s30  ;;  %2904 = vrot.lane.b32.xlu0 %v10533_v4, %s8261_s30 }
 0x662   : > { %2912 = vrot.lane.b32.xlu2 %v10726_v43, %s8261_s30 }
 0x663   : > { %v10924_v11 = vpop.permute.xlu0 %2770  ;;  %v10926_v13 = vpop.permute.xlu1 %2768 }
 0x664   : > { %15669 = vst [vmem:[#allocation164_spill] sm:$0xff] %v10924_v11  ;;  %v10928_v7 = vpop.permute.xlu2 %2846 }
 0x665   : > { %15670 = vst [vmem:[#allocation165_spill] sm:$0xff] %v10926_v13 }
 0x666   : > { %15671 = vst [vmem:[#allocation166_spill] sm:$0xff] %v10928_v7 }
 0x669   : > { %2908 = vrot.lane.b32.xlu1 %v10741_v62, %s8261_s30  ;;  %2910 = vrot.lane.b32.xlu0 %v10744_v26, %s8261_s30 }
 0x66a   : > { %2918 = vrot.lane.b32.xlu2 %v10939_v29, %s8261_s30 }
 0x66b   : > { %v10943_v54 = vpop.permute.xlu0 %2826  ;;  %v10945_v24 = vpop.permute.xlu1 %2824 }
 0x66c   : > { %v10947_v50 = vpop.permute.xlu2 %2852 }
 0x66d   : > { %15672 = vst [vmem:[#allocation167_spill] sm:$0xff] %v10947_v50 }
 0x671   : > { %2914 = vrot.lane.b32.xlu1 %v10950_v0, %s8261_s30  ;;  %2916 = vrot.lane.b32.xlu0 %v10953_v15, %s8261_s30 }
 0x672   : > { %2972 = vrot.lane.b32.xlu2 %v10291_v55, %s8254_s28 }
 0x673   : > { %v10961_v11 = vpop.permute.xlu0 %2832  ;;  %v10963_v42 = vpop.permute.xlu1 %2830 }
 0x674   : > { %v10965_v13 = vpop.permute.xlu2 %2858 }
 0x675   : > { %15673 = vst [vmem:[#allocation168_spill] sm:$0xff] %v10965_v13 }
 0x679   : > { %2968 = vrot.lane.b32.xlu1 %v10288_v41, %s8254_s28  ;;  %2970 = vrot.lane.b32.xlu0 %v10277_v16, %s8254_s28 }
 0x67a   : > { %2978 = vrot.lane.b32.xlu2 %v10316_v49, %s8254_s28 }
 0x67b   : > { %v10973_v10 = vpop.permute.xlu0 %2838  ;;  %v10975_v17 = vpop.permute.xlu1 %2836 }
 0x67c   : > { %15674 = vst [vmem:[#allocation169_spill] sm:$0xff] %v10973_v10  ;;  %v10977_v50 = vpop.permute.xlu2 %2864 }
 0x67d   : > { %15675 = vst [vmem:[#allocation170_spill] sm:$0xff] %v10975_v17 }
 0x67e   : > { %15676 = vst [vmem:[#allocation171_spill] sm:$0xff] %v10977_v50 }
 0x681   : > { %2974 = vrot.lane.b32.xlu1 %v10313_v40, %s8254_s28  ;;  %2976 = vrot.lane.b32.xlu0 %v10296_v28, %s8254_s28 }
 0x682   : > { %2984 = vrot.lane.b32.xlu2 %v10337_v47, %s8254_s28 }
 0x683   : > { %v10985_v13 = vpop.permute.xlu0 %2844  ;;  %v10987_v41 = vpop.permute.xlu1 %2842 }
 0x684   : > { %15677 = vst [vmem:[#allocation172_spill] sm:$0xff] %v10985_v13  ;;  %v10989_v16 = vpop.permute.xlu2 %2870 }
 0x685   : > { %15678 = vst [vmem:[#allocation173_spill] sm:$0xff] %v10987_v41 }
 0x686   : > { %15679 = vst [vmem:[#allocation174_spill] sm:$0xff] %v10989_v16 }
 0x689   : > { %2980 = vrot.lane.b32.xlu1 %v10334_v59, %s8254_s28  ;;  %2982 = vrot.lane.b32.xlu0 %v10319_v12, %s8254_s28 }
 0x68a   : > { %2990 = vrot.lane.b32.xlu2 %v10356_v44, %s8254_s28 }
 0x68b   : > { %v10997_v50 = vpop.permute.xlu0 %2850  ;;  %v10999_v55 = vpop.permute.xlu1 %2848 }
 0x68c   : > { %15680 = vst [vmem:[#allocation175_spill] sm:$0xff] %v10997_v50  ;;  %v11001_v7 = vpop.permute.xlu2 %2876 }
 0x68d   : > { %15681 = vst [vmem:[#allocation176_spill] sm:$0xff] %v10999_v55 }
 0x68e   : > { %15682 = vst [vmem:[#allocation177_spill] sm:$0xff] %v11001_v7 }
 0x691   : > { %2986 = vrot.lane.b32.xlu1 %v10353_v63, %s8254_s28  ;;  %2988 = vrot.lane.b32.xlu0 %v10340_v32, %s8254_s28 }
 0x692   : > { %2996 = vrot.lane.b32.xlu2 %v10379_v53, %s8254_s28 }
 0x693   : > { %v11009_v16 = vpop.permute.xlu0 %2856  ;;  %v11011_v41 = vpop.permute.xlu1 %2854 }
 0x694   : > { %15683 = vst [vmem:[#allocation178_spill] sm:$0xff] %v11009_v16  ;;  %v11013_v13 = vpop.permute.xlu2 %2882 }
 0x695   : > { %15684 = vst [vmem:[#allocation179_spill] sm:$0xff] %v11011_v41 }
 0x696   : > { %15685 = vst [vmem:[#allocation180_spill] sm:$0xff] %v11013_v13 }
 0x699   : > { %2994 = vrot.lane.b32.xlu0 %v10359_v52, %s8254_s28  ;;  %2992 = vrot.lane.b32.xlu1 %v10376_v1, %s8254_s28 }
 0x69a   : > { %3002 = vrot.lane.b32.xlu2 %v10400_v8, %s8254_s28 }
 0x69b   : > { %v11021_v7 = vpop.permute.xlu0 %2862  ;;  %v11023_v55 = vpop.permute.xlu1 %2860 }
 0x69c   : > { %15686 = vst [vmem:[#allocation181_spill] sm:$0xff] %v11021_v7  ;;  %v11025_v50 = vpop.permute.xlu2 %2888 }
 0x69d   : > { %15687 = vst [vmem:[#allocation182_spill] sm:$0xff] %v11023_v55 }
 0x69e   : > { %15688 = vst [vmem:[#allocation183_spill] sm:$0xff] %v11025_v50 }
 0x6a1   : > { %3000 = vrot.lane.b32.xlu0 %v10382_v46, %s8254_s28  ;;  %2998 = vrot.lane.b32.xlu1 %v10397_v38, %s8254_s28 }
 0x6a2   : > { %3008 = vrot.lane.b32.xlu2 %v10419_v51, %s8254_s28 }
 0x6a3   : > { %v11033_v13 = vpop.permute.xlu0 %2868  ;;  %v11035_v41 = vpop.permute.xlu1 %2866 }
 0x6a4   : > { %15689 = vst [vmem:[#allocation184_spill] sm:$0xff] %v11033_v13  ;;  %v11037_v16 = vpop.permute.xlu2 %2894 }
 0x6a5   : > { %15690 = vst [vmem:[#allocation185_spill] sm:$0xff] %v11035_v41 }
 0x6a6   : > { %15691 = vst [vmem:[#allocation186_spill] sm:$0xff] %v11037_v16 }
 0x6a9   : > { %3006 = vrot.lane.b32.xlu0 %v10403_v9, %s8254_s28  ;;  %3004 = vrot.lane.b32.xlu1 %v10416_v19, %s8254_s28 }
 0x6aa   : > { %3014 = vrot.lane.b32.xlu2 %v10442_v56, %s8254_s28 }
 0x6ab   : > { %v11045_v50 = vpop.permute.xlu0 %2874  ;;  %v11047_v55 = vpop.permute.xlu1 %2872 }
 0x6ac   : > { %15692 = vst [vmem:[#allocation187_spill] sm:$0xff] %v11045_v50  ;;  %v11049_v7 = vpop.permute.xlu2 %2900 }
 0x6ad   : > { %15693 = vst [vmem:[#allocation188_spill] sm:$0xff] %v11047_v55 }
 0x6ae   : > { %15694 = vst [vmem:[#allocation189_spill] sm:$0xff] %v11049_v7 }
 0x6b1   : > { %3012 = vrot.lane.b32.xlu0 %v10422_v5, %s8254_s28  ;;  %3010 = vrot.lane.b32.xlu1 %v10439_v58, %s8254_s28 }
 0x6b2   : > { %3020 = vrot.lane.b32.xlu2 %v10465_v48, %s8254_s28 }
 0x6b3   : > { %v11057_v16 = vpop.permute.xlu0 %2880  ;;  %v11059_v41 = vpop.permute.xlu1 %2878 }
 0x6b4   : > { %15695 = vst [vmem:[#allocation190_spill] sm:$0xff] %v11057_v16  ;;  %v11061_v13 = vpop.permute.xlu2 %2906 }
 0x6b5   : > { %15696 = vst [vmem:[#allocation191_spill] sm:$0xff] %v11059_v41 }
 0x6b6   : > { %15697 = vst [vmem:[#allocation192_spill] sm:$0xff] %v11061_v13 }
 0x6b9   : > { %3018 = vrot.lane.b32.xlu0 %v10445_v60, %s8254_s28  ;;  %3016 = vrot.lane.b32.xlu1 %v10462_v34, %s8254_s28 }
 0x6ba   : > { %3026 = vrot.lane.b32.xlu2 %v10486_v45, %s8254_s28 }
 0x6bb   : > { %v11069_v7 = vpop.permute.xlu0 %2886  ;;  %v11071_v55 = vpop.permute.xlu1 %2884 }
 0x6bc   : > { %15698 = vst [vmem:[#allocation193_spill] sm:$0xff] %v11069_v7  ;;  %v11073_v50 = vpop.permute.xlu2 %2912 }
 0x6bd   : > { %15699 = vst [vmem:[#allocation194_spill] sm:$0xff] %v11071_v55 }
 0x6be   : > { %15700 = vst [vmem:[#allocation195_spill] sm:$0xff] %v11073_v50 }
 0x6c1   : > { %3024 = vrot.lane.b32.xlu0 %v10468_v30, %s8254_s28  ;;  %3022 = vrot.lane.b32.xlu1 %v10483_v22, %s8254_s28 }
 0x6c2   : > { %3032 = vrot.lane.b32.xlu2 %v10511_v2, %s8254_s28 }
 0x6c3   : > { %v11081_v13 = vpop.permute.xlu0 %2892  ;;  %v11083_v41 = vpop.permute.xlu1 %2890 }
 0x6c4   : > { %15701 = vst [vmem:[#allocation196_spill] sm:$0xff] %v11081_v13  ;;  %v11085_v16 = vpop.permute.xlu2 %2918 }
 0x6c5   : > { %15702 = vst [vmem:[#allocation197_spill] sm:$0xff] %v11083_v41 }
 0x6c6   : > { %15703 = vst [vmem:[#allocation198_spill] sm:$0xff] %v11085_v16 }
 0x6c9   : > { %3030 = vrot.lane.b32.xlu0 %v10489_v27, %s8254_s28  ;;  %3028 = vrot.lane.b32.xlu1 %v10508_v37, %s8254_s28 }
 0x6ca   : > { %3038 = vrot.lane.b32.xlu2 %v10530_v23, %s8254_s28 }
 0x6cb   : > { %v11093_v50 = vpop.permute.xlu0 %2898  ;;  %v11095_v55 = vpop.permute.xlu1 %2896 }
 0x6cc   : > { %15704 = vst [vmem:[#allocation199_spill] sm:$0xff] %v11093_v50  ;;  %v11097_v7 = vpop.permute.xlu2 %2972 }
 0x6cd   : > { %15705 = vst [vmem:[#allocation200_spill] sm:$0xff] %v11095_v55 }
 0x6d1   : > { %3036 = vrot.lane.b32.xlu0 %v10514_v21, %s8254_s28  ;;  %3034 = vrot.lane.b32.xlu1 %v10527_v33, %s8254_s28 }
 0x6d2   : > { %3044 = vrot.lane.b32.xlu2 %v10547_v20, %s8254_s28 }
 0x6d3   : > { %v11105_v16 = vpop.permute.xlu0 %2904  ;;  %v11107_v41 = vpop.permute.xlu1 %2902 }
 0x6d4   : > { %15706 = vst [vmem:[#allocation201_spill] sm:$0xff] %v11105_v16  ;;  %v11109_v13 = vpop.permute.xlu2 %2978 }
 0x6d5   : > { %15707 = vst [vmem:[#allocation202_spill] sm:$0xff] %v11107_v41 }
 0x6d9   : > { %3042 = vrot.lane.b32.xlu0 %v10533_v4, %s8254_s28  ;;  %3040 = vrot.lane.b32.xlu1 %v10544_v3, %s8254_s28 }
 0x6da   : > { %3050 = vrot.lane.b32.xlu2 %v10726_v43, %s8254_s28 }
 0x6db   : > { %v11117_v55 = vpop.permute.xlu0 %2910  ;;  %v11119_v50 = vpop.permute.xlu1 %2908 }
 0x6dc   : > { %15708 = vst [vmem:[#allocation203_spill] sm:$0xff] %v11117_v55  ;;  %v11121_v17 = vpop.permute.xlu2 %2984 }
 0x6dd   : > { %15709 = vst [vmem:[#allocation204_spill] sm:$0xff] %v11119_v50 }
 0x6de   : > { %15710 = vst [vmem:[#allocation205_spill] sm:$0xff] %v11121_v17 }
 0x6e1   : > { %3048 = vrot.lane.b32.xlu0 %v10744_v26, %s8254_s28  ;;  %3046 = vrot.lane.b32.xlu1 %v10741_v62, %s8254_s28 }
 0x6e2   : > { %3056 = vrot.lane.b32.xlu2 %v10939_v29, %s8254_s28 }
 0x6e3   : > { %v11129_v41 = vpop.permute.xlu0 %2916  ;;  %v11131_v16 = vpop.permute.xlu1 %2914 }
 0x6e4   : > { %15711 = vst [vmem:[#allocation206_spill] sm:$0xff] %v11129_v41  ;;  %v11133_v10 = vpop.permute.xlu2 %2990  ;;  %v8022_v41 = vpack.i.bf16 %v9902_v14, %v15511_v39 }
 0x6e5   : > { %15712 = vst [vmem:[#allocation207_spill] sm:$0xff] %v11131_v16 }
 0x6e6   : > { %15713 = vst [vmem:[#allocation208_spill] sm:$0xff] %v11133_v10 }
 0x6e9   : > { %3054 = vrot.lane.b32.xlu0 %v10953_v15, %s8254_s28  ;;  %3052 = vrot.lane.b32.xlu1 %v10950_v0, %s8254_s28 }
 0x6ea   : > { %3114 = vrot.lane.b32.xlu2 %v10296_v28, %s8262_s27 }
 0x6eb   : > { %v11141_v50 = vpop.permute.xlu0 %2970  ;;  %v11143_v55 = vpop.permute.xlu1 %2968 }
 0x6ec   : > { %v11145_v17 = vpop.permute.xlu2 %2996 }
 0x6ed   : > { %15714 = vst [vmem:[#allocation209_spill] sm:$0xff] %v11145_v17 }
 0x6f1   : > { %3112 = vrot.lane.b32.xlu0 %v10313_v40, %s8262_s27  ;;  %8023 = vrot.lane.b32.xlu1 %v8022_v41, %s8254_s28  ;;  %s8263_s28 = smov 14  }
 0x6f2   : > { %3120 = vrot.lane.b32.xlu2 %v10319_v12, %s8262_s27 }
 0x6f3   : > { %v11154_v16 = vpop.permute.xlu0 %2976  ;;  %v11156_v28 = vpop.permute.xlu1 %2974 }
 0x6f4   : > { %15715 = vst [vmem:[#allocation210_spill] sm:$0xff] %v11156_v28  ;;  %v11158_v10 = vpop.permute.xlu2 %3002 }
 0x6f5   : > { %15716 = vst [vmem:[#allocation211_spill] sm:$0xff] %v11158_v10 }
 0x6f9   : > { %3118 = vrot.lane.b32.xlu0 %v10334_v59, %s8262_s27  ;;  %3116 = vrot.lane.b32.xlu1 %v10316_v49, %s8262_s27 }
 0x6fa   : > { %3126 = vrot.lane.b32.xlu2 %v10340_v32, %s8262_s27 }
 0x6fb   : > { %v11166_v40 = vpop.permute.xlu0 %2982  ;;  %v11168_v41 = vpop.permute.xlu1 %2980 }
 0x6fc   : > { %15717 = vst [vmem:[#allocation212_spill] sm:$0xff] %v11166_v40  ;;  %v11170_v17 = vpop.permute.xlu2 %3008 }
 0x6fd   : > { %15718 = vst [vmem:[#allocation213_spill] sm:$0xff] %v11168_v41 }
 0x6fe   : > { %15719 = vst [vmem:[#allocation214_spill] sm:$0xff] %v11170_v17 }
 0x701   : > { %3124 = vrot.lane.b32.xlu0 %v10353_v63, %s8262_s27  ;;  %3122 = vrot.lane.b32.xlu1 %v10337_v47, %s8262_s27 }
 0x702   : > { %3132 = vrot.lane.b32.xlu2 %v10359_v52, %s8262_s27 }
 0x703   : > { %v11178_v10 = vpop.permute.xlu0 %2988  ;;  %v11180_v49 = vpop.permute.xlu1 %2986 }
 0x704   : > { %15720 = vst [vmem:[#allocation215_spill] sm:$0xff] %v11178_v10  ;;  %v11182_v61 = vpop.permute.xlu2 %3014 }
 0x705   : > { %15721 = vst [vmem:[#allocation216_spill] sm:$0xff] %v11180_v49 }
 0x706   : > { %15722 = vst [vmem:[#allocation217_spill] sm:$0xff] %v11182_v61 }
 0x709   : > { %3130 = vrot.lane.b32.xlu0 %v10376_v1, %s8262_s27  ;;  %3128 = vrot.lane.b32.xlu1 %v10356_v44, %s8262_s27 }
 0x70a   : > { %3138 = vrot.lane.b32.xlu2 %v10382_v46, %s8262_s27 }
 0x70b   : > { %v11190_v17 = vpop.permute.xlu0 %2994  ;;  %v11192_v41 = vpop.permute.xlu1 %2992 }
 0x70c   : > { %15723 = vst [vmem:[#allocation218_spill] sm:$0xff] %v11190_v17  ;;  %v11194_v40 = vpop.permute.xlu2 %3020 }
 0x70d   : > { %15724 = vst [vmem:[#allocation219_spill] sm:$0xff] %v11192_v41 }
 0x70e   : > { %15725 = vst [vmem:[#allocation220_spill] sm:$0xff] %v11194_v40 }
 0x711   : > { %3136 = vrot.lane.b32.xlu0 %v10397_v38, %s8262_s27  ;;  %3134 = vrot.lane.b32.xlu1 %v10379_v53, %s8262_s27 }
 0x712   : > { %3144 = vrot.lane.b32.xlu2 %v10403_v9, %s8262_s27 }
 0x713   : > { %v11202_v61 = vpop.permute.xlu0 %3000  ;;  %v11204_v49 = vpop.permute.xlu1 %2998 }
 0x714   : > { %15726 = vst [vmem:[#allocation221_spill] sm:$0xff] %v11202_v61  ;;  %v11206_v10 = vpop.permute.xlu2 %3026 }
 0x715   : > { %15727 = vst [vmem:[#allocation222_spill] sm:$0xff] %v11204_v49 }
 0x716   : > { %15728 = vst [vmem:[#allocation223_spill] sm:$0xff] %v11206_v10 }
 0x719   : > { %3142 = vrot.lane.b32.xlu0 %v10416_v19, %s8262_s27  ;;  %3140 = vrot.lane.b32.xlu1 %v10400_v8, %s8262_s27 }
 0x71a   : > { %3150 = vrot.lane.b32.xlu2 %v10422_v5, %s8262_s27 }
 0x71b   : > { %v11214_v40 = vpop.permute.xlu0 %3006  ;;  %v11216_v41 = vpop.permute.xlu1 %3004 }
 0x71c   : > { %15729 = vst [vmem:[#allocation224_spill] sm:$0xff] %v11214_v40  ;;  %v11218_v17 = vpop.permute.xlu2 %3032 }
 0x71d   : > { %15730 = vst [vmem:[#allocation225_spill] sm:$0xff] %v11216_v41 }
 0x71e   : > { %15731 = vst [vmem:[#allocation226_spill] sm:$0xff] %v11218_v17 }
 0x721   : > { %3148 = vrot.lane.b32.xlu0 %v10439_v58, %s8262_s27  ;;  %3146 = vrot.lane.b32.xlu1 %v10419_v51, %s8262_s27 }
 0x722   : > { %3156 = vrot.lane.b32.xlu2 %v10445_v60, %s8262_s27 }
 0x723   : > { %v11226_v10 = vpop.permute.xlu0 %3012  ;;  %v11228_v49 = vpop.permute.xlu1 %3010 }
 0x724   : > { %15732 = vst [vmem:[#allocation227_spill] sm:$0xff] %v11226_v10  ;;  %v11230_v61 = vpop.permute.xlu2 %3038 }
 0x725   : > { %15733 = vst [vmem:[#allocation228_spill] sm:$0xff] %v11228_v49 }
 0x726   : > { %15734 = vst [vmem:[#allocation229_spill] sm:$0xff] %v11230_v61 }
 0x729   : > { %3154 = vrot.lane.b32.xlu0 %v10462_v34, %s8262_s27  ;;  %3152 = vrot.lane.b32.xlu1 %v10442_v56, %s8262_s27 }
 0x72a   : > { %3162 = vrot.lane.b32.xlu2 %v10468_v30, %s8262_s27 }
 0x72b   : > { %v11238_v17 = vpop.permute.xlu0 %3018  ;;  %v11240_v41 = vpop.permute.xlu1 %3016 }
 0x72c   : > { %15735 = vst [vmem:[#allocation230_spill] sm:$0xff] %v11238_v17  ;;  %v11242_v40 = vpop.permute.xlu2 %3044 }
 0x72d   : > { %15736 = vst [vmem:[#allocation231_spill] sm:$0xff] %v11240_v41 }
 0x72e   : > { %15737 = vst [vmem:[#allocation232_spill] sm:$0xff] %v11242_v40 }
 0x731   : > { %3160 = vrot.lane.b32.xlu0 %v10483_v22, %s8262_s27  ;;  %3158 = vrot.lane.b32.xlu1 %v10465_v48, %s8262_s27 }
 0x732   : > { %3168 = vrot.lane.b32.xlu2 %v10489_v27, %s8262_s27 }
 0x733   : > { %v11250_v61 = vpop.permute.xlu0 %3024  ;;  %v11252_v49 = vpop.permute.xlu1 %3022 }
 0x734   : > { %15738 = vst [vmem:[#allocation233_spill] sm:$0xff] %v11250_v61  ;;  %v11254_v10 = vpop.permute.xlu2 %3050 }
 0x735   : > { %15739 = vst [vmem:[#allocation234_spill] sm:$0xff] %v11252_v49 }
 0x736   : > { %15740 = vst [vmem:[#allocation235_spill] sm:$0xff] %v11254_v10 }
 0x739   : > { %3166 = vrot.lane.b32.xlu0 %v10508_v37, %s8262_s27  ;;  %3164 = vrot.lane.b32.xlu1 %v10486_v45, %s8262_s27 }
 0x73a   : > { %3174 = vrot.lane.b32.xlu2 %v10514_v21, %s8262_s27 }
 0x73b   : > { %v11262_v40 = vpop.permute.xlu0 %3030  ;;  %v11264_v41 = vpop.permute.xlu1 %3028 }
 0x73c   : > { %15741 = vst [vmem:[#allocation236_spill] sm:$0xff] %v11262_v40  ;;  %v11266_v17 = vpop.permute.xlu2 %3056 }
 0x73d   : > { %15742 = vst [vmem:[#allocation237_spill] sm:$0xff] %v11264_v41 }
 0x73e   : > { %15743 = vst [vmem:[#allocation238_spill] sm:$0xff] %v11266_v17 }
 0x741   : > { %3172 = vrot.lane.b32.xlu0 %v10527_v33, %s8262_s27  ;;  %3170 = vrot.lane.b32.xlu1 %v10511_v2, %s8262_s27 }
 0x742   : > { %3180 = vrot.lane.b32.xlu2 %v10533_v4, %s8262_s27 }
 0x743   : > { %v11274_v10 = vpop.permute.xlu0 %3036  ;;  %v11276_v49 = vpop.permute.xlu1 %3034 }
 0x744   : > { %15744 = vst [vmem:[#allocation239_spill] sm:$0xff] %v11274_v10  ;;  %v11278_v61 = vpop.permute.xlu2 %3114 }
 0x745   : > { %15745 = vst [vmem:[#allocation240_spill] sm:$0xff] %v11276_v49 }
 0x749   : > { %3178 = vrot.lane.b32.xlu0 %v10544_v3, %s8262_s27  ;;  %3176 = vrot.lane.b32.xlu1 %v10530_v23, %s8262_s27 }
 0x74a   : > { %3186 = vrot.lane.b32.xlu2 %v10744_v26, %s8262_s27 }
 0x74b   : > { %v11286_v17 = vpop.permute.xlu0 %3042  ;;  %v11288_v41 = vpop.permute.xlu1 %3040 }
 0x74c   : > { %15746 = vst [vmem:[#allocation241_spill] sm:$0xff] %v11286_v17  ;;  %v11290_v40 = vpop.permute.xlu2 %3120 }
 0x74d   : > { %15747 = vst [vmem:[#allocation242_spill] sm:$0xff] %v11288_v41 }
 0x74e   : > { %15748 = vst [vmem:[#allocation243_spill] sm:$0xff] %v11290_v40 }
 0x751   : > { %3184 = vrot.lane.b32.xlu0 %v10741_v62, %s8262_s27  ;;  %3182 = vrot.lane.b32.xlu1 %v10547_v20, %s8262_s27 }
 0x752   : > { %3192 = vrot.lane.b32.xlu2 %v10953_v15, %s8262_s27 }
 0x753   : > { %v11298_v49 = vpop.permute.xlu0 %3048  ;;  %v11300_v10 = vpop.permute.xlu1 %3046 }
 0x754   : > { %15749 = vst [vmem:[#allocation244_spill] sm:$0xff] %v11298_v49  ;;  %v11302_v28 = vpop.permute.xlu2 %3126 }
 0x755   : > { %15750 = vst [vmem:[#allocation245_spill] sm:$0xff] %v11300_v10 }
 0x756   : > { %15751 = vst [vmem:[#allocation246_spill] sm:$0xff] %v11302_v28 }
 0x759   : > { %3190 = vrot.lane.b32.xlu0 %v10950_v0, %s8262_s27  ;;  %3188 = vrot.lane.b32.xlu1 %v10726_v43, %s8262_s27 }
 0x75a   : > { %3200 = vrot.lane.b32.xlu2 %v9902_v14, %s8262_s27 }
 0x75b   : > { %v11310_v41 = vpop.permute.xlu0 %3054  ;;  %v11312_v17 = vpop.permute.xlu1 %3052 }
 0x75c   : > { %15752 = vst [vmem:[#allocation247_spill] sm:$0xff] %v11310_v41  ;;  %v11314_v40 = vpop.permute.xlu2 %3132 }
 0x75d   : > { %15753 = vst [vmem:[#allocation248_spill] sm:$0xff] %v11312_v17 }
 0x761   : > { %8028 = vrot.lane.b32.xlu0 %v9906_v35, %s8262_s27  ;;  %3194 = vrot.lane.b32.xlu1 %v10939_v29, %s8262_s27 }
 0x762   : > { %3251 = vrot.lane.b32.xlu2 %v10337_v47, %s8256_s29 }
 0x763   : > { %v11322_v10 = vpop.permute.xlu0 %3112  ;;  %v11324_v49 = vpop.permute.xlu1 %8023 }
 0x764   : > { %15754 = vst [vmem:[#allocation249_spill] sm:$0xff] %v11324_v49  ;;  %v11326_v28 = vpop.permute.xlu2 %3138 }
 0x769   : > { %3249 = vrot.lane.b32.xlu0 %v10319_v12, %s8256_s29  ;;  %3247 = vrot.lane.b32.xlu1 %v10334_v59, %s8256_s29 }
 0x76a   : > { %3257 = vrot.lane.b32.xlu2 %v10356_v44, %s8256_s29 }
 0x76b   : > { %v11334_v17 = vpop.permute.xlu0 %3118  ;;  %v11336_v41 = vpop.permute.xlu1 %3116 }
 0x76c   : > { %v11338_v47 = vpop.permute.xlu2 %3144 }
 0x771   : > { %3255 = vrot.lane.b32.xlu0 %v10340_v32, %s8256_s29  ;;  %3253 = vrot.lane.b32.xlu1 %v10353_v63, %s8256_s29 }
 0x772   : > { %3263 = vrot.lane.b32.xlu2 %v10379_v53, %s8256_s29 }
 0x773   : > { %v11346_v49 = vpop.permute.xlu0 %3124  ;;  %v11348_v59 = vpop.permute.xlu1 %3122 }
 0x774   : > { %v11350_v44 = vpop.permute.xlu2 %3150 }
 0x779   : > { %3261 = vrot.lane.b32.xlu0 %v10359_v52, %s8256_s29  ;;  %3259 = vrot.lane.b32.xlu1 %v10376_v1, %s8256_s29 }
 0x77a   : > { %3269 = vrot.lane.b32.xlu2 %v10400_v8, %s8256_s29 }
 0x77b   : > { %v11358_v32 = vpop.permute.xlu0 %3130  ;;  %v11360_v63 = vpop.permute.xlu1 %3128 }
 0x77c   : > { %v11362_v53 = vpop.permute.xlu2 %3156 }
 0x781   : > { %3267 = vrot.lane.b32.xlu0 %v10382_v46, %s8256_s29  ;;  %3265 = vrot.lane.b32.xlu1 %v10397_v38, %s8256_s29 }
 0x782   : > { %3275 = vrot.lane.b32.xlu2 %v10419_v51, %s8256_s29 }
 0x783   : > { %v11370_v52 = vpop.permute.xlu0 %3136  ;;  %v11372_v1 = vpop.permute.xlu1 %3134 }
 0x784   : > { %v11374_v8 = vpop.permute.xlu2 %3162 }
 0x789   : > { %3273 = vrot.lane.b32.xlu0 %v10403_v9, %s8256_s29  ;;  %3271 = vrot.lane.b32.xlu1 %v10416_v19, %s8256_s29 }
 0x78a   : > { %3281 = vrot.lane.b32.xlu2 %v10442_v56, %s8256_s29 }
 0x78b   : > { %v11382_v46 = vpop.permute.xlu0 %3142  ;;  %v11384_v38 = vpop.permute.xlu1 %3140 }
 0x78c   : > { %v11386_v51 = vpop.permute.xlu2 %3168 }
 0x791   : > { %3279 = vrot.lane.b32.xlu0 %v10422_v5, %s8256_s29  ;;  %3277 = vrot.lane.b32.xlu1 %v10439_v58, %s8256_s29 }
 0x792   : > { %3287 = vrot.lane.b32.xlu2 %v10465_v48, %s8256_s29 }
 0x793   : > { %v11394_v9 = vpop.permute.xlu0 %3148  ;;  %v11396_v19 = vpop.permute.xlu1 %3146 }
 0x794   : > { %v11398_v56 = vpop.permute.xlu2 %3174 }
 0x799   : > { %3285 = vrot.lane.b32.xlu0 %v10445_v60, %s8256_s29  ;;  %3283 = vrot.lane.b32.xlu1 %v10462_v34, %s8256_s29 }
 0x79a   : > { %3293 = vrot.lane.b32.xlu2 %v10486_v45, %s8256_s29 }
 0x79b   : > { %v11406_v5 = vpop.permute.xlu0 %3154  ;;  %v11408_v58 = vpop.permute.xlu1 %3152 }
 0x79c   : > { %v11410_v48 = vpop.permute.xlu2 %3180 }
 0x79d   : > { %15755 = vst [vmem:[#allocation250_spill] sm:$0xff] %v11410_v48 }
 0x7a1   : > { %3291 = vrot.lane.b32.xlu0 %v10468_v30, %s8256_s29  ;;  %3289 = vrot.lane.b32.xlu1 %v10483_v22, %s8256_s29  ;;  %v15768_v30 = vld [vmem:[#allocation28_spill] sm:$0xff] }
 0x7a2   : > { %3299 = vrot.lane.b32.xlu2 %v10511_v2, %s8256_s29 }
 0x7a3   : > { %v11418_v60 = vpop.permute.xlu0 %3160  ;;  %v11420_v34 = vpop.permute.xlu1 %3158 }
 0x7a4   : > { %v11422_v45 = vpop.permute.xlu2 %3186 }
 0x7a5   : > { %15756 = vst [vmem:[#allocation251_spill] sm:$0xff] %v11422_v45 }
 0x7a9   : > { %3297 = vrot.lane.b32.xlu0 %v10489_v27, %s8256_s29  ;;  %3295 = vrot.lane.b32.xlu1 %v10508_v37, %s8256_s29 }
 0x7aa   : > { %3305 = vrot.lane.b32.xlu2 %v10530_v23, %s8256_s29 }
 0x7ab   : > { %v11430_v48 = vpop.permute.xlu0 %3166  ;;  %v11432_v22 = vpop.permute.xlu1 %3164 }
 0x7ac   : > { %v11434_v2 = vpop.permute.xlu2 %3192 }
 0x7ad   : > { %15757 = vst [vmem:[#allocation252_spill] sm:$0xff] %v11434_v2 }
 0x7b1   : > { %3303 = vrot.lane.b32.xlu0 %v10514_v21, %s8256_s29  ;;  %3301 = vrot.lane.b32.xlu1 %v10527_v33, %s8256_s29 }
 0x7b2   : > { %3311 = vrot.lane.b32.xlu2 %v10547_v20, %s8256_s29 }
 0x7b3   : > { %v11442_v45 = vpop.permute.xlu0 %3172  ;;  %v11444_v37 = vpop.permute.xlu1 %3170 }
 0x7b4   : > { %v11446_v23 = vpop.permute.xlu2 %3200 }
 0x7b5   : > { %15758 = vst [vmem:[#allocation253_spill] sm:$0xff] %v11446_v23 }
 0x7b9   : > { %3309 = vrot.lane.b32.xlu0 %v10533_v4, %s8256_s29  ;;  %3307 = vrot.lane.b32.xlu1 %v10544_v3, %s8256_s29 }
 0x7ba   : > { %3317 = vrot.lane.b32.xlu2 %v10726_v43, %s8256_s29 }
 0x7bb   : > { %v11454_v2 = vpop.permute.xlu0 %3178  ;;  %v11456_v33 = vpop.permute.xlu1 %3176 }
 0x7bc   : > { %15759 = vst [vmem:[#allocation254_spill] sm:$0xff] %v11454_v2  ;;  %v3252_v20 = vpop.permute.xlu2 %3251  ;;  %v15767_v2 = vld [vmem:[#allocation50_spill] sm:$0xff] }
 0x7c1   : > { %3315 = vrot.lane.b32.xlu0 %v10744_v26, %s8256_s29  ;;  %3313 = vrot.lane.b32.xlu1 %v10741_v62, %s8256_s29  ;;  %v8016_v62 = vunpack.i.h.bf16 %v10125_v18 }
 0x7c2   : > { %3323 = vrot.lane.b32.xlu2 %v10939_v29, %s8256_s29  ;;  %v8015_v29 = vunpack.i.l.bf16 %v10125_v18 }
 0x7c3   : > { %v11464_v4 = vpop.permute.xlu0 %3184  ;;  %v11466_v3 = vpop.permute.xlu1 %3182  ;;  %v3375_v27 = vsel %vm3373_vm11, %v15511_v39, %v8016_v62 }
 0x7c4   : > { %15760 = vst [vmem:[#allocation255_spill] sm:$0xff] %v11464_v4  ;;  %v3258_v23 = vpop.permute.xlu2 %3257 }
 0x7c5   : > { %15761 = vst [vmem:[#allocation256_spill] sm:$0xff] %v11466_v3 }
 0x7c9   : > { %3321 = vrot.lane.b32.xlu0 %v10953_v15, %s8256_s29  ;;  %3319 = vrot.lane.b32.xlu1 %v10950_v0, %s8256_s29  ;;  %v3376_v0 = vsel %vm3373_vm11, %v9902_v14, %v10133_v36 }
 0x7ca   : > { %v3421_v3 = vsel %vm935_vm2, %v3376_v0, %v15768_v30 }
 0x7cb   : > { %v11472_v43 = vpop.permute.xlu0 %3190  ;;  %v11474_v26 = vpop.permute.xlu1 %3188  ;;  %v3470_v36 = vsel %vm3467_vm12, %v3421_v3, %v10888_v6 }
 0x7cc   : > { %15762 = vst [vmem:[#allocation257_spill] sm:$0xff] %v11472_v43  ;;  %v11482_v4 = vpop.permute.xlu2 %3263 }
 0x7cd   : > { %15763 = vst [vmem:[#allocation258_spill] sm:$0xff] %v11474_v26  ;;  %v15766_v26 = vld [vmem:[#allocation29_spill] sm:$0xff] }
 0x7ce   : > { %v8021_v21 = vunpack.i.h.bf16 %v15766_v26  ;;  %v8020_v18 = vunpack.i.l.bf16 %v15766_v26  ;;  %v3518_v26 = vsel %vm984_vm3, %v3470_v36, %v11097_v7 }
 0x7cf   : > { %v3567_v30 = vsel %vm3564_vm13, %v3518_v26, %v11336_v41 }
 0x7d0   : > { %v11516_v3 = vsel %vm1435_vm7, %v3567_v30, %v3252_v20 }
 0x7d1   : > { %3329 = vrot.lane.b32.xlu0 %v9902_v14, %s8256_s29  ;;  %8033 = vrot.lane.b32.xlu1 %v9906_v35, %s8256_s29  ;;  %v3374_v35 = vsel %vm3373_vm11, %v15767_v2, %v8015_v29  ;;  %v3712_v20 = vrot.slane %v11516_v3, 1  ;;  %s8264_s29 = smov 28  }
 0x7d2   : > { %v3422_v30 = vsel %vm935_vm2, %v3374_v35, %v10754_v31  ;;  %v15770_v31 = vld [vmem:[#allocation210_spill] sm:$0xff] }
 0x7d3   : > { %v11487_v15 = vpop.permute.xlu0 %8028  ;;  %v11489_v43 = vpop.permute.xlu1 %3194 }
 0x7d4   : > { %15764 = vst [vmem:[#allocation259_spill] sm:$0xff] %v11487_v15  ;;  %v3420_v15 = vsel %vm935_vm2, %v3375_v27, %v8021_v21 }
 0x7d5   : > { %15765 = vst [vmem:[#allocation260_spill] sm:$0xff] %v11489_v43  ;;  %v3419_v43 = vsel %vm935_vm2, %v3374_v35, %v8020_v18  ;;  %v3469_v62 = vsel %vm3467_vm12, %v3420_v15, %v10943_v54 }
 0x7d6   : > { %v3468_v29 = vsel %vm3467_vm12, %v3419_v43, %v10945_v24  ;;  %v3517_v6 = vsel %vm984_vm3, %v3469_v62, %v11141_v50  ;;  %v11522_v43 = vpop.permute.xlu2 %3269 }
 0x7d7   : > { %v3516_v21 = vsel %vm984_vm3, %v3468_v29, %v11143_v55  ;;  %v3566_v7 = vsel %vm3564_vm13, %v3517_v6, %v11278_v61  ;;  %v15769_v61 = vld [vmem:[#allocation116_spill] sm:$0xff]  ;;  %v3423_v29 = vsel %vm935_vm2, %v3375_v27, %v10752_v57 }
 0x7d8   : > { %v3565_v54 = vsel %vm3564_vm13, %v3516_v21, %v11322_v10  ;;  %v3424_v36 = vsel %vm935_vm2, %v3376_v0, %v15769_v61  ;;  %v3471_v0 = vsel %vm3467_vm12, %v3422_v30, %v10963_v42  ;;  %v15771_v21 = vld [vmem:[#allocation243_spill] sm:$0xff] }
 0x7d9   : > { %v3473_v10 = vsel %vm3467_vm12, %v3424_v36, %v10900_v25  ;;  %v3472_v25 = vsel %vm3467_vm12, %v3423_v29, %v10961_v11  ;;  %v15774_v61 = vld [vmem:[#allocation119_spill] sm:$0xff] }
 0x7da   : > { %v3521_v6 = vsel %vm984_vm3, %v3473_v10, %v11109_v13  ;;  %v3520_v57 = vsel %vm984_vm3, %v3472_v25, %v11154_v16  ;;  %v3519_v13 = vsel %vm984_vm3, %v3471_v0, %v15770_v31  ;;  %v15772_v16 = vld [vmem:[#allocation85_spill] sm:$0xff]  ;;  %v15777_v25 = vld [vmem:[#allocation127_spill] sm:$0xff] }
 0x7db   : > { %v3250_v15 = vpop.permute.xlu0 %3249  ;;  %v3248_v24 = vpop.permute.xlu1 %3247  ;;  %v3570_v27 = vsel %vm3564_vm13, %v3521_v6, %v11348_v59  ;;  %v3568_v11 = vsel %vm3564_vm13, %v3519_v13, %v11334_v17 }
 0x7dc   : > { %v11525_v41 = vsel %vm1435_vm7, %v3566_v7, %v3250_v15  ;;  %v11528_v50 = vsel %vm1435_vm7, %v3565_v54, %v3248_v24  ;;  %v11558_v35 = vsel %vm1435_vm7, %v3570_v27, %v3258_v23  ;;  %v3569_v7 = vsel %vm3564_vm13, %v3520_v57, %v15771_v21  ;;  %v15779_v57 = vld [vmem:[#allocation205_spill] sm:$0xff]  ;;  %v15781_v21 = vld [vmem:[#allocation170_spill] sm:$0xff] }
 0x7dd   : > { %v3710_v55 = vrot.slane %v11525_v41, 1  ;;  %v3709_v18 = vrot.slane %v11528_v50, 1  ;;  %v3379_v24 = vsel %vm3373_vm11, %v9902_v14, %v15772_v16  ;;  %v15776_v14 = vld [vmem:[#allocation163_spill] sm:$0xff]  ;;  %v15783_v16 = vld [vmem:[#allocation213_spill] sm:$0xff] }
 0x7de   : > { %v3427_v36 = vsel %vm935_vm2, %v3379_v24, %v15774_v61  ;;  %v11581_v10 = vpop.permute.xlu2 %3275 }
 0x7df   : > { %v3713_v26 = vsel %vm15386_vm4, %v3710_v55, %v3712_v20  ;;  %v3711_v62 = vsel %vm15386_vm4, %v3709_v18, %v3710_v55  ;;  %v3717_v55 = vrot.slane %v11558_v35, 1  ;;  %v15773_v18 = vld [vmem:[#allocation75_spill] sm:$0xff]  ;;  %v3476_v29 = vsel %vm3467_vm12, %v3427_v36, %v15776_v14 }
 0x7e0   : > { %3791 = vrot.lane.b32.xlu1 %v3713_v26, %s8263_s28  ;;  %3789 = vrot.lane.b32.xlu2 %v3711_v62, %s8263_s28  ;;  %v3377_v17 = vsel %vm3373_vm11, %v15767_v2, %v15773_v18  ;;  %v15775_v26 = vld [vmem:[#allocation84_spill] sm:$0xff]  ;;  %v3524_v31 = vsel %vm984_vm3, %v3476_v29, %v15779_v57  ;;  %v15791_v57 = vld [vmem:[#allocation2_spill] sm:$0xff] }
 0x7e1   : > { %v3378_v62 = vsel %vm3373_vm11, %v15511_v39, %v15775_v26  ;;  %v15778_v2 = vld [vmem:[#allocation128_spill] sm:$0xff]  ;;  %v15780_v39 = vld [vmem:[#allocation169_spill] sm:$0xff] }
 0x7e2   : > { %v3426_v0 = vsel %vm935_vm2, %v3378_v62, %v15777_v25  ;;  %v3425_v27 = vsel %vm935_vm2, %v3377_v17, %v15778_v2  ;;  %v15785_v26 = vld [vmem:[#allocation88_spill] sm:$0xff]  ;;  %v15786_v62 = vld [vmem:[#allocation7_spill] sm:$0xff] }
 0x7e3   : > { %v3256_v54 = vpop.permute.xlu0 %3255  ;;  %v3254_v42 = vpop.permute.xlu1 %3253  ;;  %v3475_v13 = vsel %vm3467_vm12, %v3426_v0, %v15780_v39  ;;  %v3382_v14 = vsel %vm3373_vm11, %v15786_v62, %v15785_v26  ;;  %v15789_v0 = vld [vmem:[#allocation122_spill] sm:$0xff] }
 0x7e4   : > { %v11565_v15 = vsel %vm1435_vm7, %v3569_v7, %v3256_v54  ;;  %v11568_v59 = vsel %vm1435_vm7, %v3568_v11, %v3254_v42  ;;  %v3474_v7 = vsel %vm3467_vm12, %v3425_v27, %v15781_v21  ;;  %v3573_v11 = vsel %vm3564_vm13, %v3524_v31, %v11360_v63  ;;  %v15782_v54 = vld [vmem:[#allocation212_spill] sm:$0xff]  ;;  %v15790_v27 = vld [vmem:[#allocation87_spill] sm:$0xff]  ;;  %v15792_v39 = vld [vmem:[#allocation166_spill] sm:$0xff] }
 0x7e5   : > { %v3715_v23 = vrot.slane %v11565_v15, 1  ;;  %v3714_v20 = vrot.slane %v11568_v59, 1  ;;  %v3523_v42 = vsel %vm984_vm3, %v3475_v13, %v15782_v54  ;;  %v3522_v24 = vsel %vm984_vm3, %v3474_v7, %v15783_v16 }
 0x7e6   : > { %v3571_v18 = vsel %vm3564_vm13, %v3522_v24, %v11346_v49  ;;  %v15788_v49 = vld [vmem:[#allocation3_spill] sm:$0xff]  ;;  %v3430_v2 = vsel %vm935_vm2, %v3382_v14, %v15789_v0  ;;  %v3380_v31 = vsel %vm3373_vm11, %v15791_v57, %v15790_v27  ;;  %v15795_v24 = vld [vmem:[#allocation208_spill] sm:$0xff] }
 0x7e7   : > { %v3718_v30 = vsel %vm15386_vm4, %v3715_v23, %v3717_v55  ;;  %v3716_v6 = vsel %vm15386_vm4, %v3714_v20, %v3715_v23  ;;  %v11610_v23 = vsel %vm1435_vm7, %v3573_v11, %v11482_v4  ;;  %v15784_v55 = vld [vmem:[#allocation246_spill] sm:$0xff]  ;;  %v3479_v13 = vsel %vm3467_vm12, %v3430_v2, %v15792_v39  ;;  %v15798_v14 = vld [vmem:[#allocation215_spill] sm:$0xff] }
 0x7e8   : > { %3795 = vrot.lane.b32.xlu2 %v3718_v30, %s8263_s28  ;;  %3793 = vrot.lane.b32.xlu0 %v3716_v6, %s8263_s28  ;;  %v3572_v20 = vsel %vm3564_vm13, %v3523_v42, %v15784_v55  ;;  %v3722_v29 = vrot.slane %v11610_v23, 1  ;;  %v15787_v6 = vld [vmem:[#allocation79_spill] sm:$0xff]  ;;  %v15793_v11 = vld [vmem:[#allocation130_spill] sm:$0xff]  ;;  %v3527_v55 = vsel %vm984_vm3, %v3479_v13, %v15795_v24 }
 0x7e9   : > { %v3381_v25 = vsel %vm3373_vm11, %v15788_v49, %v15787_v6  ;;  %v15794_v42 = vld [vmem:[#allocation131_spill] sm:$0xff]  ;;  %v3576_v62 = vsel %vm3564_vm13, %v3527_v55, %v11372_v1 }
 0x7ea   : > { %v3429_v54 = vsel %vm935_vm2, %v3381_v25, %v15793_v11  ;;  %v3428_v16 = vsel %vm935_vm2, %v3380_v31, %v15794_v42  ;;  %v11662_v6 = vsel %vm1435_vm7, %v3576_v62, %v11522_v43  ;;  %v15800_v57 = vld [vmem:[#allocation91_spill] sm:$0xff]  ;;  %v15801_v31 = vld [vmem:[#allocation8_spill] sm:$0xff]  ;;  %v15804_v11 = vld [vmem:[#allocation125_spill] sm:$0xff] }
 0x7eb   : > { %v3262_v17 = vpop.permute.xlu0 %3261  ;;  %v3260_v61 = vpop.permute.xlu1 %3259  ;;  %v3385_v39 = vsel %vm3373_vm11, %v15801_v31, %v15800_v57  ;;  %v3727_v13 = vrot.slane %v11662_v6, 1  ;;  %v15805_v42 = vld [vmem:[#allocation90_spill] sm:$0xff]  ;;  %v15807_v55 = vld [vmem:[#allocation167_spill] sm:$0xff] }
 0x7ec   : > { %v11617_v63 = vsel %vm1435_vm7, %v3572_v20, %v3262_v17  ;;  %v11620_v36 = vsel %vm1435_vm7, %v3571_v18, %v3260_v61  ;;  %v11646_v20 = vpop.permute.xlu2 %3281  ;;  %v15796_v18 = vld [vmem:[#allocation172_spill] sm:$0xff]  ;;  %v15797_v61 = vld [vmem:[#allocation173_spill] sm:$0xff]  ;;  %v15813_v31 = vld [vmem:[#allocation218_spill] sm:$0xff] }
 0x7ed   : > { %v3720_v4 = vrot.slane %v11617_v63, 1  ;;  %v3719_v30 = vrot.slane %v11620_v36, 1  ;;  %v3478_v17 = vsel %vm3467_vm12, %v3429_v54, %v15796_v18  ;;  %v3477_v26 = vsel %vm3467_vm12, %v3428_v16, %v15797_v61  ;;  %v15806_v16 = vld [vmem:[#allocation4_spill] sm:$0xff] }
 0x7ee   : > { %v3433_v54 = vsel %vm935_vm2, %v3385_v39, %v15804_v11  ;;  %v3383_v24 = vsel %vm3373_vm11, %v15806_v16, %v15805_v42  ;;  %v15815_v16 = vld [vmem:[#allocation94_spill] sm:$0xff] }
 0x7ef   : > { %v3723_v21 = vsel %vm15386_vm4, %v3720_v4, %v3722_v29  ;;  %v3721_v7 = vsel %vm15386_vm4, %v3719_v30, %v3720_v4  ;;  %v3526_v4 = vsel %vm984_vm3, %v3478_v17, %v15798_v14  ;;  %v15799_v29 = vld [vmem:[#allocation216_spill] sm:$0xff]  ;;  %v3482_v18 = vsel %vm3467_vm12, %v3433_v54, %v15807_v55  ;;  %v15809_v14 = vld [vmem:[#allocation134_spill] sm:$0xff] }
 0x7f0   : > { %3799 = vrot.lane.b32.xlu0 %v3723_v21, %s8263_s28  ;;  %3797 = vrot.lane.b32.xlu1 %v3721_v7, %s8263_s28  ;;  %v3525_v30 = vsel %vm984_vm3, %v3477_v26, %v15799_v29  ;;  %v3575_v49 = vsel %vm3564_vm13, %v3526_v4, %v11314_v40  ;;  %v15802_v21 = vld [vmem:[#allocation82_spill] sm:$0xff]  ;;  %v15808_v26 = vld [vmem:[#allocation133_spill] sm:$0xff]  ;;  %v3431_v4 = vsel %vm935_vm2, %v3383_v24, %v15809_v14 }
 0x7f1   : > { %v3574_v25 = vsel %vm3564_vm13, %v3525_v30, %v11358_v32  ;;  %v15803_v32 = vld [vmem:[#allocation9_spill] sm:$0xff]  ;;  %v15816_v24 = vld [vmem:[#allocation6_spill] sm:$0xff] }
 0x7f2   : > { %v3384_v7 = vsel %vm3373_vm11, %v15803_v32, %v15802_v21  ;;  %v15810_v29 = vld [vmem:[#allocation209_spill] sm:$0xff] }
 0x7f3   : > { %v3268_v0 = vpop.permute.xlu0 %3267  ;;  %v3266_v2 = vpop.permute.xlu1 %3265  ;;  %v3432_v62 = vsel %vm935_vm2, %v3384_v7, %v15808_v26  ;;  %v3530_v30 = vsel %vm984_vm3, %v3482_v18, %v15810_v29  ;;  %v15819_v26 = vld [vmem:[#allocation126_spill] sm:$0xff]  ;;  %v15820_v14 = vld [vmem:[#allocation93_spill] sm:$0xff] }
 0x7f4   : > { %v11669_v1 = vsel %vm1435_vm7, %v3575_v49, %v3268_v0  ;;  %v11672_v27 = vsel %vm1435_vm7, %v3574_v25, %v3266_v2  ;;  %v15811_v49 = vld [vmem:[#allocation175_spill] sm:$0xff]  ;;  %v15812_v0 = vld [vmem:[#allocation176_spill] sm:$0xff]  ;;  %v3579_v57 = vsel %vm3564_vm13, %v3530_v30, %v11384_v38  ;;  %v3288_v21 = vpop.permute.xlu2 %3287 }
 0x7f5   : > { %v3725_v43 = vrot.slane %v11669_v1, 1  ;;  %v3724_v40 = vrot.slane %v11672_v27, 1  ;;  %v3481_v25 = vsel %vm3467_vm12, %v3432_v62, %v15811_v49  ;;  %v3480_v2 = vsel %vm3467_vm12, %v3431_v4, %v15812_v0  ;;  %v15821_v4 = vld [vmem:[#allocation32_spill] sm:$0xff] }
 0x7f6   : > { %v3529_v39 = vsel %vm984_vm3, %v3481_v25, %v15813_v31  ;;  %v3386_v29 = vsel %vm3373_vm11, %v15821_v4, %v15820_v14  ;;  %v15822_v30 = vld [vmem:[#allocation168_spill] sm:$0xff]  ;;  %v15824_v31 = vld [vmem:[#allocation137_spill] sm:$0xff] }
 0x7f7   : > { %v3728_v17 = vsel %vm15386_vm4, %v3725_v43, %v3727_v13  ;;  %v3726_v61 = vsel %vm15386_vm4, %v3724_v40, %v3725_v43  ;;  %v15814_v43 = vld [vmem:[#allocation219_spill] sm:$0xff]  ;;  %v11712_v40 = vsel %vm1435_vm7, %v3579_v57, %v11581_v10  ;;  %v3578_v32 = vsel %vm3564_vm13, %v3529_v39, %v11326_v28  ;;  %v15830_v4 = vld [vmem:[#allocation97_spill] sm:$0xff] }
 0x7f8   : > { %3803 = vrot.lane.b32.xlu1 %v3728_v17, %s8263_s28  ;;  %3801 = vrot.lane.b32.xlu2 %v3726_v61, %s8263_s28  ;;  %v3528_v13 = vsel %vm984_vm3, %v3480_v2, %v15814_v43  ;;  %v3388_v10 = vsel %vm3373_vm11, %v15816_v24, %v15815_v16  ;;  %v3732_v18 = vrot.slane %v11712_v40, 1  ;;  %v15817_v17 = vld [vmem:[#allocation83_spill] sm:$0xff]  ;;  %v15823_v2 = vld [vmem:[#allocation136_spill] sm:$0xff]  ;;  %v3434_v39 = vsel %vm935_vm2, %v3386_v29, %v15824_v31  ;;  %v15828_v24 = vld [vmem:[#allocation221_spill] sm:$0xff] }
 0x7f9   : > { %v3577_v7 = vsel %vm3564_vm13, %v3528_v13, %v11370_v52  ;;  %v15818_v52 = vld [vmem:[#allocation30_spill] sm:$0xff]  ;;  %v3436_v62 = vsel %vm935_vm2, %v3388_v10, %v15819_v26  ;;  %v15825_v43 = vld [vmem:[#allocation211_spill] sm:$0xff]  ;;  %v15831_v29 = vld [vmem:[#allocation48_spill] sm:$0xff] }
 0x7fa   : > { %v3387_v61 = vsel %vm3373_vm11, %v15818_v52, %v15817_v17  ;;  %v3485_v49 = vsel %vm3467_vm12, %v3436_v62, %v15822_v30  ;;  %v15835_v31 = vld [vmem:[#allocation31_spill] sm:$0xff] }
 0x7fb   : > { %v3274_v11 = vpop.permute.xlu0 %3273  ;;  %v3272_v54 = vpop.permute.xlu1 %3271  ;;  %v3435_v57 = vsel %vm935_vm2, %v3387_v61, %v15823_v2  ;;  %v3533_v13 = vsel %vm984_vm3, %v3485_v49, %v15825_v43  ;;  %v15836_v43 = vld [vmem:[#allocation171_spill] sm:$0xff] }
 0x7fc   : > { %v11719_v38 = vsel %vm1435_vm7, %v3578_v32, %v3274_v11  ;;  %v11722_v42 = vsel %vm1435_vm7, %v3577_v7, %v3272_v54  ;;  %v15826_v32 = vld [vmem:[#allocation178_spill] sm:$0xff]  ;;  %v15827_v11 = vld [vmem:[#allocation179_spill] sm:$0xff]  ;;  %v3582_v16 = vsel %vm3564_vm13, %v3533_v13, %v11396_v19  ;;  %v3294_v62 = vpop.permute.xlu2 %3293 }
 0x7fd   : > { %v3730_v55 = vrot.slane %v11719_v38, 1  ;;  %v3729_v28 = vrot.slane %v11722_v42, 1  ;;  %v3484_v7 = vsel %vm3467_vm12, %v3435_v57, %v15826_v32  ;;  %v3483_v54 = vsel %vm3467_vm12, %v3434_v39, %v15827_v11  ;;  %v15834_v57 = vld [vmem:[#allocation96_spill] sm:$0xff]  ;;  %v15837_v11 = vld [vmem:[#allocation139_spill] sm:$0xff] }
 0x7fe   : > { %v3532_v10 = vsel %vm984_vm3, %v3484_v7, %v15828_v24  ;;  %v3389_v39 = vsel %vm3373_vm11, %v15835_v31, %v15834_v57  ;;  %v15839_v24 = vld [vmem:[#allocation214_spill] sm:$0xff]  ;;  %v15846_v57 = vld [vmem:[#allocation55_spill] sm:$0xff] }
 0x7ff   : > { %v3733_v25 = vsel %vm15386_vm4, %v3730_v55, %v3732_v18  ;;  %v3731_v0 = vsel %vm15386_vm4, %v3729_v28, %v3730_v55  ;;  %v15829_v55 = vld [vmem:[#allocation222_spill] sm:$0xff]  ;;  %v11762_v28 = vsel %vm1435_vm7, %v3582_v16, %v11646_v20  ;;  %v3581_v17 = vsel %vm3564_vm13, %v3532_v10, %v11338_v47  ;;  %v15838_v16 = vld [vmem:[#allocation140_spill] sm:$0xff] }
 0x800   : > { %3807 = vrot.lane.b32.xlu2 %v3733_v25, %s8263_s28  ;;  %3805 = vrot.lane.b32.xlu0 %v3731_v0, %s8263_s28  ;;  %v3531_v18 = vsel %vm984_vm3, %v3483_v54, %v15829_v55  ;;  %v3391_v20 = vsel %vm3373_vm11, %v15831_v29, %v15830_v4  ;;  %v3737_v47 = vrot.slane %v11762_v28, 1  ;;  %v15833_v0 = vld [vmem:[#allocation129_spill] sm:$0xff] }
 0x801   : > { %v3580_v52 = vsel %vm3564_vm13, %v3531_v18, %v11382_v46  ;;  %v15832_v46 = vld [vmem:[#allocation86_spill] sm:$0xff]  ;;  %v3439_v2 = vsel %vm935_vm2, %v3391_v20, %v15833_v0  ;;  %v15840_v55 = vld [vmem:[#allocation181_spill] sm:$0xff] }
 0x802   : > { %v3390_v25 = vsel %vm3373_vm11, %v10319_v12, %v15832_v46  ;;  %v3488_v13 = vsel %vm3467_vm12, %v3439_v2, %v15836_v43  ;;  %v3437_v12 = vsel %vm935_vm2, %v3389_v39, %v15838_v16  ;;  %v15843_v29 = vld [vmem:[#allocation225_spill] sm:$0xff]  ;;  %v15845_v2 = vld [vmem:[#allocation100_spill] sm:$0xff]  ;;  %v15851_v16 = vld [vmem:[#allocation54_spill] sm:$0xff] }
 0x803   : > { %v3280_v61 = vpop.permute.xlu0 %3279  ;;  %v3278_v26 = vpop.permute.xlu1 %3277  ;;  %v3438_v54 = vsel %vm935_vm2, %v3390_v25, %v15837_v11  ;;  %v3536_v10 = vsel %vm984_vm3, %v3488_v13, %v15839_v24  ;;  %v3394_v31 = vsel %vm3373_vm11, %v15846_v57, %v15845_v2  ;;  %v15847_v43 = vld [vmem:[#allocation89_spill] sm:$0xff]  ;;  %v15852_v24 = vld [vmem:[#allocation174_spill] sm:$0xff]  ;;  %v15858_v2 = vld [vmem:[#allocation227_spill] sm:$0xff] }
 0x804   : > { %v11769_v19 = vsel %vm1435_vm7, %v3581_v17, %v3280_v61  ;;  %v11772_v14 = vsel %vm1435_vm7, %v3580_v52, %v3278_v26  ;;  %v3487_v18 = vsel %vm3467_vm12, %v3438_v54, %v15840_v55  ;;  %v15841_v17 = vld [vmem:[#allocation182_spill] sm:$0xff]  ;;  %v3585_v61 = vsel %vm3564_vm13, %v3536_v10, %v11408_v58  ;;  %v15842_v26 = vld [vmem:[#allocation224_spill] sm:$0xff]  ;;  %v3300_v11 = vpop.permute.xlu2 %3299  ;;  %v15850_v54 = vld [vmem:[#allocation99_spill] sm:$0xff] }
 0x805   : > { %v3735_v30 = vrot.slane %v11769_v19, 1  ;;  %v3734_v49 = vrot.slane %v11772_v14, 1  ;;  %v3486_v52 = vsel %vm3467_vm12, %v3437_v12, %v15841_v17  ;;  %v3535_v4 = vsel %vm984_vm3, %v3487_v18, %v15842_v26  ;;  %v15853_v17 = vld [vmem:[#allocation142_spill] sm:$0xff] }
 0x806   : > { %v3534_v20 = vsel %vm984_vm3, %v3486_v52, %v15843_v29  ;;  %v3392_v12 = vsel %vm3373_vm11, %v15851_v16, %v15850_v54  ;;  %v15863_v54 = vld [vmem:[#allocation58_spill] sm:$0xff] }
 0x807   : > { %v3738_v32 = vsel %vm15386_vm4, %v3735_v30, %v3737_v47  ;;  %v3736_v7 = vsel %vm15386_vm4, %v3734_v49, %v3735_v30  ;;  %v11811_v30 = vsel %vm1435_vm7, %v3585_v61, %v3288_v21  ;;  %v3584_v47 = vsel %vm3564_vm13, %v3535_v4, %v11350_v44  ;;  %v15854_v61 = vld [vmem:[#allocation143_spill] sm:$0xff]  ;;  %v15855_v4 = vld [vmem:[#allocation217_spill] sm:$0xff] }
 0x808   : > { %3811 = vrot.lane.b32.xlu0 %v3738_v32, %s8263_s28  ;;  %3809 = vrot.lane.b32.xlu1 %v3736_v7, %s8263_s28  ;;  %v3583_v49 = vsel %vm3564_vm13, %v3534_v20, %v11394_v9  ;;  %v3742_v39 = vrot.slane %v11811_v30, 1  ;;  %v15848_v9 = vld [vmem:[#allocation53_spill] sm:$0xff]  ;;  %v15849_v32 = vld [vmem:[#allocation132_spill] sm:$0xff]  ;;  %v3440_v26 = vsel %vm935_vm2, %v3392_v12, %v15854_v61 }
 0x809   : > { %v3393_v13 = vsel %vm3373_vm11, %v15848_v9, %v15847_v43  ;;  %v3442_v7 = vsel %vm935_vm2, %v3394_v31, %v15849_v32  ;;  %v15856_v20 = vld [vmem:[#allocation184_spill] sm:$0xff] }
 0x80a   : > { %v3491_v10 = vsel %vm3467_vm12, %v3442_v7, %v15852_v24  ;;  %v3441_v52 = vsel %vm935_vm2, %v3393_v13, %v15853_v17  ;;  %v15859_v31 = vld [vmem:[#allocation228_spill] sm:$0xff]  ;;  %v15862_v7 = vld [vmem:[#allocation103_spill] sm:$0xff]  ;;  %v15867_v17 = vld [vmem:[#allocation102_spill] sm:$0xff] }
 0x80b   : > { %v3286_v46 = vpop.permute.xlu0 %3285  ;;  %v3284_v25 = vpop.permute.xlu1 %3283  ;;  %v3539_v29 = vsel %vm984_vm3, %v3491_v10, %v15855_v4  ;;  %v3397_v16 = vsel %vm3373_vm11, %v15863_v54, %v15862_v7  ;;  %v15864_v24 = vld [vmem:[#allocation92_spill] sm:$0xff]  ;;  %v15875_v7 = vld [vmem:[#allocation230_spill] sm:$0xff] }
 0x80c   : > { %v11818_v0 = vsel %vm1435_vm7, %v3584_v47, %v3286_v46  ;;  %v11821_v58 = vsel %vm1435_vm7, %v3583_v49, %v3284_v25  ;;  %v3490_v47 = vsel %vm3467_vm12, %v3441_v52, %v15856_v20  ;;  %v15857_v49 = vld [vmem:[#allocation185_spill] sm:$0xff]  ;;  %v3588_v25 = vsel %vm3564_vm13, %v3539_v29, %v11420_v34 }
 0x80d   : > { %15844 = vst [vmem:[#allocation29_spill] sm:$0xff] %v11818_v0  ;;  %v3740_v21 = vrot.slane %v11818_v0, 1  ;;  %v3739_v44 = vrot.slane %v11821_v58, 1  ;;  %v3489_v46 = vsel %vm3467_vm12, %v3440_v26, %v15857_v49  ;;  %v3538_v57 = vsel %vm984_vm3, %v3490_v47, %v15858_v2  ;;  %v15868_v52 = vld [vmem:[#allocation57_spill] sm:$0xff]  ;;  %v15872_v2 = vld [vmem:[#allocation220_spill] sm:$0xff] }
 0x80e   : > { %v3395_v61 = vsel %vm3373_vm11, %v15868_v52, %v15867_v17  ;;  %v15869_v26 = vld [vmem:[#allocation177_spill] sm:$0xff] }
 0x80f   : > { %v3743_v55 = vsel %vm15386_vm4, %v3740_v21, %v3742_v39  ;;  %v3741_v18 = vsel %vm15386_vm4, %v3739_v44, %v3740_v21  ;;  %v3537_v21 = vsel %vm984_vm3, %v3489_v46, %v15859_v31  ;;  %v11860_v39 = vsel %vm1435_vm7, %v3588_v25, %v3294_v62  ;;  %v15870_v47 = vld [vmem:[#allocation145_spill] sm:$0xff]  ;;  %v15871_v46 = vld [vmem:[#allocation146_spill] sm:$0xff]  ;;  %v3306_v31 = vpop.permute.xlu2 %3305 }
 0x810   : > { %3815 = vrot.lane.b32.xlu1 %v3743_v55, %s8263_s28  ;;  %3813 = vrot.lane.b32.xlu2 %v3741_v18, %s8263_s28  ;;  %v3587_v44 = vsel %vm3564_vm13, %v3538_v57, %v11362_v53  ;;  %v3586_v43 = vsel %vm3564_vm13, %v3537_v21, %v11406_v5  ;;  %v3747_v12 = vrot.slane %v11860_v39, 1  ;;  %v15865_v5 = vld [vmem:[#allocation56_spill] sm:$0xff]  ;;  %v15866_v55 = vld [vmem:[#allocation135_spill] sm:$0xff]  ;;  %v3443_v25 = vsel %vm935_vm2, %v3395_v61, %v15871_v46  ;;  %v15878_v17 = vld [vmem:[#allocation61_spill] sm:$0xff] }
 0x811   : > { %v3396_v10 = vsel %vm3373_vm11, %v15865_v5, %v15864_v24  ;;  %v3445_v18 = vsel %vm935_vm2, %v3397_v16, %v15866_v55  ;;  %v15873_v21 = vld [vmem:[#allocation187_spill] sm:$0xff] }
 0x812   : > { %v3494_v4 = vsel %vm3467_vm12, %v3445_v18, %v15869_v26  ;;  %v3444_v49 = vsel %vm935_vm2, %v3396_v10, %v15870_v47  ;;  %v15876_v16 = vld [vmem:[#allocation231_spill] sm:$0xff]  ;;  %v15877_v18 = vld [vmem:[#allocation106_spill] sm:$0xff]  ;;  %v15882_v47 = vld [vmem:[#allocation105_spill] sm:$0xff] }
 0x813   : > { %v3292_v9 = vpop.permute.xlu0 %3291  ;;  %v3290_v13 = vpop.permute.xlu1 %3289  ;;  %v3542_v57 = vsel %vm984_vm3, %v3494_v4, %v15872_v2  ;;  %v3400_v52 = vsel %vm3373_vm11, %v15878_v17, %v15877_v18  ;;  %v15879_v26 = vld [vmem:[#allocation95_spill] sm:$0xff]  ;;  %v15891_v17 = vld [vmem:[#allocation234_spill] sm:$0xff] }
 0x814   : > { %v11867_v32 = vsel %vm1435_vm7, %v3587_v44, %v3292_v9  ;;  %v11870_v34 = vsel %vm1435_vm7, %v3586_v43, %v3290_v13  ;;  %v3493_v44 = vsel %vm3467_vm12, %v3444_v49, %v15873_v21  ;;  %v15874_v43 = vld [vmem:[#allocation188_spill] sm:$0xff]  ;;  %v3591_v13 = vsel %vm3564_vm13, %v3542_v57, %v11432_v22 }
 0x815   : > { %15860 = vst [vmem:[#allocation50_spill] sm:$0xff] %v11867_v32  ;;  %v3745_v62 = vrot.slane %v11867_v32, 1  ;;  %v3744_v53 = vrot.slane %v11870_v34, 1  ;;  %v3492_v9 = vsel %vm3467_vm12, %v3443_v25, %v15874_v43  ;;  %v3541_v54 = vsel %vm984_vm3, %v3493_v44, %v15875_v7  ;;  %v15883_v49 = vld [vmem:[#allocation60_spill] sm:$0xff]  ;;  %v15887_v7 = vld [vmem:[#allocation223_spill] sm:$0xff] }
 0x816   : > { %15861 = vst [vmem:[#allocation28_spill] sm:$0xff] %v11870_v34  ;;  %v3398_v46 = vsel %vm3373_vm11, %v15883_v49, %v15882_v47  ;;  %v15884_v25 = vld [vmem:[#allocation180_spill] sm:$0xff] }
 0x817   : > { %v3748_v29 = vsel %vm15386_vm4, %v3745_v62, %v3747_v12  ;;  %v3746_v20 = vsel %vm15386_vm4, %v3744_v53, %v3745_v62  ;;  %v3540_v62 = vsel %vm984_vm3, %v3492_v9, %v15876_v16  ;;  %v11909_v12 = vsel %vm1435_vm7, %v3591_v13, %v3300_v11  ;;  %v15885_v44 = vld [vmem:[#allocation148_spill] sm:$0xff]  ;;  %v15886_v9 = vld [vmem:[#allocation149_spill] sm:$0xff]  ;;  %v15888_v16 = vld [vmem:[#allocation190_spill] sm:$0xff] }
 0x818   : > { %3819 = vrot.lane.b32.xlu2 %v3748_v29, %s8263_s28  ;;  %3817 = vrot.lane.b32.xlu0 %v3746_v20, %s8263_s28  ;;  %v3590_v53 = vsel %vm3564_vm13, %v3541_v54, %v11374_v8  ;;  %v3589_v24 = vsel %vm3564_vm13, %v3540_v62, %v11418_v60  ;;  %v3752_v61 = vrot.slane %v11909_v12, 1  ;;  %v15880_v60 = vld [vmem:[#allocation59_spill] sm:$0xff]  ;;  %v15881_v29 = vld [vmem:[#allocation138_spill] sm:$0xff]  ;;  %v3446_v13 = vsel %vm935_vm2, %v3398_v46, %v15886_v9  ;;  %v15893_v47 = vld [vmem:[#allocation64_spill] sm:$0xff] }
 0x819   : > { %v3399_v4 = vsel %vm3373_vm11, %v15880_v60, %v15879_v26  ;;  %v3448_v20 = vsel %vm935_vm2, %v3400_v52, %v15881_v29 }
 0x81a   : > { %v3497_v2 = vsel %vm3467_vm12, %v3448_v20, %v15884_v25  ;;  %v3447_v43 = vsel %vm935_vm2, %v3399_v4, %v15885_v44  ;;  %v15892_v20 = vld [vmem:[#allocation109_spill] sm:$0xff]  ;;  %v15894_v25 = vld [vmem:[#allocation98_spill] sm:$0xff]  ;;  %v15897_v44 = vld [vmem:[#allocation108_spill] sm:$0xff] }
 0x81b   : > { %v3298_v5 = vpop.permute.xlu0 %3297  ;;  %v3296_v10 = vpop.permute.xlu1 %3295  ;;  %v3545_v54 = vsel %vm984_vm3, %v3497_v2, %v15887_v7  ;;  %v3496_v62 = vsel %vm3467_vm12, %v3447_v43, %v15888_v16  ;;  %v15898_v43 = vld [vmem:[#allocation63_spill] sm:$0xff] }
 0x81c   : > { %v11916_v55 = vsel %vm1435_vm7, %v3590_v53, %v3298_v5  ;;  %v11919_v22 = vsel %vm1435_vm7, %v3589_v24, %v3296_v10  ;;  %v15889_v53 = vld [vmem:[#allocation191_spill] sm:$0xff]  ;;  %v3594_v5 = vsel %vm3564_vm13, %v3545_v54, %v11444_v37  ;;  %v15890_v10 = vld [vmem:[#allocation233_spill] sm:$0xff]  ;;  %v3401_v9 = vsel %vm3373_vm11, %v15898_v43, %v15897_v44 }
 0x81d   : > { %v3750_v11 = vrot.slane %v11916_v55, 1  ;;  %v3749_v8 = vrot.slane %v11919_v22, 1  ;;  %v3495_v24 = vsel %vm3467_vm12, %v3446_v13, %v15889_v53  ;;  %v3544_v18 = vsel %vm984_vm3, %v3496_v62, %v15890_v10  ;;  %v15899_v13 = vld [vmem:[#allocation183_spill] sm:$0xff]  ;;  %v15902_v10 = vld [vmem:[#allocation226_spill] sm:$0xff] }
 0x81e   : > { %v3543_v52 = vsel %vm984_vm3, %v3495_v24, %v15891_v17  ;;  %v15900_v62 = vld [vmem:[#allocation151_spill] sm:$0xff]  ;;  %v15901_v24 = vld [vmem:[#allocation152_spill] sm:$0xff]  ;;  %v15903_v17 = vld [vmem:[#allocation193_spill] sm:$0xff] }
 0x81f   : > { %v3753_v57 = vsel %vm15386_vm4, %v3750_v11, %v3752_v61  ;;  %v3751_v21 = vsel %vm15386_vm4, %v3749_v8, %v3750_v11  ;;  %v11958_v11 = vsel %vm1435_vm7, %v3594_v5, %v3306_v31  ;;  %v3312_v61 = vpop.permute.xlu2 %3311  ;;  %v3593_v8 = vsel %vm3564_vm13, %v3544_v18, %v11386_v51 }
 0x820   : > { %3823 = vrot.lane.b32.xlu0 %v3753_v57, %s8263_s28  ;;  %3821 = vrot.lane.b32.xlu1 %v3751_v21, %s8263_s28  ;;  %v3592_v26 = vsel %vm3564_vm13, %v3543_v52, %v11430_v48  ;;  %v3403_v31 = vsel %vm3373_vm11, %v15893_v47, %v15892_v20  ;;  %v3757_v46 = vrot.slane %v11958_v11, 1  ;;  %v15895_v48 = vld [vmem:[#allocation62_spill] sm:$0xff]  ;;  %v15896_v57 = vld [vmem:[#allocation141_spill] sm:$0xff]  ;;  %v3449_v5 = vsel %vm935_vm2, %v3401_v9, %v15901_v24 }
 0x821   : > { %v3402_v2 = vsel %vm3373_vm11, %v15895_v48, %v15894_v25  ;;  %v3451_v21 = vsel %vm935_vm2, %v3403_v31, %v15896_v57  ;;  %v15906_v47 = vld [vmem:[#allocation237_spill] sm:$0xff]  ;;  %v15907_v57 = vld [vmem:[#allocation112_spill] sm:$0xff] }
 0x822   : > { %v3500_v7 = vsel %vm3467_vm12, %v3451_v21, %v15899_v13  ;;  %v3450_v53 = vsel %vm935_vm2, %v3402_v2, %v15900_v62  ;;  %v15908_v21 = vld [vmem:[#allocation67_spill] sm:$0xff]  ;;  %v15910_v13 = vld [vmem:[#allocation65_spill] sm:$0xff] }
 0x823   : > { %v3304_v60 = vpop.permute.xlu0 %3303  ;;  %v3302_v4 = vpop.permute.xlu1 %3301  ;;  %v3548_v18 = vsel %vm984_vm3, %v3500_v7, %v15902_v10  ;;  %v3499_v52 = vsel %vm3467_vm12, %v3450_v53, %v15903_v17  ;;  %v3406_v44 = vsel %vm3373_vm11, %v15908_v21, %v15907_v57  ;;  %v15912_v62 = vld [vmem:[#allocation111_spill] sm:$0xff]  ;;  %v15913_v53 = vld [vmem:[#allocation66_spill] sm:$0xff] }
 0x824   : > { %v11965_v37 = vsel %vm1435_vm7, %v3593_v8, %v3304_v60  ;;  %v11968_v29 = vsel %vm1435_vm7, %v3592_v26, %v3302_v4  ;;  %v15904_v8 = vld [vmem:[#allocation194_spill] sm:$0xff]  ;;  %v3597_v60 = vsel %vm3564_vm13, %v3548_v18, %v11456_v33  ;;  %v15905_v4 = vld [vmem:[#allocation236_spill] sm:$0xff]  ;;  %v3404_v24 = vsel %vm3373_vm11, %v15913_v53, %v15912_v62  ;;  %v15921_v57 = vld [vmem:[#allocation239_spill] sm:$0xff] }
 0x825   : > { %v3755_v49 = vrot.slane %v11965_v37, 1  ;;  %v3754_v51 = vrot.slane %v11968_v29, 1  ;;  %v3498_v26 = vsel %vm3467_vm12, %v3449_v5, %v15904_v8  ;;  %v3547_v20 = vsel %vm984_vm3, %v3499_v52, %v15905_v4  ;;  %v15914_v5 = vld [vmem:[#allocation186_spill] sm:$0xff]  ;;  %v15917_v4 = vld [vmem:[#allocation229_spill] sm:$0xff] }
 0x826   : > { %v3546_v31 = vsel %vm984_vm3, %v3498_v26, %v15906_v47  ;;  %v15915_v52 = vld [vmem:[#allocation154_spill] sm:$0xff]  ;;  %v15916_v26 = vld [vmem:[#allocation155_spill] sm:$0xff]  ;;  %v15918_v47 = vld [vmem:[#allocation196_spill] sm:$0xff] }
 0x827   : > { %v3758_v54 = vsel %vm15386_vm4, %v3755_v49, %v3757_v46  ;;  %v3756_v16 = vsel %vm15386_vm4, %v3754_v51, %v3755_v49  ;;  %v12007_v49 = vsel %vm1435_vm7, %v3597_v60, %v3312_v61  ;;  %v3596_v46 = vsel %vm3564_vm13, %v3547_v20, %v11398_v56  ;;  %v3318_v61 = vpop.permute.xlu2 %3317  ;;  %v15927_v62 = vld [vmem:[#allocation250_spill] sm:$0xff] }
 0x828   : > { %3827 = vrot.lane.b32.xlu1 %v3758_v54, %s8263_s28  ;;  %3825 = vrot.lane.b32.xlu2 %v3756_v16, %s8263_s28  ;;  %v3595_v51 = vsel %vm3564_vm13, %v3546_v31, %v11442_v45  ;;  %v3762_v56 = vrot.slane %v12007_v49, 1  ;;  %v15909_v45 = vld [vmem:[#allocation101_spill] sm:$0xff]  ;;  %v15911_v54 = vld [vmem:[#allocation144_spill] sm:$0xff]  ;;  %v3452_v60 = vsel %vm935_vm2, %v3404_v24, %v15916_v26  ;;  %v15928_v24 = vld [vmem:[#allocation254_spill] sm:$0xff] }
 0x829   : > { %v3405_v7 = vsel %vm3373_vm11, %v15910_v13, %v15909_v45  ;;  %v3454_v16 = vsel %vm935_vm2, %v3406_v44, %v15911_v54  ;;  %v15922_v44 = vld [vmem:[#allocation240_spill] sm:$0xff]  ;;  %v15926_v54 = vld [vmem:[#allocation71_spill] sm:$0xff]  ;;  %v15932_v26 = vld [vmem:[#allocation78_spill] sm:$0xff] }
 0x82a   : > { %v3503_v10 = vsel %vm3467_vm12, %v3454_v16, %v15914_v5  ;;  %v3453_v8 = vsel %vm935_vm2, %v3405_v7, %v15915_v52  ;;  %v15924_v45 = vld [vmem:[#allocation68_spill] sm:$0xff]  ;;  %v15925_v7 = vld [vmem:[#allocation107_spill] sm:$0xff]  ;;  %v15930_v52 = vld [vmem:[#allocation74_spill] sm:$0xff] }
 0x82b   : > { %v3310_v25 = vpop.permute.xlu0 %3309  ;;  %v3308_v48 = vpop.permute.xlu1 %3307  ;;  %v3551_v20 = vsel %vm984_vm3, %v3503_v10, %v15917_v4  ;;  %v3502_v31 = vsel %vm3467_vm12, %v3453_v8, %v15918_v47  ;;  %v3411_v16 = vsel %vm3373_vm11, %v15926_v54, %v15925_v7  ;;  %v15931_v8 = vld [vmem:[#allocation113_spill] sm:$0xff]  ;;  %v15933_v47 = vld [vmem:[#allocation115_spill] sm:$0xff]  ;;  %v15939_v7 = vld [vmem:[#allocation118_spill] sm:$0xff] }
 0x82c   : > { %v12014_v2 = vsel %vm1435_vm7, %v3596_v46, %v3310_v25  ;;  %v12017_v33 = vsel %vm1435_vm7, %v3595_v51, %v3308_v48  ;;  %v15919_v46 = vld [vmem:[#allocation197_spill] sm:$0xff]  ;;  %v15920_v25 = vld [vmem:[#allocation256_spill] sm:$0xff]  ;;  %v3550_v21 = vsel %vm984_vm3, %v3502_v31, %v15921_v57  ;;  %v15934_v31 = vld [vmem:[#allocation70_spill] sm:$0xff] }
 0x82d   : > { %v3760_v43 = vrot.slane %v12014_v2, 1  ;;  %v3759_v9 = vrot.slane %v12017_v33, 1  ;;  %v3501_v51 = vsel %vm3467_vm12, %v3452_v60, %v15919_v46  ;;  %v3600_v48 = vsel %vm3564_vm13, %v3551_v20, %v15920_v25  ;;  %v15935_v57 = vld [vmem:[#allocation114_spill] sm:$0xff]  ;;  %v15940_v54 = vld [vmem:[#allocation73_spill] sm:$0xff] }
 0x82e   : > { %v3599_v53 = vsel %vm3564_vm13, %v3550_v21, %v15927_v62  ;;  %v3417_v60 = vsel %vm3373_vm11, %v15932_v26, %v15931_v8  ;;  %v3409_v46 = vsel %vm3373_vm11, %v15934_v31, %v15933_v47  ;;  %v15936_v21 = vld [vmem:[#allocation69_spill] sm:$0xff]  ;;  %v3412_v62 = vsel %vm3373_vm11, %v15940_v54, %v15939_v7 }
 0x82f   : > { %v3763_v18 = vsel %vm15386_vm4, %v3760_v43, %v3762_v56  ;;  %v3761_v17 = vsel %vm15386_vm4, %v3759_v9, %v3760_v43  ;;  %v3549_v43 = vsel %vm984_vm3, %v3501_v51, %v15922_v44  ;;  %v12056_v56 = vsel %vm1435_vm7, %v3600_v48, %v3318_v61  ;;  %v15923_v9 = vld [vmem:[#allocation104_spill] sm:$0xff]  ;;  %v3324_v8 = vpop.permute.xlu2 %3323  ;;  %v15945_v31 = vld [vmem:[#allocation157_spill] sm:$0xff] }
 0x830   : > { %3831 = vrot.lane.b32.xlu2 %v3763_v18, %s8263_s28  ;;  %3829 = vrot.lane.b32.xlu0 %v3761_v17, %s8263_s28  ;;  %v3408_v13 = vsel %vm3373_vm11, %v15924_v45, %v15923_v9  ;;  %v3598_v5 = vsel %vm3564_vm13, %v3549_v43, %v15928_v24  ;;  %v15929_v17 = vld [vmem:[#allocation110_spill] sm:$0xff]  ;;  %v3767_v25 = vrot.slane %v12056_v56, 1  ;;  %v3407_v44 = vsel %vm3373_vm11, %v15936_v21, %v15935_v57  ;;  %v15937_v43 = vld [vmem:[#allocation117_spill] sm:$0xff]  ;;  %v15938_v9 = vld [vmem:[#allocation72_spill] sm:$0xff] }
 0x831   : > { %v3414_v61 = vsel %vm3373_vm11, %v15930_v52, %v15929_v17  ;;  %v3410_v45 = vsel %vm3373_vm11, %v15938_v9, %v15937_v43  ;;  %v15944_v17 = vld [vmem:[#allocation189_spill] sm:$0xff]  ;;  %v3456_v57 = vsel %vm935_vm2, %v3408_v13, %v15945_v31  ;;  %v15946_v21 = vld [vmem:[#allocation158_spill] sm:$0xff]  ;;  %v15947_v9 = vld [vmem:[#allocation232_spill] sm:$0xff] }
 0x832   : > { %v3455_v43 = vsel %vm935_vm2, %v3407_v44, %v15946_v21  ;;  %v15948_v7 = vld [vmem:[#allocation121_spill] sm:$0xff] }
 0x833   : > { %v3316_v10 = vpop.permute.xlu0 %3315  ;;  %v3314_v18 = vpop.permute.xlu1 %3313  ;;  %v15949_v54 = vld [vmem:[#allocation77_spill] sm:$0xff] }
 0x834   : > { %v12075_v4 = vsel %vm1435_vm7, %v3599_v53, %v3316_v10  ;;  %v12078_v20 = vsel %vm1435_vm7, %v3598_v5, %v3314_v18  ;;  %v15941_v53 = vld [vmem:[#allocation147_spill] sm:$0xff]  ;;  %v15942_v5 = vld [vmem:[#allocation120_spill] sm:$0xff] }
 0x835   : > { %v3765_v51 = vrot.slane %v12075_v4, 1  ;;  %v3764_v48 = vrot.slane %v12078_v20, 1  ;;  %v3457_v24 = vsel %vm935_vm2, %v3409_v46, %v15941_v53  ;;  %v15943_v10 = vld [vmem:[#allocation76_spill] sm:$0xff]  ;;  %v3415_v53 = vsel %vm3373_vm11, %v15949_v54, %v15948_v7  ;;  %v15960_v7 = vld [vmem:[#allocation150_spill] sm:$0xff]  ;;  %v15961_v54 = vld [vmem:[#allocation251_spill] sm:$0xff] }
 0x836   : > { %v3413_v18 = vsel %vm3373_vm11, %v15943_v10, %v15942_v5  ;;  %v3506_v52 = vsel %vm3467_vm12, %v3457_v24, %v15944_v17  ;;  %v15952_v24 = vld [vmem:[#allocation258_spill] sm:$0xff]  ;;  %v15953_v5 = vld [vmem:[#allocation123_spill] sm:$0xff]  ;;  %v15954_v10 = vld [vmem:[#allocation80_spill] sm:$0xff] }
 0x837   : > { %v3768_v26 = vsel %vm15386_vm4, %v3765_v51, %v3767_v25  ;;  %v3766_v47 = vsel %vm15386_vm4, %v3764_v48, %v3765_v51  ;;  %v3554_v46 = vsel %vm984_vm3, %v3506_v52, %v15947_v9  ;;  %v15950_v25 = vld [vmem:[#allocation199_spill] sm:$0xff]  ;;  %v15951_v48 = vld [vmem:[#allocation200_spill] sm:$0xff]  ;;  %v3416_v17 = vsel %vm3373_vm11, %v15954_v10, %v15953_v5  ;;  %v15955_v52 = vld [vmem:[#allocation241_spill] sm:$0xff] }
 0x838   : > { %3835 = vrot.lane.b32.xlu0 %v3768_v26, %s8263_s28  ;;  %3833 = vrot.lane.b32.xlu1 %v3766_v47, %s8263_s28  ;;  %v3505_v51 = vsel %vm3467_vm12, %v3456_v57, %v15950_v25  ;;  %v3504_v13 = vsel %vm3467_vm12, %v3455_v43, %v15951_v48  ;;  %v3603_v44 = vsel %vm3564_vm13, %v3554_v46, %v15952_v24  ;;  %v15956_v47 = vld [vmem:[#allocation242_spill] sm:$0xff]  ;;  %v15958_v57 = vld [vmem:[#allocation124_spill] sm:$0xff]  ;;  %v15959_v9 = vld [vmem:[#allocation81_spill] sm:$0xff] }
 0x839   : > { %v3553_v26 = vsel %vm984_vm3, %v3505_v51, %v15955_v52  ;;  %v3552_v31 = vsel %vm984_vm3, %v3504_v13, %v15956_v47  ;;  %v12129_v21 = vsel %vm1435_vm7, %v3603_v44, %v3324_v8  ;;  %v3418_v43 = vsel %vm3373_vm11, %v15959_v9, %v15958_v57  ;;  %v15962_v48 = vld [vmem:[#allocation255_spill] sm:$0xff]  ;;  %v15963_v10 = vld [vmem:[#allocation153_spill] sm:$0xff]  ;;  %v15964_v8 = vld [vmem:[#allocation156_spill] sm:$0xff] }
 0x83a   : > { %15957 = vst [vmem:[#allocation116_spill] sm:$0xff] %v12129_v21  ;;  %v3460_v46 = vsel %vm935_vm2, %v3412_v62, %v15960_v7  ;;  %v3602_v25 = vsel %vm3564_vm13, %v3553_v26, %v15961_v54  ;;  %v3601_v24 = vsel %vm3564_vm13, %v3552_v31, %v15962_v48  ;;  %v3463_v13 = vsel %vm935_vm2, %v3415_v53, %v15963_v10  ;;  %v15966_v62 = vld [vmem:[#allocation159_spill] sm:$0xff]  ;;  %v15967_v7 = vld [vmem:[#allocation160_spill] sm:$0xff]  ;;  %v15968_v54 = vld [vmem:[#allocation161_spill] sm:$0xff] }
 0x83b   : > { %v3322_v51 = vpop.permute.xlu0 %3321  ;;  %v3320_v5 = vpop.permute.xlu1 %3319  ;;  %v3466_v44 = vsel %vm935_vm2, %v3418_v43, %v15964_v8  ;;  %v3459_v26 = vsel %vm935_vm2, %v3411_v16, %v15966_v62  ;;  %v3772_v31 = vrot.slane %v12129_v21, 1  ;;  %v3458_v53 = vsel %vm935_vm2, %v3410_v45, %v15967_v7  ;;  %v15972_v10 = vld [vmem:[#allocation207_spill] sm:$0xff]  ;;  %v15973_v45 = vld [vmem:[#allocation5_spill] sm:$0xff] }
 0x83c   : > { %v12145_v52 = vsel %vm1435_vm7, %v3602_v25, %v3322_v51  ;;  %v12148_v47 = vsel %vm1435_vm7, %v3601_v24, %v3320_v5  ;;  %v3462_v43 = vsel %vm935_vm2, %v3414_v61, %v15968_v54  ;;  %v15969_v25 = vld [vmem:[#allocation162_spill] sm:$0xff]  ;;  %v15970_v24 = vld [vmem:[#allocation165_spill] sm:$0xff]  ;;  %v15971_v5 = vld [vmem:[#allocation164_spill] sm:$0xff]  ;;  %v8011_v7 = vunpack.i.h.bf16 %v15973_v45 }
 0x83d   : > { %15965 = vst [vmem:[#allocation210_spill] sm:$0xff] %v12148_v47  ;;  %v3770_v57 = vrot.slane %v12145_v52, 1  ;;  %v3769_v9 = vrot.slane %v12148_v47, 1  ;;  %v3461_v48 = vsel %vm935_vm2, %v3413_v18, %v15969_v25  ;;  %v3464_v51 = vsel %vm935_vm2, %v3416_v17, %v15970_v24  ;;  %v15974_v47 = vld [vmem:[#allocation192_spill] sm:$0xff]  ;;  %v15975_v54 = vld [vmem:[#allocation195_spill] sm:$0xff]  ;;  %v15976_v25 = vld [vmem:[#allocation201_spill] sm:$0xff] }
 0x83e   : > { %v3465_v16 = vsel %vm935_vm2, %v3417_v60, %v15971_v5  ;;  %v3513_v8 = vsel %vm3467_vm12, %v3464_v51, %v15972_v10  ;;  %v3509_v61 = vsel %vm3467_vm12, %v3460_v46, %v15974_v47  ;;  %v3512_v18 = vsel %vm3467_vm12, %v3463_v13, %v15975_v54  ;;  %v15977_v60 = vld [vmem:[#allocation202_spill] sm:$0xff]  ;;  %v15978_v24 = vld [vmem:[#allocation203_spill] sm:$0xff]  ;;  %v15983_v45 = vld [vmem:[#allocation244_spill] sm:$0xff] }
 0x83f   : > { %v3773_v62 = vsel %vm15386_vm4, %v3770_v57, %v3772_v31  ;;  %v3771_v21 = vsel %vm15386_vm4, %v3769_v9, %v3770_v57  ;;  %v3508_v17 = vsel %vm3467_vm12, %v3459_v26, %v15976_v25  ;;  %v3507_v31 = vsel %vm3467_vm12, %v3458_v53, %v15977_v60  ;;  %v15979_v9 = vld [vmem:[#allocation204_spill] sm:$0xff]  ;;  %v15980_v46 = vld [vmem:[#allocation259_spill] sm:$0xff]  ;;  %v15981_v5 = vld [vmem:[#allocation206_spill] sm:$0xff] }
 0x840   : > { %3839 = vrot.lane.b32.xlu1 %v3773_v62, %s8263_s28  ;;  %3837 = vrot.lane.b32.xlu2 %v3771_v21, %s8263_s28  ;;  %v3511_v57 = vsel %vm3467_vm12, %v3462_v43, %v15978_v24  ;;  %v3510_v51 = vsel %vm3467_vm12, %v3461_v48, %v15979_v9  ;;  %v8031_v47 = vunpack.i.h.bf16 %v15980_v46  ;;  %v3514_v13 = vsel %vm3467_vm12, %v3465_v16, %v15981_v5  ;;  %v15982_v10 = vld [vmem:[#allocation235_spill] sm:$0xff]  ;;  %v15984_v54 = vld [vmem:[#allocation245_spill] sm:$0xff]  ;;  %v15986_v60 = vld [vmem:[#allocation260_spill] sm:$0xff] }
 0x841   : > { %v3561_v26 = vsel %vm984_vm3, %v3513_v8, %v8011_v7  ;;  %v3557_v62 = vsel %vm984_vm3, %v3509_v61, %v15982_v10  ;;  %v8030_v21 = vunpack.i.l.bf16 %v15980_v46  ;;  %v3556_v53 = vsel %vm984_vm3, %v3508_v17, %v15983_v45  ;;  %v15985_v25 = vld [vmem:[#allocation247_spill] sm:$0xff]  ;;  %v15987_v8 = vld [vmem:[#allocation248_spill] sm:$0xff]  ;;  %v15988_v61 = vld [vmem:[#allocation249_spill] sm:$0xff] }
 0x842   : > { %v3555_v43 = vsel %vm984_vm3, %v3507_v31, %v15984_v54  ;;  %v3559_v48 = vsel %vm984_vm3, %v3511_v57, %v15985_v25  ;;  %v3606_v24 = vsel %vm3564_vm13, %v3557_v62, %v15986_v60  ;;  %v3558_v7 = vsel %vm984_vm3, %v3510_v51, %v15987_v8  ;;  %v15990_v31 = vld [vmem:[#allocation252_spill] sm:$0xff]  ;;  %v15991_v62 = vld [vmem:[#allocation257_spill] sm:$0xff] }
 0x843   : > { %v3330_v16 = vpop.permute.xlu0 %3329  ;;  %v8034_v9 = vpop.permute.xlu1 %8033  ;;  %v8025_v5 = vunpack.i.l.bf16 %v15988_v61  ;;  %v8026_v10 = vunpack.i.h.bf16 %v15988_v61  ;;  %v3605_v45 = vsel %vm3564_vm13, %v3556_v53, %v15990_v31  ;;  %v3608_v57 = vsel %vm3564_vm13, %v3559_v48, %v8031_v47 }
 0x844   : > { %v12203_v46 = vsel %vm1435_vm7, %v3606_v24, %v3330_v16  ;;  %v8036_v17 = vunpack.i.h.bf16 %v8034_v9  ;;  %v8035_v54 = vunpack.i.l.bf16 %v8034_v9  ;;  %v3604_v25 = vsel %vm3564_vm13, %v3555_v43, %v15991_v62 }
 0x845   : > { %15989 = vst [vmem:[#allocation243_spill] sm:$0xff] %v12203_v46  ;;  %v3607_v60 = vsel %vm3564_vm13, %v3558_v7, %v8030_v21  ;;  %v3777_v48 = vrot.slane %v12203_v46, 1  ;;  %v3562_v43 = vsel %vm984_vm3, %v3514_v13, %v8025_v5  ;;  %v3610_v62 = vsel %vm3564_vm13, %v3561_v26, %v8030_v21 }
 0x846   : > { %v12213_v51 = vsel %vm1435_vm7, %v3605_v45, %v8036_v17  ;;  %v12216_v24 = vsel %vm1435_vm7, %v3608_v57, %v8036_v17  ;;  %v12219_v8 = vsel %vm1435_vm7, %v3604_v25, %v8035_v54  ;;  %v12222_v61 = vsel %vm1435_vm7, %v3607_v60, %v8035_v54  ;;  %v15995_v45 = vld [vmem:[#allocation198_spill] sm:$0xff] }
 0x847   : > { %15992 = vst [vmem:[#allocation85_spill] sm:$0xff] %v12213_v51  ;;  %v3775_v53 = vrot.slane %v12213_v51, 1  ;;  %v3779_v9 = vrot.slane %v12222_v61, 1  ;;  %v3780_v7 = vrot.slane %v12216_v24, 1  ;;  %v3774_v31 = vrot.slane %v12219_v8, 1 }
 0x848   : > { %15993 = vst [vmem:[#allocation75_spill] sm:$0xff] %v12216_v24  ;;  %v3515_v57 = vsel %vm3467_vm12, %v3466_v44, %v15995_v45  ;;  %v3611_v25 = vsel %vm3564_vm13, %v3562_v43, %v8031_v47  ;;  %v12236_v51 = vsel %vm1435_vm7, %v3610_v62, %v8035_v54  ;;  %v15999_v47 = vld [vmem:[#allocation253_spill] sm:$0xff]  ;;  %v3885_v45 = vrot.slane %v11528_v50, 2 }
 0x849   : > { %15994 = vst [vmem:[#allocation119_spill] sm:$0xff] %v12222_v61  ;;  %v3778_v60 = vsel %vm15386_vm4, %v3775_v53, %v3777_v48  ;;  %v12239_v13 = vsel %vm1435_vm7, %v3611_v25, %v8036_v17  ;;  %v3781_v5 = vsel %vm15386_vm4, %v3779_v9, %v3780_v7  ;;  %v3776_v46 = vsel %vm15386_vm4, %v3774_v31, %v3775_v53  ;;  %v15998_v61 = vld [vmem:[#allocation238_spill] sm:$0xff] }
 0x84a   : > { %15996 = vst [vmem:[#allocation84_spill] sm:$0xff] %v12236_v51  ;;  %3843 = vrot.lane.b32.xlu2 %v3778_v60, %s8263_s28  ;;  %v3560_v44 = vsel %vm984_vm3, %v3512_v18, %v15998_v61  ;;  %v3563_v26 = vsel %vm984_vm3, %v3515_v57, %v8026_v10  ;;  %3845 = vrot.lane.b32.xlu1 %v3781_v5, %s8263_s28  ;;  %v3785_v18 = vrot.slane %v12239_v13, 1  ;;  %v3784_v10 = vrot.slane %v12236_v51, 1 }
 0x84b   : > { %15997 = vst [vmem:[#allocation163_spill] sm:$0xff] %v12239_v13  ;;  %3841 = vrot.lane.b32.xlu0 %v3776_v46, %s8263_s28  ;;  %v3609_v21 = vsel %vm3564_vm13, %v3560_v44, %v15999_v47  ;;  %v3612_v17 = vsel %vm3564_vm13, %v3563_v26, %v15999_v47  ;;  %v3886_v31 = vrot.slane %v11525_v41, 2  ;;  %v3890_v57 = vrot.slane %v11568_v59, 2 }
 0x84c   : > { %v12254_v54 = vsel %vm1435_vm7, %v3609_v21, %v3330_v16  ;;  %v12257_v53 = vsel %vm1435_vm7, %v3612_v17, %v3330_v16  ;;  %v3786_v48 = vsel %vm15386_vm4, %v3784_v10, %v3785_v18  ;;  %v12269_v16 = vpop.permute.xlu2 %3789  ;;  %v3891_v62 = vrot.slane %v11565_v15, 2 }
 0x84d   : > { %16000 = vst [vmem:[#allocation127_spill] sm:$0xff] %v12257_v53  ;;  %v3782_v61 = vrot.slane %v12254_v54, 1  ;;  %v3787_v46 = vrot.slane %v12257_v53, 1  ;;  %v15370_v25 = vrot.slane %v12216_v24, 5  ;;  %v15371_v60 = vrot.slane %v12216_v24, 4 }
 0x84e   : > { %v15369_v5 = vrot.slane %v12216_v24, 6  ;;  %v4311_v44 = vrot.slane %v12254_v54, 4  ;;  %v4487_v47 = vrot.slane %v12254_v54, 5  ;;  %v3887_v21 = vsel %vm15387_vm5, %v3885_v45, %v3886_v31 }
 0x84f   : > { %v3783_v43 = vsel %vm15386_vm4, %v3780_v7, %v3782_v61  ;;  %v3788_v9 = vsel %vm15386_vm4, %v3785_v18, %v3787_v46  ;;  %v3888_v7 = vrot.slane %v11516_v3, 2  ;;  %v3892_v17 = vsel %vm15387_vm5, %v3890_v57, %v3891_v62 }
 0x850   : > { %v12288_v18 = vsel %vm1603_vm6, %v15371_v60, %v4311_v44  ;;  %v4664_v10 = vrot.slane %v12254_v54, 6  ;;  %vm4590_vm2 = vcmask 1041408   ;;  %v12296_v61 = vsel %vm2379_vm1, %v15370_v25, %v4487_v47 }
 0x851   : > { %v3889_v26 = vsel %vm15387_vm5, %v3886_v31, %v3888_v7  ;;  %16001 = vst [vmem:[#allocation128_spill] sm:$0xff] %v12288_v18  ;;  %v3893_v31 = vrot.slane %v11558_v35, 2  ;;  %v3898_v45 = vrot.slane %v11610_v23, 2  ;;  %v3915_v25 = vrot.slane %v11821_v58, 2 }
 0x852   : > { %3849 = vrot.lane.b32.xlu2 %v3786_v48, %s8263_s28  ;;  %3851 = vrot.lane.b32.xlu1 %v3788_v9, %s8263_s28  ;;  %16002 = vst [vmem:[#allocation205_spill] sm:$0xff] %v12296_v61  ;;  %v12301_v46 = vsel %vm4590_vm2, %v15369_v5, %v4664_v10  ;;  %v3896_v48 = vrot.slane %v11617_v63, 2  ;;  %v3906_v10 = vrot.slane %v11719_v38, 2  ;;  %v3916_v5 = vrot.slane %v11818_v0, 2 }
 0x853   : > { %3847 = vrot.lane.b32.xlu0 %v3783_v43, %s8263_s28  ;;  %16003 = vst [vmem:[#allocation169_spill] sm:$0xff] %v12301_v46  ;;  %v3895_v43 = vrot.slane %v11620_v36, 2  ;;  %v3894_v7 = vsel %vm15387_vm5, %v3891_v62, %v3893_v31  ;;  %v3903_v62 = vrot.slane %v11662_v6, 2  ;;  %v3925_v60 = vrot.slane %v11919_v22, 2 }
 0x854   : > { %v12305_v9 = vpop.permute.xlu2 %3795  ;;  %v3899_v44 = vsel %vm15387_vm5, %v3896_v48, %v3898_v45  ;;  %v12328_v45 = vpop.permute.xlu1 %3791  ;;  %v3930_v18 = vrot.slane %v11968_v29, 2  ;;  %vm4061_vm3 = vcmask 1044480   ;;  %vm4767_vm7 = vcmask 113664  }
 0x855   : > { %16004 = vst [vmem:[#allocation170_spill] sm:$0xff] %v12305_v9  ;;  %v3897_v57 = vsel %vm15387_vm5, %v3895_v43, %v3896_v48  ;;  %v4083_v9 = vrot.slane %v11719_v38, 3  ;;  %vm4932_vm11 = vcmask 687104   ;;  %vm4978_vm12 = vcmask 801792  }
 0x85a   : > { %3967 = vrot.lane.b32.xlu2 %v3889_v26, %s8264_s29  ;;  %3969 = vrot.lane.b32.xlu1 %v3892_v17, %s8264_s29  ;;  %v3901_v26 = vrot.slane %v11669_v1, 2  ;;  %v3905_v17 = vrot.slane %v11722_v42, 2 }
 0x85b   : > { %3965 = vrot.lane.b32.xlu0 %v3887_v21, %s8264_s29  ;;  %v3900_v21 = vrot.slane %v11672_v27, 2 }
 0x85c   : > { %v12316_v47 = vpop.permute.xlu2 %3801  ;;  %v3904_v48 = vsel %vm15387_vm5, %v3901_v26, %v3903_v62  ;;  %v3907_v31 = vsel %vm15387_vm5, %v3905_v17, %v3906_v10  ;;  %v3908_v62 = vrot.slane %v11712_v40, 2 }
 0x85d   : > { %16005 = vst [vmem:[#allocation212_spill] sm:$0xff] %v12316_v47  ;;  %v3902_v43 = vsel %vm15387_vm5, %v3900_v21, %v3901_v26  ;;  %v3913_v26 = vrot.slane %v11762_v28, 2  ;;  %v16021_v47 = vld [vmem:[#allocation116_spill] sm:$0xff] }
 0x85e   : > { %v3909_v17 = vsel %vm15387_vm5, %v3906_v10, %v3908_v62  ;;  %v3921_v10 = vrot.slane %v11867_v32, 2 }
 0x862   : > { %3973 = vrot.lane.b32.xlu2 %v3897_v57, %s8264_s29  ;;  %3975 = vrot.lane.b32.xlu1 %v3899_v44, %s8264_s29  ;;  %v3911_v57 = vrot.slane %v11769_v19, 2 }
 0x863   : > { %3971 = vrot.lane.b32.xlu0 %v3894_v7, %s8264_s29  ;;  %v3910_v7 = vrot.slane %v11772_v14, 2 }
 0x864   : > { %v12332_v44 = vpop.permute.xlu2 %3807 }
 0x865   : > { %16006 = vst [vmem:[#allocation213_spill] sm:$0xff] %v12332_v44  ;;  %v3912_v21 = vsel %vm15387_vm5, %v3910_v7, %v3911_v57  ;;  %v3920_v7 = vrot.slane %v11870_v34, 2 }
 0x86a   : > { %3979 = vrot.lane.b32.xlu2 %v3904_v48, %s8264_s29  ;;  %3981 = vrot.lane.b32.xlu1 %v3907_v31, %s8264_s29  ;;  %v3914_v48 = vsel %vm15387_vm5, %v3911_v57, %v3913_v26  ;;  %v12344_v31 = vpop.permute.xlu1 %3797  ;;  %v3918_v57 = vrot.slane %v11811_v30, 2 }
 0x86b   : > { %3977 = vrot.lane.b32.xlu0 %v3902_v43, %s8264_s29  ;;  %v12342_v43 = vpop.permute.xlu0 %3793  ;;  %16008 = vst [vmem:[#allocation88_spill] sm:$0xff] %v12344_v31  ;;  %v16026_v31 = vld [vmem:[#allocation243_spill] sm:$0xff] }
 0x86c   : > { %16007 = vst [vmem:[#allocation246_spill] sm:$0xff] %v12342_v43  ;;  %v12351_v62 = vpop.permute.xlu2 %3813  ;;  %v3919_v26 = vsel %vm15387_vm5, %v3916_v5, %v3918_v57  ;;  %v3923_v57 = vrot.slane %v11860_v39, 2  ;;  %v4103_v43 = vrot.slane %v11916_v55, 3 }
 0x86d   : > { %16009 = vst [vmem:[#allocation7_spill] sm:$0xff] %v12351_v62  ;;  %v3935_v62 = vrot.slane %v12017_v33, 2 }
 0x872   : > { %3985 = vrot.lane.b32.xlu2 %v3912_v21, %s8264_s29  ;;  %3987 = vrot.lane.b32.xlu1 %v3914_v48, %s8264_s29  ;;  %v3917_v21 = vsel %vm15387_vm5, %v3915_v25, %v3916_v5  ;;  %v3926_v48 = vrot.slane %v11916_v55, 2  ;;  %v12363_v61 = vpop.permute.xlu1 %3803  ;;  %v3928_v25 = vrot.slane %v11909_v12, 2 }
 0x873   : > { %3983 = vrot.lane.b32.xlu0 %v3909_v17, %s8264_s29  ;;  %v3922_v17 = vsel %vm15387_vm5, %v3920_v7, %v3921_v10  ;;  %v12361_v46 = vpop.permute.xlu0 %3799  ;;  %16011 = vst [vmem:[#allocation3_spill] sm:$0xff] %v12363_v61  ;;  %v16020_v61 = vld [vmem:[#allocation85_spill] sm:$0xff] }
 0x874   : > { %16010 = vst [vmem:[#allocation79_spill] sm:$0xff] %v12361_v46  ;;  %v3927_v5 = vsel %vm15387_vm5, %v3925_v60, %v3926_v48  ;;  %v12368_v7 = vpop.permute.xlu2 %3819  ;;  %v3936_v60 = vrot.slane %v12014_v2, 2  ;;  %v16025_v46 = vld [vmem:[#allocation119_spill] sm:$0xff] }
 0x875   : > { %16012 = vst [vmem:[#allocation122_spill] sm:$0xff] %v12368_v7 }
 0x87a   : > { %3991 = vrot.lane.b32.xlu2 %v3919_v26, %s8264_s29  ;;  %3993 = vrot.lane.b32.xlu1 %v3922_v17, %s8264_s29  ;;  %v3924_v26 = vsel %vm15387_vm5, %v3921_v10, %v3923_v57  ;;  %v3931_v17 = vrot.slane %v11965_v37, 2  ;;  %v12381_v7 = vpop.permute.xlu1 %3809  ;;  %v3933_v10 = vrot.slane %v11958_v11, 2 }
 0x87b   : > { %3989 = vrot.lane.b32.xlu0 %v3917_v21, %s8264_s29  ;;  %v3929_v21 = vsel %vm15387_vm5, %v3926_v48, %v3928_v25  ;;  %v12379_v44 = vpop.permute.xlu0 %3805  ;;  %16014 = vst [vmem:[#allocation2_spill] sm:$0xff] %v12381_v7  ;;  %v3938_v7 = vrot.slane %v12007_v49, 2 }
 0x87c   : > { %16013 = vst [vmem:[#allocation87_spill] sm:$0xff] %v12379_v44  ;;  %v3934_v48 = vsel %vm15387_vm5, %v3931_v17, %v3933_v10  ;;  %v3932_v25 = vsel %vm15387_vm5, %v3930_v18, %v3931_v17  ;;  %v3943_v10 = vrot.slane %v12056_v56, 2 }
 0x882   : > { %3997 = vrot.lane.b32.xlu2 %v3927_v5, %s8264_s29  ;;  %3999 = vrot.lane.b32.xlu1 %v3929_v21, %s8264_s29  ;;  %v12385_v57 = vpop.permute.xlu2 %3825  ;;  %v3937_v5 = vsel %vm15387_vm5, %v3935_v62, %v3936_v60  ;;  %v3940_v21 = vrot.slane %v12078_v20, 2  ;;  %v3939_v62 = vsel %vm15387_vm5, %v3936_v60, %v3938_v7  ;;  %v3948_v7 = vrot.slane %v16021_v47, 2 }
 0x883   : > { %3995 = vrot.lane.b32.xlu0 %v3924_v26, %s8264_s29  ;;  %16015 = vst [vmem:[#allocation166_spill] sm:$0xff] %v12385_v57  ;;  %v3941_v26 = vrot.slane %v12075_v4, 2  ;;  %v12396_v44 = vpop.permute.xlu0 %3811  ;;  %v12398_v57 = vpop.permute.xlu1 %3815 }
 0x884   : > { %16016 = vst [vmem:[#allocation130_spill] sm:$0xff] %v12396_v44 }
 0x885   : > { %16017 = vst [vmem:[#allocation131_spill] sm:$0xff] %v12398_v57  ;;  %v3942_v18 = vsel %vm15387_vm5, %v3940_v21, %v3941_v26  ;;  %v3944_v17 = vsel %vm15387_vm5, %v3941_v26, %v3943_v10  ;;  %v3950_v57 = vrot.slane %v12219_v8, 2  ;;  %v3951_v21 = vrot.slane %v16020_v61, 2 }
 0x88a   : > { %4003 = vrot.lane.b32.xlu2 %v3934_v48, %s8264_s29  ;;  %4005 = vrot.lane.b32.xlu1 %v3937_v5, %s8264_s29  ;;  %v12406_v48 = vpop.permute.xlu2 %3831  ;;  %v16019_v5 = vld [vmem:[#allocation210_spill] sm:$0xff] }
 0x88b   : > { %4001 = vrot.lane.b32.xlu0 %v3932_v25, %s8264_s29  ;;  %16018 = vst [vmem:[#allocation208_spill] sm:$0xff] %v12406_v48  ;;  %v3946_v25 = vrot.slane %v12145_v52, 2  ;;  %v3945_v44 = vrot.slane %v16019_v5, 2  ;;  %v12413_v60 = vpop.permute.xlu0 %3817  ;;  %v3956_v48 = vrot.slane %v12216_v24, 2 }
 0x88c   : > { %16022 = vst [vmem:[#allocation172_spill] sm:$0xff] %v12413_v60  ;;  %v3955_v60 = vrot.slane %v16025_v46, 2 }
 0x88d   : > { %v3949_v10 = vsel %vm15387_vm5, %v3946_v25, %v3948_v7  ;;  %v3958_v7 = vrot.slane %v12254_v54, 2 }
 0x892   : > { %4009 = vrot.lane.b32.xlu2 %v3942_v18, %s8264_s29  ;;  %4011 = vrot.lane.b32.xlu1 %v3944_v17, %s8264_s29  ;;  %v12415_v26 = vpop.permute.xlu1 %3821  ;;  %v3947_v18 = vsel %vm15387_vm5, %v3945_v44, %v3946_v25  ;;  %v3957_v44 = vsel %vm15387_vm5, %v3955_v60, %v3956_v48  ;;  %v3959_v25 = vsel %vm15387_vm5, %v3956_v48, %v3958_v7  ;;  %v3960_v60 = vrot.slane %v12236_v51, 2 }
 0x893   : > { %4007 = vrot.lane.b32.xlu0 %v3939_v62, %s8264_s29  ;;  %16023 = vst [vmem:[#allocation173_spill] sm:$0xff] %v12415_v26  ;;  %v3952_v62 = vsel %vm15387_vm5, %v3950_v57, %v3951_v21  ;;  %v3953_v26 = vrot.slane %v16026_v31, 2  ;;  %v4063_v48 = vrot.slane %v11525_v41, 3 }
 0x895   : > { %v3954_v57 = vsel %vm15387_vm5, %v3951_v21, %v3953_v26  ;;  %v4062_v21 = vrot.slane %v11528_v50, 3  ;;  %v3963_v26 = vrot.slane %v12257_v53, 2 }
 0x89a   : > { %4015 = vrot.lane.b32.xlu2 %v3949_v10, %s8264_s29  ;;  %4017 = vrot.lane.b32.xlu1 %v3952_v62, %s8264_s29  ;;  %v12423_v17 = vpop.permute.xlu2 %3837  ;;  %v12433_v10 = vpop.permute.xlu0 %3823 }
 0x89b   : > { %4013 = vrot.lane.b32.xlu0 %v3947_v18, %s8264_s29  ;;  %16024 = vst [vmem:[#allocation215_spill] sm:$0xff] %v12423_v17  ;;  %v12435_v18 = vpop.permute.xlu1 %3827  ;;  %v3961_v17 = vrot.slane %v12239_v13, 2 }
 0x89c   : > { %16027 = vst [vmem:[#allocation216_spill] sm:$0xff] %v12433_v10  ;;  %v4068_v10 = vrot.slane %v11565_v15, 3 }
 0x89d   : > { %16028 = vst [vmem:[#allocation91_spill] sm:$0xff] %v12435_v18  ;;  %v3964_v7 = vsel %vm15387_vm5, %v3961_v17, %v3963_v26  ;;  %v4067_v26 = vrot.slane %v11568_v59, 3 }
 0x8a2   : > { %4021 = vrot.lane.b32.xlu2 %v3957_v44, %s8264_s29  ;;  %4023 = vrot.lane.b32.xlu1 %v3959_v25, %s8264_s29  ;;  %v3962_v44 = vsel %vm15387_vm5, %v3960_v60, %v3961_v17  ;;  %v12450_v25 = vpop.permute.xlu0 %3829  ;;  %v4065_v17 = vrot.slane %v11516_v3, 3  ;;  %v4070_v60 = vrot.slane %v11558_v35, 3 }
 0x8a3   : > { %4019 = vrot.lane.b32.xlu0 %v3954_v57, %s8264_s29  ;;  %v4064_v57 = vsel %vm4061_vm3, %v4062_v21, %v4063_v48  ;;  %16030 = vst [vmem:[#allocation82_spill] sm:$0xff] %v12450_v25  ;;  %v4069_v21 = vsel %vm4061_vm3, %v4067_v26, %v4068_v10  ;;  %v4073_v25 = vrot.slane %v11617_v63, 3  ;;  %v4072_v26 = vrot.slane %v11620_v36, 3 }
 0x8a4   : > { %v12439_v62 = vpop.permute.xlu2 %3843 }
 0x8a5   : > { %16029 = vst [vmem:[#allocation8_spill] sm:$0xff] %v12439_v62 }
 0x8aa   : > { %4027 = vrot.lane.b32.xlu2 %v3964_v7, %s8264_s29  ;;  %v12452_v62 = vpop.permute.xlu1 %3833  ;;  %4142 = vrot.lane.b32.xlu1 %v4064_v57, %s8265_s13  ;;  %v4066_v7 = vsel %vm4061_vm3, %v4063_v48, %v4065_v17  ;;  %v12470_v57 = vpop.permute.xlu0 %3835  ;;  %v4077_v48 = vrot.slane %v11672_v27, 3  ;;  %v4075_v17 = vrot.slane %v11610_v23, 3 }
 0x8ab   : > { %16031 = vst [vmem:[#allocation9_spill] sm:$0xff] %v12452_v62  ;;  %4025 = vrot.lane.b32.xlu0 %v3962_v44, %s8264_s29  ;;  %v4071_v62 = vsel %vm4061_vm3, %v4068_v10, %v4070_v60  ;;  %v4078_v10 = vrot.slane %v11669_v1, 3 }
 0x8ac   : > { %v12456_v18 = vpop.permute.xlu2 %3849  ;;  %16033 = vst [vmem:[#allocation90_spill] sm:$0xff] %v12470_v57  ;;  %v4076_v60 = vsel %vm4061_vm3, %v4073_v25, %v4075_v17  ;;  %v4082_v17 = vrot.slane %v11722_v42, 3 }
 0x8ad   : > { %16032 = vst [vmem:[#allocation125_spill] sm:$0xff] %v12456_v18 }
 0x8b2   : > { %4146 = vrot.lane.b32.xlu2 %v4069_v21, %s8265_s13  ;;  %4148 = vrot.lane.b32.xlu1 %v4071_v62, %s8265_s13  ;;  %v12472_v18 = vpop.permute.xlu1 %3839  ;;  %v4074_v62 = vsel %vm4061_vm3, %v4072_v26, %v4073_v25  ;;  %v4079_v21 = vsel %vm4061_vm3, %v4077_v48, %v4078_v10  ;;  %v4080_v25 = vrot.slane %v11662_v6, 3  ;;  %v4085_v26 = vrot.slane %v11712_v40, 3 }
 0x8b3   : > { %4144 = vrot.lane.b32.xlu0 %v4066_v7, %s8265_s13  ;;  %16034 = vst [vmem:[#allocation4_spill] sm:$0xff] %v12472_v18  ;;  %v4084_v48 = vsel %vm4061_vm3, %v4082_v17, %v4083_v9  ;;  %v4087_v17 = vrot.slane %v11772_v14, 3 }
 0x8b4   : > { %v12468_v44 = vpop.permute.xlu2 %3967 }
 0x8ba   : > { %4152 = vrot.lane.b32.xlu2 %v4076_v60, %s8265_s13  ;;  %4154 = vrot.lane.b32.xlu1 %v4079_v21, %s8265_s13  ;;  %v4081_v60 = vsel %vm4061_vm3, %v4078_v10, %v4080_v25  ;;  %v4092_v10 = vrot.slane %v11821_v58, 3  ;;  %v4090_v25 = vrot.slane %v11762_v28, 3 }
 0x8bb   : > { %4150 = vrot.lane.b32.xlu0 %v4074_v62, %s8265_s13  ;;  %v4086_v62 = vsel %vm4061_vm3, %v4083_v9, %v4085_v26  ;;  %v4093_v9 = vrot.slane %v11818_v0, 3 }
 0x8bc   : > { %v12485_v7 = vpop.permute.xlu2 %3973  ;;  %v12487_v18 = vpop.permute.xlu1 %3845 }
 0x8bd   : > { %16035 = vst [vmem:[#allocation167_spill] sm:$0xff] %v12485_v7  ;;  %v12489_v57 = vpop.permute.xlu0 %3841  ;;  %v4088_v7 = vrot.slane %v11769_v19, 3 }
 0x8be   : > { %16036 = vst [vmem:[#allocation133_spill] sm:$0xff] %v12487_v18 }
 0x8bf   : > { %16037 = vst [vmem:[#allocation134_spill] sm:$0xff] %v12489_v57  ;;  %v4091_v26 = vsel %vm4061_vm3, %v4088_v7, %v4090_v25  ;;  %v4097_v25 = vrot.slane %v11870_v34, 3 }
 0x8c2   : > { %4158 = vrot.lane.b32.xlu2 %v4084_v48, %s8265_s13  ;;  %4160 = vrot.lane.b32.xlu1 %v4086_v62, %s8265_s13  ;;  %v4089_v48 = vsel %vm4061_vm3, %v4087_v17, %v4088_v7  ;;  %v4095_v7 = vrot.slane %v11811_v30, 3  ;;  %v4100_v17 = vrot.slane %v11860_v39, 3 }
 0x8c3   : > { %4156 = vrot.lane.b32.xlu0 %v4081_v60, %s8265_s13  ;;  %v4094_v60 = vsel %vm4061_vm3, %v4092_v10, %v4093_v9 }
 0x8c4   : > { %v12501_v21 = vpop.permute.xlu2 %3979  ;;  %v12505_v57 = vpop.permute.xlu1 %3851 }
 0x8c5   : > { %16038 = vst [vmem:[#allocation209_spill] sm:$0xff] %v12501_v21  ;;  %v12503_v18 = vpop.permute.xlu0 %3847  ;;  %v4098_v21 = vrot.slane %v11867_v32, 3 }
 0x8c6   : > { %16039 = vst [vmem:[#allocation175_spill] sm:$0xff] %v12503_v18 }
 0x8c7   : > { %16040 = vst [vmem:[#allocation176_spill] sm:$0xff] %v12505_v57  ;;  %v4099_v10 = vsel %vm4061_vm3, %v4097_v25, %v4098_v21  ;;  %v4102_v25 = vrot.slane %v11919_v22, 3 }
 0x8ca   : > { %4164 = vrot.lane.b32.xlu2 %v4091_v26, %s8265_s13  ;;  %4166 = vrot.lane.b32.xlu1 %v4094_v60, %s8265_s13  ;;  %v4096_v26 = vsel %vm4061_vm3, %v4093_v9, %v4095_v7  ;;  %v4107_v9 = vrot.slane %v11968_v29, 3  ;;  %v4105_v7 = vrot.slane %v11909_v12, 3 }
 0x8cb   : > { %4162 = vrot.lane.b32.xlu0 %v4089_v48, %s8265_s13  ;;  %v4101_v48 = vsel %vm4061_vm3, %v4098_v21, %v4100_v17  ;;  %v4108_v21 = vrot.slane %v11965_v37, 3 }
 0x8cc   : > { %v12518_v62 = vpop.permute.xlu2 %3985  ;;  %v12522_v18 = vpop.permute.xlu1 %3969  ;;  %v4106_v17 = vsel %vm4061_vm3, %v4103_v43, %v4105_v7  ;;  %v4112_v7 = vrot.slane %v12017_v33, 3 }
 0x8cd   : > { %16041 = vst [vmem:[#allocation218_spill] sm:$0xff] %v12518_v62  ;;  %v12520_v57 = vpop.permute.xlu0 %3965 }
 0x8ce   : > { %16042 = vst [vmem:[#allocation219_spill] sm:$0xff] %v12522_v18 }
 0x8d2   : > { %4170 = vrot.lane.b32.xlu2 %v4099_v10, %s8265_s13  ;;  %4172 = vrot.lane.b32.xlu1 %v4101_v48, %s8265_s13  ;;  %v4104_v10 = vsel %vm4061_vm3, %v4102_v25, %v4103_v43  ;;  %v4110_v43 = vrot.slane %v11958_v11, 3  ;;  %v4115_v25 = vrot.slane %v12007_v49, 3 }
 0x8d3   : > { %4168 = vrot.lane.b32.xlu0 %v4096_v26, %s8265_s13  ;;  %v4109_v26 = vsel %vm4061_vm3, %v4107_v9, %v4108_v21 }
 0x8d4   : > { %v12534_v60 = vpop.permute.xlu2 %3991  ;;  %v12538_v18 = vpop.permute.xlu1 %3975 }
 0x8d5   : > { %16043 = vst [vmem:[#allocation94_spill] sm:$0xff] %v12534_v60  ;;  %v12536_v62 = vpop.permute.xlu0 %3971 }
 0x8d6   : > { %16044 = vst [vmem:[#allocation6_spill] sm:$0xff] %v12536_v62  ;;  %v4113_v62 = vrot.slane %v12014_v2, 3 }
 0x8d7   : > { %16045 = vst [vmem:[#allocation83_spill] sm:$0xff] %v12538_v18 }
 0x8d8   : > { %v4114_v9 = vsel %vm4061_vm3, %v4112_v7, %v4113_v62  ;;  %v4117_v7 = vrot.slane %v12078_v20, 3 }
 0x8da   : > { %4176 = vrot.lane.b32.xlu2 %v4106_v17, %s8265_s13  ;;  %4178 = vrot.lane.b32.xlu1 %v4109_v26, %s8265_s13  ;;  %v4111_v17 = vsel %vm4061_vm3, %v4108_v21, %v4110_v43  ;;  %v4122_v21 = vrot.slane %v16019_v5, 3  ;;  %v4120_v43 = vrot.slane %v12056_v56, 3 }
 0x8db   : > { %4174 = vrot.lane.b32.xlu0 %v4104_v10, %s8265_s13  ;;  %v4116_v10 = vsel %vm4061_vm3, %v4113_v62, %v4115_v25  ;;  %v4123_v62 = vrot.slane %v12145_v52, 3 }
 0x8dc   : > { %v12551_v48 = vpop.permute.xlu2 %3997  ;;  %v12555_v18 = vpop.permute.xlu1 %3981 }
 0x8dd   : > { %16046 = vst [vmem:[#allocation30_spill] sm:$0xff] %v12551_v48  ;;  %v12553_v60 = vpop.permute.xlu0 %3977 }
 0x8de   : > { %16047 = vst [vmem:[#allocation126_spill] sm:$0xff] %v12553_v60  ;;  %v4118_v60 = vrot.slane %v12075_v4, 3 }
 0x8df   : > { %16048 = vst [vmem:[#allocation93_spill] sm:$0xff] %v12555_v18 }
 0x8e0   : > { %v4121_v25 = vsel %vm4061_vm3, %v4118_v60, %v4120_v43  ;;  %v4127_v43 = vrot.slane %v12219_v8, 3 }
 0x8e2   : > { %4182 = vrot.lane.b32.xlu2 %v4114_v9, %s8265_s13  ;;  %4184 = vrot.lane.b32.xlu1 %v4116_v10, %s8265_s13  ;;  %v4119_v9 = vsel %vm4061_vm3, %v4117_v7, %v4118_v60  ;;  %v4125_v60 = vrot.slane %v16021_v47, 3  ;;  %v4130_v7 = vrot.slane %v16026_v31, 3 }
 0x8e3   : > { %4180 = vrot.lane.b32.xlu0 %v4111_v17, %s8265_s13  ;;  %v4124_v17 = vsel %vm4061_vm3, %v4122_v21, %v4123_v62 }
 0x8e4   : > { %v12567_v26 = vpop.permute.xlu2 %4003  ;;  %v12571_v18 = vpop.permute.xlu1 %3987 }
 0x8e5   : > { %16049 = vst [vmem:[#allocation32_spill] sm:$0xff] %v12567_v26  ;;  %v12569_v48 = vpop.permute.xlu0 %3983 }
 0x8e6   : > { %16050 = vst [vmem:[#allocation168_spill] sm:$0xff] %v12569_v48  ;;  %v4128_v48 = vrot.slane %v16020_v61, 3  ;;  %v4429_v61 = vrot.slane %v11672_v27, 5 }
 0x8e7   : > { %16051 = vst [vmem:[#allocation136_spill] sm:$0xff] %v12571_v18 }
 0x8e8   : > { %v4129_v21 = vsel %vm4061_vm3, %v4127_v43, %v4128_v48  ;;  %v4132_v43 = vrot.slane %v16025_v46, 3  ;;  %v4599_v46 = vrot.slane %v11558_v35, 6 }
 0x8ea   : > { %4188 = vrot.lane.b32.xlu2 %v4121_v25, %s8265_s13  ;;  %4190 = vrot.lane.b32.xlu1 %v4124_v17, %s8265_s13  ;;  %v4126_v25 = vsel %vm4061_vm3, %v4123_v62, %v4125_v60  ;;  %v4137_v62 = vrot.slane %v12236_v51, 3  ;;  %v4135_v60 = vrot.slane %v12254_v54, 3  ;;  %v4239_v54 = vrot.slane %v11525_v41, 4 }
 0x8eb   : > { %4186 = vrot.lane.b32.xlu0 %v4119_v9, %s8265_s13  ;;  %v4131_v9 = vsel %vm4061_vm3, %v4128_v48, %v4130_v7  ;;  %v4138_v48 = vrot.slane %v12239_v13, 3  ;;  %v4244_v13 = vrot.slane %v11565_v15, 4 }
 0x8ec   : > { %v12584_v10 = vpop.permute.xlu2 %4009  ;;  %v12588_v18 = vpop.permute.xlu1 %3993 }
 0x8ed   : > { %16052 = vst [vmem:[#allocation137_spill] sm:$0xff] %v12584_v10  ;;  %v12586_v26 = vpop.permute.xlu0 %3989 }
 0x8ee   : > { %16053 = vst [vmem:[#allocation211_spill] sm:$0xff] %v12586_v26  ;;  %v4133_v26 = vrot.slane %v12216_v24, 3 }
 0x8ef   : > { %16054 = vst [vmem:[#allocation178_spill] sm:$0xff] %v12588_v18 }
 0x8f0   : > { %v4136_v7 = vsel %vm4061_vm3, %v4133_v26, %v4135_v60  ;;  %v4238_v60 = vrot.slane %v11528_v50, 4 }
 0x8f2   : > { %4194 = vrot.lane.b32.xlu2 %v4129_v21, %s8265_s13  ;;  %4196 = vrot.lane.b32.xlu1 %v4131_v9, %s8265_s13  ;;  %v4134_v21 = vsel %vm4061_vm3, %v4132_v43, %v4133_v26  ;;  %v4140_v26 = vrot.slane %v12257_v53, 3  ;;  %v4241_v43 = vrot.slane %v11516_v3, 4 }
 0x8f3   : > { %4192 = vrot.lane.b32.xlu0 %v4126_v25, %s8265_s13  ;;  %v4139_v25 = vsel %vm4061_vm3, %v4137_v62, %v4138_v48  ;;  %v4240_v62 = vsel %vm1603_vm6, %v4238_v60, %v4239_v54  ;;  %v4243_v60 = vrot.slane %v11568_v59, 4 }
 0x8f4   : > { %v12600_v17 = vpop.permute.xlu2 %4015  ;;  %v12604_v18 = vpop.permute.xlu1 %3999 }
 0x8f5   : > { %16055 = vst [vmem:[#allocation179_spill] sm:$0xff] %v12600_v17  ;;  %v12602_v10 = vpop.permute.xlu0 %3995 }
 0x8f6   : > { %16056 = vst [vmem:[#allocation221_spill] sm:$0xff] %v12602_v10 }
 0x8f7   : > { %16057 = vst [vmem:[#allocation222_spill] sm:$0xff] %v12604_v18 }
 0x8fa   : > { %4200 = vrot.lane.b32.xlu2 %v4136_v7, %s8265_s13  ;;  %4202 = vrot.lane.b32.xlu1 %v4139_v25, %s8265_s13  ;;  %v4141_v7 = vsel %vm4061_vm3, %v4138_v48, %v4140_v26  ;;  %v4248_v48 = vrot.slane %v11620_v36, 4  ;;  %v4246_v26 = vrot.slane %v11558_v35, 4 }
 0x8fb   : > { %4198 = vrot.lane.b32.xlu0 %v4134_v21, %s8265_s13  ;;  %v4242_v21 = vsel %vm1603_vm6, %v4239_v54, %v4241_v43  ;;  %v4249_v54 = vrot.slane %v11617_v63, 4 }
 0x8fc   : > { %v12617_v9 = vpop.permute.xlu2 %4021  ;;  %v12621_v51 = vpop.permute.xlu1 %4005  ;;  %v4247_v43 = vsel %vm1603_vm6, %v4244_v13, %v4246_v26  ;;  %v4253_v26 = vrot.slane %v11672_v27, 4 }
 0x8fd   : > { %16058 = vst [vmem:[#allocation97_spill] sm:$0xff] %v12617_v9  ;;  %v12619_v17 = vpop.permute.xlu0 %4001 }
 0x8fe   : > { %16059 = vst [vmem:[#allocation48_spill] sm:$0xff] %v12619_v17 }
 0x8ff   : > { %16060 = vst [vmem:[#allocation86_spill] sm:$0xff] %v12621_v51  ;;  %v4414_v51 = vrot.slane %v11528_v50, 5 }
 0x902   : > { %4318 = vrot.lane.b32.xlu2 %v4240_v62, %s8266_s14  ;;  %4320 = vrot.lane.b32.xlu1 %v4242_v21, %s8266_s14  ;;  %v4245_v62 = vsel %vm1603_vm6, %v4243_v60, %v4244_v13  ;;  %v4251_v13 = vrot.slane %v11610_v23, 4  ;;  %v4256_v60 = vrot.slane %v11662_v6, 4 }
 0x903   : > { %4204 = vrot.lane.b32.xlu0 %v4141_v7, %s8265_s13  ;;  %v4250_v7 = vsel %vm1603_vm6, %v4248_v48, %v4249_v54 }
 0x904   : > { %v12633_v25 = vpop.permute.xlu2 %4027  ;;  %v12637_v53 = vpop.permute.xlu1 %4011 }
 0x905   : > { %16061 = vst [vmem:[#allocation129_spill] sm:$0xff] %v12633_v25  ;;  %v12635_v9 = vpop.permute.xlu0 %4007 }
 0x906   : > { %16062 = vst [vmem:[#allocation96_spill] sm:$0xff] %v12635_v9  ;;  %v4254_v9 = vrot.slane %v11669_v1, 4 }
 0x907   : > { %16063 = vst [vmem:[#allocation31_spill] sm:$0xff] %v12637_v53 }
 0x908   : > { %v4255_v48 = vsel %vm1603_vm6, %v4253_v26, %v4254_v9  ;;  %v4415_v26 = vrot.slane %v11525_v41, 5 }
 0x90a   : > { %4324 = vrot.lane.b32.xlu2 %v4247_v43, %s8266_s14  ;;  %4326 = vrot.lane.b32.xlu1 %v4250_v7, %s8266_s14  ;;  %v4252_v43 = vsel %vm1603_vm6, %v4249_v54, %v4251_v13  ;;  %v4258_v54 = vrot.slane %v11722_v42, 4  ;;  %v4591_v13 = vrot.slane %v11528_v50, 6 }
 0x90b   : > { %4322 = vrot.lane.b32.xlu0 %v4245_v62, %s8266_s14  ;;  %v4257_v62 = vsel %vm1603_vm6, %v4254_v9, %v4256_v60  ;;  %v4259_v9 = vrot.slane %v11719_v38, 4  ;;  %v4592_v60 = vrot.slane %v11525_v41, 6 }
 0x90c   : > { %v12650_v21 = vpop.permute.xlu2 %4146  ;;  %v12654_v53 = vpop.permute.xlu1 %4017 }
 0x90d   : > { %v12652_v25 = vpop.permute.xlu0 %4013  ;;  %16065 = vst [vmem:[#allocation139_spill] sm:$0xff] %v12654_v53 }
 0x90e   : > { %16064 = vst [vmem:[#allocation171_spill] sm:$0xff] %v12652_v25 }
 0x912   : > { %4330 = vrot.lane.b32.xlu2 %v4255_v48, %s8266_s14  ;;  %4332 = vrot.lane.b32.xlu1 %v4257_v62, %s8266_s14  ;;  %v4416_v48 = vsel %vm2379_vm1, %v4414_v51, %v4415_v26  ;;  %v4593_v62 = vsel %vm4590_vm2, %v4591_v13, %v4592_v60  ;;  %v4417_v51 = vrot.slane %v11516_v3, 5  ;;  %v4594_v13 = vrot.slane %v11516_v3, 6 }
 0x913   : > { %4328 = vrot.lane.b32.xlu0 %v4252_v43, %s8266_s14  ;;  %v4260_v43 = vsel %vm1603_vm6, %v4258_v54, %v4259_v9  ;;  %v4261_v54 = vrot.slane %v11712_v40, 4  ;;  %v4419_v3 = vrot.slane %v11568_v59, 5 }
 0x914   : > { %v12666_v7 = vpop.permute.xlu2 %4152  ;;  %v12670_v25 = vpop.permute.xlu1 %4023  ;;  %v4418_v18 = vsel %vm2379_vm1, %v4415_v26, %v4417_v51  ;;  %v4420_v26 = vrot.slane %v11565_v15, 5  ;;  %v4597_v51 = vrot.slane %v11565_v15, 6 }
 0x915   : > { %v12668_v53 = vpop.permute.xlu0 %4019  ;;  %16067 = vst [vmem:[#allocation214_spill] sm:$0xff] %v12670_v25 }
 0x916   : > { %16066 = vst [vmem:[#allocation140_spill] sm:$0xff] %v12668_v53 }
 0x91a   : > { %4494 = vrot.lane.b32.xlu2 %v4416_v48, %s8267_s15  ;;  %4671 = vrot.lane.b32.xlu1 %v4593_v62, %s8268_s16  ;;  %v4262_v48 = vsel %vm1603_vm6, %v4259_v9, %v4261_v54  ;;  %v4263_v9 = vrot.slane %v11772_v14, 4  ;;  %v4421_v54 = vsel %vm2379_vm1, %v4419_v3, %v4420_v26  ;;  %v4422_v3 = vrot.slane %v11558_v35, 5 }
 0x91b   : > { %4334 = vrot.lane.b32.xlu0 %v4260_v43, %s8266_s14  ;;  %v4595_v43 = vsel %vm4590_vm2, %v4592_v60, %v4594_v13  ;;  %v4264_v60 = vrot.slane %v11769_v19, 4  ;;  %v4601_v35 = vrot.slane %v11620_v36, 6 }
 0x91c   : > { %v12684_v25 = vpop.permute.xlu2 %4158  ;;  %v12688_v17 = vpop.permute.xlu1 %4142 }
 0x91d   : > { %v12686_v53 = vpop.permute.xlu0 %4025  ;;  %v4265_v13 = vsel %vm1603_vm6, %v4263_v9, %v4264_v60  ;;  %v4266_v9 = vrot.slane %v11762_v28, 4 }
 0x91e   : > { %16068 = vst [vmem:[#allocation181_spill] sm:$0xff] %v12686_v53 }
 0x922   : > { %4496 = vrot.lane.b32.xlu2 %v4418_v18, %s8267_s15  ;;  %4673 = vrot.lane.b32.xlu1 %v4595_v43, %s8268_s16  ;;  %v4596_v18 = vrot.slane %v11568_v59, 6 }
 0x923   : > { %4336 = vrot.lane.b32.xlu0 %v4262_v48, %s8266_s14 }
 0x924   : > { %v12699_v62 = vpop.permute.xlu2 %4164  ;;  %v12703_v10 = vpop.permute.xlu1 %4148  ;;  %v4598_v48 = vsel %vm4590_vm2, %v4596_v18, %v4597_v51  ;;  %v4600_v18 = vsel %vm4590_vm2, %v4597_v51, %v4599_v46  ;;  %v4602_v46 = vrot.slane %v11617_v63, 6  ;;  %v4268_v51 = vrot.slane %v11821_v58, 4 }
 0x925   : > { %16069 = vst [vmem:[#allocation182_spill] sm:$0xff] %v12699_v62  ;;  %v12701_v53 = vpop.permute.xlu0 %4144 }
 0x92a   : > { %4498 = vrot.lane.b32.xlu2 %v4421_v54, %s8267_s15  ;;  %4675 = vrot.lane.b32.xlu1 %v4598_v48, %s8268_s16  ;;  %v4423_v54 = vsel %vm2379_vm1, %v4420_v26, %v4422_v3  ;;  %v4424_v26 = vrot.slane %v11620_v36, 5  ;;  %v4269_v3 = vrot.slane %v11818_v0, 4 }
 0x92b   : > { %4338 = vrot.lane.b32.xlu0 %v4265_v13, %s8266_s14  ;;  %v4267_v13 = vsel %vm1603_vm6, %v4264_v60, %v4266_v9  ;;  %v4425_v60 = vrot.slane %v11617_v63, 5  ;;  %v4603_v9 = vsel %vm4590_vm2, %v4601_v35, %v4602_v46  ;;  %v4430_v35 = vrot.slane %v11669_v1, 5 }
 0x92c   : > { %v12717_v43 = vpop.permute.xlu2 %4170  ;;  %v12721_v24 = vpop.permute.xlu1 %4154 }
 0x92d   : > { %16070 = vst [vmem:[#allocation224_spill] sm:$0xff] %v12717_v43  ;;  %v12719_v62 = vpop.permute.xlu0 %4150 }
 0x932   : > { %4677 = vrot.lane.b32.xlu2 %v4600_v18, %s8268_s16  ;;  %4340 = vrot.lane.b32.xlu1 %v4267_v13, %s8266_s14  ;;  %v4426_v18 = vsel %vm2379_vm1, %v4424_v26, %v4425_v60  ;;  %v4604_v26 = vrot.slane %v11610_v23, 6 }
 0x933   : > { %4500 = vrot.lane.b32.xlu0 %v4423_v54, %s8267_s15  ;;  %v4270_v54 = vsel %vm1603_vm6, %v4268_v51, %v4269_v3  ;;  %v4427_v51 = vrot.slane %v11610_v23, 5  ;;  %v4606_v23 = vrot.slane %v11672_v27, 6 }
 0x934   : > { %v12732_v48 = vpop.permute.xlu2 %4176  ;;  %v12736_v31 = vpop.permute.xlu1 %4160 }
 0x935   : > { %16071 = vst [vmem:[#allocation225_spill] sm:$0xff] %v12732_v48  ;;  %v12734_v43 = vpop.permute.xlu0 %4156 }
 0x936   : > { %16072 = vst [vmem:[#allocation100_spill] sm:$0xff] %v12736_v31 }
 0x93a   : > { %4679 = vrot.lane.b32.xlu2 %v4603_v9, %s8268_s16  ;;  %4342 = vrot.lane.b32.xlu1 %v4270_v54, %s8266_s14  ;;  %v4605_v9 = vsel %vm4590_vm2, %v4602_v46, %v4604_v26  ;;  %v4431_v54 = vsel %vm2379_vm1, %v4429_v61, %v4430_v35  ;;  %v4607_v46 = vrot.slane %v11669_v1, 6  ;;  %v4432_v61 = vrot.slane %v11662_v6, 5 }
 0x93b   : > { %4502 = vrot.lane.b32.xlu0 %v4426_v18, %s8267_s15  ;;  %v4428_v18 = vsel %vm2379_vm1, %v4425_v60, %v4427_v51  ;;  %v4271_v60 = vrot.slane %v11811_v30, 4 }
 0x93c   : > { %v12750_v13 = vpop.permute.xlu2 %4182  ;;  %v12754_v31 = vpop.permute.xlu1 %4166  ;;  %v4608_v51 = vsel %vm4590_vm2, %v4606_v23, %v4607_v46  ;;  %v4434_v23 = vrot.slane %v11722_v42, 5 }
 0x93d   : > { %16073 = vst [vmem:[#allocation55_spill] sm:$0xff] %v12750_v13  ;;  %v12752_v48 = vpop.permute.xlu0 %4162  ;;  %v4272_v26 = vsel %vm1603_vm6, %v4269_v3, %v4271_v60  ;;  %v4274_v3 = vrot.slane %v11867_v32, 4  ;;  %v4609_v60 = vrot.slane %v11662_v6, 6  ;;  %v4611_v6 = vrot.slane %v11722_v42, 6 }
 0x93e   : > { %16074 = vst [vmem:[#allocation89_spill] sm:$0xff] %v12752_v48 }
 0x93f   : > { %16075 = vst [vmem:[#allocation53_spill] sm:$0xff] %v12754_v31 }
 0x942   : > { %4681 = vrot.lane.b32.xlu2 %v4605_v9, %s8268_s16  ;;  %4506 = vrot.lane.b32.xlu1 %v4431_v54, %s8267_s15  ;;  %v4433_v9 = vsel %vm2379_vm1, %v4430_v35, %v4432_v61  ;;  %v4435_v35 = vrot.slane %v11719_v38, 5 }
 0x943   : > { %4504 = vrot.lane.b32.xlu0 %v4428_v18, %s8267_s15 }
 0x944   : > { %v12766_v13 = vpop.permute.xlu2 %4188  ;;  %v12770_v48 = vpop.permute.xlu1 %4172 }
 0x945   : > { %16076 = vst [vmem:[#allocation132_spill] sm:$0xff] %v12766_v13  ;;  %v12768_v31 = vpop.permute.xlu0 %4168 }
 0x946   : > { %16077 = vst [vmem:[#allocation99_spill] sm:$0xff] %v12768_v31  ;;  %v4283_v31 = vrot.slane %v11968_v29, 4 }
 0x947   : > { %16078 = vst [vmem:[#allocation54_spill] sm:$0xff] %v12770_v48  ;;  %v4273_v48 = vrot.slane %v11870_v34, 4 }
 0x949   : > { %v4275_v61 = vsel %vm1603_vm6, %v4273_v48, %v4274_v3  ;;  %v4612_v48 = vrot.slane %v11719_v38, 6 }
 0x94a   : > { %4344 = vrot.lane.b32.xlu2 %v4272_v26, %s8266_s14  ;;  %4508 = vrot.lane.b32.xlu1 %v4433_v9, %s8267_s15  ;;  %v4610_v26 = vsel %vm4590_vm2, %v4607_v46, %v4609_v60  ;;  %v4977_v46 = vld [vmem:[%s15234_s6 + $0x60] sm:$0x3]  ;;  %v4437_v60 = vrot.slane %v11712_v40, 5 }
 0x94b   : > { %4683 = vrot.lane.b32.xlu0 %v4608_v51, %s8268_s16  ;;  %v4436_v51 = vsel %vm2379_vm1, %v4434_v23, %v4435_v35  ;;  %v4976_v23 = vld [vmem:[%s15234_s6 + $0x58] sm:$0xff]  ;;  %7824 = vmatpush.msk.msrb.mxu3 %vm4590_vm2, %v4977_v46 }
 0x94c   : > { %v12782_v18 = vpop.permute.xlu2 %4194  ;;  %v12786_v13 = vpop.permute.xlu1 %4178 }
 0x94d   : > { %16079 = vst [vmem:[#allocation174_spill] sm:$0xff] %v12782_v18  ;;  %v12784_v54 = vpop.permute.xlu0 %4174  ;;  %5082 = vmatpush.msrb.mxu3 %v4976_v23 }
 0x94e   : > { %16080 = vst [vmem:[#allocation142_spill] sm:$0xff] %v12784_v54 }
 0x94f   : > { %16081 = vst [vmem:[#allocation143_spill] sm:$0xff] %v12786_v13 }
 0x952   : > { %4346 = vrot.lane.b32.xlu2 %v4275_v61, %s8266_s14  ;;  %4510 = vrot.lane.b32.xlu1 %v4436_v51, %s8267_s15  ;;  %v4614_v61 = vrot.slane %v11712_v40, 6  ;;  %v4975_v51 = vld [vmem:[%s15234_s6 + $0x50] sm:$0xff]  ;;  %v4974_v40 = vld [vmem:[%s15234_s6 + $0x48] sm:$0xff] }
 0x953   : > { %4685 = vrot.lane.b32.xlu0 %v4610_v26, %s8268_s16  ;;  %v4438_v26 = vsel %vm2379_vm1, %v4435_v35, %v4437_v60  ;;  %5083 = vmatpush.msrb.mxu3 %v4975_v51  ;;  %v4616_v60 = vrot.slane %v11772_v14, 6 }
 0x954   : > { %v12799_v9 = vpop.permute.xlu2 %4200  ;;  %v12803_v13 = vpop.permute.xlu1 %4184 }
 0x955   : > { %16082 = vst [vmem:[#allocation217_spill] sm:$0xff] %v12799_v9  ;;  %v12801_v18 = vpop.permute.xlu0 %4180  ;;  %v4613_v9 = vsel %vm4590_vm2, %v4611_v6, %v4612_v48  ;;  %v4439_v6 = vrot.slane %v11772_v14, 5  ;;  %5084 = vmatpush.msrb.mxu3 %v4974_v40 }
 0x956   : > { %16083 = vst [vmem:[#allocation184_spill] sm:$0xff] %v12801_v18 }
 0x957   : > { %16084 = vst [vmem:[#allocation185_spill] sm:$0xff] %v12803_v13  ;;  %v4615_v13 = vsel %vm4590_vm2, %v4612_v48, %v4614_v61  ;;  %v4440_v48 = vrot.slane %v11769_v19, 5  ;;  %v4972_v61 = vld [vmem:[%s15234_s6 + $0x38] sm:$0xff] }
 0x959   : > { %v4441_v51 = vsel %vm2379_vm1, %v4439_v6, %v4440_v48 }
 0x95a   : > { %4512 = vrot.lane.b32.xlu2 %v4438_v26, %s8267_s15  ;;  %4689 = vrot.lane.b32.xlu1 %v4615_v13, %s8268_s16  ;;  %v4973_v13 = vld [vmem:[%s15234_s6 + $0x40] sm:$0xff]  ;;  %v4276_v26 = vrot.slane %v11860_v39, 4 }
 0x95b   : > { %4687 = vrot.lane.b32.xlu0 %v4613_v9, %s8268_s16  ;;  %v4617_v9 = vrot.slane %v11769_v19, 6  ;;  %5085 = vmatpush.msrb.mxu3 %v4973_v13  ;;  %v4970_v13 = vld [vmem:[%s15234_s6 + $0x28] sm:$0xff] }
 0x95c   : > { %v12828_v35 = vpop.permute.xlu2 %4318  ;;  %v12832_v23 = vpop.permute.xlu1 %4190 }
 0x95d   : > { %v12830_v46 = vpop.permute.xlu0 %4186  ;;  %16086 = vst [vmem:[#allocation228_spill] sm:$0xff] %v12832_v23  ;;  %v4971_v23 = vld [vmem:[%s15234_s6 + $0x30] sm:$0xff]  ;;  %v4618_v40 = vsel %vm4590_vm2, %v4616_v60, %v4617_v9  ;;  %5086 = vmatpush.msrb.mxu3 %v4972_v61  ;;  %v4279_v60 = vrot.slane %v11916_v55, 4  ;;  %v4442_v61 = vrot.slane %v11762_v28, 5 }
 0x95e   : > { %16085 = vst [vmem:[#allocation227_spill] sm:$0xff] %v12830_v46  ;;  %v4277_v46 = vsel %vm1603_vm6, %v4274_v3, %v4276_v26  ;;  %v4278_v3 = vrot.slane %v11919_v22, 4  ;;  %v4968_v26 = vld [vmem:[%s15234_s6 + $0x18] sm:$0xff] }
 0x95f   : > { %5087 = vmatpush.msrb.mxu3 %v4971_v23  ;;  %v4619_v23 = vrot.slane %v11762_v28, 6  ;;  %v4966_v28 = vld [vmem:[%s15234_s6 + $0x8] sm:$0xff] }
 0x961   : > { %5088 = vmatpush.msrb.mxu3 %v4970_v13  ;;  %v4280_v13 = vsel %vm1603_vm6, %v4278_v3, %v4279_v60  ;;  %v4622_v3 = vrot.slane %v11818_v0, 6 }
 0x962   : > { %4514 = vrot.lane.b32.xlu2 %v4441_v51, %s8267_s15  ;;  %4691 = vrot.lane.b32.xlu1 %v4618_v40, %s8268_s16  ;;  %v4443_v51 = vsel %vm2379_vm1, %v4440_v48, %v4442_v61  ;;  %v4967_v40 = vld [vmem:[%s15234_s6 + $0x10] sm:$0xff] }
 0x963   : > { %4348 = vrot.lane.b32.xlu0 %v4277_v46, %s8266_s14  ;;  %v4969_v46 = vld [vmem:[%s15234_s6 + $0x20] sm:$0xff] }
 0x964   : > { %v12857_v6 = vpop.permute.xlu2 %4324  ;;  %v12861_v54 = vpop.permute.xlu1 %4196  ;;  %5089 = vmatpush.msrb.mxu3 %v4969_v46 }
 0x965   : > { %v12859_v18 = vpop.permute.xlu0 %4192  ;;  %16088 = vst [vmem:[#allocation58_spill] sm:$0xff] %v12861_v54  ;;  %v4620_v54 = vsel %vm4590_vm2, %v4617_v9, %v4619_v23  ;;  %v4621_v9 = vrot.slane %v11821_v58, 6  ;;  %v4445_v23 = vrot.slane %v11818_v0, 5  ;;  %v4626_v0 = vrot.slane %v11870_v34, 6 }
 0x966   : > { %16087 = vst [vmem:[#allocation103_spill] sm:$0xff] %v12859_v18  ;;  %5090 = vmatpush.msrb.mxu3 %v4968_v26  ;;  %v4444_v26 = vrot.slane %v11821_v58, 5 }
 0x968   : > { %5091 = vmatpush.msrb.mxu3 %v4967_v40  ;;  %v4623_v40 = vsel %vm4590_vm2, %v4621_v9, %v4622_v3  ;;  %v4624_v9 = vrot.slane %v11811_v30, 6 }
 0x96a   : > { %4516 = vrot.lane.b32.xlu2 %v4443_v51, %s8267_s15  ;;  %4693 = vrot.lane.b32.xlu1 %v4620_v54, %s8268_s16  ;;  %v4965_v54 = vld [vmem:[%s15234_s6] sm:$0xff]  ;;  %v4281_v51 = vrot.slane %v11909_v12, 4 }
 0x96b   : > { %4350 = vrot.lane.b32.xlu0 %v4280_v13, %s8266_s14  ;;  %5092 = vmatpush.msrb.mxu3 %v4966_v28  ;;  %v4446_v13 = vsel %vm2379_vm1, %v4444_v26, %v4445_v23  ;;  %v4447_v26 = vrot.slane %v11811_v30, 5  ;;  %v4627_v30 = vrot.slane %v11867_v32, 6 }
 0x96c   : > { %v12885_v48 = vpop.permute.xlu2 %4330  ;;  %v12889_v61 = vpop.permute.xlu1 %4202 }
 0x96d   : > { %v12887_v46 = vpop.permute.xlu0 %4198  ;;  %16090 = vst [vmem:[#allocation56_spill] sm:$0xff] %v12889_v61  ;;  %5093 = vmatpush.msrb.mxu3 %v4965_v54  ;;  %v4282_v61 = vsel %vm1603_vm6, %v4279_v60, %v4281_v51  ;;  %v4284_v54 = vrot.slane %v11965_v37, 4  ;;  %v4625_v60 = vsel %vm4590_vm2, %v4622_v3, %v4624_v9  ;;  %v4448_v51 = vsel %vm2379_vm1, %v4445_v23, %v4447_v26 }
 0x96e   : > { %16089 = vst [vmem:[#allocation92_spill] sm:$0xff] %v12887_v46  ;;  %v4449_v3 = vrot.slane %v11870_v34, 5  ;;  %v4450_v23 = vrot.slane %v11867_v32, 5  ;;  %v4628_v9 = vsel %vm4590_vm2, %v4626_v0, %v4627_v30  ;;  %v4629_v34 = vrot.slane %v11860_v39, 6 }
 0x96f   : > { %v4454_v0 = vrot.slane %v11919_v22, 5 }
 0x970   : > { %v4451_v26 = vsel %vm2379_vm1, %v4449_v3, %v4450_v23  ;;  %v4455_v3 = vrot.slane %v11916_v55, 5 }
 0x972   : > { %4695 = vrot.lane.b32.xlu2 %v4623_v40, %s8268_s16  ;;  %4352 = vrot.lane.b32.xlu1 %v4282_v61, %s8266_s14  ;;  %v4285_v40 = vsel %vm1603_vm6, %v4283_v31, %v4284_v54  ;;  %v4452_v31 = vrot.slane %v11860_v39, 5  ;;  %v4456_v39 = vsel %vm2379_vm1, %v4454_v0, %v4455_v3  ;;  %v4289_v0 = vrot.slane %v12014_v2, 4 }
 0x973   : > { %4518 = vrot.lane.b32.xlu0 %v4446_v13, %s8267_s15 }
 0x974   : > { %v4495_v28 = vpop.permute.xlu2 %4494  ;;  %v12907_v18 = vpop.permute.xlu1 %4320 }
 0x975   : > { %v12905_v46 = vpop.permute.xlu0 %4204 }
 0x976   : > { %16091 = vst [vmem:[#allocation135_spill] sm:$0xff] %v12905_v46 }
 0x97a   : > { %4697 = vrot.lane.b32.xlu2 %v4625_v60, %s8268_s16  ;;  %4354 = vrot.lane.b32.xlu1 %v4285_v40, %s8266_s14  ;;  %v4453_v60 = vsel %vm2379_vm1, %v4450_v23, %v4452_v31  ;;  %v4286_v23 = vrot.slane %v11958_v11, 4  ;;  %v4630_v31 = vsel %vm4590_vm2, %v4627_v30, %v4629_v34  ;;  %v4288_v30 = vrot.slane %v12017_v33, 4 }
 0x97b   : > { %4520 = vrot.lane.b32.xlu0 %v4448_v51, %s8267_s15 }
 0x97c   : > { %v4497_v61 = vpop.permute.xlu2 %4496  ;;  %v12921_v46 = vpop.permute.xlu1 %4326 }
 0x97d   : > { %v12919_v13 = vpop.permute.xlu0 %4322 }
 0x982   : > { %4699 = vrot.lane.b32.xlu2 %v4628_v9, %s8268_s16  ;;  %4524 = vrot.lane.b32.xlu1 %v4453_v60, %s8267_s15  ;;  %v4768_v9 = vsel %vm4767_vm7, %v11528_v50, %v12269_v16 }
 0x983   : > { %4522 = vrot.lane.b32.xlu0 %v4451_v26, %s8267_s15  ;;  %v4287_v26 = vsel %vm1603_vm6, %v4284_v54, %v4286_v23  ;;  %v4801_v60 = vsel %vm4800_vm14, %v4768_v9, %v12520_v57  ;;  %v4631_v23 = vrot.slane %v11919_v22, 6 }
 0x984   : > { %v12936_v40 = vpop.permute.xlu1 %4332  ;;  %v12938_v32 = vpop.permute.xlu2 %4498  ;;  %v4834_v34 = vsel %vm4833_vm8, %v4801_v60, %v12688_v17 }
 0x985   : > { %v12934_v51 = vpop.permute.xlu0 %4328  ;;  %v4867_v50 = vsel %vm4866_vm15, %v4834_v34, %v12828_v35  ;;  %v4457_v35 = vrot.slane %v11909_v12, 5 }
 0x986   : > { %v4900_v16 = vsel %vm4899_vm9, %v4867_v50, %v4495_v28  ;;  %v4769_v28 = vsel %vm4767_vm7, %v11525_v41, %v12328_v45 }
 0x987   : > { %v4802_v60 = vsel %vm4800_vm14, %v4769_v28, %v12468_v44  ;;  %v4458_v34 = vsel %vm2379_vm1, %v4455_v3, %v4457_v35  ;;  %v4460_v3 = vrot.slane %v11965_v37, 5  ;;  %v16093_v28 = vld [vmem:[#allocation219_spill] sm:$0xff] }
 0x988   : > { %v4835_v50 = vsel %vm4833_vm8, %v4802_v60, %v12701_v53  ;;  %v4636_v53 = vrot.slane %v11968_v29, 6 }
 0x989   : > { %v4868_v41 = vsel %vm4866_vm15, %v4835_v50, %v12907_v18  ;;  %v16092_v18 = vld [vmem:[#allocation246_spill] sm:$0xff] }
 0x98a   : > { %4356 = vrot.lane.b32.xlu2 %v4287_v26, %s8266_s14  ;;  %4526 = vrot.lane.b32.xlu1 %v4456_v39, %s8267_s15  ;;  %v4290_v26 = vsel %vm1603_vm6, %v4288_v30, %v4289_v0  ;;  %v4901_v45 = vsel %vm4899_vm9, %v4868_v41, %v4497_v61  ;;  %v4770_v61 = vsel %vm4767_vm7, %v11568_v59, %v16092_v18  ;;  %v16095_v18 = vld [vmem:[#allocation6_spill] sm:$0xff] }
 0x98b   : > { %4701 = vrot.lane.b32.xlu0 %v4630_v31, %s8268_s16  ;;  %v4632_v31 = vrot.slane %v11916_v55, 6 }
 0x98c   : > { %v4672_v54 = vpop.permute.xlu1 %4671  ;;  %v4678_v9 = vpop.permute.xlu2 %4677 }
 0x98d   : > { %v12960_v57 = vpop.permute.xlu0 %4334  ;;  %v4933_v17 = vsel %vm4932_vm11, %v4900_v16, %v4672_v54  ;;  %v4633_v39 = vsel %vm4590_vm2, %v4631_v23, %v4632_v31  ;;  %v4459_v54 = vrot.slane %v11968_v29, 5  ;;  %v4634_v23 = vrot.slane %v11909_v12, 6 }
 0x98e   : > { %7825 = vmatmul.msk.f32.vlgmr.msrb.gmra.mxu3 %vm4978_vm12, %v4933_v17  ;;  %v4637_v17 = vrot.slane %v11965_v37, 6 }
 0x98f   : > { %v4461_v35 = vsel %vm2379_vm1, %v4459_v54, %v4460_v3  ;;  %v4639_v54 = vrot.slane %v11958_v11, 6 }
 0x992   : > { %4358 = vrot.lane.b32.xlu2 %v4290_v26, %s8266_s14  ;;  %4528 = vrot.lane.b32.xlu1 %v4458_v34, %s8267_s15  ;;  %v4803_v26 = vsel %vm4800_vm14, %v4770_v61, %v16093_v28  ;;  %v4638_v34 = vsel %vm4590_vm2, %v4636_v53, %v4637_v17  ;;  %v16094_v53 = vld [vmem:[#allocation170_spill] sm:$0xff]  ;;  %v4464_v28 = vrot.slane %v12017_v33, 5 }
 0x993   : > { %4703 = vrot.lane.b32.xlu0 %v4633_v39, %s8268_s16  ;;  %v4635_v39 = vsel %vm4590_vm2, %v4632_v31, %v4634_v23  ;;  %v4836_v50 = vsel %vm4833_vm8, %v4803_v26, %v12650_v21  ;;  %v4291_v21 = vrot.slane %v12007_v49, 4  ;;  %v4640_v23 = vsel %vm4590_vm2, %v4637_v17, %v4639_v54 }
 0x994   : > { %v4674_v44 = vpop.permute.xlu1 %4673  ;;  %v4680_v60 = vpop.permute.xlu2 %4679  ;;  %v4869_v59 = vsel %vm4866_vm15, %v4836_v50, %v12919_v13  ;;  %v4771_v13 = vsel %vm4767_vm7, %v11565_v15, %v16094_v53  ;;  %v4641_v17 = vrot.slane %v12017_v33, 6  ;;  %v4465_v26 = vrot.slane %v12014_v2, 5 }
 0x995   : > { %v12985_v16 = vpop.permute.xlu0 %4336  ;;  %v4934_v30 = vsel %vm4932_vm11, %v4901_v45, %v4674_v44  ;;  %v4902_v12 = vsel %vm4899_vm9, %v4869_v59, %v12938_v32  ;;  %v4462_v44 = vrot.slane %v11958_v11, 5  ;;  %v4292_v32 = vsel %vm1603_vm6, %v4289_v0, %v4291_v21  ;;  %v16097_v21 = vld [vmem:[#allocation167_spill] sm:$0xff] }
 0x996   : > { %7826 = vmatmul.msk.f32.gmra.mxu3 %vm4978_vm12, %v4934_v30  ;;  %v4804_v61 = vsel %vm4800_vm14, %v4771_v13, %v16095_v18  ;;  %v4294_v50 = vrot.slane %v12075_v4, 4  ;;  %v4644_v18 = vrot.slane %v12007_v49, 6 }
 0x997   : > { %v4463_v30 = vsel %vm2379_vm1, %v4460_v3, %v4462_v44  ;;  %v4837_v11 = vsel %vm4833_vm8, %v4804_v61, %v12703_v10  ;;  %v4642_v10 = vrot.slane %v12014_v2, 6  ;;  %v4467_v61 = vrot.slane %v12007_v49, 5 }
 0x998   : > { %v4870_v15 = vsel %vm4866_vm15, %v4837_v11, %v12857_v6  ;;  %v4466_v6 = vsel %vm2379_vm1, %v4464_v28, %v4465_v26 }
 0x999   : > { %v4643_v44 = vsel %vm4590_vm2, %v4641_v17, %v4642_v10  ;;  %v4645_v11 = vsel %vm4590_vm2, %v4642_v10, %v4644_v18  ;;  %v4647_v10 = vrot.slane %v12075_v4, 6 }
 0x99a   : > { %4530 = vrot.lane.b32.xlu2 %v4461_v35, %s8267_s15  ;;  %4707 = vrot.lane.b32.xlu1 %v4638_v34, %s8268_s16  ;;  %v4293_v34 = vrot.slane %v12078_v20, 4 }
 0x99b   : > { %4705 = vrot.lane.b32.xlu0 %v4635_v39, %s8268_s16 }
 0x99c   : > { %v4676_v31 = vpop.permute.xlu1 %4675  ;;  %v4682_v3 = vpop.permute.xlu2 %4681 }
 0x99d   : > { %v13011_v41 = vpop.permute.xlu0 %4338  ;;  %v4935_v45 = vsel %vm4932_vm11, %v4902_v12, %v4676_v31  ;;  %v16096_v12 = vld [vmem:[#allocation88_spill] sm:$0xff] }
 0x99e   : > { %7827 = vmatmul.msk.f32.gmra.mxu3 %vm4978_vm12, %v4935_v45  ;;  %v4772_v31 = vsel %vm4767_vm7, %v11620_v36, %v16096_v12  ;;  %v4295_v45 = vsel %vm1603_vm6, %v4293_v34, %v4294_v50  ;;  %v4298_v12 = vrot.slane %v16019_v5, 4 }
 0x99f   : > { %v4805_v54 = vsel %vm4800_vm14, %v4772_v31, %v16097_v21  ;;  %v4299_v31 = vrot.slane %v12145_v52, 4 }
 0x9a2   : > { %4532 = vrot.lane.b32.xlu2 %v4463_v30, %s8267_s15  ;;  %4709 = vrot.lane.b32.xlu1 %v4640_v23, %s8268_s16 }
 0x9a3   : > { %4360 = vrot.lane.b32.xlu0 %v4292_v32, %s8266_s14 }
 0x9a4   : > { %v13033_v0 = vpop.permute.xlu1 %4340  ;;  %v13061_v13 = vpop.permute.xlu2 %4344 }
 0x9a5   : > { %v4501_v35 = vpop.permute.xlu0 %4500 }
 0x9a6   : > { %v4903_v39 = vsel %vm4899_vm9, %v4870_v15, %v4501_v35  ;;  %v4468_v35 = vsel %vm2379_vm1, %v4465_v26, %v4467_v61  ;;  %v4469_v26 = vrot.slane %v12078_v20, 5 }
 0x9a7   : > { %v4936_v59 = vsel %vm4932_vm11, %v4903_v39, %v4678_v9  ;;  %v4838_v9 = vsel %vm4833_vm8, %v4805_v54, %v12719_v62  ;;  %v4296_v62 = vrot.slane %v12056_v56, 4  ;;  %v16101_v54 = vld [vmem:[#allocation126_spill] sm:$0xff] }
 0x9a8   : > { %7828 = vmatmul.msk.f32.gmra.mxu3 %vm4978_vm12, %v4936_v59  ;;  %v4871_v30 = vsel %vm4866_vm15, %v4838_v9, %v12921_v46  ;;  %v16098_v46 = vld [vmem:[#allocation79_spill] sm:$0xff] }
 0x9a9   : > { %v4773_v15 = vsel %vm4767_vm7, %v11617_v63, %v16098_v46  ;;  %v4297_v17 = vsel %vm1603_vm6, %v4294_v50, %v4296_v62  ;;  %v4646_v50 = vrot.slane %v12078_v20, 6  ;;  %v4474_v62 = vrot.slane %v16019_v5, 5 }
 0x9aa   : > { %4534 = vrot.lane.b32.xlu2 %v4466_v6, %s8267_s15  ;;  %4711 = vrot.lane.b32.xlu1 %v4643_v44, %s8268_s16  ;;  %v4470_v6 = vrot.slane %v12075_v4, 5  ;;  %v4649_v46 = vrot.slane %v12056_v56, 6 }
 0x9ab   : > { %4362 = vrot.lane.b32.xlu0 %v4295_v45, %s8266_s14  ;;  %v4648_v21 = vsel %vm4590_vm2, %v4646_v50, %v4647_v10 }
 0x9ac   : > { %v13059_v53 = vpop.permute.xlu1 %4342  ;;  %v13092_v45 = vpop.permute.xlu2 %4346 }
 0x9ad   : > { %v4503_v36 = vpop.permute.xlu0 %4502 }
 0x9ae   : > { %v4904_v32 = vsel %vm4899_vm9, %v4871_v30, %v4503_v36  ;;  %v4471_v30 = vsel %vm2379_vm1, %v4469_v26, %v4470_v6  ;;  %v4300_v36 = vsel %vm1603_vm6, %v4298_v12, %v4299_v31  ;;  %v16104_v12 = vld [vmem:[#allocation87_spill] sm:$0xff] }
 0x9af   : > { %v4937_v23 = vsel %vm4932_vm11, %v4904_v32, %v4680_v60  ;;  %v16099_v60 = vld [vmem:[#allocation83_spill] sm:$0xff] }
 0x9b0   : > { %7829 = vmatmul.msk.f32.gmra.mxu3 %vm4978_vm12, %v4937_v23  ;;  %v4806_v28 = vsel %vm4800_vm14, %v4773_v15, %v16099_v60  ;;  %v16102_v15 = vld [vmem:[#allocation3_spill] sm:$0xff] }
 0x9b1   : > { %v4839_v49 = vsel %vm4833_vm8, %v4806_v28, %v12666_v7 }
 0x9b2   : > { %4713 = vrot.lane.b32.xlu2 %v4645_v11, %s8268_s16  ;;  %4364 = vrot.lane.b32.xlu1 %v4297_v17, %s8266_s14  ;;  %v4872_v39 = vsel %vm4866_vm15, %v4839_v49, %v12934_v51  ;;  %v16100_v51 = vld [vmem:[#allocation212_spill] sm:$0xff]  ;;  %v4475_v11 = vrot.slane %v12145_v52, 5  ;;  %v16103_v17 = vld [vmem:[#allocation209_spill] sm:$0xff] }
 0x9b3   : > { %4536 = vrot.lane.b32.xlu0 %v4468_v35, %s8267_s15  ;;  %v4774_v44 = vsel %vm4767_vm7, %v11672_v27, %v16100_v51  ;;  %v4650_v35 = vsel %vm4590_vm2, %v4647_v10, %v4649_v46  ;;  %v4651_v10 = vrot.slane %v16019_v5, 6  ;;  %v16105_v51 = vld [vmem:[#allocation93_spill] sm:$0xff] }
 0x9b4   : > { %v4507_v34 = vpop.permute.xlu1 %4506  ;;  %v4807_v9 = vsel %vm4800_vm14, %v4774_v44, %v16101_v54  ;;  %v4513_v28 = vpop.permute.xlu2 %4512 }
 0x9b5   : > { %v4505_v63 = vpop.permute.xlu0 %4504 }
 0x9b6   : > { %v4905_v59 = vsel %vm4899_vm9, %v4872_v39, %v4505_v63  ;;  %v4476_v39 = vsel %vm2379_vm1, %v4474_v62, %v4475_v11  ;;  %v4654_v62 = vrot.slane %v16021_v47, 6 }
 0x9b7   : > { %v4938_v7 = vsel %vm4932_vm11, %v4905_v59, %v4682_v3  ;;  %v4840_v3 = vsel %vm4833_vm8, %v4807_v9, %v12721_v24  ;;  %v4472_v24 = vrot.slane %v12056_v56, 5  ;;  %v4652_v59 = vrot.slane %v12145_v52, 6 }
 0x9b8   : > { %7830 = vmatmul.msk.f32.gmra.mxu3 %vm4978_vm12, %v4938_v7  ;;  %v4873_v27 = vsel %vm4866_vm15, %v4840_v3, %v12885_v48  ;;  %v4775_v48 = vsel %vm4767_vm7, %v11669_v1, %v16102_v15 }
 0x9b9   : > { %v4906_v32 = vsel %vm4899_vm9, %v4873_v27, %v4507_v34  ;;  %v4808_v60 = vsel %vm4800_vm14, %v4775_v48, %v16103_v17  ;;  %v4473_v49 = vsel %vm2379_vm1, %v4470_v6, %v4472_v24  ;;  %v4301_v6 = vrot.slane %v16021_v47, 4  ;;  %v16108_v48 = vld [vmem:[#allocation168_spill] sm:$0xff] }
 0x9ba   : > { %4715 = vrot.lane.b32.xlu2 %v4648_v21, %s8268_s16  ;;  %4366 = vrot.lane.b32.xlu1 %v4300_v36, %s8266_s14  ;;  %v4841_v63 = vsel %vm4833_vm8, %v4808_v60, %v12734_v43  ;;  %v4477_v43 = vrot.slane %v16021_v47, 5  ;;  %v4653_v21 = vsel %vm4590_vm2, %v4651_v10, %v4652_v59  ;;  %v4303_v27 = vrot.slane %v12219_v8, 4  ;;  %v16109_v47 = vld [vmem:[#allocation100_spill] sm:$0xff] }
 0x9bb   : > { %4538 = vrot.lane.b32.xlu0 %v4471_v30, %s8267_s15  ;;  %v4874_v1 = vsel %vm4866_vm15, %v4841_v63, %v12936_v40  ;;  %v4776_v40 = vsel %vm4767_vm7, %v11722_v42, %v16104_v12  ;;  %v4302_v7 = vsel %vm1603_vm6, %v4299_v31, %v4301_v6  ;;  %v4655_v24 = vsel %vm4590_vm2, %v4652_v59, %v4654_v62  ;;  %v16111_v59 = vld [vmem:[#allocation2_spill] sm:$0xff] }
 0x9bc   : > { %v4509_v18 = vpop.permute.xlu1 %4508  ;;  %v4809_v44 = vsel %vm4800_vm14, %v4776_v40, %v16105_v51  ;;  %v4478_v54 = vsel %vm2379_vm1, %v4475_v11, %v4477_v43  ;;  %v4515_v31 = vpop.permute.xlu2 %4514  ;;  %v16107_v11 = vld [vmem:[#allocation213_spill] sm:$0xff]  ;;  %v4778_v6 = vsel %vm4767_vm7, %v11772_v14, %v16111_v59  ;;  %v16112_v12 = vld [vmem:[#allocation218_spill] sm:$0xff] }
 0x9bd   : > { %v4684_v23 = vpop.permute.xlu0 %4683  ;;  %v4907_v56 = vsel %vm4899_vm9, %v4874_v1, %v4509_v18  ;;  %v4842_v9 = vsel %vm4833_vm8, %v4809_v44, %v12684_v25  ;;  %v4479_v25 = vrot.slane %v12219_v8, 5  ;;  %v4777_v46 = vsel %vm4767_vm7, %v11719_v38, %v16107_v11  ;;  %v16119_v11 = vld [vmem:[#allocation136_spill] sm:$0xff] }
 0x9be   : > { %v4939_v61 = vsel %vm4932_vm11, %v4906_v32, %v4684_v23  ;;  %v4875_v42 = vsel %vm4866_vm15, %v4842_v9, %v12960_v57  ;;  %v16106_v32 = vld [vmem:[#allocation85_spill] sm:$0xff]  ;;  %v4656_v1 = vrot.slane %v12219_v8, 6  ;;  %v4811_v40 = vsel %vm4800_vm14, %v4778_v6, %v16112_v12 }
 0x9bf   : > { %v4304_v23 = vrot.slane %v16106_v32, 4 }
 0x9c0   : > { %7831 = vmatmul.msk.f32.gmra.mxu3 %vm4978_vm12, %v4939_v61  ;;  %v4480_v61 = vrot.slane %v16106_v32, 5 }
 0x9c1   : > { %v4305_v57 = vsel %vm1603_vm6, %v4303_v27, %v4304_v23 }
 0x9c2   : > { %4717 = vrot.lane.b32.xlu2 %v4650_v35, %s8268_s16  ;;  %4542 = vrot.lane.b32.xlu1 %v4476_v39, %s8267_s15  ;;  %v4481_v15 = vsel %vm2379_vm1, %v4479_v25, %v4480_v61  ;;  %v4810_v35 = vsel %vm4800_vm14, %v4777_v46, %v16108_v48  ;;  %v16117_v25 = vld [vmem:[#allocation130_spill] sm:$0xff] }
 0x9c3   : > { %4540 = vrot.lane.b32.xlu0 %v4473_v49, %s8267_s15  ;;  %v4843_v17 = vsel %vm4833_vm8, %v4810_v35, %v16109_v47 }
 0x9c4   : > { %v4511_v26 = vpop.permute.xlu1 %4510  ;;  %v4876_v60 = vsel %vm4866_vm15, %v4843_v17, %v12985_v16  ;;  %v4517_v63 = vpop.permute.xlu2 %4516 }
 0x9c5   : > { %v4686_v34 = vpop.permute.xlu0 %4685  ;;  %v4908_v30 = vsel %vm4899_vm9, %v4875_v42, %v4511_v26  ;;  %v4909_v39 = vsel %vm4899_vm9, %v4876_v60, %v4513_v28  ;;  %v16110_v26 = vld [vmem:[#allocation243_spill] sm:$0xff] }
 0x9c6   : > { %v4940_v50 = vsel %vm4932_vm11, %v4907_v56, %v4686_v34  ;;  %v4657_v56 = vrot.slane %v16106_v32, 6  ;;  %v4482_v10 = vrot.slane %v16110_v26, 5  ;;  %v4659_v27 = vrot.slane %v16110_v26, 6 }
 0x9c8   : > { %7832 = vmatmul.msk.f32.gmra.mxu3 %vm4978_vm12, %v4940_v50  ;;  %v4306_v50 = vrot.slane %v16110_v26, 4  ;;  %v4658_v28 = vsel %vm4590_vm2, %v4656_v1, %v4657_v56  ;;  %v4483_v43 = vsel %vm2379_vm1, %v4480_v61, %v4482_v10  ;;  %v4779_v61 = vsel %vm4767_vm7, %v11769_v19, %v16117_v25  ;;  %v16122_v1 = vld [vmem:[#allocation211_spill] sm:$0xff] }
 0x9c9   : > { %v4660_v62 = vsel %vm4590_vm2, %v4657_v56, %v4659_v27  ;;  %v4812_v46 = vsel %vm4800_vm14, %v4779_v61, %v16119_v11  ;;  %v16130_v27 = vld [vmem:[#allocation28_spill] sm:$0xff] }
 0x9ca   : > { %4368 = vrot.lane.b32.xlu2 %v4302_v7, %s8266_s14  ;;  %4544 = vrot.lane.b32.xlu1 %v4478_v54, %s8267_s15  ;;  %v4307_v16 = vsel %vm1603_vm6, %v4304_v23, %v4306_v50  ;;  %v16113_v7 = vld [vmem:[#allocation89_spill] sm:$0xff]  ;;  %v16114_v54 = vld [vmem:[#allocation119_spill] sm:$0xff]  ;;  %v16132_v61 = vld [vmem:[#allocation224_spill] sm:$0xff] }
 0x9cb   : > { %4719 = vrot.lane.b32.xlu0 %v4653_v21, %s8268_s16  ;;  %v4844_v51 = vsel %vm4833_vm8, %v4811_v40, %v16113_v7  ;;  %v4308_v9 = vrot.slane %v16114_v54, 4  ;;  %v16115_v23 = vld [vmem:[#allocation75_spill] sm:$0xff]  ;;  %v4661_v17 = vrot.slane %v16114_v54, 6  ;;  %v16127_v40 = vld [vmem:[#allocation94_spill] sm:$0xff] }
 0x9cc   : > { %v4690_v3 = vpop.permute.xlu1 %4689  ;;  %v4877_v44 = vsel %vm4866_vm15, %v4844_v51, %v13011_v41  ;;  %v16124_v50 = vrot.slane %v16115_v23, 6  ;;  %v16128_v51 = vld [vmem:[#allocation99_spill] sm:$0xff] }
 0x9cd   : > { %v4688_v36 = vpop.permute.xlu0 %4687  ;;  %v4942_v34 = vsel %vm4932_vm11, %v4909_v39, %v4690_v3  ;;  %v4910_v42 = vsel %vm4899_vm9, %v4877_v44, %v4515_v31  ;;  %v4696_v3 = vpop.permute.xlu2 %4695  ;;  %v16118_v31 = vrot.slane %v16115_v23, 5 }
 0x9ce   : > { %v4941_v18 = vsel %vm4932_vm11, %v4908_v30, %v4688_v36  ;;  %v4484_v30 = vrot.slane %v16114_v54, 5 }
 0x9d0   : > { %7833 = vmatmul.msk.f32.gmra.mxu3 %vm4978_vm12, %v4941_v18  ;;  %v16116_v18 = vrot.slane %v16115_v23, 4 }
 0x9d2   : > { %4370 = vrot.lane.b32.xlu2 %v4305_v57, %s8266_s14  ;;  %4546 = vrot.lane.b32.xlu1 %v4481_v15, %s8267_s15  ;;  %v4310_v41 = vsel %vm1603_vm6, %v4308_v9, %v16116_v18  ;;  %v4486_v57 = vsel %vm2379_vm1, %v4484_v30, %v16118_v31 }
 0x9d3   : > { %4721 = vrot.lane.b32.xlu0 %v4655_v24, %s8268_s16  ;;  %v16120_v24 = vld [vmem:[#allocation182_spill] sm:$0xff] }
 0x9d4   : > { %v4692_v49 = vpop.permute.xlu1 %4691  ;;  %v4845_v15 = vsel %vm4833_vm8, %v4812_v46, %v16120_v24 }
 0x9d5   : > { %v13177_v38 = vpop.permute.xlu0 %4348  ;;  %v4943_v36 = vsel %vm4932_vm11, %v4910_v42, %v4692_v49  ;;  %v4878_v19 = vsel %vm4866_vm15, %v4845_v15, %v13033_v0  ;;  %v16121_v49 = vld [vmem:[#allocation7_spill] sm:$0xff]  ;;  %v4698_v26 = vpop.permute.xlu2 %4697  ;;  %v16133_v15 = vld [vmem:[#allocation122_spill] sm:$0xff] }
 0x9d6   : > { %v4911_v47 = vsel %vm4899_vm9, %v4878_v19, %v4517_v63  ;;  %v4780_v39 = vsel %vm4767_vm7, %v11821_v58, %v16121_v49  ;;  %v4663_v63 = vsel %vm4590_vm2, %v4661_v17, %v16124_v50  ;;  %v16134_v19 = vld [vmem:[#allocation50_spill] sm:$0xff] }
 0x9d7   : > { %v4813_v56 = vsel %vm4800_vm14, %v4780_v39, %v16122_v1 }
 0x9d8   : > { %7834 = vmatmul.msk.f32.gmra.mxu3 %vm4978_vm12, %v4942_v34  ;;  %v16123_v34 = vld [vmem:[#allocation53_spill] sm:$0xff] }
 0x9d9   : > { %v4846_v0 = vsel %vm4833_vm8, %v4813_v56, %v16123_v34 }
 0x9da   : > { %4372 = vrot.lane.b32.xlu2 %v4307_v16, %s8266_s14  ;;  %4548 = vrot.lane.b32.xlu1 %v4483_v43, %s8267_s15  ;;  %v4879_v10 = vsel %vm4866_vm15, %v4846_v0, %v13059_v53  ;;  %v16126_v43 = vld [vmem:[#allocation29_spill] sm:$0xff] }
 0x9db   : > { %4723 = vrot.lane.b32.xlu0 %v4658_v28, %s8268_s16  ;;  %v16125_v28 = vld [vmem:[#allocation131_spill] sm:$0xff] }
 0x9dc   : > { %v4694_v21 = vpop.permute.xlu1 %4693  ;;  %v4781_v12 = vsel %vm4767_vm7, %v16126_v43, %v16125_v28 }
 0x9dd   : > { %v13201_v14 = vpop.permute.xlu0 %4350  ;;  %v4944_v60 = vsel %vm4932_vm11, %v4911_v47, %v4694_v21  ;;  %v4814_v7 = vsel %vm4800_vm14, %v4781_v12, %v16127_v40  ;;  %v4700_v21 = vpop.permute.xlu2 %4699  ;;  %v16135_v47 = vld [vmem:[#allocation221_spill] sm:$0xff]  ;;  %v16140_v40 = vld [vmem:[#allocation216_spill] sm:$0xff] }
 0x9de   : > { %v4847_v53 = vsel %vm4833_vm8, %v4814_v7, %v16128_v51 }
 0x9df   : > { %v4880_v44 = vsel %vm4866_vm15, %v4847_v53, %v13061_v13  ;;  %v16141_v53 = vld [vmem:[#allocation222_spill] sm:$0xff] }
 0x9e0   : > { %7835 = vmatmul.msk.f32.gmra.mxu3 %vm4978_vm12, %v4943_v36 }
 0x9e2   : > { %4374 = vrot.lane.b32.xlu2 %v4310_v41, %s8266_s14  ;;  %4550 = vrot.lane.b32.xlu1 %v4486_v57, %s8267_s15  ;;  %v16131_v41 = vld [vmem:[#allocation178_spill] sm:$0xff] }
 0x9e3   : > { %4725 = vrot.lane.b32.xlu0 %v4660_v62, %s8268_s16 }
 0x9e4   : > { %v13228_v35 = vpop.permute.xlu1 %4352 }
 0x9e5   : > { %v4519_v48 = vpop.permute.xlu0 %4518  ;;  %v13274_v46 = vpop.permute.xlu2 %4356 }
 0x9e6   : > { %v4912_v58 = vsel %vm4899_vm9, %v4879_v10, %v4519_v48  ;;  %v4783_v48 = vsel %vm4767_vm7, %v16134_v19, %v16133_v15 }
 0x9e7   : > { %v4945_v6 = vsel %vm4932_vm11, %v4912_v58, %v4696_v3  ;;  %v16129_v3 = vld [vmem:[#allocation172_spill] sm:$0xff]  ;;  %v4816_v17 = vsel %vm4800_vm14, %v4783_v48, %v16135_v47  ;;  %v16139_v58 = vld [vmem:[#allocation142_spill] sm:$0xff] }
 0x9e8   : > { %7836 = vmatmul.msk.f32.gmra.mxu3 %vm4978_vm12, %v4944_v60  ;;  %v4782_v18 = vsel %vm4767_vm7, %v16130_v27, %v16129_v3  ;;  %v16136_v60 = vld [vmem:[#allocation54_spill] sm:$0xff]  ;;  %v8269_v27 = vmov 0  }
 0x9e9   : > { %v4815_v25 = vsel %vm4800_vm14, %v4782_v18, %v16131_v41  ;;  %8037 = vset.pattern.permute.xlu0 %v8269_v27  ;;  %8038 = vset.pattern.permute.xlu2 %v8269_v27  ;;  %v16143_v18 = vld [vmem:[#allocation166_spill] sm:$0xff] }
 0x9ea   : > { %4727 = vrot.lane.b32.xlu1 %v4663_v63, %s8268_s16  ;;  %v4848_v62 = vsel %vm4833_vm8, %v4815_v25, %v16132_v61  ;;  %v16138_v63 = vld [vmem:[#allocation30_spill] sm:$0xff]  ;;  %v4786_v41 = vsel %vm4767_vm7, %v11968_v29, %v16143_v18  ;;  %v16144_v61 = vld [vmem:[#allocation48_spill] sm:$0xff] }
 0x9eb   : > { %v4881_v13 = vsel %vm4866_vm15, %v4848_v62, %v13092_v45  ;;  %v4849_v45 = vsel %vm4833_vm8, %v4816_v17, %v16136_v60  ;;  %8039 = vset.pattern.permute.xlu1 %v8269_v27  ;;  %v4819_v62 = vsel %vm4800_vm14, %v4786_v41, %v16144_v61  ;;  %v16146_v17 = vld [vmem:[#allocation91_spill] sm:$0xff] }
 0x9ec   : > { %v13248_v59 = vpop.permute.xlu1 %4354  ;;  %v4882_v49 = vsel %vm4866_vm15, %v4849_v45, %v13177_v38  ;;  %v4787_v60 = vsel %vm4767_vm7, %v11965_v37, %v16146_v17 }
 0x9ed   : > { %v4521_v16 = vpop.permute.xlu0 %4520  ;;  %v13289_v0 = vpop.permute.xlu2 %4358 }
 0x9ee   : > { %v4913_v9 = vsel %vm4899_vm9, %v4880_v44, %v4521_v16 }
 0x9ef   : > { %v4946_v36 = vsel %vm4932_vm11, %v4913_v9, %v4698_v26  ;;  %v16137_v26 = vld [vmem:[#allocation173_spill] sm:$0xff] }
 0x9f0   : > { %7837 = vmatmul.msk.f32.gmra.mxu3 %vm4978_vm12, %v4945_v6  ;;  %v4784_v50 = vsel %vm4767_vm7, %v11919_v22, %v16137_v26  ;;  %v4785_v22 = vsel %vm4767_vm7, %v11916_v55, %v16140_v40  ;;  %v16142_v9 = vld [vmem:[#allocation225_spill] sm:$0xff]  ;;  %v16149_v40 = vld [vmem:[#allocation82_spill] sm:$0xff] }
 0x9f1   : > { %v4817_v10 = vsel %vm4800_vm14, %v4784_v50, %v16138_v63  ;;  %v4818_v44 = vsel %vm4800_vm14, %v4785_v22, %v16141_v53 }
 0x9f2   : > { %v4850_v38 = vsel %vm4833_vm8, %v4817_v10, %v16139_v58 }
 0x9f3   : > { %v4883_v16 = vsel %vm4866_vm15, %v4850_v38, %v13201_v14  ;;  %v4851_v14 = vsel %vm4833_vm8, %v4818_v44, %v16142_v9 }
 0x9f4   : > { %v4525_v30 = vpop.permute.xlu1 %4524 }
 0x9f5   : > { %v4523_v42 = vpop.permute.xlu0 %4522  ;;  %v4915_v56 = vsel %vm4899_vm9, %v4882_v49, %v4525_v30  ;;  %v4531_v7 = vpop.permute.xlu2 %4530 }
 0x9f6   : > { %v4914_v31 = vsel %vm4899_vm9, %v4881_v13, %v4523_v42  ;;  %v4884_v42 = vsel %vm4866_vm15, %v4851_v14, %v13228_v35  ;;  %v16151_v14 = vld [vmem:[#allocation55_spill] sm:$0xff] }
 0x9f7   : > { %v4947_v24 = vsel %vm4932_vm11, %v4914_v31, %v4700_v21  ;;  %v16145_v31 = vld [vmem:[#allocation143_spill] sm:$0xff] }
 0x9f8   : > { %7838 = vmatmul.msk.f32.gmra.mxu3 %vm4978_vm12, %v4946_v36 }
 0x9fc   : > { %v4527_v11 = vpop.permute.xlu1 %4526 }
 0x9fd   : > { %v4702_v57 = vpop.permute.xlu0 %4701  ;;  %v4916_v43 = vsel %vm4899_vm9, %v4883_v16, %v4527_v11  ;;  %v4533_v11 = vpop.permute.xlu2 %4532 }
 0x9fe   : > { %v4948_v34 = vsel %vm4932_vm11, %v4915_v56, %v4702_v57  ;;  %v4852_v57 = vsel %vm4833_vm8, %v4819_v62, %v16145_v31  ;;  %v16152_v62 = vld [vmem:[#allocation208_spill] sm:$0xff] }
 0x9ff   : > { %v4885_v15 = vsel %vm4866_vm15, %v4852_v57, %v13248_v59 }
 0xa00   : > { %7839 = vmatmul.msk.f32.gmra.mxu3 %vm4978_vm12, %v4947_v24  ;;  %v4918_v19 = vsel %vm4899_vm9, %v4885_v15, %v4531_v7  ;;  %v16154_v15 = vld [vmem:[#allocation185_spill] sm:$0xff] }
 0xa04   : > { %v4529_v1 = vpop.permute.xlu1 %4528 }
 0xa05   : > { %v4704_v39 = vpop.permute.xlu0 %4703  ;;  %v4917_v36 = vsel %vm4899_vm9, %v4884_v42, %v4529_v1  ;;  %v4535_v37 = vpop.permute.xlu2 %4534 }
 0xa06   : > { %v4949_v12 = vsel %vm4932_vm11, %v4916_v43, %v4704_v39  ;;  %v16147_v39 = vld [vmem:[#allocation32_spill] sm:$0xff] }
 0xa07   : > { %v4820_v59 = vsel %vm4800_vm14, %v4787_v60, %v16147_v39 }
 0xa08   : > { %7840 = vmatmul.msk.f32.gmra.mxu3 %vm4978_vm12, %v4948_v34  ;;  %v16148_v34 = vld [vmem:[#allocation184_spill] sm:$0xff] }
 0xa09   : > { %v4853_v26 = vsel %vm4833_vm8, %v4820_v59, %v16148_v34 }
 0xa0a   : > { %v4886_v63 = vsel %vm4866_vm15, %v4853_v26, %v13274_v46  ;;  %v4788_v46 = vsel %vm4767_vm7, %v12017_v33, %v16149_v40 }
 0xa0b   : > { %v4919_v58 = vsel %vm4899_vm9, %v4886_v63, %v4533_v11 }
 0xa0c   : > { %v4708_v28 = vpop.permute.xlu1 %4707 }
 0xa0d   : > { %v4706_v6 = vpop.permute.xlu0 %4705  ;;  %v4951_v48 = vsel %vm4932_vm11, %v4918_v19, %v4708_v28  ;;  %v4714_v31 = vpop.permute.xlu2 %4713 }
 0xa0e   : > { %v4950_v55 = vsel %vm4932_vm11, %v4917_v36, %v4706_v6 }
 0xa10   : > { %7841 = vmatmul.msk.f32.gmra.mxu3 %vm4978_vm12, %v4949_v12 }
 0xa11   : > { %v5095_v51 = vpop.f32.mrf.mxu3 }
 0xa12   : > { %v7857_v21 = vmul.f32 -1.442695, %v5095_v51  ;;  %v16150_v51 = vld [vmem:[#allocation86_spill] sm:$0xff] }
 0xa13   : > { %v4821_v53 = vsel %vm4800_vm14, %v4788_v46, %v16150_v51  ;;  %v16158_v46 = vld [vmem:[#allocation227_spill] sm:$0xff]  ;;  %v16159_v51 = vld [vmem:[#allocation84_spill] sm:$0xff] }
 0xa14   : > { %8117 = vpow2.f32 %v7857_v21  ;;  %v4710_v30 = vpop.permute.xlu1 %4709  ;;  %v4854_v42 = vsel %vm4833_vm8, %v4821_v53, %v16151_v14  ;;  %v16160_v53 = vld [vmem:[#allocation163_spill] sm:$0xff] }
 0xa15   : > { %v13314_v3 = vpop.permute.xlu0 %4360  ;;  %v4952_v38 = vsel %vm4932_vm11, %v4919_v58, %v4710_v30  ;;  %v4887_v33 = vsel %vm4866_vm15, %v4854_v42, %v13289_v0  ;;  %v16153_v0 = vld [vmem:[#allocation96_spill] sm:$0xff] }
 0xa16   : > { %v4920_v41 = vsel %vm4899_vm9, %v4887_v33, %v4535_v37  ;;  %v16156_v37 = vld [vmem:[#allocation9_spill] sm:$0xff] }
 0xa18   : > { %7842 = vmatmul.msk.f32.gmra.mxu3 %vm4978_vm12, %v4950_v55 }
 0xa19   : > { %v5098_v25 = vpop.f32.mrf.mxu3 }
 0xa1a   : > { %v8118_v35 = vpop.eup %8117  ;;  %v7858_v13 = vmul.f32 -1.442695, %v5098_v25 }
 0xa1b   : > { %v5287_v24 = vadd.f32 1.0, %v8118_v35 }
 0xa1c   : > { %8119 = vpow2.f32 %v7858_v13  ;;  %v4712_v29 = vpop.permute.xlu1 %4711  ;;  %v4789_v13 = vsel %vm4767_vm7, %v12014_v2, %v16152_v62 }
 0xa1d   : > { %8121 = vrcp.f32 %v5287_v24  ;;  %v13329_v47 = vpop.permute.xlu0 %4362  ;;  %v5330_v28 = vand.u32 2147483648, %v5287_v24  ;;  %v5328_v12 = vand.u32 2147483647, %v5287_v24  ;;  %vm5324_vm3 = vweird.f32 %v5287_v24 }
 0xa1e   : > { %v4953_v35 = vsel %vm4932_vm11, %v4920_v41, %v4712_v29  ;;  %v4822_v57 = vsel %vm4800_vm14, %v4789_v13, %v16153_v0  ;;  %v16161_v13 = vld [vmem:[#allocation90_spill] sm:$0xff]  ;;  %v16162_v0 = vld [vmem:[#allocation31_spill] sm:$0xff] }
 0xa1f   : > { %v5331_v55 = vor.u32 1.1754944e-38, %v5330_v28  ;;  %vm5329_vm5 = vcmp.eq.f32.partialorder %v5328_v12, 8.507059e+37  ;;  %v4855_v19 = vsel %vm4833_vm8, %v4822_v57, %v16154_v15  ;;  %v16157_v28 = vld [vmem:[#allocation137_spill] sm:$0xff] }
 0xa20   : > { %7843 = vmatmul.msk.f32.gmra.mxu3 %vm4978_vm12, %v4951_v48  ;;  %v4888_v2 = vsel %vm4866_vm15, %v4855_v19, %v13314_v3  ;;  %v16155_v3 = vld [vmem:[#allocation128_spill] sm:$0xff] }
 0xa21   : > { %v5101_v45 = vpop.f32.mrf.mxu3 }
 0xa22   : > { %v8120_v49 = vpop.eup %8119  ;;  %v7859_v1 = vmul.f32 -1.442695, %v5101_v45 }
 0xa23   : > { %v8122_v56 = vpop.eup %8121  ;;  %v13339_v50 = vadd.f32 1.0, %v8120_v49 }
 0xa24   : > { %8123 = vpow2.f32 %v7859_v1  ;;  %v5320_v10 = vmul.f32 %v8122_v56, %v5287_v24  ;;  %v13346_v6 = vpop.permute.xlu1 %4364  ;;  %vm5325_vm13 = vweird.f32 %v8122_v56 }
 0xa25   : > { %8125 = vrcp.f32 %v13339_v50  ;;  %v4537_v22 = vpop.permute.xlu0 %4536  ;;  %vm5326_vm4 = vmor %vm5324_vm3, %vm5325_vm13  ;;  %v5345_v24 = vand.u32 2147483648, %v13339_v50  ;;  %v5343_v48 = vand.u32 2147483647, %v13339_v50 }
 0xa26   : > { %v5321_v16 = vsub.f32 1.0, %v5320_v10  ;;  %v4921_v49 = vsel %vm4899_vm9, %v4888_v2, %v4537_v22 }
 0xa27   : > { %v5346_v34 = vor.u32 1.1754944e-38, %v5345_v24  ;;  %vm5344_vm3 = vcmp.eq.f32.partialorder %v5343_v48, 8.507059e+37  ;;  %v16163_v24 = vld [vmem:[#allocation132_spill] sm:$0xff] }
 0xa28   : > { %7844 = vmatmul.msk.f32.gmra.mxu3 %vm4978_vm12, %v4952_v38  ;;  %v5322_v43 = vmul.f32 %v8122_v56, %v5321_v16  ;;  %v4790_v38 = vsel %vm4767_vm7, %v12078_v20, %v16156_v37  ;;  %v4313_v20 = vrot.slane %v16159_v51, 4 }
 0xa2a   : > { %v8124_v7 = vpop.eup %8123  ;;  %v5323_v21 = vadd.f32 %v8122_v56, %v5322_v43  ;;  %v4823_v43 = vsel %vm4800_vm14, %v4790_v38, %v16157_v28  ;;  %v4489_v38 = vrot.slane %v16159_v51, 5 }
 0xa2b   : > { %v5104_v44 = vpop.f32.mrf.mxu3  ;;  %v8126_v9 = vpop.eup %8125  ;;  %v13356_v30 = vadd.f32 1.0, %v8124_v7  ;;  %v4856_v22 = vsel %vm4833_vm8, %v4823_v43, %v16158_v46 }
 0xa2c   : > { %v7860_v36 = vmul.f32 -1.442695, %v5104_v44  ;;  %v5327_v27 = vsel %vm5326_vm4, %v8122_v56, %v5323_v21  ;;  %v5335_v18 = vmul.f32 %v8126_v9, %v13339_v50  ;;  %vm5340_vm4 = vweird.f32 %v8126_v9  ;;  %v13373_v29 = vpop.permute.xlu1 %4366  ;;  %v4716_v7 = vpop.permute.xlu2 %4715 }
 0xa2d   : > { %8127 = vrcp.f32 %v13356_v30  ;;  %v5332_v25 = vsel %vm5329_vm5, %v5331_v55, %v5327_v27  ;;  %vm5339_vm5 = vweird.f32 %v13339_v50  ;;  %v4539_v39 = vpop.permute.xlu0 %4538  ;;  %v4954_v50 = vsel %vm4932_vm11, %v4921_v49, %v4714_v31 }
 0xa2e   : > { %8129 = vpow2.f32 %v7860_v36  ;;  %5801 = vperm.xlu0 %8037, %v5332_v25   ;;  %v5336_v61 = vsub.f32 1.0, %v5335_v18  ;;  %vm5341_vm13 = vmor %vm5339_vm5, %vm5340_vm4  ;;  %v5360_v16 = vand.u32 2147483648, %v13356_v30  ;;  %v5358_v40 = vand.u32 2147483647, %v13356_v30 }
 0xa2f   : > { %v4314_v44 = vrot.slane %v16160_v53, 4  ;;  %v4889_v21 = vsel %vm4866_vm15, %v4856_v22, %v13329_v47  ;;  %vm5354_vm5 = vweird.f32 %v13356_v30  ;;  %v4791_v31 = vsel %vm4767_vm7, %v12075_v4, %v16161_v13 }
 0xa30   : > { %7845 = vmatmul.msk.f32.gmra.mxu3 %vm4978_vm12, %v4953_v35  ;;  %v5337_v11 = vmul.f32 %v8126_v9, %v5336_v61  ;;  %v4922_v36 = vsel %vm4899_vm9, %v4889_v21, %v4539_v39  ;;  %v5361_v27 = vor.u32 1.1754944e-38, %v5360_v16  ;;  %v4824_v57 = vsel %vm4800_vm14, %v4791_v31, %v16162_v0  ;;  %v16168_v31 = vld [vmem:[#allocation169_spill] sm:$0xff] }
 0xa31   : > { %v4315_v47 = vsel %vm1603_vm6, %v4313_v20, %v4314_v44  ;;  %v4955_v61 = vsel %vm4932_vm11, %v4922_v36, %v4716_v7  ;;  %v4857_v15 = vsel %vm4833_vm8, %v4824_v57, %v16163_v24  ;;  %v4490_v16 = vrot.slane %v16160_v53, 5  ;;  %v16166_v20 = vld [vmem:[#allocation171_spill] sm:$0xff]  ;;  %v16167_v36 = vld [vmem:[#allocation228_spill] sm:$0xff] }
 0xa32   : > { %v5338_v60 = vadd.f32 %v8126_v9, %v5337_v11  ;;  %v4890_v48 = vsel %vm4866_vm15, %v4857_v15, %v13346_v6  ;;  %v16169_v15 = vld [vmem:[#allocation4_spill] sm:$0xff] }
 0xa33   : > { %v5107_v17 = vpop.f32.mrf.mxu3  ;;  %v8128_v45 = vpop.eup %8127 }
 0xa34   : > { %v7861_v59 = vmul.f32 -1.442695, %v5107_v17  ;;  %v8130_v1 = vpop.eup %8129  ;;  %v5342_v56 = vsel %vm5341_vm13, %v8126_v9, %v5338_v60  ;;  %v5350_v26 = vmul.f32 %v8128_v45, %v13356_v30  ;;  %vm5355_vm4 = vweird.f32 %v8128_v45  ;;  %v13403_v55 = vpop.permute.xlu1 %4542 }
 0xa35   : > { %v13381_v63 = vadd.f32 1.0, %v8130_v1  ;;  %v5347_v10 = vsel %vm5344_vm3, %v5346_v34, %v5342_v56  ;;  %vm5356_vm13 = vmor %vm5354_vm5, %vm5355_vm4  ;;  %vm5359_vm3 = vcmp.eq.f32.partialorder %v5358_v40, 8.507059e+37  ;;  %v4541_v35 = vpop.permute.xlu0 %4540  ;;  %v16165_v40 = vld [vmem:[#allocation215_spill] sm:$0xff] }
 0xa36   : > { %8131 = vpow2.f32 %v7861_v59  ;;  %4376 = vrot.lane.b32.xlu0 %v16155_v3, %s8266_s14  ;;  %v5351_v58 = vsub.f32 1.0, %v5350_v26  ;;  %5806 = vperm.xlu2 %8038, %v5347_v10   ;;  %v4923_v49 = vsel %vm4899_vm9, %v4890_v48, %v4541_v35  ;;  %v4792_v46 = vsel %vm4767_vm7, %v16019_v5, %v16165_v40 }
 0xa37   : > { %8133 = vrcp.f32 %v13381_v63  ;;  %v5375_v19 = vand.u32 2147483648, %v13381_v63  ;;  %v5373_v4 = vand.u32 2147483647, %v13381_v63  ;;  %vm5369_vm5 = vweird.f32 %v13381_v63 }
 0xa38   : > { %7846 = vmatmul.msk.f32.gmra.mxu3 %vm4978_vm12, %v4954_v50  ;;  %v5352_v12 = vmul.f32 %v8128_v45, %v5351_v58  ;;  %v16164_v58 = vld [vmem:[#allocation205_spill] sm:$0xff]  ;;  %v4825_v21 = vsel %vm4800_vm14, %v4792_v46, %v16166_v20  ;;  %v4666_v48 = vrot.slane %v16159_v51, 6  ;;  %v16174_v46 = vld [vmem:[#allocation139_spill] sm:$0xff]  ;;  %v16175_v20 = vld [vmem:[#allocation174_spill] sm:$0xff] }
 0xa39   : > { %v5376_v6 = vor.u32 1.1754944e-38, %v5375_v19  ;;  %v4793_v19 = vsel %vm4767_vm7, %v12145_v52, %v16169_v15  ;;  %v16180_v15 = vld [vmem:[#allocation58_spill] sm:$0xff] }
 0xa3a   : > { %v5353_v14 = vadd.f32 %v8128_v45, %v5352_v12 }
 0xa3b   : > { %v5110_v9 = vpop.f32.mrf.mxu3 }
 0xa3c   : > { %v8132_v42 = vpop.eup %8131  ;;  %v7862_v33 = vmul.f32 -1.442695, %v5110_v9  ;;  %v5357_v41 = vsel %vm5356_vm13, %v8128_v45, %v5353_v14  ;;  %v4718_v45 = vpop.permute.xlu2 %4717 }
 0xa3d   : > { %v13405_v18 = vadd.f32 1.0, %v8132_v42  ;;  %v8134_v25 = vpop.eup %8133  ;;  %v5362_v30 = vsel %vm5359_vm3, %v5361_v27, %v5357_v41  ;;  %v13430_v34 = vpop.permute.xlu1 %4544  ;;  %vm5374_vm3 = vcmp.eq.f32.partialorder %v5373_v4, 8.507059e+37  ;;  %v4956_v10 = vsel %vm4932_vm11, %v4923_v49, %v4718_v45  ;;  %v16171_v45 = vld [vmem:[#allocation179_spill] sm:$0xff] }
 0xa3e   : > { %8135 = vpow2.f32 %v7862_v33  ;;  %4378 = vrot.lane.b32.xlu0 %v4315_v47, %s8266_s14  ;;  %v5365_v62 = vmul.f32 %v8134_v25, %v13381_v63  ;;  %5811 = vperm.xlu2 %8038, %v5362_v30   ;;  %vm5370_vm4 = vweird.f32 %v8134_v25  ;;  %v4720_v50 = vpop.permute.xlu0 %4719  ;;  %v4858_v33 = vsel %vm4833_vm8, %v4825_v21, %v16167_v36 }
 0xa3f   : > { %8137 = vrcp.f32 %v13405_v18  ;;  %vm5371_vm13 = vmor %vm5369_vm5, %vm5370_vm4  ;;  %v5390_v28 = vand.u32 2147483648, %v13405_v18  ;;  %v5388_v12 = vand.u32 2147483647, %v13405_v18  ;;  %vm5384_vm5 = vweird.f32 %v13405_v18 }
 0xa40   : > { %7847 = vmatmul.msk.f32.gmra.mxu3 %vm4978_vm12, %v4955_v61  ;;  %v5366_v11 = vsub.f32 1.0, %v5365_v62  ;;  %v4491_v41 = vsel %vm2379_vm1, %v4489_v38, %v4490_v16  ;;  %v4891_v35 = vsel %vm4866_vm15, %v4858_v33, %v13373_v29  ;;  %v4826_v49 = vsel %vm4800_vm14, %v4793_v19, %v16171_v45 }
 0xa42   : > { %v5367_v17 = vmul.f32 %v8134_v25, %v5366_v11 }
 0xa43   : > { %v5113_v2 = vpop.f32.mrf.mxu3 }
 0xa44   : > { %v8136_v60 = vpop.eup %8135  ;;  %v7863_v39 = vmul.f32 -1.442695, %v5113_v2  ;;  %v5368_v56 = vadd.f32 %v8134_v25, %v5367_v17  ;;  %v4369_v5 = vpop.permute.xlu2 %4368  ;;  %v4667_v2 = vrot.slane %v16160_v53, 6  ;;  %v16170_v17 = vld [vmem:[#allocation127_spill] sm:$0xff] }
 0xa45   : > { %v8138_v59 = vpop.eup %8137  ;;  %v13427_v1 = vadd.f32 1.0, %v8136_v60  ;;  %v4547_v13 = vpop.permute.xlu1 %4546  ;;  %v4492_v4 = vrot.slane %v16170_v17, 5 }
 0xa46   : > { %8139 = vpow2.f32 %v7863_v39  ;;  %v5380_v26 = vmul.f32 %v8138_v59, %v13405_v18  ;;  %v5372_v3 = vsel %vm5371_vm13, %v8134_v25, %v5368_v56  ;;  %4552 = vrot.lane.b32.xlu2 %v16164_v58, %s8267_s15  ;;  %vm5385_vm4 = vweird.f32 %v8138_v59  ;;  %v4722_v0 = vpop.permute.xlu0 %4721  ;;  %v16172_v56 = vld [vmem:[#allocation103_spill] sm:$0xff] }
 0xa47   : > { %8141 = vrcp.f32 %v13427_v1  ;;  %v5377_v37 = vsel %vm5374_vm3, %v5376_v6, %v5372_v3  ;;  %vm5386_vm13 = vmor %vm5384_vm5, %vm5385_vm4  ;;  %v5391_v25 = vor.u32 1.1754944e-38, %v5390_v28  ;;  %vm5389_vm3 = vcmp.eq.f32.partialorder %v5388_v12, 8.507059e+37 }
 0xa48   : > { %7848 = vmatmul.msk.f32.gmra.mxu3 %vm4978_vm12, %v4956_v10  ;;  %v5381_v63 = vsub.f32 1.0, %v5380_v26  ;;  %5816 = vperm.xlu1 %8039, %v5377_v37   ;;  %v4924_v18 = vsel %vm4899_vm9, %v4891_v35, %v13403_v55  ;;  %v5405_v55 = vand.u32 2147483648, %v13427_v1  ;;  %v5403_v11 = vand.u32 2147483647, %v13427_v1 }
 0xa49   : > { %v4957_v62 = vsel %vm4932_vm11, %v4924_v18, %v4720_v50  ;;  %vm5399_vm5 = vweird.f32 %v13427_v1  ;;  %v4859_v6 = vsel %vm4833_vm8, %v4826_v49, %v16172_v56  ;;  %v4493_v52 = vsel %vm2379_vm1, %v4490_v16, %v4492_v4 }
 0xa4a   : > { %v5382_v43 = vmul.f32 %v8138_v59, %v5381_v63  ;;  %v5406_v26 = vor.u32 1.1754944e-38, %v5405_v55  ;;  %v4892_v10 = vsel %vm4866_vm15, %v4859_v6, %v4369_v5  ;;  %v4668_v37 = vsel %vm4590_vm2, %v4666_v48, %v4667_v2  ;;  %v16182_v6 = vld [vmem:[#allocation97_spill] sm:$0xff] }
 0xa4b   : > { %v5116_v22 = vpop.f32.mrf.mxu3 }
 0xa4c   : > { %v8140_v7 = vpop.eup %8139  ;;  %v7864_v9 = vmul.f32 -1.442695, %v5116_v22  ;;  %v5383_v14 = vadd.f32 %v8138_v59, %v5382_v43  ;;  %v4371_v58 = vpop.permute.xlu2 %4370  ;;  %v16173_v43 = vld [vmem:[#allocation134_spill] sm:$0xff] }
 0xa4d   : > { %v8142_v42 = vpop.eup %8141  ;;  %v13450_v27 = vadd.f32 1.0, %v8140_v7  ;;  %v4549_v28 = vpop.permute.xlu1 %4548  ;;  %v4794_v12 = vsel %vm4767_vm7, %v12219_v8, %v16173_v43 }
 0xa4e   : > { %8143 = vpow2.f32 %v7864_v9  ;;  %v5387_v47 = vsel %vm5386_vm13, %v8138_v59, %v5383_v14  ;;  %v5395_v61 = vmul.f32 %v8142_v42, %v13427_v1  ;;  %4554 = vrot.lane.b32.xlu2 %v4491_v41, %s8267_s15  ;;  %vm5400_vm4 = vweird.f32 %v8142_v42  ;;  %v4724_v40 = vpop.permute.xlu0 %4723 }
 0xa4f   : > { %8145 = vrcp.f32 %v13450_v27  ;;  %v5392_v30 = vsel %vm5389_vm3, %v5391_v25, %v5387_v47  ;;  %vm5401_vm13 = vmor %vm5399_vm5, %vm5400_vm4  ;;  %vm5404_vm3 = vcmp.eq.f32.partialorder %v5403_v11, 8.507059e+37  ;;  %v4925_v1 = vsel %vm4899_vm9, %v4892_v10, %v13430_v34 }
 0xa50   : > { %5821 = vperm.xlu0 %8037, %v5392_v30   ;;  %4729 = vrot.lane.b32.xlu1 %v16168_v31, %s8268_s16  ;;  %v5396_v29 = vsub.f32 1.0, %v5395_v61  ;;  %v4958_v38 = vsel %vm4932_vm11, %v4925_v1, %v4722_v0  ;;  %v4827_v22 = vsel %vm4800_vm14, %v4794_v12, %v16174_v46  ;;  %v4316_v9 = vrot.slane %v16170_v17, 4 }
 0xa51   : > { %7849 = vmatmul.msk.f32.gmra.mxu3 %vm4978_vm12, %v4957_v62  ;;  %v4860_v21 = vsel %vm4833_vm8, %v4827_v22, %v16175_v20  ;;  %v4669_v14 = vrot.slane %v16170_v17, 6  ;;  %v5418_v62 = vand.u32 2147483647, %v13450_v27 }
 0xa52   : > { %v5397_v57 = vmul.f32 %v8142_v42, %v5396_v29  ;;  %v4893_v36 = vsel %vm4866_vm15, %v4860_v21, %v4371_v58  ;;  %v4317_v33 = vsel %vm1603_vm6, %v4314_v44, %v4316_v9  ;;  %v5420_v44 = vand.u32 2147483648, %v13450_v27  ;;  %v16184_v9 = vld [vmem:[#allocation33_spill] sm:$0xff] }
 0xa53   : > { %v4926_v8 = vsel %vm4899_vm9, %v4893_v36, %v4547_v13  ;;  %v4670_v41 = vsel %vm4590_vm2, %v4667_v2, %v4669_v14  ;;  %vm5414_vm2 = vweird.f32 %v13450_v27  ;;  %v16176_v13 = vld [vmem:[#allocation8_spill] sm:$0xff] }
 0xa54   : > { %v8144_v24 = vpop.eup %8143  ;;  %v5398_v59 = vadd.f32 %v8142_v42, %v5397_v57  ;;  %v4959_v5 = vsel %vm4932_vm11, %v4926_v8, %v4724_v40  ;;  %v4373_v18 = vpop.permute.xlu2 %4372  ;;  %v4795_v31 = vsel %vm4767_vm7, %v16106_v32, %v16176_v13  ;;  %v16179_v57 = vld [vmem:[#allocation140_spill] sm:$0xff]  ;;  %v5421_v48 = vor.u32 1.1754944e-38, %v5420_v44 }
 0xa55   : > { %v13472_v60 = vpop.eup %8145  ;;  %v13476_v39 = vadd.f32 1.0, %v8144_v24  ;;  %v4551_v29 = vpop.permute.xlu1 %4550  ;;  %v4828_v11 = vsel %vm4800_vm14, %v4795_v31, %v16179_v57 }
 0xa56   : > { %v5410_v3 = vmul.f32 %v13472_v60, %v13450_v27  ;;  %v5402_v50 = vsel %vm5401_vm13, %v8142_v42, %v5398_v59  ;;  %vm5415_vm1 = vweird.f32 %v13472_v60  ;;  %v4861_v32 = vsel %vm4833_vm8, %v4828_v11, %v16180_v15  ;;  %v4726_v19 = vpop.permute.xlu0 %4725 }
 0xa57   : > { %8147 = vrcp.f32 %v13476_v39  ;;  %v5407_v63 = vsel %vm5404_vm3, %v5406_v26, %v5402_v50  ;;  %v5435_v47 = vand.u32 2147483648, %v13476_v39  ;;  %v5433_v61 = vand.u32 2147483647, %v13476_v39  ;;  %vm13524_vm4 = vmor %vm5414_vm2, %vm5415_vm1  ;;  %v5119_v26 = vpop.f32.mrf.mxu3 }
 0xa58   : > { %4556 = vrot.lane.b32.xlu0 %v4493_v52, %s8267_s15  ;;  %4731 = vrot.lane.b32.xlu1 %v4668_v37, %s8268_s16  ;;  %v5411_v16 = vsub.f32 1.0, %v5410_v3  ;;  %vm5429_vm5 = vweird.f32 %v13476_v39  ;;  %v4894_v17 = vsel %vm4866_vm15, %v4861_v32, %v4373_v18  ;;  %vm5419_vm1 = vcmp.eq.f32.partialorder %v5418_v62, 8.507059e+37  ;;  %v16183_v3 = vld [vmem:[#allocation92_spill] sm:$0xff]  ;;  %s8271_s15 = smov 32  }
 0xa59   : > { %5826 = vperm.xlu2 %8038, %v5407_v63   ;;  %7850 = vmatmul.msk.f32.gmra.mxu3 %vm4978_vm12, %v4958_v38  ;;  %v5436_v27 = vor.u32 1.1754944e-38, %v5435_v47  ;;  %vm5434_vm3 = vcmp.eq.f32.partialorder %v5433_v61, 8.507059e+37  ;;  %v4927_v45 = vsel %vm4899_vm9, %v4894_v17, %v4549_v28 }
 0xa5a   : > { %v5412_v7 = vmul.f32 %v13472_v60, %v5411_v16 }
 0xa5c   : > { %v5413_v35 = vadd.f32 %v13472_v60, %v5412_v7  ;;  %v4375_v56 = vpop.permute.xlu2 %4374 }
 0xa5d   : > { %v8148_v34 = vpop.eup %8147  ;;  %v4728_v50 = vpop.permute.xlu1 %4727 }
 0xa5e   : > { %v5425_v42 = vmul.f32 %v8148_v34, %v13476_v39  ;;  %vm5430_vm6 = vweird.f32 %v8148_v34  ;;  %v5417_v24 = vsel %vm13524_vm4, %v13472_v60, %v5413_v35  ;;  %v4960_v39 = vsel %vm4932_vm11, %v4927_v45, %v4726_v19  ;;  %v16181_v60 = vld [vmem:[#allocation133_spill] sm:$0xff] }
 0xa5f   : > { %vm5431_vm13 = vmor %vm5429_vm5, %vm5430_vm6  ;;  %v5422_v49 = vsel %vm5419_vm1, %v5421_v48, %v5417_v24  ;;  %v4796_v59 = vsel %vm4767_vm7, %v16114_v54, %v16181_v60  ;;  %v5122_v63 = vpop.f32.mrf.mxu3  ;;  %v7865_v54 = vmul.f32 -1.442695, %v5119_v26 }
 0xa60   : > { %v5426_v25 = vsub.f32 1.0, %v5425_v42  ;;  %4380 = vrot.lane.b32.xlu1 %v4317_v33, %s8266_s14  ;;  %v4829_v52 = vsel %vm4800_vm14, %v4796_v59, %v16182_v6  ;;  %v7866_v38 = vmul.f32 -1.442695, %v5122_v63  ;;  %s8270_s14 = smov 64   ;;  %v16188_v63 = vld [vmem:[#allocation175_spill] sm:$0xff] }
 0xa61   : > { %4733 = vrot.lane.b32.xlu2 %v4670_v41, %s8268_s16  ;;  %7851 = vmatmul.msk.f32.gmra.mxu3 %vm4978_vm12, %v4959_v5  ;;  %v4862_v10 = vsel %vm4833_vm8, %v4829_v52, %v16183_v3  ;;  %v16185_v5 = vld [vmem:[#allocation10_spill] sm:$0xff]  ;;  %s8272_s16 = smov 96  }
 0xa62   : > { %v5427_v30 = vmul.f32 %v8148_v34, %v5426_v25  ;;  %v4895_v58 = vsel %vm4866_vm15, %v4862_v10, %v4375_v56  ;;  %8149 = vpow2.f32 %v7866_v38  ;;  %v4797_v38 = vsel %vm4767_vm7, %v16115_v23, %v16188_v63 }
 0xa63   : > { %v4928_v1 = vsel %vm4899_vm9, %v4895_v58, %v4551_v29  ;;  %8151 = vpow2.f32 %v7865_v54 }
 0xa64   : > { %v5428_v55 = vadd.f32 %v8148_v34, %v5427_v30  ;;  %v4961_v37 = vsel %vm4932_vm11, %v4928_v1, %v4728_v50  ;;  %v16186_v30 = vld [vmem:[#allocation11_spill] sm:$0xff]  ;;  %v16187_v1 = vld [vmem:[#allocation34_spill] sm:$0xff] }
 0xa66   : > { %v5432_v2 = vsel %vm5431_vm13, %v8148_v34, %v5428_v55 }
 0xa67   : > { %v5437_v4 = vsel %vm5434_vm3, %v5436_v27, %v5432_v2  ;;  %v5125_v22 = vpop.f32.mrf.mxu3 }
 0xa68   : > { %5836 = vperm.xlu0 %8037, %v5437_v4   ;;  %5831 = vperm.xlu1 %8039, %v5422_v49   ;;  %v8150_v16 = vpop.eup %8149  ;;  %v7867_v2 = vmul.f32 -1.442695, %v5125_v22 }
 0xa69   : > { %7852 = vmatmul.msk.f32.gmra.mxu3 %vm4978_vm12, %v4960_v39  ;;  %v5296_v28 = vadd.f32 1.0, %v8150_v16  ;;  %v8152_v43 = vpop.eup %8151  ;;  %v16189_v16 = vld [vmem:[#allocation214_spill] sm:$0xff] }
 0xa6a   : > { %v5295_v12 = vadd.f32 1.0, %v8152_v43 }
 0xa6b   : > { %8153 = vrcp.f32 %v5296_v28  ;;  %v5465_v44 = vand.u32 2147483648, %v5296_v28  ;;  %vm5459_vm2 = vweird.f32 %v5296_v28  ;;  %v5463_v62 = vand.u32 2147483647, %v5296_v28 }
 0xa6c   : > { %8155 = vrcp.f32 %v5295_v12  ;;  %v5450_v32 = vand.u32 2147483648, %v5295_v12  ;;  %vm5444_vm3 = vweird.f32 %v5295_v12  ;;  %v5448_v19 = vand.u32 2147483647, %v5295_v12 }
 0xa6d   : > { %v5466_v57 = vor.u32 1.1754944e-38, %v5465_v44  ;;  %vm5464_vm5 = vcmp.eq.f32.partialorder %v5463_v62, 8.507059e+37 }
 0xa6e   : > { %v5451_v4 = vor.u32 1.1754944e-38, %v5450_v32 }
 0xa6f   : > { %v5128_v25 = vpop.f32.mrf.mxu3 }
 0xa70   : > { %v7868_v13 = vmul.f32 -1.442695, %v5128_v25 }
 0xa71   : > { %7853 = vmatmul.msk.f32.gmra.mxu3 %vm4978_vm12, %v4961_v37  ;;  %v8154_v40 = vpop.eup %8153 }
 0xa72   : > { %v5455_v46 = vmul.f32 %v8154_v40, %v5296_v28  ;;  %v8156_v7 = vpop.eup %8155  ;;  %vm5460_vm6 = vweird.f32 %v8154_v40  ;;  %8157 = vpow2.f32 %v7868_v13  ;;  %v4830_v28 = vsel %vm4800_vm14, %v4797_v38, %v16189_v16  ;;  %v16198_v16 = vld [vmem:[#allocation135_spill] sm:$0xff] }
 0xa73   : > { %v5440_v42 = vmul.f32 %v8156_v7, %v5295_v12  ;;  %vm5461_vm4 = vmor %vm5459_vm2, %vm5460_vm6  ;;  %vm5445_vm13 = vweird.f32 %v8156_v7  ;;  %vm5449_vm6 = vcmp.eq.f32.partialorder %v5448_v19, 8.507059e+37  ;;  %8159 = vpow2.f32 %v7867_v2 }
 0xa74   : > { %v5456_v20 = vsub.f32 1.0, %v5455_v46  ;;  %vm5446_vm1 = vmor %vm5444_vm3, %vm5445_vm13 }
 0xa75   : > { %v5441_v41 = vsub.f32 1.0, %v5440_v42 }
 0xa76   : > { %v5457_v36 = vmul.f32 %v8154_v40, %v5456_v20 }
 0xa77   : > { %v5442_v31 = vmul.f32 %v8156_v7, %v5441_v41  ;;  %v5131_v39 = vpop.f32.mrf.mxu3 }
 0xa78   : > { %v5458_v47 = vadd.f32 %v8154_v40, %v5457_v36  ;;  %v8158_v45 = vpop.eup %8157  ;;  %v7869_v56 = vmul.f32 -1.442695, %v5131_v39 }
 0xa79   : > { %v5443_v15 = vadd.f32 %v8156_v7, %v5442_v31  ;;  %v13579_v60 = vadd.f32 1.0, %v8158_v45  ;;  %v8160_v52 = vpop.eup %8159 }
 0xa7a   : > { %v5462_v55 = vsel %vm5461_vm4, %v8154_v40, %v5458_v47  ;;  %v13584_v26 = vadd.f32 1.0, %v8160_v52  ;;  %v16190_v40 = vld [vmem:[#allocation217_spill] sm:$0xff] }
 0xa7b   : > { %v5467_v27 = vsel %vm5464_vm5, %v5466_v57, %v5462_v55  ;;  %v5447_v17 = vsel %vm5446_vm1, %v8156_v7, %v5443_v15  ;;  %8161 = vrcp.f32 %v13579_v60  ;;  %v16195_v57 = vld [vmem:[#allocation56_spill] sm:$0xff]  ;;  %vm5489_vm4 = vweird.f32 %v13579_v60 }
 0xa7c   : > { %v5452_v49 = vsel %vm5449_vm6, %v5451_v4, %v5447_v17  ;;  %8163 = vpow2.f32 %v7869_v56  ;;  %v5493_v45 = vand.u32 2147483647, %v13579_v60 }
 0xa7d   : > { %8165 = vrcp.f32 %v13584_v26 }
 0xa7e   : > { %vm5494_vm13 = vcmp.eq.f32.partialorder %v5493_v45, 8.507059e+37 }
 0xa7f   : > { %v5134_v22 = vpop.f32.mrf.mxu3 }
 0xa80   : > { %v7870_v25 = vmul.f32 -1.442695, %v5134_v22 }
 0xa81   : > { %v13586_v3 = vpop.eup %8161 }
 0xa82   : > { %v8164_v58 = vpop.eup %8163  ;;  %v5485_v54 = vmul.f32 %v13586_v3, %v13579_v60  ;;  %vm5490_vm2 = vweird.f32 %v13586_v3 }
 0xa83   : > { %v13599_v46 = vadd.f32 1.0, %v8164_v58  ;;  %v13617_v36 = vpop.eup %8165  ;;  %vm5491_vm5 = vmor %vm5489_vm4, %vm5490_vm2  ;;  %v16196_v58 = vld [vmem:[#allocation176_spill] sm:$0xff] }
 0xa84   : > { %v5486_v42 = vsub.f32 1.0, %v5485_v54  ;;  %v5470_v31 = vmul.f32 %v13617_v36, %v13584_v26  ;;  %vm5475_vm3 = vweird.f32 %v13617_v36  ;;  %v5480_v54 = vand.u32 2147483648, %v13584_v26 }
 0xa85   : > { %8167 = vrcp.f32 %v13599_v46 }
 0xa86   : > { %v5487_v13 = vmul.f32 %v13586_v3, %v5486_v42  ;;  %8169 = vpow2.f32 %v7870_v25  ;;  %v5471_v17 = vsub.f32 1.0, %v5470_v31  ;;  %v5481_v42 = vor.u32 1.1754944e-38, %v5480_v54 }
 0xa88   : > { %v5488_v2 = vadd.f32 %v13586_v3, %v5487_v13  ;;  %v5472_v52 = vmul.f32 %v13617_v36, %v5471_v17 }
 0xa8a   : > { %v5492_v56 = vsel %vm5491_vm5, %v13586_v3, %v5488_v2  ;;  %v5473_v3 = vadd.f32 %v13617_v36, %v5472_v52  ;;  %vm6518_vm5 = vcmask 523264  }
 0xa90   : > { %v5807_v34 = vpop.permute.xlu2 %5806 }
 0xa91   : > { %v13561_v35 = vmul.f32 %v5807_v34, %v16185_v5  ;;  %v4863_v34 = vsel %vm4833_vm8, %v4830_v28, %v16190_v40  ;;  %v16192_v5 = vld [vmem:[#allocation13_spill] sm:$0xff] }
 0xa93   : > { %v6024_v29 = vrot.slane %v13561_v35, 7  ;;  %v5495_v35 = vand.u32 2147483648, %v13579_v60 }
 0xa95   : > { %v13647_v19 = vsel %vm479_vm0, %v6024_v29, 0.0 }
 0xa98   : > { %v5812_v21 = vpop.permute.xlu2 %5811 }
 0xa99   : > { %v13552_v14 = vmul.f32 %v5812_v21, %v16184_v9  ;;  %v16191_v21 = vld [vmem:[#allocation12_spill] sm:$0xff] }
 0xa9b   : > { %v6026_v8 = vrot.slane %v13552_v14, 7 }
 0xa9d   : > { %v13558_v33 = vsel %vm479_vm0, 0.0, %v6026_v8 }
 0xa9e   : > { %6326 = vrot.lane.b32.xlu0 %v13558_v33, %s8270_s14 }
 0xaa0   : > { %v5802_v18 = vpop.permute.xlu0 %5801  ;;  %v4553_v48 = vpop.permute.xlu2 %4552 }
 0xaa1   : > { %v5959_v61 = vmul.f32 %v5802_v18, %v16186_v30  ;;  %v16193_v18 = vld [vmem:[#allocation125_spill] sm:$0xff] }
 0xaa2   : > { %v4798_v44 = vsel %vm4767_vm7, %v16159_v51, %v16193_v18 }
 0xaa3   : > { %v6023_v0 = vrot.slane %v5959_v61, 7 }
 0xaa5   : > { %v13568_v11 = vsel %vm479_vm0, 0.0, %v6023_v0  ;;  %v13573_v24 = vsel %vm479_vm0, %v6023_v0, %v6024_v29  ;;  %v16194_v0 = vld [vmem:[#allocation181_spill] sm:$0xff] }
 0xaa6   : > { %6182 = vrot.lane.b32.xlu2 %v13568_v11, %s8271_s15  ;;  %6184 = vrot.lane.b32.xlu1 %v13573_v24, %s8271_s15  ;;  %v4831_v55 = vsel %vm4800_vm14, %v4798_v44, %v16194_v0  ;;  %v16200_v44 = vld [vmem:[#allocation35_spill] sm:$0xff] }
 0xaa7   : > { %5846 = vperm.xlu0 %8037, %v5467_v27   ;;  %v4864_v27 = vsel %vm4833_vm8, %v4831_v55, %v16195_v57 }
 0xaa8   : > { %v4377_v59 = vpop.permute.xlu0 %4376  ;;  %v4555_v6 = vpop.permute.xlu2 %4554 }
 0xaa9   : > { %v4896_v7 = vsel %vm4866_vm15, %v4863_v34, %v4377_v59 }
 0xaae   : > { %5841 = vperm.xlu1 %8039, %v5452_v49  }
 0xaaf   : > { %6188 = vrot.lane.b32.xlu0 %v13558_v33, %s8271_s15 }
 0xab0   : > { %v4379_v10 = vpop.permute.xlu0 %4378 }
 0xab1   : > { %v4897_v32 = vsel %vm4866_vm15, %v4864_v27, %v4379_v10  ;;  %v5496_v10 = vor.u32 1.1754944e-38, %v5495_v35 }
 0xab2   : > { %v4930_v4 = vsel %vm4899_vm9, %v4897_v32, %v4555_v6 }
 0xab3   : > { %v5827_v43 = vpop.permute.xlu2 %5826 }
 0xab4   : > { %v13611_v9 = vmul.f32 %v5827_v43, %v16191_v21 }
 0xab6   : > { %v6030_v61 = vrot.slane %v13611_v9, 7 }
 0xaba   : > { %v5817_v50 = vpop.permute.xlu1 %5816 }
 0xabb   : > { %v5962_v37 = vmul.f32 %v5817_v50, %v16187_v1  ;;  %v5497_v50 = vsel %vm5494_vm13, %v5496_v10, %v5492_v56  ;;  %v4799_v1 = vsel %vm4767_vm7, %v16160_v53, %v16196_v58  ;;  %vm5474_vm7 = vweird.f32 %v13584_v26  ;;  %v4734_v34 = vpop.permute.xlu2 %4733 }
 0xabc   : > { %v5478_v53 = vand.u32 2147483647, %v13584_v26  ;;  %vm5476_vm1 = vmor %vm5474_vm7, %vm5475_vm3  ;;  %vm16203_vm13 = vcmask 1045504  }
 0xabd   : > { %v6027_v12 = vrot.slane %v5962_v37, 7  ;;  %v16197_v37 = vld [vmem:[#allocation129_spill] sm:$0xff] }
 0xabe   : > { %v4832_v63 = vsel %vm4800_vm14, %v4799_v1, %v16197_v37  ;;  %vm5479_vm14 = vcmp.eq.f32.partialorder %v5478_v53, 8.507059e+37  ;;  %v16202_v37 = vld [vmem:[#allocation47_spill] sm:$0xff] }
 0xabf   : > { %v13603_v20 = vsel %vm479_vm0, %v6027_v12, 0.0  ;;  %v13608_v23 = vsel %vm479_vm0, %v6026_v8, %v6027_v12  ;;  %v4929_v8 = vsel %vm4899_vm9, %v4896_v7, %v4553_v48  ;;  %v13651_v48 = vpop.eup %8167  ;;  %v4865_v28 = vsel %vm4833_vm8, %v4832_v63, %v16198_v16 }
 0xac0   : > { %6330 = vrot.lane.b32.xlu1 %v13603_v20, %s8270_s14  ;;  %6328 = vrot.lane.b32.xlu2 %v13608_v23, %s8270_s14  ;;  %v5500_v39 = vmul.f32 %v13651_v48, %v13599_v46  ;;  %v8170_v59 = vpop.eup %8169  ;;  %v5477_v7 = vsel %vm5476_vm1, %v13617_v36, %v5473_v3  ;;  %v5510_v36 = vand.u32 2147483648, %v13599_v46  ;;  %vm5504_vm8 = vweird.f32 %v13599_v46 }
 0xac1   : > { %v13669_v6 = vadd.f32 1.0, %v8170_v59 }
 0xac2   : > { %v5822_v41 = vpop.permute.xlu0 %5821  ;;  %v4730_v14 = vpop.permute.xlu1 %4729  ;;  %v5501_v60 = vsub.f32 1.0, %v5500_v39  ;;  %v5511_v31 = vor.u32 1.1754944e-38, %v5510_v36 }
 0xac3   : > { %v5963_v47 = vmul.f32 %v5822_v41, %v16192_v5  ;;  %v4962_v30 = vsel %vm4932_vm11, %v4929_v8, %v4730_v14  ;;  %8171 = vrcp.f32 %v13669_v6  ;;  %v5482_v41 = vsel %vm5479_vm14, %v5481_v42, %v5477_v7  ;;  %v16205_v42 = vld [vmem:[#allocation14_spill] sm:$0xff] }
 0xac4   : > { %7854 = vmatmul.msk.f32.gmra.mxu3 %vm4978_vm12, %v4962_v30  ;;  %v5502_v40 = vmul.f32 %v13651_v48, %v5501_v60  ;;  %v5508_v8 = vand.u32 2147483647, %v13599_v46  ;;  %v13713_v46 = vsel %vm479_vm0, %v6030_v61, 0.0  ;;  %vm5519_vm6 = vweird.f32 %v13669_v6  ;;  %v16201_v60 = vld [vmem:[#allocation49_spill] sm:$0xff] }
 0xac5   : > { %v6029_v62 = vrot.slane %v5963_v47, 7  ;;  %v16199_v47 = vld [vmem:[#allocation15_spill] sm:$0xff]  ;;  %v5523_v35 = vand.u32 2147483647, %v13669_v6 }
 0xac6   : > { %v5503_v26 = vadd.f32 %v13651_v48, %v5502_v40 }
 0xac7   : > { %v13636_v51 = vsel %vm479_vm0, 0.0, %v6029_v62  ;;  %v13641_v15 = vsel %vm479_vm0, %v6029_v62, %v6030_v61  ;;  %v5525_v61 = vand.u32 2147483648, %v13669_v6  ;;  %vm5524_vm4 = vcmp.eq.f32.partialorder %v5523_v35, 8.507059e+37 }
 0xac8   : > { %6334 = vrot.lane.b32.xlu0 %v13641_v15, %s8270_s14  ;;  %6332 = vrot.lane.b32.xlu1 %v13636_v51, %s8270_s14 }
 0xac9   : > { %6186 = vrot.lane.b32.xlu2 %v13647_v19, %s8271_s15  ;;  %v8172_v25 = vpop.eup %8171 }
 0xaca   : > { %v4732_v29 = vpop.permute.xlu1 %4731  ;;  %v4557_v38 = vpop.permute.xlu0 %4556  ;;  %v5515_v0 = vmul.f32 %v8172_v25, %v13669_v6 }
 0xacb   : > { %v4963_v49 = vsel %vm4932_vm11, %v4930_v4, %v4732_v29  ;;  %v5526_v4 = vor.u32 1.1754944e-38, %v5525_v61  ;;  %v16206_v61 = vld [vmem:[#allocation51_spill] sm:$0xff] }
 0xacc   : > { %7855 = vmatmul.msk.f32.gmra.mxu3 %vm4978_vm12, %v4963_v49  ;;  %v5516_v32 = vsub.f32 1.0, %v5515_v0  ;;  %v5137_v49 = vpop.f32.mrf.mxu3 }
 0xacd   : > { %v7871_v16 = vmul.f32 -1.442695, %v5137_v49 }
 0xad0   : > { %6192 = vrot.lane.b32.xlu0 %v13603_v20, %s8271_s15  ;;  %5856 = vperm.xlu1 %8039, %v5497_v50  }
 0xad1   : > { %6190 = vrot.lane.b32.xlu2 %v13608_v23, %s8271_s15 }
 0xad2   : > { %v4381_v43 = vpop.permute.xlu1 %4380 }
 0xad3   : > { %v4898_v12 = vsel %vm4866_vm15, %v4865_v28, %v4381_v43  ;;  %vm5505_vm15 = vweird.f32 %v13651_v48 }
 0xad4   : > { %v4931_v22 = vsel %vm4899_vm9, %v4898_v12, %v4557_v38  ;;  %vm5506_vm9 = vmor %vm5504_vm8, %vm5505_vm15  ;;  %v5140_v39 = vpop.f32.mrf.mxu3  ;;  %vm16207_vm15 = vcmask 1046528  }
 0xad5   : > { %v4964_v21 = vsel %vm4932_vm11, %v4931_v22, %v4734_v34  ;;  %v5507_v62 = vsel %vm5506_vm9, %v13651_v48, %v5503_v26  ;;  %vm5509_vm11 = vcmp.eq.f32.partialorder %v5508_v8, 8.507059e+37  ;;  %v5517_v48 = vmul.f32 %v8172_v25, %v5516_v32  ;;  %v16204_v22 = vld [vmem:[#allocation36_spill] sm:$0xff]  ;;  %vm16208_vm8 = vmmov %vm16203_vm13 }
 0xad6   : > { %7856 = vmatmul.msk.f32.gmra.mxu3 %vm4978_vm12, %v4964_v21  ;;  %v5512_v57 = vsel %vm5509_vm11, %v5511_v31, %v5507_v62  ;;  %vm5520_vm12 = vweird.f32 %v8172_v25  ;;  %v7872_v59 = vmul.f32 -1.442695, %v5140_v39  ;;  %vm16209_vm9 = vmmov %vm16207_vm15 }
 0xad7   : > { %v5518_v9 = vadd.f32 %v8172_v25, %v5517_v48  ;;  %vm5521_vm2 = vmor %vm5519_vm6, %vm5520_vm12 }
 0xad8   : > { %6196 = vrot.lane.b32.xlu0 %v13641_v15, %s8271_s15  ;;  %6194 = vrot.lane.b32.xlu1 %v13636_v51, %s8271_s15  ;;  %8173 = vpow2.f32 %v7872_v59 }
 0xad9   : > { %5851 = vperm.xlu2 %8038, %v5482_v41   ;;  %v5522_v29 = vsel %vm5521_vm2, %v8172_v25, %v5518_v9  ;;  %vm16212_vm2 = vmmov %vm16208_vm8 }
 0xada   : > { %v5837_v14 = vpop.permute.xlu0 %5836  ;;  %v5832_v5 = vpop.permute.xlu1 %5831  ;;  %v5527_v45 = vsel %vm5524_vm4, %v5526_v4, %v5522_v29  ;;  %vm16213_vm4 = vmmov %vm16209_vm9 }
 0xadb   : > { %v5966_v18 = vmul.f32 %v5837_v14, %v16199_v47  ;;  %v5965_v30 = vmul.f32 %v5832_v5, %v16200_v44 }
 0xadd   : > { %v6033_v13 = vrot.slane %v5966_v18, 7  ;;  %v6032_v55 = vrot.slane %v5965_v30, 7  ;;  %v5143_v30 = vpop.f32.mrf.mxu3 }
 0xade   : > { %v8174_v56 = vpop.eup %8173  ;;  %v7873_v31 = vmul.f32 -1.442695, %v5143_v30 }
 0xadf   : > { %v13708_v27 = vsel %vm479_vm0, %v6032_v55, %v6033_v13  ;;  %v13720_v2 = vsel %vm479_vm0, %v6033_v13, 0.0  ;;  %v13723_v17 = vsel %vm479_vm0, 0.0, %v6032_v55  ;;  %v5302_v52 = vadd.f32 1.0, %v8174_v56 }
 0xae0   : > { %5861 = vperm.xlu0 %8037, %v5512_v57   ;;  %6340 = vrot.lane.b32.xlu1 %v13708_v27, %s8270_s14 }
 0xae1   : > { %6336 = vrot.lane.b32.xlu2 %v13713_v46, %s8270_s14  ;;  %8175 = vrcp.f32 %v5302_v52  ;;  %v5555_v18 = vand.u32 2147483648, %v5302_v52  ;;  %vm5549_vm7 = vweird.f32 %v5302_v52  ;;  %v5553_v62 = vand.u32 2147483647, %v5302_v52 }
 0xae2   : > { %8177 = vpow2.f32 %v7871_v16 }
 0xae3   : > { %v5556_v0 = vor.u32 1.1754944e-38, %v5555_v18  ;;  %vm5554_vm14 = vcmp.eq.f32.partialorder %v5553_v62, 8.507059e+37 }
 0xae7   : > { %v8176_v50 = vpop.eup %8175 }
 0xae8   : > { %6342 = vrot.lane.b32.xlu0 %v13720_v2, %s8270_s14  ;;  %6198 = vrot.lane.b32.xlu1 %v13713_v46, %s8271_s15  ;;  %v5545_v54 = vmul.f32 %v8176_v50, %v5302_v52  ;;  %v8178_v8 = vpop.eup %8177  ;;  %vm5550_vm3 = vweird.f32 %v8176_v50 }
 0xae9   : > { %6338 = vrot.lane.b32.xlu2 %v13723_v17, %s8270_s14  ;;  %v13766_v44 = vadd.f32 1.0, %v8178_v8  ;;  %vm5551_vm1 = vmor %vm5549_vm7, %vm5550_vm3 }
 0xaea   : > { %v5546_v34 = vsub.f32 1.0, %v5545_v54 }
 0xaeb   : > { %8179 = vrcp.f32 %v13766_v44  ;;  %vm5534_vm12 = vweird.f32 %v13766_v44  ;;  %v5538_v62 = vand.u32 2147483647, %v13766_v44 }
 0xaec   : > { %v5547_v26 = vmul.f32 %v8176_v50, %v5546_v34  ;;  %8181 = vpow2.f32 %v7873_v31 }
 0xaed   : > { %vm5539_vm3 = vcmp.eq.f32.partialorder %v5538_v62, 8.507059e+37 }
 0xaee   : > { %v5548_v47 = vadd.f32 %v8176_v50, %v5547_v26 }
 0xaf0   : > { %6202 = vrot.lane.b32.xlu0 %v13708_v27, %s8271_s15  ;;  %6200 = vrot.lane.b32.xlu1 %v13723_v17, %s8271_s15  ;;  %v5552_v13 = vsel %vm5551_vm1, %v8176_v50, %v5548_v47 }
 0xaf1   : > { %5866 = vperm.xlu2 %8038, %v5527_v45   ;;  %v5557_v55 = vsel %vm5554_vm14, %v5556_v0, %v5552_v13  ;;  %v13769_v48 = vpop.eup %8179  ;;  %v5146_v45 = vpop.f32.mrf.mxu3 }
 0xaf2   : > { %v8182_v56 = vpop.eup %8181  ;;  %v5530_v52 = vmul.f32 %v13769_v48, %v13766_v44  ;;  %v7874_v54 = vmul.f32 -1.442695, %v5146_v45  ;;  %vm5535_vm11 = vweird.f32 %v13769_v48  ;;  %v16215_v45 = vld [vmem:[#allocation17_spill] sm:$0xff] }
 0xaf3   : > { %vm13821_vm6 = vmor %vm5534_vm12, %vm5535_vm11 }
 0xb00   : > { %v6183_v10 = vpop.permute.xlu2 %6182 }
 0xb01   : > { %v6470_v58 = vsel %vm1824_vm10, %v16201_v60, %v6183_v10 }
 0xb10   : > { %v6327_v6 = vpop.permute.xlu0 %6326 }
 0xb11   : > { %v13741_v3 = vsel %vm6518_vm5, %v6470_v58, %v6327_v6  ;;  %v13782_v58 = vadd.f32 1.0, %v8182_v56 }
 0xb12   : > { %v6791_v43 = vrot.slane %v13741_v3, 2  ;;  %v6615_v49 = vrot.slane %v13741_v3, 1 }
 0xb13   : > { %8183 = vrcp.f32 %v13782_v58  ;;  %vm5564_vm1 = vweird.f32 %v13782_v58 }
 0xb14   : > { %8185 = vpow2.f32 %v7874_v54 }
 0xb18   : > { %v6185_v1 = vpop.permute.xlu1 %6184 }
 0xb19   : > { %v6471_v63 = vsel %vm1824_vm10, %v16202_v37, %v6185_v1  ;;  %v5847_v53 = vpop.permute.xlu0 %5846 }
 0xb1a   : > { %v6329_v38 = vpop.permute.xlu2 %6328  ;;  %v13752_v7 = vmul.f32 %v5847_v53, %v16204_v22  ;;  %v5149_v53 = vpop.f32.mrf.mxu3 }
 0xb1b   : > { %v13746_v28 = vsel %vm6518_vm5, %v6471_v63, %v6329_v38  ;;  %v5531_v63 = vsub.f32 1.0, %v5530_v52  ;;  %v7875_v13 = vmul.f32 -1.442695, %v5149_v53  ;;  %v7063_v53 = vld [vmem:[%s15235_s7 + $0xf8] sm:$0xff] }
 0xb1c   : > { %v6792_v12 = vrot.slane %v13746_v28, 2  ;;  %v6036_v36 = vrot.slane %v13752_v7, 7  ;;  %v6616_v9 = vrot.slane %v13746_v28, 1  ;;  %7245 = vmatpush.msra.mxu1 %v7063_v53 }
 0xb1d   : > { %8187 = vpow2.f32 %v7875_v13 }
 0xb1e   : > { %v6793_v40 = vsel %vm16203_vm13, %v6791_v43, %v6792_v12  ;;  %v6617_v50 = vsel %vm16209_vm9, %v6615_v49, %v6616_v9  ;;  %v5532_v43 = vmul.f32 %v13769_v48, %v5531_v63  ;;  %vm16214_vm13 = vmmov %vm16213_vm4 }
 0xb1f   : > { %6871 = vrot.lane.b32.xlu0 %v6793_v40, %s8270_s14  ;;  %vm16218_vm9 = vmmov %vm16213_vm4 }
 0xb20   : > { %v5842_v21 = vpop.permute.xlu1 %5841 }
 0xb21   : > { %v5967_v41 = vmul.f32 %v5842_v21, %v16205_v42  ;;  %v6189_v32 = vpop.permute.xlu0 %6188  ;;  %v5540_v42 = vand.u32 2147483648, %v13766_v44 }
 0xb23   : > { %v6035_v25 = vrot.slane %v5967_v41, 7  ;;  %v6187_v14 = vpop.permute.xlu2 %6186  ;;  %v13808_v41 = vpop.eup %8183  ;;  %v5541_v44 = vor.u32 1.1754944e-38, %v5540_v42 }
 0xb24   : > { %v6472_v35 = vsel %vm1824_vm10, %v16206_v61, %v6187_v14  ;;  %vm5565_vm7 = vweird.f32 %v13808_v41 }
 0xb25   : > { %v13760_v5 = vsel %vm479_vm0, %v6035_v25, %v6036_v36  ;;  %v13800_v22 = vsel %vm479_vm0, 0.0, %v6035_v25  ;;  %vm5566_vm14 = vmor %vm5564_vm1, %vm5565_vm7  ;;  %vm16225_vm7 = vcmask 1045504  }
 0xb26   : > { %6346 = vrot.lane.b32.xlu1 %v13760_v5, %s8270_s14 }
 0xb27   : > { %6204 = vrot.lane.b32.xlu0 %v13720_v2, %s8271_s15 }
 0xb2b   : > { %v6191_v57 = vpop.permute.xlu2 %6190 }
 0xb2c   : > { %v6474_v16 = vsel %vm1824_vm10, %v13573_v24, %v6191_v57 }
 0xb2e   : > { %5876 = vperm.xlu1 %8039, %v5557_v55   ;;  %v8186_v55 = vpop.eup %8185 }
 0xb32   : > { %v6331_v29 = vpop.permute.xlu1 %6330 }
 0xb33   : > { %v6521_v4 = vsel %vm6518_vm5, %v6472_v35, %v6331_v29  ;;  %v5852_v1 = vpop.permute.xlu2 %5851 }
 0xb34   : > { %v6618_v39 = vrot.slane %v6521_v4, 1  ;;  %v6794_v59 = vrot.slane %v6521_v4, 2  ;;  %v13836_v4 = vadd.f32 1.0, %v8186_v55  ;;  %v13839_v49 = vmul.f32 %v5852_v1, %v16215_v45 }
 0xb35   : > { %v13848_v1 = vsel %vm479_vm0, %v6036_v36, 0.0 }
 0xb36   : > { %v6619_v10 = vsel %vm16207_vm15, %v6616_v9, %v6618_v39  ;;  %v6795_v6 = vsel %vm16208_vm8, %v6792_v12, %v6794_v59  ;;  %v6473_v12 = vsel %vm1824_vm10, %v13568_v11, %v6189_v32  ;;  %v5533_v11 = vadd.f32 %v13769_v48, %v5532_v43  ;;  %v7047_v43 = vld [vmem:[%s15235_s7 + $0x78] sm:$0xff]  ;;  %vm16217_vm8 = vmmov %vm16213_vm4 }
 0xb37   : > { %6873 = vrot.lane.b32.xlu1 %v6795_v6, %s8270_s14  ;;  %v8040_v60 = vpack.i.bf16 %v6619_v10, %v6617_v50  ;;  %8189 = vrcp.f32 %v13836_v4  ;;  %v6038_v6 = vrot.slane %v13839_v49, 7  ;;  %7132 = vmatpush.msra.mxu2 %v7047_v43  ;;  %v16219_v43 = vld [vmem:[#allocation37_spill] sm:$0xff]  ;;  %vm5579_vm12 = vweird.f32 %v13836_v4 }
 0xb38   : > { %v5537_v57 = vsel %vm13821_vm6, %v13769_v48, %v5533_v11  ;;  %v5152_v48 = vpop.f32.mrf.mxu3 }
 0xb39   : > { %8041 = vrot.lane.b32.xlu2 %v8040_v60, %s8272_s16  ;;  %v5542_v39 = vsel %vm5539_vm3, %v5541_v44, %v5537_v57  ;;  %v7876_v10 = vmul.f32 -1.442695, %v5152_v48  ;;  %v8188_v60 = vpop.eup %8187  ;;  %v7045_v57 = vld [vmem:[%s15235_s7 + $0x68] sm:$0xff] }
 0xb3a   : > { %v6335_v37 = vpop.permute.xlu0 %6334  ;;  %v6333_v38 = vpop.permute.xlu1 %6332  ;;  %v13857_v63 = vadd.f32 1.0, %v8188_v60 }
 0xb3b   : > { %v13792_v40 = vsel %vm6518_vm5, %v6474_v16, %v6335_v37  ;;  %v13795_v34 = vsel %vm6518_vm5, %v6473_v12, %v6333_v38  ;;  %v6337_v8 = vpop.permute.xlu2 %6336  ;;  %8191 = vpow2.f32 %v7876_v10  ;;  %v13855_v37 = vsel %vm479_vm0, 0.0, %v6038_v6 }
 0xb3c   : > { %v6621_v24 = vrot.slane %v13792_v40, 1  ;;  %v6620_v26 = vrot.slane %v13795_v34, 1  ;;  %v6796_v14 = vrot.slane %v13795_v34, 2  ;;  %v6797_v25 = vrot.slane %v13792_v40, 2 }
 0xb3d   : > { %v13867_v36 = vpop.eup %8189  ;;  %v5570_v16 = vand.u32 2147483648, %v13782_v58  ;;  %v5568_v12 = vand.u32 2147483647, %v13782_v58  ;;  %8193 = vrcp.f32 %v13857_v63 }
 0xb3e   : > { %v6798_v32 = vsel %vm16212_vm2, %v6796_v14, %v6797_v25  ;;  %v6622_v9 = vsel %vm16213_vm4, %v6620_v26, %v6621_v24  ;;  %v5575_v11 = vmul.f32 %v13867_v36, %v13836_v4  ;;  %vm5580_vm11 = vweird.f32 %v13867_v36 }
 0xb3f   : > { %6208 = vrot.lane.b32.xlu1 %v13760_v5, %s8271_s15  ;;  %v5571_v42 = vor.u32 1.1754944e-38, %v5570_v16  ;;  %vm5569_vm15 = vcmp.eq.f32.partialorder %v5568_v12, 8.507059e+37  ;;  %v7058_v12 = vld [vmem:[%s15235_s7 + $0xd0] sm:$0xff]  ;;  %vm13976_vm6 = vmor %vm5579_vm12, %vm5580_vm11 }
 0xb40   : > { %v5576_v0 = vsub.f32 1.0, %v5575_v11  ;;  %v7041_v11 = vld [vmem:[%s15235_s7 + $0x48] sm:$0xff]  ;;  %vm16226_vm11 = vmmov %vm16225_vm7 }
 0xb41   : > { %6344 = vrot.lane.b32.xlu2 %v13800_v22, %s8270_s14  ;;  %vm16227_vm12 = vmmov %vm16225_vm7 }
 0xb42   : > { %v6193_v21 = vpop.permute.xlu0 %6192  ;;  %v5857_v47 = vpop.permute.xlu1 %5856 }
 0xb43   : > { %v6475_v18 = vsel %vm1824_vm10, %v13647_v19, %v6193_v21  ;;  %v5560_v19 = vmul.f32 %v13808_v41, %v13782_v58 }
 0xb44   : > { %v13816_v30 = vsel %vm6518_vm5, %v6475_v18, %v6337_v8  ;;  %v16216_v8 = vld [vmem:[#allocation16_spill] sm:$0xff] }
 0xb45   : > { %v6623_v31 = vrot.slane %v13816_v30, 1  ;;  %v5561_v56 = vsub.f32 1.0, %v5560_v19  ;;  %v5970_v18 = vmul.f32 %v5857_v47, %v16216_v8  ;;  %v7061_v19 = vld [vmem:[%s15235_s7 + $0xe8] sm:$0xff]  ;;  %v7050_v8 = vld [vmem:[%s15235_s7 + $0x90] sm:$0xff] }
 0xb47   : > { %v6624_v35 = vsel %vm16214_vm13, %v6621_v24, %v6623_v31  ;;  %6875 = vrot.lane.b32.xlu1 %v6798_v32, %s8270_s14  ;;  %v5562_v50 = vmul.f32 %v13808_v41, %v5561_v56  ;;  %v8192_v24 = vpop.eup %8191  ;;  %v6039_v48 = vrot.slane %v5970_v18, 7  ;;  %v7043_v56 = vld [vmem:[%s15235_s7 + $0x58] sm:$0xff]  ;;  %v7056_v18 = vld [vmem:[%s15235_s7 + $0xc0] sm:$0xff]  ;;  %vm5594_vm13 = vweird.f32 %v13857_v63 }
 0xb48   : > { %v8045_v29 = vpack.i.bf16 %v6624_v35, %v6622_v9  ;;  %v13886_v58 = vadd.f32 1.0, %v8192_v24  ;;  %v13909_v32 = vpop.eup %8193  ;;  %v7044_v35 = vld [vmem:[%s15235_s7 + $0x60] sm:$0xff]  ;;  %v5585_v24 = vand.u32 2147483648, %v13836_v4 }
 0xb49   : > { %5871 = vperm.xlu2 %8038, %v5542_v39   ;;  %v5563_v7 = vadd.f32 %v13808_v41, %v5562_v50  ;;  %v5590_v10 = vmul.f32 %v13909_v32, %v13857_v63  ;;  %vm5595_vm4 = vweird.f32 %v13909_v32 }
 0xb4a   : > { %v6197_v59 = vpop.permute.xlu0 %6196  ;;  %8046 = vrot.lane.b32.xlu0 %v8045_v29, %s8272_s16  ;;  %v6195_v52 = vpop.permute.xlu1 %6194  ;;  %v7060_v29 = vld [vmem:[%s15235_s7 + $0xe0] sm:$0xff]  ;;  %8195 = vrcp.f32 %v13886_v58  ;;  %vm14036_vm3 = vmor %vm5594_vm13, %vm5595_vm4 }
 0xb4b   : > { %v5567_v21 = vsel %vm5566_vm14, %v13808_v41, %v5563_v7  ;;  %v6476_v26 = vsel %vm1824_vm10, %v13558_v33, %v6195_v52  ;;  %v6477_v14 = vsel %vm1824_vm10, %v13608_v23, %v6197_v59  ;;  %v6339_v41 = vpop.permute.xlu2 %6338  ;;  %v7046_v33 = vld [vmem:[%s15235_s7 + $0x70] sm:$0xff]  ;;  %v5577_v59 = vmul.f32 %v13867_v36, %v5576_v0  ;;  %v7059_v52 = vld [vmem:[%s15235_s7 + $0xd8] sm:$0xff] }
 0xb4c   : > { %v5572_v13 = vsel %vm5569_vm15, %v5571_v42, %v5567_v21  ;;  %v7062_v23 = vld [vmem:[%s15235_s7 + $0xf0] sm:$0xff]  ;;  %v13901_v47 = vsel %vm6518_vm5, %v6476_v26, %v6339_v41  ;;  %7133 = vmatpush.msra.mxu2 %v7046_v33  ;;  %v13940_v7 = vsel %vm479_vm0, %v6038_v6, %v6039_v48  ;;  %v5591_v21 = vsub.f32 1.0, %v5590_v10  ;;  %v7057_v42 = vld [vmem:[%s15235_s7 + $0xc8] sm:$0xff] }
 0xb4d   : > { %7246 = vmatpush.msra.mxu1 %v7062_v23  ;;  %v6625_v39 = vrot.slane %v13901_v47, 1  ;;  %v5578_v49 = vadd.f32 %v13867_v36, %v5577_v59  ;;  %v7042_v6 = vld [vmem:[%s15235_s7 + $0x50] sm:$0xff]  ;;  %v5583_v26 = vand.u32 2147483647, %v13836_v4  ;;  %v5586_v0 = vor.u32 1.1754944e-38, %v5585_v24 }
 0xb4e   : > { %7134 = vmatpush.msra.mxu2 %v7045_v57  ;;  %v5592_v33 = vmul.f32 %v13909_v32, %v5591_v21  ;;  %v7066_v59 = vld [vmem:[%s15235_s7 + $0x110] sm:$0xff]  ;;  %v6799_v10 = vrot.slane %v13816_v30, 2  ;;  %v7052_v30 = vld [vmem:[%s15235_s7 + $0xa0] sm:$0xff]  ;;  %vm5609_vm15 = vweird.f32 %v13886_v58 }
 0xb4f   : > { %6210 = vrot.lane.b32.xlu1 %v13848_v1, %s8271_s15  ;;  %7247 = vmatpush.msra.mxu1 %v7061_v19  ;;  %v5582_v4 = vsel %vm13976_vm6, %v13867_v36, %v5578_v49  ;;  %vm5584_vm2 = vcmp.eq.f32.partialorder %v5583_v26, 8.507059e+37  ;;  %v7034_v26 = vld [vmem:[%s15235_s7 + $0x10] sm:$0xff]  ;;  %vm6967_vm6 = vcmask 785408  }
 0xb50   : > { %7135 = vmatpush.msra.mxu2 %v7044_v35  ;;  %v5587_v36 = vsel %vm5584_vm2, %v5586_v0, %v5582_v4  ;;  %v7067_v35 = vld [vmem:[%s15235_s7 + $0x118] sm:$0xff]  ;;  %v6800_v24 = vsel %vm16225_vm7, %v6797_v25, %v6799_v10  ;;  %v7049_v4 = vld [vmem:[%s15235_s7 + $0x88] sm:$0xff]  ;;  %vm16228_vm2 = vmmov %vm16225_vm7  ;;  %vm16231_vm7 = vcmask 1046528  }
 0xb51   : > { %6348 = vrot.lane.b32.xlu2 %v13848_v1, %s8270_s14  ;;  %7248 = vmatpush.msra.mxu1 %v7060_v29  ;;  %v16222_v29 = vld [vmem:[#allocation19_spill] sm:$0xff] }
 0xb52   : > { %v13861_v38 = vpop.permute.xlu0 %5861  ;;  %6350 = vrot.lane.b32.xlu0 %v13855_v37, %s8270_s14  ;;  %v6341_v54 = vpop.permute.xlu1 %6340  ;;  %7136 = vmatpush.msra.mxu2 %v7043_v56  ;;  %v5600_v56 = vand.u32 2147483648, %v13857_v63 }
 0xb53   : > { %v13890_v62 = vsel %vm6518_vm5, %v6477_v14, %v6341_v54  ;;  %v13943_v54 = vsel %vm479_vm0, %v6039_v48, 0.0  ;;  %7249 = vmatpush.msra.mxu1 %v7059_v52  ;;  %v13947_v53 = vmul.f32 %v13861_v38, %v16219_v43  ;;  %v13961_v38 = vpop.eup %8195  ;;  %v7040_v14 = vld [vmem:[%s15235_s7 + $0x40] sm:$0xff]  ;;  %v5867_v23 = vpop.permute.xlu2 %5866  ;;  %7370 = vmatpush.msrb.mxu0 %v7067_v35  ;;  %v7053_v52 = vld [vmem:[%s15235_s7 + $0xa8] sm:$0xff] }
 0xb54   : > { %v6626_v44 = vrot.slane %v13890_v62, 1  ;;  %7137 = vmatpush.msra.mxu2 %v7042_v6  ;;  %v5605_v41 = vmul.f32 %v13961_v38, %v13886_v58  ;;  %v14011_v48 = vmul.f32 %v5867_v23, %v16222_v29  ;;  %v5601_v6 = vor.u32 1.1754944e-38, %v5600_v56 }
 0xb55   : > { %7250 = vmatpush.msra.mxu1 %v7058_v12  ;;  %7371 = vmatpush.msrb.mxu0 %v7066_v59  ;;  %v7035_v12 = vld [vmem:[%s15235_s7 + $0x18] sm:$0xff]  ;;  %vm5610_vm14 = vweird.f32 %v13961_v38 }
 0xb56   : > { %v6627_v60 = vsel %vm16218_vm9, %v6625_v39, %v6626_v44  ;;  %7138 = vmatpush.msra.mxu2 %v7041_v11  ;;  %v5606_v19 = vsub.f32 1.0, %v5605_v41  ;;  %v5593_v39 = vadd.f32 %v13909_v32, %v5592_v33  ;;  %v7064_v11 = vld [vmem:[%s15235_s7 + $0x100] sm:$0xff] }
 0xb57   : > { %7251 = vmatpush.msra.mxu1 %v7057_v42  ;;  %v7048_v33 = vld [vmem:[%s15235_s7 + $0x80] sm:$0xff] }
 0xb58   : > { %7139 = vmatpush.msra.mxu2 %v7040_v14  ;;  %v5597_v49 = vsel %vm14036_vm3, %v13909_v32, %v5593_v39  ;;  %v7051_v32 = vld [vmem:[%s15235_s7 + $0x98] sm:$0xff]  ;;  %v5615_v14 = vand.u32 2147483648, %v13886_v58 }
 0xb59   : > { %6206 = vrot.lane.b32.xlu2 %v13800_v22, %s8271_s15  ;;  %7252 = vmatpush.msra.mxu1 %v7056_v18  ;;  %v5613_v18 = vand.u32 2147483647, %v13886_v58  ;;  %v5155_v58 = vpop.f32.mrf.mxu3 }
 0xb5a   : > { %v6343_v31 = vpop.permute.xlu0 %6342  ;;  %5881 = vperm.xlu0 %8037, %v5572_v13   ;;  %v6199_v55 = vpop.permute.xlu1 %6198  ;;  %v6041_v13 = vrot.slane %v13947_v53, 7  ;;  %v5607_v53 = vmul.f32 %v13961_v38, %v5606_v19  ;;  %v5616_v0 = vor.u32 1.1754944e-38, %v5615_v14  ;;  %v6801_v19 = vrot.slane %v13901_v47, 2  ;;  %v16229_v14 = vld [vmem:[#allocation38_spill] sm:$0xff] }
 0xb5b   : > { %v6478_v9 = vsel %vm1824_vm10, %v13603_v20, %v6199_v55  ;;  %v7055_v55 = vld [vmem:[%s15235_s7 + $0xb8] sm:$0xff]  ;;  %vm5614_vm9 = vcmp.eq.f32.partialorder %v5613_v18, 8.507059e+37 }
 0xb5c   : > { %v13922_v45 = vsel %vm6518_vm5, %v6478_v9, %v6343_v31  ;;  %v7039_v31 = vld [vmem:[%s15235_s7 + $0x38] sm:$0xff]  ;;  %v13999_v57 = vsel %vm479_vm0, 0.0, %v6041_v13  ;;  %v7054_v9 = vld [vmem:[%s15235_s7 + $0xb0] sm:$0xff]  ;;  %7253 = vmatpush.msra.mxu1 %v7055_v55  ;;  %v5608_v25 = vadd.f32 %v13961_v38, %v5607_v53  ;;  %v6802_v55 = vrot.slane %v13890_v62, 2 }
 0xb5d   : > { %v6628_v20 = vrot.slane %v13922_v45, 1  ;;  %7140 = vmatpush.msra.mxu2 %v7039_v31  ;;  %v7032_v31 = vld [vmem:[%s15235_s7] sm:$0xff] }
 0xb5e   : > { %7254 = vmatpush.msra.mxu1 %v7054_v9  ;;  %v6803_v9 = vsel %vm16226_vm11, %v6801_v19, %v6802_v55 }
 0xb5f   : > { %v6629_v50 = vsel %vm16217_vm8, %v6626_v44, %v6628_v20  ;;  %v7038_v44 = vld [vmem:[%s15235_s7 + $0x30] sm:$0xff]  ;;  %v7037_v20 = vld [vmem:[%s15235_s7 + $0x28] sm:$0xff]  ;;  %vm5611_vm8 = vmor %vm5609_vm15, %vm5610_vm14 }
 0xb60   : > { %v8050_v16 = vpack.i.bf16 %v6629_v50, %v6627_v60  ;;  %7141 = vmatpush.msra.mxu2 %v7038_v44  ;;  %v5598_v50 = vand.u32 2147483647, %v13857_v63  ;;  %v7036_v60 = vld [vmem:[%s15235_s7 + $0x20] sm:$0xff]  ;;  %v6042_v63 = vrot.slane %v14011_v48, 7  ;;  %7255 = vmatpush.msra.mxu1 %v7053_v52  ;;  %v5612_v41 = vsel %vm5611_vm8, %v13961_v38, %v5608_v25  ;;  %vm16232_vm14 = vmmov %vm16231_vm7 }
 0xb61   : > { %6352 = vrot.lane.b32.xlu2 %v13940_v7, %s8270_s14  ;;  %v5617_v23 = vsel %vm5614_vm9, %v5616_v0, %v5612_v41  ;;  %v5158_v44 = vpop.f32.mrf.mxu3  ;;  %v7877_v52 = vmul.f32 -1.442695, %v5155_v58  ;;  %vm16233_vm15 = vmmov %vm16228_vm2 }
 0xb62   : > { %6354 = vrot.lane.b32.xlu0 %v13943_v54, %s8270_s14  ;;  %8051 = vrot.lane.b32.xlu1 %v8050_v16, %s8272_s16  ;;  %v7065_v16 = vld [vmem:[%s15235_s7 + $0x108] sm:$0xff]  ;;  %vm5599_vm1 = vcmp.eq.f32.partialorder %v5598_v50, 8.507059e+37  ;;  %v14055_v21 = vsel %vm479_vm0, %v6041_v13, %v6042_v63  ;;  %v14093_v38 = vsel %vm479_vm0, %v6042_v63, 0.0  ;;  %v7878_v29 = vmul.f32 -1.442695, %v5158_v44  ;;  %v6203_v48 = vpop.permute.xlu0 %6202 }
 0xb63   : > { %7142 = vmatpush.msra.mxu2 %v7037_v20  ;;  %7372 = vmatpush.msrb.mxu0 %v7065_v16  ;;  %v5602_v42 = vsel %vm5599_vm1, %v5601_v6, %v5597_v49  ;;  %v7033_v13 = vld [vmem:[%s15235_s7 + $0x8] sm:$0xff]  ;;  %v6201_v20 = vpop.permute.xlu1 %6200  ;;  %v6480_v43 = vsel %vm1824_vm10, %v13641_v15, %v6203_v48 }
 0xb64   : > { %7256 = vmatpush.msra.mxu1 %v7052_v30  ;;  %8197 = vpow2.f32 %v7878_v29  ;;  %v6479_v49 = vsel %vm1824_vm10, %v13636_v51, %v6201_v20 }
 0xb65   : > { %7143 = vmatpush.msra.mxu2 %v7036_v60  ;;  %7373 = vmatpush.msrb.mxu0 %v7064_v11 }
 0xb66   : > { %7257 = vmatpush.msra.mxu1 %v7051_v32 }
 0xb67   : > { %7144 = vmatpush.msra.mxu2 %v7035_v12 }
 0xb68   : > { %7258 = vmatpush.msra.mxu1 %v7050_v8 }
 0xb69   : > { %5886 = vperm.xlu2 %8038, %v5587_v36   ;;  %7145 = vmatpush.msra.mxu2 %v7034_v26  ;;  %v6804_v36 = vrot.slane %v13922_v45, 2  ;;  %v5161_v58 = vpop.f32.mrf.mxu3 }
 0xb6a   : > { %6212 = vrot.lane.b32.xlu0 %v13855_v37, %s8271_s15  ;;  %6356 = vrot.lane.b32.xlu1 %v13999_v57, %s8270_s14  ;;  %v8198_v45 = vpop.eup %8197 }
 0xb6b   : > { %7146 = vmatpush.msra.mxu2 %v7033_v13  ;;  %7259 = vmatpush.msra.mxu1 %v7049_v4  ;;  %v6805_v35 = vsel %vm16227_vm12, %v6802_v55, %v6804_v36  ;;  %v14110_v39 = vadd.f32 1.0, %v8198_v45  ;;  %v16230_v13 = vld [vmem:[#allocation18_spill] sm:$0xff] }
 0xb6d   : > { %7147 = vmatpush.msra.mxu2 %v7032_v31  ;;  %7260 = vmatpush.msra.mxu1 %v7048_v33  ;;  %8199 = vrcp.f32 %v14110_v39  ;;  %v5645_v19 = vand.u32 2147483648, %v14110_v39  ;;  %vm5639_vm13 = vweird.f32 %v14110_v39  ;;  %v5643_v48 = vand.u32 2147483647, %v14110_v39 }
 0xb6e   : > { %8201 = vpow2.f32 %v7877_v52 }
 0xb6f   : > { %v5646_v52 = vor.u32 1.1754944e-38, %v5645_v19  ;;  %vm5644_vm1 = vcmp.eq.f32.partialorder %v5643_v48, 8.507059e+37 }
 0xb71   : > { %6877 = vrot.lane.b32.xlu2 %v6800_v24, %s8270_s14 }
 0xb72   : > { %6358 = vrot.lane.b32.xlu0 %v14055_v21, %s8270_s14  ;;  %5891 = vperm.xlu1 %8039, %v5602_v42  }
 0xb73   : > { %v8200_v53 = vpop.eup %8199 }
 0xb74   : > { %v5635_v32 = vmul.f32 %v8200_v53, %v14110_v39  ;;  %v8202_v11 = vpop.eup %8201  ;;  %vm5640_vm4 = vweird.f32 %v8200_v53 }
 0xb75   : > { %v14134_v25 = vadd.f32 1.0, %v8202_v11  ;;  %vm5641_vm3 = vmor %vm5639_vm13, %vm5640_vm4 }
 0xb76   : > { %v5636_v26 = vsub.f32 1.0, %v5635_v32  ;;  %vm16236_vm4 = vmmov %vm16231_vm7 }
 0xb77   : > { %8203 = vrcp.f32 %v14134_v25  ;;  %vm5624_vm9 = vweird.f32 %v14134_v25  ;;  %vm16237_vm13 = vmmov %vm16236_vm4 }
 0xb78   : > { %v5637_v41 = vmul.f32 %v8200_v53, %v5636_v26 }
 0xb79   : > { %6214 = vrot.lane.b32.xlu2 %v13940_v7, %s8271_s15 }
 0xb7a   : > { %5896 = vperm.xlu0 %8037, %v5617_v23   ;;  %6360 = vrot.lane.b32.xlu1 %v14093_v38, %s8270_s14  ;;  %v5638_v55 = vadd.f32 %v8200_v53, %v5637_v41 }
 0xb7d   : > { %v8204_v44 = vpop.eup %8203 }
 0xb7e   : > { %vm5625_vm8 = vweird.f32 %v8204_v44 }
 0xb7f   : > { %vm5626_vm11 = vmor %vm5624_vm9, %vm5625_vm8 }
 0xb81   : > { %6879 = vrot.lane.b32.xlu2 %v6803_v9, %s8270_s14 }
 0xb82   : > { %6881 = vrot.lane.b32.xlu0 %v6805_v35, %s8270_s14  ;;  %6218 = vrot.lane.b32.xlu1 %v13999_v57, %s8271_s15 }
 0xb89   : > { %6216 = vrot.lane.b32.xlu2 %v13943_v54, %s8271_s15 }
 0xb8a   : > { %6220 = vrot.lane.b32.xlu0 %v14055_v21, %s8271_s15 }
 0xb91   : > { %v6872_v59 = vpop.permute.xlu0 %6871 }
 0xb92   : > { %7889 = vmatmul.msk.f32.vlgmr.msrb.gmra.mxu0 %vm1824_vm10, %v6872_v59 }
 0xb93   : > { %v8042_v56 = vpop.permute.xlu2 %8041 }
 0xb94   : > { %v8043_v10 = vunpack.i.l.bf16 %v8042_v56  ;;  %v8044_v30 = vunpack.i.h.bf16 %v8042_v56  ;;  %v5642_v56 = vsel %vm5641_vm3, %v8200_v53, %v5638_v55 }
 0xb96   : > { %v6968_v50 = vsel %vm6967_vm6, %v13741_v3, %v8043_v10  ;;  %v7000_v60 = vsel %vm6518_vm5, %v8043_v10, %v6872_v59  ;;  %v6969_v15 = vsel %vm6967_vm6, %v13746_v28, %v8044_v30  ;;  %v5620_v10 = vmul.f32 %v8204_v44, %v14134_v25 }
 0xb97   : > { %7148 = vmatmul.f32.vlgmr.msra.gmra.mxu2 %v6968_v50  ;;  %7261 = vmatmul.f32.vlgmr.msra.gmra.mxu1 %v7000_v60  ;;  %v5647_v60 = vsel %vm5644_vm1, %v5646_v52, %v5642_v56 }
 0xb98   : > { %v6347_v16 = vpop.permute.xlu1 %6346  ;;  %v5621_v39 = vsub.f32 1.0, %v5620_v10 }
 0xb99   : > { %v14120_v63 = vsel %vm6518_vm5, %v6480_v43, %v6347_v16  ;;  %v6205_v0 = vpop.permute.xlu0 %6204  ;;  %v5164_v43 = vpop.f32.mrf.mxu3 }
 0xb9a   : > { %v6807_v12 = vrot.slane %v14120_v63, 2  ;;  %v6481_v9 = vsel %vm1824_vm10, %v13713_v46, %v6205_v0  ;;  %v6631_v20 = vrot.slane %v14120_v63, 1  ;;  %v5622_v53 = vmul.f32 %v8204_v44, %v5621_v39  ;;  %v16235_v39 = vld [vmem:[#allocation20_spill] sm:$0xff] }
 0xb9b   : > { %v6345_v6 = vpop.permute.xlu2 %6344 }
 0xb9c   : > { %v14125_v3 = vsel %vm6518_vm5, %v6479_v49, %v6345_v6  ;;  %v7880_v6 = vmul.f32 -1.442695, %v5164_v43 }
 0xb9d   : > { %v6806_v24 = vrot.slane %v14125_v3, 2  ;;  %v6630_v35 = vrot.slane %v14125_v3, 1 }
 0xb9e   : > { %8205 = vpow2.f32 %v7880_v6 }
 0xb9f   : > { %7151 = vmatmul.f32.gmra.mxu2 %v6969_v15  ;;  %v6808_v42 = vsel %vm16228_vm2, %v6806_v24, %v6807_v12  ;;  %v6632_v50 = vsel %vm16232_vm14, %v6630_v35, %v6631_v20 }
 0xba0   : > { %6883 = vrot.lane.b32.xlu0 %v6808_v42, %s8270_s14  ;;  %v5877_v51 = vpop.permute.xlu1 %5876  ;;  %v5623_v42 = vadd.f32 %v8204_v44, %v5622_v53 }
 0xba1   : > { %v14137_v8 = vmul.f32 %v5877_v51, %v16229_v14  ;;  %v5630_v14 = vand.u32 2147483648, %v14134_v25 }
 0xba2   : > { %v5627_v0 = vsel %vm5626_vm11, %v8204_v44, %v5623_v42 }
 0xba3   : > { %v5872_v18 = vpop.permute.xlu2 %5871  ;;  %v6045_v28 = vrot.slane %v14137_v8, 7 }
 0xba4   : > { %v5973_v4 = vmul.f32 %v5872_v18, %v16230_v13  ;;  %v7879_v18 = vmul.f32 -1.442695, %v5161_v58 }
 0xba6   : > { %v6044_v31 = vrot.slane %v5973_v4, 7  ;;  %v8206_v4 = vpop.eup %8205  ;;  %8207 = vpow2.f32 %v7879_v18 }
 0xba7   : > { %v14179_v55 = vadd.f32 1.0, %v8206_v4 }
 0xba8   : > { %6222 = vrot.lane.b32.xlu0 %v14093_v38, %s8271_s15  ;;  %v14147_v33 = vsel %vm479_vm0, %v6044_v31, %v6045_v28  ;;  %v14167_v11 = vsel %vm479_vm0, 0.0, %v6044_v31 }
 0xba9   : > { %v6874_v23 = vpop.permute.xlu1 %6873  ;;  %6364 = vrot.lane.b32.xlu1 %v14147_v33, %s8270_s14  ;;  %8209 = vrcp.f32 %v14179_v55 }
 0xbaa   : > { %7890 = vmatmul.msk.f32.gmra.mxu0 %vm1824_vm10, %v6874_v23  ;;  %v7001_v36 = vsel %vm6518_vm5, %v8044_v30, %v6874_v23  ;;  %v5631_v23 = vor.u32 1.1754944e-38, %v5630_v14 }
 0xbab   : > { %v6349_v29 = vpop.permute.xlu2 %6348  ;;  %7264 = vmatmul.f32.gmra.mxu1 %v7001_v36 }
 0xbac   : > { %v6530_v45 = vsel %vm6518_vm5, %v6481_v9, %v6349_v29  ;;  %v8208_v48 = vpop.eup %8207 }
 0xbad   : > { %v6633_v59 = vrot.slane %v6530_v45, 1  ;;  %v6809_v24 = vrot.slane %v6530_v45, 2 }
 0xbaf   : > { %v6634_v46 = vsel %vm16231_vm7, %v6631_v20, %v6633_v59  ;;  %v6810_v32 = vsel %vm16233_vm15, %v6807_v12, %v6809_v24  ;;  %v5628_v12 = vand.u32 2147483647, %v14134_v25  ;;  %v14201_v20 = vadd.f32 1.0, %v8208_v48  ;;  %v14211_v56 = vpop.eup %8209 }
 0xbb0   : > { %v8055_v16 = vpack.i.bf16 %v6634_v46, %v6632_v50  ;;  %v14206_v59 = vsel %vm479_vm0, %v6045_v28, 0.0  ;;  %v5665_v8 = vmul.f32 %v14211_v56, %v14179_v55  ;;  %v5167_v28 = vpop.f32.mrf.mxu3  ;;  %v16234_v50 = vld [vmem:[#allocation41_spill] sm:$0xff]  ;;  %vm5670_vm3 = vweird.f32 %v14211_v56 }
 0xbb1   : > { %v6209_v30 = vpop.permute.xlu1 %6208  ;;  %5906 = vperm.xlu1 %8039, %v5647_v60   ;;  %vm5629_vm12 = vcmp.eq.f32.partialorder %v5628_v12, 8.507059e+37  ;;  %8211 = vrcp.f32 %v14201_v20  ;;  %vm5669_vm7 = vweird.f32 %v14179_v55  ;;  %vm5654_vm8 = vweird.f32 %v14201_v20 }
 0xbb2   : > { %8056 = vrot.lane.b32.xlu2 %v8055_v16, %s8272_s16  ;;  %v6483_v58 = vsel %vm1824_vm10, %v13708_v27, %v6209_v30  ;;  %v5632_v25 = vsel %vm5629_vm12, %v5631_v23, %v5627_v0  ;;  %v5666_v16 = vsub.f32 1.0, %v5665_v8  ;;  %vm5671_vm1 = vmor %vm5669_vm7, %vm5670_vm3 }
 0xbb3   : > { %v6207_v49 = vpop.permute.xlu2 %6206  ;;  %vm16238_vm12 = vmmov %vm16228_vm2 }
 0xbb4   : > { %v6482_v19 = vsel %vm1824_vm10, %v13723_v17, %v6207_v49  ;;  %v5667_v18 = vmul.f32 %v14211_v56, %v5666_v16 }
 0xbb7   : > { %v14223_v43 = vpop.eup %8211 }
 0xbb8   : > { %v5170_v23 = vpop.f32.mrf.mxu3  ;;  %vm5655_vm15 = vweird.f32 %v14223_v43 }
 0xbb9   : > { %v6876_v15 = vpop.permute.xlu1 %6875  ;;  %6885 = vrot.lane.b32.xlu1 %v6810_v32, %s8270_s14  ;;  %v7881_v32 = vmul.f32 -1.442695, %v5167_v28  ;;  %vm5656_vm9 = vmor %vm5654_vm8, %vm5655_vm15 }
 0xbba   : > { %7891 = vmatmul.msk.f32.gmra.mxu0 %vm1824_vm10, %v6876_v15  ;;  %6362 = vrot.lane.b32.xlu2 %v14167_v11, %s8270_s14 }
 0xbbb   : > { %v6353_v51 = vpop.permute.xlu2 %6352  ;;  %8213 = vpow2.f32 %v7881_v32 }
 0xbbc   : > { %v8047_v26 = vpop.permute.xlu0 %8046  ;;  %v14186_v36 = vsel %vm6518_vm5, %v6483_v58, %v6353_v51 }
 0xbbd   : > { %v8048_v13 = vunpack.i.l.bf16 %v8047_v26  ;;  %v6812_v27 = vrot.slane %v14186_v36, 2  ;;  %v6636_v51 = vrot.slane %v14186_v36, 1 }
 0xbbf   : > { %v6970_v41 = vsel %vm6967_vm6, %v13795_v34, %v8048_v13  ;;  %v7002_v31 = vsel %vm6518_vm5, %v8048_v13, %v6876_v15  ;;  %v8049_v34 = vunpack.i.h.bf16 %v8047_v26  ;;  %v5650_v13 = vmul.f32 %v14223_v43, %v14201_v20 }
 0xbc0   : > { %7154 = vmatmul.f32.gmra.mxu2 %v6970_v41  ;;  %7267 = vmatmul.f32.gmra.mxu1 %v7002_v31 }
 0xbc1   : > { %6226 = vrot.lane.b32.xlu1 %v14147_v33, %s8271_s15  ;;  %v6971_v45 = vsel %vm6967_vm6, %v13792_v40, %v8049_v34  ;;  %v6211_v10 = vpop.permute.xlu1 %6210 }
 0xbc2   : > { %5901 = vperm.xlu2 %8038, %v5632_v25   ;;  %v6484_v30 = vsel %vm1824_vm10, %v13720_v2, %v6211_v10  ;;  %v5668_v25 = vadd.f32 %v14211_v56, %v5667_v18  ;;  %v8214_v10 = vpop.eup %8213 }
 0xbc3   : > { %v5887_v44 = vpop.permute.xlu2 %5886 }
 0xbc4   : > { %v6351_v9 = vpop.permute.xlu0 %6350  ;;  %v14228_v49 = vmul.f32 %v5887_v44, %v16235_v39 }
 0xbc5   : > { %v14191_v35 = vsel %vm6518_vm5, %v6482_v19, %v6351_v9  ;;  %v5675_v9 = vand.u32 2147483648, %v14179_v55 }
 0xbc6   : > { %v6811_v29 = vrot.slane %v14191_v35, 2  ;;  %v6635_v6 = vrot.slane %v14191_v35, 1  ;;  %v6048_v12 = vrot.slane %v14228_v49, 7 }
 0xbc7   : > { %v5676_v8 = vor.u32 1.1754944e-38, %v5675_v9 }
 0xbc8   : > { %7157 = vmatmul.f32.gmra.mxu2 %v6971_v45  ;;  %v6813_v17 = vsel %vm16228_vm2, %v6811_v29, %v6812_v27  ;;  %v6637_v31 = vsel %vm16237_vm13, %v6635_v6, %v6636_v51  ;;  %v7882_v29 = vmul.f32 -1.442695, %v5170_v23  ;;  %vm16239_vm2 = vmmov %vm16236_vm4 }
 0xbc9   : > { %6887 = vrot.lane.b32.xlu1 %v6813_v17, %s8270_s14  ;;  %v5673_v17 = vand.u32 2147483647, %v14179_v55  ;;  %vm16243_vm13 = vmmov %vm16238_vm12 }
 0xbca   : > { %6366 = vrot.lane.b32.xlu2 %v14206_v59, %s8270_s14  ;;  %8215 = vpow2.f32 %v7882_v29 }
 0xbcb   : > { %v6878_v40 = vpop.permute.xlu2 %6877  ;;  %vm5674_vm14 = vcmp.eq.f32.partialorder %v5673_v17, 8.507059e+37 }
 0xbcc   : > { %v5882_v52 = vpop.permute.xlu0 %5881  ;;  %7892 = vmatmul.msk.f32.gmra.mxu0 %vm1824_vm10, %v6878_v40  ;;  %v7003_v46 = vsel %vm6518_vm5, %v8049_v34, %v6878_v40  ;;  %v5672_v40 = vsel %vm5671_vm1, %v14211_v56, %v5668_v25 }
 0xbcd   : > { %7270 = vmatmul.f32.gmra.mxu1 %v7003_v46  ;;  %v5975_v60 = vmul.f32 %v5882_v52, %v16234_v50  ;;  %v5677_v55 = vsel %vm5674_vm14, %v5676_v8, %v5672_v40  ;;  %v14274_v50 = vadd.f32 1.0, %v8214_v10 }
 0xbcf   : > { %v6047_v26 = vrot.slane %v5975_v60, 7  ;;  %8217 = vrcp.f32 %v14274_v50  ;;  %vm5684_vm7 = vweird.f32 %v14274_v50 }
 0xbd0   : > { %v8216_v6 = vpop.eup %8215 }
 0xbd1   : > { %6228 = vrot.lane.b32.xlu1 %v14206_v59, %s8271_s15  ;;  %v14252_v58 = vsel %vm479_vm0, %v6047_v26, %v6048_v12  ;;  %v14272_v28 = vsel %vm479_vm0, 0.0, %v6047_v26 }
 0xbd2   : > { %6224 = vrot.lane.b32.xlu2 %v14167_v11, %s8271_s15 }
 0xbd3   : > { %v14231_v24 = vpop.permute.xlu2 %6214 }
 0xbd4   : > { %v6355_v53 = vpop.permute.xlu0 %6354  ;;  %v14236_v42 = vpop.permute.xlu1 %8051 }
 0xbd5   : > { %v14234_v15 = vsel %vm6518_vm5, %v6484_v30, %v6355_v53  ;;  %v8053_v2 = vunpack.i.l.bf16 %v14236_v42  ;;  %v8054_v34 = vunpack.i.h.bf16 %v14236_v42  ;;  %v5658_v30 = vand.u32 2147483647, %v14201_v20 }
 0xbd6   : > { %v6638_v14 = vrot.slane %v14234_v15, 1  ;;  %v6814_v39 = vrot.slane %v14234_v15, 2 }
 0xbd7   : > { %v6972_v41 = vsel %vm6967_vm6, %v13901_v47, %v8053_v2  ;;  %v5651_v47 = vsub.f32 1.0, %v5650_v13  ;;  %v6973_v46 = vsel %vm6967_vm6, %v13890_v62, %v8054_v34  ;;  %v5660_v62 = vand.u32 2147483648, %v14201_v20 }
 0xbd8   : > { %v6639_v4 = vsel %vm16236_vm4, %v6636_v51, %v6638_v14  ;;  %7160 = vmatmul.f32.gmra.mxu2 %v6972_v41  ;;  %v6486_v51 = vsel %vm1824_vm10, %v13760_v5, %v14231_v24  ;;  %vm5659_vm11 = vcmp.eq.f32.partialorder %v5658_v30, 8.507059e+37  ;;  %v14291_v14 = vadd.f32 1.0, %v8216_v6  ;;  %vm16240_vm4 = vmmov %vm16239_vm2 }
 0xbd9   : > { %v8060_v0 = vpack.i.bf16 %v6639_v4, %v6637_v31  ;;  %v5652_v52 = vmul.f32 %v14223_v43, %v5651_v47  ;;  %v5661_v32 = vor.u32 1.1754944e-38, %v5660_v62 }
 0xbda   : > { %6370 = vrot.lane.b32.xlu2 %v14252_v58, %s8270_s14  ;;  %8219 = vrcp.f32 %v14291_v14  ;;  %vm5699_vm8 = vweird.f32 %v14291_v14 }
 0xbdb   : > { %8061 = vrot.lane.b32.xlu0 %v8060_v0, %s8272_s16  ;;  %v6880_v19 = vpop.permute.xlu2 %6879  ;;  %v5653_v56 = vadd.f32 %v14223_v43, %v5652_v52 }
 0xbdc   : > { %v6213_v44 = vpop.permute.xlu0 %6212  ;;  %v6357_v48 = vpop.permute.xlu1 %6356  ;;  %7893 = vmatmul.msk.f32.gmra.mxu0 %vm1824_vm10, %v6880_v19  ;;  %v7004_v45 = vsel %vm6518_vm5, %v8053_v2, %v6880_v19  ;;  %v6815_v2 = vsel %vm16238_vm12, %v6812_v27, %v6814_v39  ;;  %v16241_v19 = vld [vmem:[#allocation21_spill] sm:$0xff] }
 0xbdd   : > { %7273 = vmatmul.f32.gmra.mxu1 %v7004_v45  ;;  %v5657_v53 = vsel %vm5656_vm9, %v14223_v43, %v5653_v56  ;;  %v6485_v26 = vsel %vm1824_vm10, %v13800_v22, %v6213_v44  ;;  %v8218_v22 = vpop.eup %8217  ;;  %v5173_v45 = vpop.f32.mrf.mxu3 }
 0xbde   : > { %v5662_v43 = vsel %vm5659_vm11, %v5661_v32, %v5657_v53  ;;  %v14301_v5 = vsel %vm6518_vm5, %v6485_v26, %v6357_v48  ;;  %v5680_v0 = vmul.f32 %v8218_v22, %v14274_v50  ;;  %vm5685_vm3 = vweird.f32 %v8218_v22 }
 0xbdf   : > { %v6640_v27 = vrot.slane %v14301_v5, 1  ;;  %v6816_v52 = vrot.slane %v14301_v5, 2  ;;  %vm5686_vm1 = vmor %vm5684_vm7, %vm5685_vm3 }
 0xbe0   : > { %7163 = vmatmul.f32.gmra.mxu2 %v6973_v46  ;;  %v8220_v9 = vpop.eup %8219  ;;  %v5681_v48 = vsub.f32 1.0, %v5680_v0  ;;  %v16242_v46 = vld [vmem:[#allocation22_spill] sm:$0xff] }
 0xbe1   : > { %v5695_v40 = vmul.f32 %v8220_v9, %v14291_v14  ;;  %vm5700_vm15 = vweird.f32 %v8220_v9 }
 0xbe2   : > { %5916 = vperm.xlu2 %8038, %v5677_v55   ;;  %v5682_v10 = vmul.f32 %v8218_v22, %v5681_v48  ;;  %vm5701_vm9 = vmor %vm5699_vm8, %vm5700_vm15 }
 0xbe3   : > { %6368 = vrot.lane.b32.xlu0 %v14272_v28, %s8270_s14  ;;  %v6217_v20 = vpop.permute.xlu2 %6216  ;;  %v5696_v42 = vsub.f32 1.0, %v5695_v40 }
 0xbe4   : > { %v6359_v60 = vpop.permute.xlu0 %6358  ;;  %v5892_v16 = vpop.permute.xlu1 %5891  ;;  %v6487_v18 = vsel %vm1824_vm10, %v13848_v1, %v6217_v20  ;;  %v14318_v1 = vsel %vm479_vm0, %v6048_v12, 0.0 }
 0xbe5   : > { %v14294_v15 = vsel %vm6518_vm5, %v6486_v51, %v6359_v60  ;;  %v5977_v44 = vmul.f32 %v5892_v16, %v16241_v19  ;;  %v5690_v60 = vand.u32 2147483648, %v14274_v50  ;;  %v5688_v16 = vand.u32 2147483647, %v14274_v50  ;;  %v5176_v6 = vpop.f32.mrf.mxu3 }
 0xbe6   : > { %v6641_v13 = vrot.slane %v14294_v15, 1  ;;  %v6817_v12 = vrot.slane %v14294_v15, 2  ;;  %v5697_v30 = vmul.f32 %v8220_v9, %v5696_v42  ;;  %v7884_v20 = vmul.f32 -1.442695, %v5176_v6  ;;  %v16246_v6 = vld [vmem:[#allocation39_spill] sm:$0xff] }
 0xbe7   : > { %v6050_v17 = vrot.slane %v5977_v44, 7  ;;  %v5691_v53 = vor.u32 1.1754944e-38, %v5690_v60  ;;  %vm5689_vm14 = vcmp.eq.f32.partialorder %v5688_v16, 8.507059e+37  ;;  %v5705_v50 = vand.u32 2147483648, %v14291_v14 }
 0xbe8   : > { %v6642_v25 = vsel %vm16240_vm4, %v6640_v27, %v6641_v13  ;;  %v6818_v55 = vsel %vm16243_vm13, %v6816_v52, %v6817_v12  ;;  %v5698_v26 = vadd.f32 %v8220_v9, %v5697_v30  ;;  %8221 = vpow2.f32 %v7884_v20  ;;  %vm16247_vm13 = vmmov %vm16240_vm4 }
 0xbe9   : > { %v14336_v56 = vsel %vm479_vm0, 0.0, %v6050_v17 }
 0xbea   : > { %6889 = vrot.lane.b32.xlu2 %v6815_v2, %s8270_s14  ;;  %v5703_v2 = vand.u32 2147483647, %v14291_v14 }
 0xbeb   : > { %5911 = vperm.xlu0 %8037, %v5662_v43   ;;  %v5702_v43 = vsel %vm5701_vm9, %v8220_v9, %v5698_v26 }
 0xbec   : > { %v5897_v24 = vpop.permute.xlu0 %5896  ;;  %v6361_v4 = vpop.permute.xlu1 %6360  ;;  %vm5704_vm11 = vcmp.eq.f32.partialorder %v5703_v2, 8.507059e+37 }
 0xbed   : > { %v14308_v41 = vsel %vm6518_vm5, %v6487_v18, %v6361_v4  ;;  %v5978_v8 = vmul.f32 %v5897_v24, %v16242_v46  ;;  %v5706_v24 = vor.u32 1.1754944e-38, %v5705_v50 }
 0xbee   : > { %v6643_v31 = vrot.slane %v14308_v41, 1  ;;  %v8222_v27 = vpop.eup %8221  ;;  %v6819_v14 = vrot.slane %v14308_v41, 2 }
 0xbef   : > { %v6051_v62 = vrot.slane %v5978_v8, 7 }
 0xbf0   : > { %v6644_v23 = vsel %vm16239_vm2, %v6641_v13, %v6643_v31  ;;  %v7883_v31 = vmul.f32 -1.442695, %v5173_v45  ;;  %vm16244_vm2 = vmmov %vm16238_vm12 }
 0xbf1   : > { %v8065_v47 = vpack.i.bf16 %v6644_v23, %v6642_v25  ;;  %v14347_v32 = vsel %vm479_vm0, %v6050_v17, %v6051_v62  ;;  %v14357_v18 = vsel %vm479_vm0, %v6051_v62, 0.0  ;;  %v14367_v25 = vadd.f32 1.0, %v8222_v27 }
 0xbf2   : > { %6232 = vrot.lane.b32.xlu2 %v14252_v58, %s8271_s15  ;;  %8223 = vpow2.f32 %v7883_v31 }
 0xbf3   : > { %6372 = vrot.lane.b32.xlu0 %v14318_v1, %s8270_s14  ;;  %8066 = vrot.lane.b32.xlu1 %v8065_v47, %s8272_s16  ;;  %v6820_v47 = vsel %vm16238_vm12, %v6817_v12, %v6819_v14  ;;  %8225 = vrcp.f32 %v14367_v25  ;;  %v5735_v14 = vand.u32 2147483648, %v14367_v25  ;;  %vm5729_vm7 = vweird.f32 %v14367_v25 }
 0xbf4   : > { %v6882_v29 = vpop.permute.xlu0 %6881  ;;  %v6219_v44 = vpop.permute.xlu1 %6218 }
 0xbf5   : > { %7894 = vmatmul.msk.f32.gmra.mxu0 %vm1824_vm10, %v6882_v29  ;;  %v7005_v49 = vsel %vm6518_vm5, %v8054_v34, %v6882_v29  ;;  %v5683_v34 = vadd.f32 %v8218_v22, %v5682_v10  ;;  %v6488_v45 = vsel %vm1824_vm10, %v13855_v37, %v6219_v44 }
 0xbf6   : > { %7276 = vmatmul.f32.gmra.mxu1 %v7005_v49 }
 0xbf7   : > { %v5687_v39 = vsel %vm5686_vm1, %v8218_v22, %v5683_v34  ;;  %v5707_v22 = vsel %vm5704_vm11, %v5706_v24, %v5702_v43  ;;  %v16245_v34 = vld [vmem:[#allocation42_spill] sm:$0xff]  ;;  %vm16248_vm11 = vmmov %vm16244_vm2 }
 0xbf8   : > { %v5692_v51 = vsel %vm5689_vm14, %v5691_v53, %v5687_v39  ;;  %v8224_v29 = vpop.eup %8223 }
 0xbf9   : > { %v8226_v49 = vpop.eup %8225  ;;  %v14379_v12 = vadd.f32 1.0, %v8224_v29 }
 0xbfa   : > { %6891 = vrot.lane.b32.xlu2 %v6818_v55, %s8270_s14  ;;  %v5725_v8 = vmul.f32 %v8226_v49, %v14367_v25  ;;  %vm5730_vm3 = vweird.f32 %v8226_v49 }
 0xbfb   : > { %6230 = vrot.lane.b32.xlu0 %v14272_v28, %s8271_s15  ;;  %6374 = vrot.lane.b32.xlu1 %v14336_v56, %s8270_s14  ;;  %8227 = vrcp.f32 %v14379_v12  ;;  %vm5731_vm1 = vmor %vm5729_vm7, %vm5730_vm3  ;;  %vm5714_vm8 = vweird.f32 %v14379_v12 }
 0xbfc   : > { %v6221_v13 = vpop.permute.xlu0 %6220 }
 0xbfd   : > { %v6489_v17 = vsel %vm1824_vm10, %v13940_v7, %v6221_v13  ;;  %v5726_v7 = vsub.f32 1.0, %v5725_v8  ;;  %v5720_v8 = vand.u32 2147483648, %v14379_v12 }
 0xbff   : > { %v5727_v20 = vmul.f32 %v8226_v49, %v5726_v7 }
 0xc01   : > { %v8228_v16 = vpop.eup %8227  ;;  %v5728_v31 = vadd.f32 %v8226_v49, %v5727_v20 }
 0xc02   : > { %6234 = vrot.lane.b32.xlu2 %v14318_v1, %s8271_s15  ;;  %vm5715_vm15 = vweird.f32 %v8228_v16 }
 0xc03   : > { %6376 = vrot.lane.b32.xlu0 %v14347_v32, %s8270_s14  ;;  %5921 = vperm.xlu1 %8039, %v5692_v51   ;;  %vm5716_vm9 = vmor %vm5714_vm8, %vm5715_vm15 }
 0xc04   : > { %vm16253_vm15 = vmmov %vm16244_vm2 }
 0xc0b   : > { %5926 = vperm.xlu0 %8037, %v5707_v22   ;;  %6378 = vrot.lane.b32.xlu1 %v14357_v18, %s8270_s14  ;;  %v5710_v22 = vmul.f32 %v8228_v16, %v14379_v12 }
 0xc0c   : > { %v14361_v4 = vpop.permute.xlu2 %8056 }
 0xc0d   : > { %v8058_v0 = vunpack.i.l.bf16 %v14361_v4  ;;  %v8059_v9 = vunpack.i.h.bf16 %v14361_v4 }
 0xc0f   : > { %v6974_v23 = vsel %vm6967_vm6, %v14125_v3, %v8058_v0  ;;  %v6975_v48 = vsel %vm6967_vm6, %v14120_v63, %v8059_v9 }
 0xc10   : > { %7166 = vmatmul.f32.gmra.mxu2 %v6974_v23  ;;  %v5733_v23 = vand.u32 2147483647, %v14367_v25 }
 0xc12   : > { %v6884_v19 = vpop.permute.xlu0 %6883  ;;  %vm5734_vm14 = vcmp.eq.f32.partialorder %v5733_v23, 8.507059e+37 }
 0xc13   : > { %6893 = vrot.lane.b32.xlu0 %v6820_v47, %s8270_s14  ;;  %7895 = vmatmul.msk.f32.gmra.mxu0 %vm1824_vm10, %v6884_v19  ;;  %v7006_v41 = vsel %vm6518_vm5, %v8058_v0, %v6884_v19  ;;  %v5711_v47 = vsub.f32 1.0, %v5710_v22 }
 0xc14   : > { %6236 = vrot.lane.b32.xlu1 %v14336_v56, %s8271_s15  ;;  %v6363_v3 = vpop.permute.xlu2 %6362  ;;  %7279 = vmatmul.f32.gmra.mxu1 %v7006_v41  ;;  %v5732_v41 = vsel %vm5731_vm1, %v8226_v49, %v5728_v31  ;;  %v5718_v49 = vand.u32 2147483647, %v14379_v12  ;;  %vm16251_vm1 = vcmask 1046528  }
 0xc15   : > { %v14388_v52 = vsel %vm6518_vm5, %v6488_v45, %v6363_v3  ;;  %v5736_v3 = vor.u32 1.1754944e-38, %v5735_v14  ;;  %v5712_v29 = vmul.f32 %v8228_v16, %v5711_v47  ;;  %v5179_v45 = vpop.f32.mrf.mxu3 }
 0xc16   : > { %v6821_v55 = vrot.slane %v14388_v52, 2  ;;  %v6645_v50 = vrot.slane %v14388_v52, 1  ;;  %vm5719_vm12 = vcmp.eq.f32.partialorder %v5718_v49, 8.507059e+37 }
 0xc17   : > { %v5713_v25 = vadd.f32 %v8228_v16, %v5712_v29 }
 0xc18   : > { %7169 = vmatmul.f32.gmra.mxu2 %v6975_v48  ;;  %v5737_v48 = vsel %vm5734_vm14, %v5736_v3, %v5732_v41  ;;  %v16249_v41 = vld [vmem:[#allocation23_spill] sm:$0xff]  ;;  %vm16252_vm14 = vmmov %vm16251_vm1 }
 0xc1a   : > { %v6223_v37 = vpop.permute.xlu0 %6222 }
 0xc1b   : > { %6238 = vrot.lane.b32.xlu0 %v14347_v32, %s8271_s15  ;;  %v6365_v40 = vpop.permute.xlu1 %6364  ;;  %v6490_v30 = vsel %vm1824_vm10, %v13943_v54, %v6223_v37 }
 0xc1c   : > { %v14391_v10 = vsel %vm6518_vm5, %v6489_v17, %v6365_v40  ;;  %v5902_v63 = vpop.permute.xlu2 %5901 }
 0xc1d   : > { %v6822_v46 = vrot.slane %v14391_v10, 2  ;;  %v5979_v60 = vmul.f32 %v5902_v63, %v16245_v34  ;;  %v6646_v39 = vrot.slane %v14391_v10, 1  ;;  %v5182_v7 = vpop.f32.mrf.mxu3 }
 0xc1f   : > { %v6823_v42 = vsel %vm16244_vm2, %v6821_v55, %v6822_v46  ;;  %v6053_v2 = vrot.slane %v5979_v60, 7  ;;  %v6647_v54 = vsel %vm16247_vm13, %v6645_v50, %v6646_v39  ;;  %v5717_v55 = vsel %vm5716_vm9, %v8228_v16, %v5713_v25 }
 0xc21   : > { %v14423_v17 = vsel %vm479_vm0, 0.0, %v6053_v2 }
 0xc23   : > { %6895 = vrot.lane.b32.xlu0 %v6823_v42, %s8270_s14  ;;  %v5907_v62 = vpop.permute.xlu1 %5906  ;;  %v5721_v42 = vor.u32 1.1754944e-38, %v5720_v8 }
 0xc24   : > { %v5980_v53 = vmul.f32 %v5907_v62, %v16246_v6  ;;  %v6367_v51 = vpop.permute.xlu2 %6366  ;;  %v7886_v62 = vmul.f32 -1.442695, %v5182_v7 }
 0xc25   : > { %v6539_v26 = vsel %vm6518_vm5, %v6490_v30, %v6367_v51  ;;  %v5722_v34 = vsel %vm5719_vm12, %v5721_v42, %v5717_v55  ;;  %v7885_v51 = vmul.f32 -1.442695, %v5179_v45  ;;  %v16250_v45 = vld [vmem:[#allocation43_spill] sm:$0xff]  ;;  %v5185_v8 = vpop.f32.mrf.mxu3 }
 0xc26   : > { %v6054_v43 = vrot.slane %v5980_v53, 7  ;;  %v6648_v24 = vrot.slane %v6539_v26, 1  ;;  %v6824_v63 = vrot.slane %v6539_v26, 2  ;;  %8229 = vpow2.f32 %v7886_v62 }
 0xc27   : > { %v7887_v62 = vmul.f32 -1.442695, %v5185_v8 }
 0xc28   : > { %v6649_v13 = vsel %vm16240_vm4, %v6646_v39, %v6648_v24  ;;  %v14409_v4 = vsel %vm479_vm0, %v6053_v2, %v6054_v43  ;;  %v6825_v37 = vsel %vm16248_vm11, %v6822_v46, %v6824_v63  ;;  %v14436_v12 = vsel %vm479_vm0, %v6054_v43, 0.0 }
 0xc29   : > { %6382 = vrot.lane.b32.xlu1 %v14409_v4, %s8270_s14  ;;  %v8070_v27 = vpack.i.bf16 %v6649_v13, %v6647_v54 }
 0xc2b   : > { %6240 = vrot.lane.b32.xlu0 %v14357_v18, %s8271_s15  ;;  %v6886_v0 = vpop.permute.xlu1 %6885  ;;  %8071 = vrot.lane.b32.xlu2 %v8070_v27, %s8272_s16 }
 0xc2c   : > { %7896 = vmatmul.msk.f32.gmra.mxu0 %vm1824_vm10, %v6886_v0  ;;  %v6225_v19 = vpop.permute.xlu2 %6224  ;;  %v7007_v44 = vsel %vm6518_vm5, %v8059_v9, %v6886_v0  ;;  %v8230_v16 = vpop.eup %8229 }
 0xc2d   : > { %7282 = vmatmul.f32.gmra.mxu1 %v7007_v44  ;;  %v14441_v39 = vadd.f32 1.0, %v8230_v16  ;;  %v6491_v13 = vsel %vm1824_vm10, %v13999_v57, %v6225_v19 }
 0xc2f   : > { %8231 = vrcp.f32 %v14441_v39  ;;  %v5763_v55 = vand.u32 2147483647, %v14441_v39  ;;  %vm5759_vm13 = vweird.f32 %v14441_v39 }
 0xc30   : > { %8233 = vpow2.f32 %v7885_v51 }
 0xc31   : > { %5936 = vperm.xlu1 %8039, %v5737_v48   ;;  %vm5764_vm7 = vcmp.eq.f32.partialorder %v5763_v55, 8.507059e+37 }
 0xc33   : > { %v6227_v40 = vpop.permute.xlu1 %6226  ;;  %6380 = vrot.lane.b32.xlu2 %v14423_v17, %s8270_s14 }
 0xc34   : > { %v6371_v9 = vpop.permute.xlu2 %6370  ;;  %v6492_v2 = vsel %vm1824_vm10, %v14055_v21, %v6227_v40 }
 0xc35   : > { %v8232_v43 = vpop.eup %8231  ;;  %v14454_v24 = vsel %vm6518_vm5, %v6492_v2, %v6371_v9 }
 0xc36   : > { %v6827_v21 = vrot.slane %v14454_v24, 2  ;;  %v5755_v14 = vmul.f32 %v8232_v43, %v14441_v39  ;;  %v8234_v0 = vpop.eup %8233  ;;  %vm5760_vm4 = vweird.f32 %v8232_v43  ;;  %v6651_v16 = vrot.slane %v14454_v24, 1 }
 0xc37   : > { %v14472_v19 = vadd.f32 1.0, %v8234_v0  ;;  %vm5761_vm3 = vmor %vm5759_vm13, %vm5760_vm4 }
 0xc38   : > { %v5756_v44 = vsub.f32 1.0, %v5755_v14  ;;  %vm16255_vm4 = vmmov %vm16253_vm15 }
 0xc39   : > { %6897 = vrot.lane.b32.xlu1 %v6825_v37, %s8270_s14  ;;  %8235 = vrcp.f32 %v14472_v19  ;;  %v5765_v37 = vand.u32 2147483648, %v14441_v39  ;;  %vm5744_vm9 = vweird.f32 %v14472_v19  ;;  %vm16256_vm13 = vmmov %vm16251_vm1 }
 0xc3a   : > { %v5757_v40 = vmul.f32 %v8232_v43, %v5756_v44  ;;  %8237 = vpow2.f32 %v7887_v62 }
 0xc3b   : > { %v6888_v60 = vpop.permute.xlu1 %6887  ;;  %5931 = vperm.xlu2 %8038, %v5722_v34  }
 0xc3c   : > { %7897 = vmatmul.msk.f32.gmra.mxu0 %vm1824_vm10, %v6888_v60  ;;  %v5917_v30 = vpop.permute.xlu2 %5916  ;;  %v5758_v49 = vadd.f32 %v8232_v43, %v5757_v40 }
 0xc3d   : > { %v14475_v3 = vmul.f32 %v5917_v30, %v16249_v41 }
 0xc3f   : > { %v6057_v25 = vrot.slane %v14475_v3, 7  ;;  %v14491_v42 = vpop.eup %8235 }
 0xc40   : > { %vm5745_vm8 = vweird.f32 %v14491_v42 }
 0xc41   : > { %6244 = vrot.lane.b32.xlu1 %v14409_v4, %s8271_s15  ;;  %vm5746_vm11 = vmor %vm5744_vm9, %vm5745_vm8 }
 0xc43   : > { %6384 = vrot.lane.b32.xlu2 %v14436_v12, %s8270_s14  ;;  %v6229_v48 = vpop.permute.xlu1 %6228 }
 0xc44   : > { %v6890_v46 = vpop.permute.xlu2 %6889  ;;  %v6493_v7 = vsel %vm1824_vm10, %v14093_v38, %v6229_v48  ;;  %v5740_v38 = vmul.f32 %v14491_v42, %v14472_v19 }
 0xc45   : > { %7898 = vmatmul.msk.f32.gmra.mxu0 %vm1824_vm10, %v6890_v46 }
 0xc4b   : > { %6242 = vrot.lane.b32.xlu2 %v14423_v17, %s8271_s15 }
 0xc4c   : > { %v14445_v6 = vpop.permute.xlu2 %6232 }
 0xc4d   : > { %v8062_v53 = vpop.permute.xlu0 %8061  ;;  %v6495_v55 = vsel %vm1824_vm10, %v14147_v33, %v14445_v6 }
 0xc4e   : > { %v8063_v26 = vunpack.i.l.bf16 %v8062_v53  ;;  %v8064_v22 = vunpack.i.h.bf16 %v8062_v53 }
 0xc50   : > { %v6976_v20 = vsel %vm6967_vm6, %v14191_v35, %v8063_v26  ;;  %v7008_v50 = vsel %vm6518_vm5, %v8063_v26, %v6888_v60  ;;  %v6977_v23 = vsel %vm6967_vm6, %v14186_v36, %v8064_v22  ;;  %v7009_v47 = vsel %vm6518_vm5, %v8064_v22, %v6890_v46 }
 0xc51   : > { %7172 = vmatmul.f32.gmra.mxu2 %v6976_v20  ;;  %7285 = vmatmul.f32.gmra.mxu1 %v7008_v50  ;;  %v5762_v26 = vsel %vm5761_vm3, %v8232_v43, %v5758_v49  ;;  %v5766_v20 = vor.u32 1.1754944e-38, %v5765_v37  ;;  %v5188_v43 = vpop.f32.mrf.mxu3 }
 0xc54   : > { %v6892_v54 = vpop.permute.xlu2 %6891 }
 0xc55   : > { %v6369_v27 = vpop.permute.xlu0 %6368  ;;  %7899 = vmatmul.msk.f32.gmra.mxu0 %vm1824_vm10, %v6892_v54 }
 0xc56   : > { %v14459_v35 = vsel %vm6518_vm5, %v6491_v13, %v6369_v27  ;;  %v5767_v13 = vsel %vm5764_vm7, %v5766_v20, %v5762_v26 }
 0xc57   : > { %v6826_v31 = vrot.slane %v14459_v35, 2  ;;  %v6650_v34 = vrot.slane %v14459_v35, 1 }
 0xc59   : > { %7175 = vmatmul.f32.gmra.mxu2 %v6977_v23  ;;  %7288 = vmatmul.f32.gmra.mxu1 %v7009_v47  ;;  %v6828_v57 = vsel %vm16244_vm2, %v6826_v31, %v6827_v21  ;;  %v6652_v22 = vsel %vm16252_vm14, %v6650_v34, %v6651_v16  ;;  %v5741_v31 = vsub.f32 1.0, %v5740_v38  ;;  %v7888_v23 = vmul.f32 -1.442695, %v5188_v43  ;;  %vm16254_vm2 = vmmov %vm16251_vm1 }
 0xc5a   : > { %6899 = vrot.lane.b32.xlu1 %v6828_v57, %s8270_s14  ;;  %v8238_v57 = vpop.eup %8237 }
 0xc5b   : > { %8239 = vpow2.f32 %v7888_v23  ;;  %v14523_v48 = vadd.f32 1.0, %v8238_v57 }
 0xc5c   : > { %v6235_v34 = vpop.permute.xlu2 %6234 }
 0xc5d   : > { %v5912_v29 = vpop.permute.xlu0 %5911  ;;  %8241 = vrcp.f32 %v14523_v48  ;;  %vm5774_vm7 = vweird.f32 %v14523_v48 }
 0xc5e   : > { %v5981_v36 = vmul.f32 %v5912_v29, %v16250_v45 }
 0xc60   : > { %v6056_v63 = vrot.slane %v5981_v36, 7  ;;  %v5750_v36 = vand.u32 2147483648, %v14472_v19 }
 0xc62   : > { %6246 = vrot.lane.b32.xlu1 %v14436_v12, %s8271_s15  ;;  %v14485_v9 = vsel %vm479_vm0, %v6056_v63, %v6057_v25  ;;  %v14520_v29 = vsel %vm479_vm0, 0.0, %v6056_v63  ;;  %v8240_v63 = vpop.eup %8239  ;;  %v5751_v49 = vor.u32 1.1754944e-38, %v5750_v36 }
 0xc63   : > { %6388 = vrot.lane.b32.xlu2 %v14485_v9, %s8270_s14  ;;  %v14549_v33 = vpop.eup %8241 }
 0xc64   : > { %v5770_v38 = vmul.f32 %v14549_v33, %v14523_v48  ;;  %vm5775_vm3 = vweird.f32 %v14549_v33 }
 0xc65   : > { %v6373_v60 = vpop.permute.xlu0 %6372  ;;  %v14498_v46 = vpop.permute.xlu1 %8066 }
 0xc66   : > { %v6542_v30 = vsel %vm6518_vm5, %v6493_v7, %v6373_v60  ;;  %v8068_v51 = vunpack.i.l.bf16 %v14498_v46  ;;  %v8069_v14 = vunpack.i.h.bf16 %v14498_v46  ;;  %v14539_v7 = vadd.f32 1.0, %v8240_v63 }
 0xc67   : > { %v6653_v53 = vrot.slane %v6542_v30, 1  ;;  %v6829_v47 = vrot.slane %v6542_v30, 2 }
 0xc68   : > { %v6978_v39 = vsel %vm6967_vm6, %v14301_v5, %v8068_v51  ;;  %v7010_v2 = vsel %vm6518_vm5, %v8068_v51, %v6892_v54  ;;  %v5742_v54 = vmul.f32 %v14491_v42, %v5741_v31  ;;  %v6979_v44 = vsel %vm6967_vm6, %v14294_v15, %v8069_v14 }
 0xc69   : > { %v6654_v50 = vsel %vm16251_vm1, %v6651_v16, %v6653_v53  ;;  %7178 = vmatmul.f32.gmra.mxu2 %v6978_v39  ;;  %7291 = vmatmul.f32.gmra.mxu1 %v7010_v2  ;;  %v6830_v41 = vsel %vm16253_vm15, %v6827_v21, %v6829_v47  ;;  %v5748_v21 = vand.u32 2147483647, %v14472_v19  ;;  %8243 = vrcp.f32 %v14539_v7  ;;  %vm5776_vm1 = vmor %vm5774_vm7, %vm5775_vm3 }
 0xc6a   : > { %v8075_v27 = vpack.i.bf16 %v6654_v50, %v6652_v22  ;;  %v5743_v45 = vadd.f32 %v14491_v42, %v5742_v54  ;;  %v14572_v2 = vsel %vm479_vm0, %v6057_v25, 0.0  ;;  %vm5789_vm8 = vweird.f32 %v14539_v7  ;;  %vm16267_vm3 = vmmov %vm16255_vm4 }
 0xc6b   : > { %5946 = vperm.xlu2 %8038, %v5767_v13   ;;  %vm5749_vm12 = vcmp.eq.f32.partialorder %v5748_v21, 8.507059e+37  ;;  %v16257_v13 = vld [vmem:[#allocation24_spill] sm:$0xff]  ;;  %v5780_v21 = vand.u32 2147483648, %v14523_v48  ;;  %vm16268_vm7 = vmmov %vm16267_vm3 }
 0xc6c   : > { %8076 = vrot.lane.b32.xlu0 %v8075_v27, %s8272_s16  ;;  %v5747_v8 = vsel %vm5746_vm11, %v14491_v42, %v5743_v45 }
 0xc6d   : > { %v6231_v0 = vpop.permute.xlu0 %6230  ;;  %v6375_v5 = vpop.permute.xlu1 %6374  ;;  %v5752_v60 = vsel %vm5749_vm12, %v5751_v49, %v5747_v8  ;;  %v5778_v8 = vand.u32 2147483647, %v14523_v48  ;;  %vm16263_vm12 = vmmov %vm16254_vm2 }
 0xc6e   : > { %v6494_v37 = vsel %vm1824_vm10, %v14167_v11, %v6231_v0  ;;  %v6496_v11 = vsel %vm1824_vm10, %v14206_v59, %v6235_v34  ;;  %v5771_v0 = vsub.f32 1.0, %v5770_v38  ;;  %v14613_v34 = vpop.f32.mrf.mxu1  ;;  %v5793_v38 = vand.u32 2147483647, %v14539_v7 }
 0xc6f   : > { %v14547_v42 = vsel %vm6518_vm5, %v6494_v37, %v6375_v5  ;;  %v8244_v43 = vpop.eup %8243  ;;  %16260 = vst [vmem:[#allocation57_spill] sm:$0xff] %v14613_v34  ;;  %vm5779_vm14 = vcmp.eq.f32.partialorder %v5778_v8, 8.507059e+37 }
 0xc70   : > { %v6655_v51 = vrot.slane %v14547_v42, 1  ;;  %v6831_v26 = vrot.slane %v14547_v42, 2  ;;  %v5785_v5 = vmul.f32 %v8244_v43, %v14539_v7  ;;  %v5772_v57 = vmul.f32 %v14549_v33, %v5771_v0 }
 0xc71   : > { %7181 = vmatmul.f32.gmra.mxu2 %v6979_v44  ;;  %v14590_v44 = vpop.f32.mrf.mxu2  ;;  %vm5790_vm15 = vweird.f32 %v8244_v43  ;;  %vm5794_vm11 = vcmp.eq.f32.partialorder %v5793_v38, 8.507059e+37 }
 0xc72   : > { %16258 = vst [vmem:[#allocation102_spill] sm:$0xff] %v14590_v44  ;;  %v5773_v36 = vadd.f32 %v14549_v33, %v5772_v57  ;;  %vm5791_vm9 = vmor %vm5789_vm8, %vm5790_vm15 }
 0xc73   : > { %6901 = vrot.lane.b32.xlu2 %v6830_v41, %s8270_s14  ;;  %v16259_v41 = vld [vmem:[#allocation25_spill] sm:$0xff]  ;;  %vm16273_vm15 = vmmov %vm16267_vm3 }
 0xc74   : > { %6386 = vrot.lane.b32.xlu0 %v14520_v29, %s8270_s14  ;;  %v5777_v37 = vsel %vm5776_vm1, %v14549_v33, %v5773_v36  ;;  %vm16271_vm1 = vmmov %vm16254_vm2 }
 0xc75   : > { %v6377_v15 = vpop.permute.xlu0 %6376  ;;  %v5922_v40 = vpop.permute.xlu1 %5921  ;;  %vm16275_vm8 = vmmov %vm16267_vm3 }
 0xc76   : > { %v14542_v19 = vsel %vm6518_vm5, %v6495_v55, %v6377_v15  ;;  %v5983_v27 = vmul.f32 %v5922_v40, %v16257_v13 }
 0xc77   : > { %v6656_v6 = vrot.slane %v14542_v19, 1  ;;  %v6832_v30 = vrot.slane %v14542_v19, 2 }
 0xc78   : > { %v6059_v47 = vrot.slane %v5983_v27, 7 }
 0xc79   : > { %v6833_v50 = vsel %vm16255_vm4, %v6831_v26, %v6832_v30  ;;  %v6657_v39 = vsel %vm16256_vm13, %v6655_v51, %v6656_v6  ;;  %v5795_v51 = vand.u32 2147483648, %v14539_v7  ;;  %vm16266_vm13 = vmmov %vm16255_vm4 }
 0xc7a   : > { %v14596_v46 = vsel %vm479_vm0, 0.0, %v6059_v47 }
 0xc7b   : > { %6250 = vrot.lane.b32.xlu2 %v14485_v9, %s8271_s15 }
 0xc7c   : > { %5941 = vperm.xlu0 %8037, %v5752_v60   ;;  %v5781_v60 = vor.u32 1.1754944e-38, %v5780_v21 }
 0xc7d   : > { %v5927_v62 = vpop.permute.xlu0 %5926  ;;  %v6379_v16 = vpop.permute.xlu1 %6378 }
 0xc7e   : > { %v14557_v53 = vsel %vm6518_vm5, %v6496_v11, %v6379_v16  ;;  %v5984_v45 = vmul.f32 %v5927_v62, %v16259_v41  ;;  %v14618_v11 = vpop.f32.mrf.mxu0 }
 0xc7f   : > { %v6658_v20 = vrot.slane %v14557_v53, 1  ;;  %16261 = vst [vmem:[#allocation177_spill] sm:$0xff] %v14618_v11 }
 0xc80   : > { %v6060_v63 = vrot.slane %v5984_v45, 7 }
 0xc81   : > { %v6659_v59 = vsel %vm16254_vm2, %v6656_v6, %v6658_v20  ;;  %v5782_v6 = vsel %vm5779_vm14, %v5781_v60, %v5777_v37  ;;  %vm16272_vm14 = vmmov %vm16271_vm1 }
 0xc82   : > { %v8080_v22 = vpack.i.bf16 %v6659_v59, %v6657_v39  ;;  %v14616_v62 = vsel %vm479_vm0, %v6059_v47, %v6060_v63  ;;  %v14629_v39 = vpop.f32.mrf.mxu1  ;;  %v14634_v27 = vsel %vm479_vm0, %v6060_v63, 0.0 }
 0xc83   : > { %6903 = vrot.lane.b32.xlu2 %v6833_v50, %s8270_s14  ;;  %v5796_v50 = vor.u32 1.1754944e-38, %v5795_v51 }
 0xc84   : > { %6390 = vrot.lane.b32.xlu0 %v14572_v2, %s8270_s14  ;;  %8081 = vrot.lane.b32.xlu1 %v8080_v22, %s8272_s16 }
 0xc85   : > { %v6894_v31 = vpop.permute.xlu0 %6893  ;;  %v14579_v23 = vpop.permute.xlu2 %8071 }
 0xc86   : > { %7900 = vmatmul.msk.f32.gmra.mxu0 %vm1824_vm10, %v6894_v31  ;;  %v7011_v3 = vsel %vm6518_vm5, %v8069_v14, %v6894_v31  ;;  %v8073_v25 = vunpack.i.l.bf16 %v14579_v23  ;;  %v5786_v14 = vsub.f32 1.0, %v5785_v5  ;;  %v8074_v15 = vunpack.i.h.bf16 %v14579_v23  ;;  %v6237_v48 = vpop.permute.xlu1 %6236  ;;  %v14631_v13 = vpop.f32.mrf.mxu0 }
 0xc87   : > { %7294 = vmatmul.f32.gmra.mxu1 %v7011_v3  ;;  %16262 = vst [vmem:[#allocation145_spill] sm:$0xff] %v14631_v13  ;;  %v6497_v31 = vsel %vm1824_vm10, %v14272_v28, %v6237_v48 }
 0xc88   : > { %v6980_v54 = vsel %vm6967_vm6, %v14388_v52, %v8073_v25  ;;  %v5787_v49 = vmul.f32 %v8244_v43, %v5786_v14  ;;  %v6981_v55 = vsel %vm6967_vm6, %v14391_v10, %v8074_v15  ;;  %v14622_v10 = vpop.f32.mrf.mxu2 }
 0xc89   : > { %7184 = vmatmul.f32.gmra.mxu2 %v6980_v54  ;;  %v6834_v54 = vrot.slane %v14557_v53, 2  ;;  %v16264_v53 = vld [vmem:[#allocation44_spill] sm:$0xff] }
 0xc8a   : > { %v5788_v16 = vadd.f32 %v8244_v43, %v5787_v49  ;;  %v14656_v14 = vpop.f32.mrf.mxu1  ;;  %v16265_v49 = vld [vmem:[#allocation40_spill] sm:$0xff] }
 0xc8b   : > { %6252 = vrot.lane.b32.xlu2 %v14572_v2, %s8271_s15 }
 0xc8c   : > { %6248 = vrot.lane.b32.xlu0 %v14520_v29, %s8271_s15  ;;  %6392 = vrot.lane.b32.xlu1 %v14596_v46, %s8270_s14  ;;  %v5792_v59 = vsel %vm5791_vm9, %v8244_v43, %v5788_v16  ;;  %vm16278_vm9 = vmmov %vm16271_vm1 }
 0xc8d   : > { %v6239_v52 = vpop.permute.xlu0 %6238  ;;  %v6381_v40 = vpop.permute.xlu2 %6380  ;;  %v5797_v22 = vsel %vm5794_vm11, %v5796_v50, %v5792_v59  ;;  %vm16279_vm11 = vmmov %vm16267_vm3 }
 0xc8e   : > { %v6498_v0 = vsel %vm1824_vm10, %v14252_v58, %v6239_v52  ;;  %v14643_v43 = vsel %vm6518_vm5, %v6497_v31, %v6381_v40  ;;  %v6835_v40 = vsel %vm16255_vm4, %v6832_v30, %v6834_v54 }
 0xc8f   : > { %v6660_v41 = vrot.slane %v14643_v43, 1  ;;  %v6836_v59 = vrot.slane %v14643_v43, 2 }
 0xc90   : > { %v14640_v3 = vpop.f32.mrf.mxu2 }
 0xc91   : > { %7187 = vmatmul.f32.gmra.mxu2 %v6981_v55 }
 0xc92   : > { %v14673_v30 = vpop.f32.mrf.mxu1 }
 0xc94   : > { %6394 = vrot.lane.b32.xlu0 %v14616_v62, %s8270_s14  ;;  %5951 = vperm.xlu1 %8039, %v5782_v6  }
 0xc95   : > { %v6896_v33 = vpop.permute.xlu0 %6895  ;;  %v5932_v26 = vpop.permute.xlu2 %5931 }
 0xc96   : > { %7901 = vmatmul.msk.f32.gmra.mxu0 %vm1824_vm10, %v6896_v33  ;;  %v7012_v20 = vsel %vm6518_vm5, %v8073_v25, %v6896_v33  ;;  %v5985_v8 = vmul.f32 %v5932_v26, %v16264_v53 }
 0xc97   : > { %7297 = vmatmul.f32.gmra.mxu1 %v7012_v20 }
 0xc98   : > { %v14671_v37 = vpop.f32.mrf.mxu2  ;;  %v6062_v48 = vrot.slane %v5985_v8, 7 }
 0xc9a   : > { %v14683_v51 = vsel %vm479_vm0, 0.0, %v6062_v48  ;;  %v14697_v50 = vpop.f32.mrf.mxu1 }
 0xc9b   : > { %v6383_v7 = vpop.permute.xlu1 %6382 }
 0xc9c   : > { %5956 = vperm.xlu0 %8037, %v5797_v22   ;;  %v14646_v25 = vsel %vm6518_vm5, %v6498_v0, %v6383_v7  ;;  %6396 = vrot.lane.b32.xlu1 %v14634_v27, %s8270_s14 }
 0xc9d   : > { %v6241_v47 = vpop.permute.xlu0 %6240  ;;  %v6661_v5 = vrot.slane %v14646_v25, 1  ;;  %v6385_v58 = vpop.permute.xlu2 %6384  ;;  %v6837_v38 = vrot.slane %v14646_v25, 2 }
 0xc9e   : > { %v6499_v28 = vsel %vm1824_vm10, %v14318_v1, %v6241_v47  ;;  %v14663_v1 = vpop.f32.mrf.mxu0 }
 0xc9f   : > { %v6548_v57 = vsel %vm6518_vm5, %v6499_v28, %v6385_v58  ;;  %v6662_v36 = vsel %vm16254_vm2, %v6660_v41, %v6661_v5  ;;  %v6838_v22 = vsel %vm16266_vm13, %v6836_v59, %v6837_v38  ;;  %vm16283_vm2 = vmmov %vm16267_vm3 }
 0xca0   : > { %v6663_v45 = vrot.slane %v6548_v57, 1  ;;  %v14693_v20 = vpop.f32.mrf.mxu2  ;;  %v6839_v0 = vrot.slane %v6548_v57, 2  ;;  %vm16285_vm13 = vmmov %vm16283_vm2 }
 0xca2   : > { %v6664_v52 = vsel %vm16263_vm12, %v6661_v5, %v6663_v45  ;;  %v14712_v47 = vpop.f32.mrf.mxu1  ;;  %v6840_v5 = vsel %vm16267_vm3, %v6837_v38, %v6839_v0  ;;  %vm16280_vm12 = vmmov %vm16271_vm1 }
 0xca3   : > { %v8085_v21 = vpack.i.bf16 %v6664_v52, %v6662_v36  ;;  %v5937_v63 = vpop.permute.xlu1 %5936  ;;  %vm16289_vm3 = vmmov %vm16283_vm2 }
 0xca4   : > { %6905 = vrot.lane.b32.xlu0 %v6835_v40, %s8270_s14  ;;  %v5986_v55 = vmul.f32 %v5937_v63, %v16265_v49  ;;  %6254 = vrot.lane.b32.xlu1 %v14596_v46, %s8271_s15 }
 0xca5   : > { %8086 = vrot.lane.b32.xlu2 %v8085_v21, %s8272_s16 }
 0xca6   : > { %v6063_v60 = vrot.slane %v5986_v55, 7  ;;  %v14675_v6 = vpop.f32.mrf.mxu0 }
 0xca8   : > { %v14680_v33 = vsel %vm479_vm0, %v6062_v48, %v6063_v60  ;;  %v14703_v23 = vsel %vm479_vm0, %v6063_v60, 0.0  ;;  %v14710_v7 = vpop.f32.mrf.mxu2 }
 0xcaa   : > { %v14722_v41 = vpop.f32.mrf.mxu1 }
 0xcab   : > { %v6898_v16 = vpop.permute.xlu1 %6897 }
 0xcac   : > { %6256 = vrot.lane.b32.xlu0 %v14616_v62, %s8271_s15  ;;  %7902 = vmatmul.msk.f32.gmra.mxu0 %vm1824_vm10, %v6898_v16  ;;  %v7013_v26 = vsel %vm6518_vm5, %v8074_v15, %v6898_v16  ;;  %v6243_v15 = vpop.permute.xlu2 %6242 }
 0xcad   : > { %6400 = vrot.lane.b32.xlu1 %v14680_v33, %s8270_s14  ;;  %6398 = vrot.lane.b32.xlu2 %v14683_v51, %s8270_s14 }
 0xcae   : > { %7300 = vmatmul.f32.gmra.mxu1 %v7013_v26  ;;  %v14700_v31 = vpop.f32.mrf.mxu0 }
 0xcb0   : > { %v14720_v54 = vpop.f32.mrf.mxu2 }
 0xcb2   : > { %v14728_v36 = vpop.f32.mrf.mxu1 }
 0xcb3   : > { %v6245_v57 = vpop.permute.xlu1 %6244 }
 0xcb4   : > { %6907 = vrot.lane.b32.xlu0 %v6838_v22, %s8270_s14 }
 0xcb5   : > { %6402 = vrot.lane.b32.xlu1 %v14703_v23, %s8270_s14  ;;  %6258 = vrot.lane.b32.xlu2 %v14634_v27, %s8271_s15 }
 0xcb6   : > { %v14715_v28 = vpop.f32.mrf.mxu0 }
 0xcb8   : > { %v14730_v40 = vpop.f32.mrf.mxu2 }
 0xcbc   : > { %6909 = vrot.lane.b32.xlu0 %v6840_v5, %s8270_s14 }
 0xcbd   : > { %6260 = vrot.lane.b32.xlu1 %v14683_v51, %s8271_s15  ;;  %v6389_v58 = vpop.permute.xlu2 %6388 }
 0xcbe   : > { %v14724_v45 = vpop.f32.mrf.mxu0 }
 0xcc4   : > { %6262 = vrot.lane.b32.xlu0 %v14680_v33, %s8271_s15 }
 0xcc5   : > { %v5947_v52 = vpop.permute.xlu2 %5946 }
 0xcc6   : > { %v14732_v21 = vpop.f32.mrf.mxu0 }
 0xccc   : > { %v6900_v63 = vpop.permute.xlu1 %6899 }
 0xccd   : > { %7903 = vmatmul.msk.f32.gmra.mxu0 %vm1824_vm10, %v6900_v63  ;;  %v6902_v53 = vpop.permute.xlu2 %6901 }
 0xcce   : > { %v7286_v8 = vpop.f32.mrf.mxu1  ;;  %v7399_v49 = vpop.f32.mrf.mxu0 }
 0xcd4   : > { %v7173_v55 = vpop.f32.mrf.mxu2 }
 0xcd5   : > { %v7287_v60 = vadd.f32 %v7286_v8, %v7173_v55  ;;  %7904 = vmatmul.msk.f32.gmra.mxu0 %vm1824_vm10, %v6902_v53  ;;  %v14736_v48 = vpop.permute.xlu2 %6250 }
 0xcd6   : > { %v7289_v26 = vpop.f32.mrf.mxu1  ;;  %v7402_v0 = vpop.f32.mrf.mxu0 }
 0xcd7   : > { %v14738_v16 = vadd.f32 %v7399_v49, %v7287_v60  ;;  %v6501_v49 = vsel %vm1824_vm10, %v14347_v32, %v6245_v57 }
 0xcd8   : > { %v14749_v60 = vsel %vm6518_vm5, %v6501_v49, %v6389_v58 }
 0xcdc   : > { %v7176_v38 = vpop.f32.mrf.mxu2 }
 0xcdd   : > { %v7290_v59 = vadd.f32 %v7289_v26, %v7176_v38  ;;  %v6904_v22 = vpop.permute.xlu2 %6903  ;;  %v6500_v38 = vsel %vm1824_vm10, %v14336_v56, %v6243_v15  ;;  %v16269_v56 = vld [vmem:[#allocation26_spill] sm:$0xff] }
 0xcde   : > { %v8077_v5 = vpop.permute.xlu0 %8076  ;;  %7905 = vmatmul.msk.f32.gmra.mxu0 %vm1824_vm10, %v6904_v22  ;;  %v5988_v15 = vmul.f32 %v5947_v52, %v16269_v56  ;;  %v6666_v52 = vrot.slane %v14749_v60, 1 }
 0xcdf   : > { %v14741_v11 = vadd.f32 %v7402_v0, %v7290_v59  ;;  %v8078_v13 = vunpack.i.l.bf16 %v8077_v5  ;;  %v8079_v26 = vunpack.i.h.bf16 %v8077_v5  ;;  %v6247_v5 = vpop.permute.xlu1 %6246 }
 0xce0   : > { %v6066_v49 = vrot.slane %v5988_v15, 7 }
 0xce1   : > { %v6982_v8 = vsel %vm6967_vm6, %v14459_v35, %v8078_v13  ;;  %v7014_v55 = vsel %vm6518_vm5, %v8078_v13, %v6900_v63  ;;  %v6842_v35 = vrot.slane %v14749_v60, 2  ;;  %v6983_v63 = vsel %vm6967_vm6, %v14454_v24, %v8079_v26 }
 0xce2   : > { %7190 = vmatmul.f32.gmra.mxu2 %v6982_v8  ;;  %7303 = vmatmul.f32.gmra.mxu1 %v7014_v55  ;;  %v7015_v32 = vsel %vm6518_vm5, %v8079_v26, %v6902_v53  ;;  %v16270_v8 = vld [vmem:[#allocation45_spill] sm:$0xff]  ;;  %v6502_v53 = vsel %vm1824_vm10, %v14357_v18, %v6247_v5 }
 0xce6   : > { %v6387_v59 = vpop.permute.xlu0 %6386 }
 0xce7   : > { %v14754_v0 = vsel %vm6518_vm5, %v6500_v38, %v6387_v59 }
 0xce8   : > { %v6841_v13 = vrot.slane %v14754_v0, 2  ;;  %v6665_v24 = vrot.slane %v14754_v0, 1 }
 0xcea   : > { %7193 = vmatmul.f32.gmra.mxu2 %v6983_v63  ;;  %7306 = vmatmul.f32.gmra.mxu1 %v7015_v32  ;;  %v6843_v58 = vsel %vm16268_vm7, %v6841_v13, %v6842_v35  ;;  %v6667_v15 = vsel %vm16271_vm1, %v6665_v24, %v6666_v52 }
 0xceb   : > { %6911 = vrot.lane.b32.xlu0 %v6843_v58, %s8270_s14 }
 0xcee   : > { %v5942_v57 = vpop.permute.xlu0 %5941 }
 0xcef   : > { %v5987_v55 = vmul.f32 %v5942_v57, %v16270_v8 }
 0xcf1   : > { %v6065_v38 = vrot.slane %v5987_v55, 7  ;;  %v14785_v55 = vsel %vm479_vm0, %v6066_v49, 0.0 }
 0xcf2   : > { %16274 = vst [vmem:[#allocation146_spill] sm:$0xff] %v14785_v55 }
 0xcf3   : > { %v14766_v59 = vsel %vm479_vm0, %v6065_v38, %v6066_v49 }
 0xcf4   : > { %6406 = vrot.lane.b32.xlu1 %v14766_v59, %s8270_s14 }
 0xcf6   : > { %v6391_v26 = vpop.permute.xlu0 %6390  ;;  %v14775_v63 = vpop.permute.xlu1 %8081 }
 0xcf7   : > { %v6551_v13 = vsel %vm6518_vm5, %v6502_v53, %v6391_v26  ;;  %v8083_v56 = vunpack.i.l.bf16 %v14775_v63  ;;  %v6253_v53 = vpop.permute.xlu2 %6252 }
 0xcf8   : > { %v6668_v32 = vrot.slane %v6551_v13, 1  ;;  %v6844_v58 = vrot.slane %v6551_v13, 2 }
 0xcf9   : > { %v6984_v8 = vsel %vm6967_vm6, %v14547_v42, %v8083_v56  ;;  %v7016_v18 = vsel %vm6518_vm5, %v8083_v56, %v6904_v22  ;;  %v8084_v42 = vunpack.i.h.bf16 %v14775_v63 }
 0xcfa   : > { %v6669_v57 = vsel %vm16272_vm14, %v6666_v52, %v6668_v32  ;;  %v6845_v5 = vsel %vm16273_vm15, %v6842_v35, %v6844_v58  ;;  %7196 = vmatmul.f32.gmra.mxu2 %v6984_v8  ;;  %7309 = vmatmul.f32.gmra.mxu1 %v7016_v18  ;;  %v14797_v52 = vsel %vm479_vm0, 0.0, %v6065_v38 }
 0xcfb   : > { %v8090_v26 = vpack.i.bf16 %v6669_v57, %v6667_v15  ;;  %6913 = vrot.lane.b32.xlu0 %v6845_v5, %s8270_s14  ;;  %v6985_v49 = vsel %vm6967_vm6, %v14542_v19, %v8084_v42 }
 0xcfc   : > { %6408 = vrot.lane.b32.xlu1 %v14785_v55, %s8270_s14 }
 0xcfd   : > { %8091 = vrot.lane.b32.xlu2 %v8090_v26, %s8272_s16  ;;  %v6505_v26 = vsel %vm1824_vm10, %v14436_v12, %v6253_v53 }
 0xcfe   : > { %v6249_v24 = vpop.permute.xlu0 %6248  ;;  %v6393_v22 = vpop.permute.xlu1 %6392 }
 0xcff   : > { %v6503_v35 = vsel %vm1824_vm10, %v14423_v17, %v6249_v24  ;;  %v14799_v13 = vpop.permute.xlu2 %8086  ;;  %v6504_v17 = vsel %vm1824_vm10, %v14409_v4, %v14736_v48  ;;  %v16276_v4 = vld [vmem:[#allocation27_spill] sm:$0xff] }
 0xd00   : > { %v14806_v63 = vsel %vm6518_vm5, %v6503_v35, %v6393_v22  ;;  %v8088_v19 = vunpack.i.l.bf16 %v14799_v13  ;;  %v8089_v18 = vunpack.i.h.bf16 %v14799_v13  ;;  %v16277_v22 = vld [vmem:[#allocation46_spill] sm:$0xff]  ;;  %v14894_v13 = vpop.f32.mrf.mxu0 }
 0xd01   : > { %v6846_v56 = vrot.slane %v14806_v63, 2 }
 0xd02   : > { %7199 = vmatmul.f32.gmra.mxu2 %v6985_v49  ;;  %v6986_v57 = vsel %vm6967_vm6, %v14643_v43, %v8088_v19  ;;  %v6670_v49 = vrot.slane %v14806_v63, 1 }
 0xd03   : > { %6268 = vrot.lane.b32.xlu0 %v14766_v59, %s8271_s15 }
 0xd04   : > { %6266 = vrot.lane.b32.xlu1 %v14797_v52, %s8271_s15 }
 0xd05   : > { %6404 = vrot.lane.b32.xlu2 %v14797_v52, %s8270_s14 }
 0xd06   : > { %v6395_v38 = vpop.permute.xlu0 %6394  ;;  %v5952_v58 = vpop.permute.xlu1 %5951 }
 0xd07   : > { %v14815_v32 = vsel %vm6518_vm5, %v6504_v17, %v6395_v38  ;;  %v5989_v48 = vmul.f32 %v5952_v58, %v16276_v4 }
 0xd08   : > { %v6847_v15 = vrot.slane %v14815_v32, 2  ;;  %v6671_v24 = vrot.slane %v14815_v32, 1 }
 0xd09   : > { %v6068_v38 = vrot.slane %v5989_v48, 7 }
 0xd0a   : > { %v6848_v8 = vsel %vm16275_vm8, %v6846_v56, %v6847_v15  ;;  %7202 = vmatmul.f32.gmra.mxu2 %v6986_v57 }
 0xd0b   : > { %6915 = vrot.lane.b32.xlu0 %v6848_v8, %s8270_s14  ;;  %v6987_v8 = vsel %vm6967_vm6, %v14646_v25, %v8089_v18 }
 0xd0d   : > { %6264 = vrot.lane.b32.xlu2 %v14703_v23, %s8271_s15 }
 0xd0e   : > { %v5957_v5 = vpop.permute.xlu0 %5956  ;;  %v6397_v35 = vpop.permute.xlu1 %6396 }
 0xd0f   : > { %v5990_v43 = vmul.f32 %v5957_v5, %v16277_v22  ;;  %v6554_v17 = vsel %vm6518_vm5, %v6505_v26, %v6397_v35  ;;  %v6672_v5 = vsel %vm16280_vm12, %v6670_v49, %v6671_v24 }
 0xd10   : > { %v6673_v56 = vrot.slane %v6554_v17, 1  ;;  %v6849_v57 = vrot.slane %v6554_v17, 2 }
 0xd11   : > { %v6069_v58 = vrot.slane %v5990_v43, 7  ;;  %v6399_v43 = vpop.permute.xlu2 %6398 }
 0xd12   : > { %v6674_v12 = vsel %vm16278_vm9, %v6671_v24, %v6673_v56  ;;  %7205 = vmatmul.f32.gmra.mxu2 %v6987_v8  ;;  %v6850_v53 = vsel %vm16279_vm11, %v6847_v15, %v6849_v57  ;;  %v6133_v24 = vsel %vm479_vm0, 0.0, %v6068_v38 }
 0xd13   : > { %v6070_v4 = vsel %vm479_vm0, %v6068_v38, %v6069_v58  ;;  %6917 = vrot.lane.b32.xlu0 %v6850_v53, %s8270_s14  ;;  %v8095_v48 = vpack.i.bf16 %v6674_v12, %v6672_v5  ;;  %v6149_v15 = vsel %vm479_vm0, %v6069_v58, 0.0  ;;  %vm16282_vm0 = vmmov %vm16271_vm1 }
 0xd14   : > { %6412 = vrot.lane.b32.xlu1 %v6070_v4, %s8270_s14  ;;  %vm16284_vm4 = vmmov %vm16282_vm0 }
 0xd15   : > { %8096 = vrot.lane.b32.xlu2 %v8095_v48, %s8272_s16  ;;  %vm16290_vm7 = vmmov %vm16282_vm0 }
 0xd16   : > { %v6906_v26 = vpop.permute.xlu0 %6905  ;;  %v6255_v22 = vpop.permute.xlu1 %6254  ;;  %vm16291_vm1 = vmmov %vm16283_vm2 }
 0xd17   : > { %7906 = vmatmul.msk.f32.gmra.mxu0 %vm1824_vm10, %v6906_v26  ;;  %v7017_v25 = vsel %vm6518_vm5, %v8084_v42, %v6906_v26  ;;  %v6506_v42 = vsel %vm1824_vm10, %v14520_v29, %v6255_v22  ;;  %vm16292_vm14 = vmmov %vm16282_vm0 }
 0xd18   : > { %7312 = vmatmul.f32.gmra.mxu1 %v7017_v25  ;;  %v14860_v58 = vsel %vm6518_vm5, %v6506_v42, %v6399_v43  ;;  %v14892_v42 = vpop.f32.mrf.mxu1  ;;  %vm16293_vm15 = vmmov %vm16291_vm1 }
 0xd19   : > { %v6259_v56 = vpop.permute.xlu2 %6258  ;;  %v6675_v26 = vrot.slane %v14860_v58, 1  ;;  %vm16294_vm8 = vmmov %vm16282_vm0 }
 0xd1a   : > { %v6508_v8 = vsel %vm1824_vm10, %v14572_v2, %v6259_v56  ;;  %vm16295_vm9 = vmmov %vm16291_vm1 }
 0xd1b   : > { %6274 = vrot.lane.b32.xlu0 %v6070_v4, %s8271_s15  ;;  %v6851_v4 = vrot.slane %v14860_v58, 2  ;;  %vm16296_vm11 = vmmov %vm16282_vm0 }
 0xd1c   : > { %6414 = vrot.lane.b32.xlu1 %v6149_v15, %s8270_s14  ;;  %vm16297_vm12 = vmmov %vm16291_vm1 }
 0xd1d   : > { %6410 = vrot.lane.b32.xlu2 %v6133_v24, %s8270_s14 }
 0xd1e   : > { %v6257_v35 = vpop.permute.xlu0 %6256 }
 0xd1f   : > { %v6401_v49 = vpop.permute.xlu1 %6400  ;;  %v6507_v17 = vsel %vm1824_vm10, %v14485_v9, %v6257_v35 }
 0xd20   : > { %v14856_v57 = vsel %vm6518_vm5, %v6507_v17, %v6401_v49  ;;  %v16286_v49 = vld [vmem:[#allocation52_spill] sm:$0xff]  ;;  %v14890_v17 = vpop.f32.mrf.mxu2  ;;  %v14898_v56 = vpop.f32.mrf.mxu1 }
 0xd21   : > { %16281 = vst [vmem:[#allocation220_spill] sm:$0xff] %v14856_v57  ;;  %v6852_v9 = vrot.slane %v14856_v57, 2  ;;  %v6676_v5 = vrot.slane %v14856_v57, 1 }
 0xd23   : > { %v6853_v2 = vsel %vm16283_vm2, %v6851_v4, %v6852_v9  ;;  %vm16304_vm2 = vmmov %vm16282_vm0 }
 0xd24   : > { %6272 = vrot.lane.b32.xlu1 %v6133_v24, %s8271_s15 }
 0xd25   : > { %6270 = vrot.lane.b32.xlu2 %v14785_v55, %s8271_s15 }
 0xd26   : > { %v6908_v38 = vpop.permute.xlu0 %6907 }
 0xd27   : > { %v6403_v12 = vpop.permute.xlu1 %6402  ;;  %7907 = vmatmul.msk.f32.gmra.mxu0 %vm1824_vm10, %v6908_v38  ;;  %v7018_v29 = vsel %vm6518_vm5, %v8088_v19, %v6908_v38  ;;  %v6677_v19 = vsel %vm16284_vm4, %v6675_v26, %v6676_v5  ;;  %v14900_v38 = vpop.f32.mrf.mxu0  ;;  %vm16305_vm4 = vmmov %vm16291_vm1 }
 0xd28   : > { %v6557_v53 = vsel %vm6518_vm5, %v6508_v8, %v6403_v12  ;;  %7315 = vmatmul.f32.gmra.mxu1 %v7018_v29 }
 0xd29   : > { %v6678_v48 = vrot.slane %v6557_v53, 1  ;;  %v6854_v43 = vrot.slane %v6557_v53, 2 }
 0xd2b   : > { %v6679_v22 = vsel %vm16282_vm0, %v6676_v5, %v6678_v48  ;;  %v6855_v35 = vsel %vm16285_vm13, %v6852_v9, %v6854_v43  ;;  %v7298_v9 = vpop.f32.mrf.mxu1 }
 0xd2c   : > { %6745 = vrot.lane.b32.xlu0 %v6679_v22, %s8272_s16  ;;  %6919 = vrot.lane.b32.xlu1 %v6853_v2, %s8270_s14 }
 0xd2d   : > { %6743 = vrot.lane.b32.xlu2 %v6677_v19, %s8272_s16 }
 0xd2e   : > { %v6910_v25 = vpop.permute.xlu0 %6909 }
 0xd2f   : > { %7908 = vmatmul.msk.f32.gmra.mxu0 %vm1824_vm10, %v6910_v25  ;;  %v7019_v24 = vsel %vm6518_vm5, %v8089_v18, %v6910_v25  ;;  %v14896_v18 = vpop.f32.mrf.mxu2  ;;  %v6261_v22 = vpop.permute.xlu1 %6260 }
 0xd30   : > { %7318 = vmatmul.f32.gmra.mxu1 %v7019_v24 }
 0xd33   : > { %v7301_v4 = vpop.f32.mrf.mxu1 }
 0xd34   : > { %6921 = vrot.lane.b32.xlu0 %v6855_v35, %s8270_s14  ;;  %6420 = vrot.lane.b32.xlu1 %v16206_v61, %s8270_s14  ;;  %v14902_v61 = vpop.f32.mrf.mxu0 }
 0xd35   : > { %8101 = vrot.lane.b32.xlu2 %v16286_v49, %s8270_s14 }
 0xd36   : > { %v6263_v12 = vpop.permute.xlu0 %6262 }
 0xd37   : > { %v7185_v8 = vpop.f32.mrf.mxu2 }
 0xd3c   : > { %v7414_v48 = vpop.f32.mrf.mxu0 }
 0xd3d   : > { %6276 = vrot.lane.b32.xlu2 %v6149_v15, %s8271_s15 }
 0xd3f   : > { %v7188_v5 = vpop.f32.mrf.mxu2 }
 0xd4a   : > { %v7417_v35 = vpop.f32.mrf.mxu0 }
 0xd57   : > { %v8092_v29 = vpop.permute.xlu2 %8091 }
 0xd58   : > { %v8093_v53 = vunpack.i.l.bf16 %v8092_v29  ;;  %v8094_v2 = vunpack.i.h.bf16 %v8092_v29  ;;  %v6510_v29 = vsel %vm1824_vm10, %v14616_v62, %v6263_v12  ;;  %v7302_v62 = vadd.f32 %v7301_v4, %v7188_v5  ;;  %v14936_v4 = vld [vmem:[%s15236_s8] ss:$0 sm:$0xff] }
 0xd5a   : > { %v6988_v15 = vsel %vm6967_vm6, %v14754_v0, %v8093_v53  ;;  %v6989_v43 = vsel %vm6967_vm6, %v14749_v60, %v8094_v2  ;;  %v6509_v0 = vsel %vm1824_vm10, %v14596_v46, %v6261_v22 }
 0xd5b   : > { %7208 = vmatmul.f32.gmra.mxu2 %v6988_v15 }
 0xd5d   : > { %v6912_v26 = vpop.permute.xlu0 %6911 }
 0xd5e   : > { %7909 = vmatmul.msk.f32.gmra.mxu0 %vm1824_vm10, %v6912_v26  ;;  %v7020_v19 = vsel %vm6518_vm5, %v8093_v53, %v6912_v26 }
 0xd5f   : > { %v6405_v25 = vpop.permute.xlu2 %6404  ;;  %7321 = vmatmul.f32.gmra.mxu1 %v7020_v19  ;;  %v7304_v24 = vpop.f32.mrf.mxu1 }
 0xd60   : > { %v14913_v49 = vsel %vm6518_vm5, %v6509_v0, %v6405_v25 }
 0xd61   : > { %16287 = vst [vmem:[#allocation187_spill] sm:$0xff] %v14913_v49  ;;  %v6680_v60 = vrot.slane %v14913_v49, 1  ;;  %v6856_v19 = vrot.slane %v14913_v49, 2 }
 0xd63   : > { %7211 = vmatmul.f32.gmra.mxu2 %v6989_v43 }
 0xd65   : > { %v7191_v15 = vpop.f32.mrf.mxu2 }
 0xd66   : > { %v6407_v55 = vpop.permute.xlu1 %6406  ;;  %v7305_v22 = vadd.f32 %v7304_v24, %v7191_v15 }
 0xd67   : > { %v14918_v53 = vsel %vm6518_vm5, %v6510_v29, %v6407_v55  ;;  %v6265_v26 = vpop.permute.xlu2 %6264  ;;  %v7307_v55 = vpop.f32.mrf.mxu1 }
 0xd68   : > { %16288 = vst [vmem:[#allocation188_spill] sm:$0xff] %v14918_v53  ;;  %v6681_v43 = vrot.slane %v14918_v53, 1  ;;  %v6857_v46 = vrot.slane %v14918_v53, 2  ;;  %v7418_v29 = vadd.f32 %v7417_v35, %v7305_v22  ;;  %v6511_v49 = vsel %vm1824_vm10, %v14634_v27, %v6265_v26  ;;  %v7420_v53 = vpop.f32.mrf.mxu0 }
 0xd69   : > { %v7299_v27 = vadd.f32 %v7298_v9, %v7185_v8  ;;  %v7415_v26 = vadd.f32 %v7414_v48, %v7302_v62  ;;  %v7296_v48 = vadd.f32 %v14898_v56, %v14896_v18  ;;  %v7293_v56 = vadd.f32 %v14892_v42, %v14890_v17 }
 0xd6a   : > { %v6858_v25 = vsel %vm16289_vm3, %v6856_v19, %v6857_v46  ;;  %v6682_v0 = vsel %vm16290_vm7, %v6680_v60, %v6681_v43 }
 0xd6b   : > { %6923 = vrot.lane.b32.xlu1 %v6858_v25, %s8270_s14  ;;  %6747 = vrot.lane.b32.xlu2 %v6682_v0, %s8272_s16  ;;  %v7488_v25 = vmul.f32 %v14936_v4, %v7415_v26 }
 0xd6d   : > { %v7194_v12 = vpop.f32.mrf.mxu2  ;;  %v6914_v34 = vpop.permute.xlu0 %6913 }
 0xd6e   : > { %v7308_v44 = vadd.f32 %v7307_v55, %v7194_v12  ;;  %v6409_v57 = vpop.permute.xlu1 %6408  ;;  %7910 = vmatmul.msk.f32.gmra.mxu0 %vm1824_vm10, %v6914_v34  ;;  %v7021_v15 = vsel %vm6518_vm5, %v8094_v2, %v6914_v34  ;;  %v7489_v34 = vmul.f32 %v14936_v4, %v7418_v29 }
 0xd6f   : > { %v6560_v24 = vsel %vm6518_vm5, %v6511_v49, %v6409_v57  ;;  %v14938_v19 = vpop.permute.xlu2 %8096  ;;  %7324 = vmatmul.f32.gmra.mxu1 %v7021_v15  ;;  %v14944_v57 = vld [vmem:[%s15237_s9] ss:$0 sm:$0xff] }
 0xd70   : > { %v7421_v5 = vadd.f32 %v7420_v53, %v7308_v44  ;;  %v6683_v35 = vrot.slane %v6560_v24, 1  ;;  %v6859_v60 = vrot.slane %v6560_v24, 2  ;;  %v8098_v22 = vunpack.i.l.bf16 %v14938_v19 }
 0xd71   : > { %v7412_v53 = vadd.f32 %v14902_v61, %v7299_v27  ;;  %v8099_v62 = vunpack.i.h.bf16 %v14938_v19  ;;  %v7524_v29 = vadd.f32 %v14944_v57, %v7488_v25  ;;  %v7406_v19 = vadd.f32 %v14894_v13, %v7293_v56 }
 0xd72   : > { %v7490_v2 = vmul.f32 %v14936_v4, %v7421_v5  ;;  %v6860_v44 = vsel %vm16291_vm1, %v6857_v46, %v6859_v60  ;;  %v6684_v49 = vsel %vm16292_vm14, %v6681_v43, %v6683_v35  ;;  %v6990_v8 = vsel %vm6967_vm6, %v14806_v63, %v8098_v22 }
 0xd73   : > { %6925 = vrot.lane.b32.xlu2 %v6860_v44, %s8270_s14  ;;  %6749 = vrot.lane.b32.xlu0 %v6684_v49, %s8272_s16  ;;  %v7525_v46 = vadd.f32 %v14944_v57, %v7489_v34  ;;  %v7409_v63 = vadd.f32 %v14900_v38, %v7296_v48  ;;  %v7487_v12 = vmul.f32 %v14936_v4, %v7412_v53  ;;  %v7556_v38 = vmax.f32 %v7524_v29, 0.0 }
 0xd74   : > { %v7526_v9 = vadd.f32 %v14944_v57, %v7490_v2  ;;  %7214 = vmatmul.f32.gmra.mxu2 %v6990_v8  ;;  %v6991_v61 = vsel %vm6967_vm6, %v14815_v32, %v8099_v62  ;;  %v7423_v32 = vpop.f32.mrf.mxu0  ;;  %v7485_v13 = vmul.f32 %v14936_v4, %v7406_v19  ;;  %v7484_v53 = vmul.f32 %v14936_v4, %v14741_v11 }
 0xd75   : > { %v6269_v0 = vpop.permute.xlu0 %6268  ;;  %v7557_v18 = vmax.f32 %v7525_v46, 0.0  ;;  %v7486_v15 = vmul.f32 %v14936_v4, %v7409_v63  ;;  %v7523_v5 = vadd.f32 %v14944_v57, %v7487_v12  ;;  %v7483_v12 = vmul.f32 %v14936_v4, %v14738_v16 }
 0xd76   : > { %v7558_v43 = vmax.f32 %v7526_v9, 0.0  ;;  %v6267_v27 = vpop.permute.xlu1 %6266  ;;  %v7521_v25 = vadd.f32 %v14944_v57, %v7485_v13  ;;  %v7520_v29 = vadd.f32 %v14944_v57, %v7484_v53  ;;  %v7272_v13 = vadd.f32 %v14673_v30, %v14671_v37 }
 0xd77   : > { %v6411_v55 = vpop.permute.xlu2 %6410  ;;  %v7310_v24 = vpop.f32.mrf.mxu1  ;;  %v7522_v2 = vadd.f32 %v14944_v57, %v7486_v15  ;;  %v7555_v44 = vmax.f32 %v7523_v5, 0.0  ;;  %v6512_v49 = vsel %vm1824_vm10, %v14683_v51, %v6267_v27  ;;  %v6513_v51 = vsel %vm1824_vm10, %v14680_v33, %v6269_v0 }
 0xd78   : > { %7921 = vmatpush.xpose.msk.msra.mxu3 %vm6518_vm5, %v7558_v43  ;;  %v14984_v8 = vsel %vm6518_vm5, %v6512_v49, %v6411_v55  ;;  %v7519_v16 = vadd.f32 %v14944_v57, %v7483_v12  ;;  %v7275_v27 = vadd.f32 %v14697_v50, %v14693_v20 }
 0xd79   : > { %v7554_v9 = vmax.f32 %v7522_v2, 0.0  ;;  %v6685_v55 = vrot.slane %v14984_v8, 1  ;;  %v6861_v11 = vrot.slane %v14984_v8, 2 }
 0xd7c   : > { %7217 = vmatmul.f32.gmra.mxu2 %v6991_v61  ;;  %7922 = vmatpush.xpose.msk.msra.mxu3 %vm6518_vm5, %v7557_v18  ;;  %v7553_v18 = vmax.f32 %v7521_v25, 0.0 }
 0xd7d   : > { %v6916_v35 = vpop.permute.xlu0 %6915  ;;  %v7197_v60 = vpop.f32.mrf.mxu2 }
 0xd7e   : > { %v7311_v26 = vadd.f32 %v7310_v24, %v7197_v60  ;;  %7911 = vmatmul.msk.f32.gmra.mxu0 %vm1824_vm10, %v6916_v35  ;;  %v7022_v17 = vsel %vm6518_vm5, %v8098_v22, %v6916_v35  ;;  %v7284_v22 = vadd.f32 %v14728_v36, %v14730_v40  ;;  %v7281_v24 = vadd.f32 %v14722_v41, %v14720_v54 }
 0xd7f   : > { %v6271_v42 = vpop.permute.xlu2 %6270  ;;  %7327 = vmatmul.f32.gmra.mxu1 %v7022_v17 }
 0xd80   : > { %7923 = vmatpush.xpose.msk.msra.mxu3 %vm6518_vm5, %v7556_v38  ;;  %v14976_v34 = vadd.f32 %v7423_v32, %v7311_v26  ;;  %v6514_v15 = vsel %vm1824_vm10, %v14703_v23, %v6271_v42  ;;  %v7278_v38 = vadd.f32 %v14712_v47, %v14710_v7  ;;  %v7394_v54 = vadd.f32 %v14724_v45, %v7281_v24 }
 0xd81   : > { %v7551_v47 = vmax.f32 %v7519_v16, 0.0 }
 0xd82   : > { %v7391_v45 = vadd.f32 %v14715_v28, %v7278_v38  ;;  %v7481_v42 = vmul.f32 %v14936_v4, %v7394_v54  ;;  %v7388_v28 = vadd.f32 %v14700_v31, %v7275_v27 }
 0xd84   : > { %7924 = vmatpush.xpose.msk.msra.mxu3 %vm6518_vm5, %v7555_v44  ;;  %v7480_v25 = vmul.f32 %v14936_v4, %v7391_v45 }
 0xd85   : > { %v6918_v48 = vpop.permute.xlu0 %6917  ;;  %v7200_v2 = vpop.f32.mrf.mxu2 }
 0xd86   : > { %v6413_v46 = vpop.permute.xlu1 %6412  ;;  %7912 = vmatmul.msk.f32.gmra.mxu0 %vm1824_vm10, %v6918_v48  ;;  %v7023_v43 = vsel %vm6518_vm5, %v8099_v62, %v6918_v48  ;;  %v7397_v62 = vadd.f32 %v14732_v21, %v7284_v22 }
 0xd87   : > { %v14997_v63 = vsel %vm6518_vm5, %v6513_v51, %v6413_v46  ;;  %v14999_v36 = vpop.permute.xlu2 %6743  ;;  %7330 = vmatmul.f32.gmra.mxu1 %v7023_v43  ;;  %v7517_v51 = vadd.f32 %v14944_v57, %v7481_v42 }
 0xd88   : > { %7925 = vmatpush.xpose.msk.msra.mxu3 %vm6518_vm5, %v7554_v9  ;;  %v6686_v40 = vrot.slane %v14997_v63, 1  ;;  %v6862_v33 = vrot.slane %v14997_v63, 2  ;;  %v6992_v0 = vsel %vm6967_vm6, %v14860_v58, %v14999_v36  ;;  %v7482_v21 = vmul.f32 %v14936_v4, %v7397_v62 }
 0xd89   : > { %7220 = vmatmul.f32.gmra.mxu2 %v6992_v0  ;;  %v7552_v58 = vmax.f32 %v7520_v29, 0.0  ;;  %v7549_v12 = vmax.f32 %v7517_v51, 0.0 }
 0xd8a   : > { %v6863_v56 = vsel %vm16293_vm15, %v6861_v11, %v6862_v33  ;;  %v6687_v61 = vsel %vm16294_vm8, %v6685_v55, %v6686_v40  ;;  %v7518_v26 = vadd.f32 %v14944_v57, %v7482_v21  ;;  %v7269_v11 = vadd.f32 %v14656_v14, %v14640_v3 }
 0xd8b   : > { %6927 = vrot.lane.b32.xlu0 %v6863_v56, %s8270_s14  ;;  %6751 = vrot.lane.b32.xlu1 %v6687_v61, %s8272_s16  ;;  %v7266_v3 = vadd.f32 %v14629_v39, %v14622_v10  ;;  %v7576_v10 = vld [vmem:[%s15239_s11] sm:$0xff] }
 0xd8c   : > { %7926 = vmatpush.xpose.msk.msra.mxu3 %vm6518_vm5, %v7553_v18  ;;  %v7550_v53 = vmax.f32 %v7518_v26, 0.0  ;;  %v7382_v14 = vadd.f32 %v14663_v1, %v7269_v11  ;;  %v16298_v18 = vld [vmem:[#allocation220_spill] sm:$0xff]  ;;  %v16299_v39 = vld [vmem:[#allocation102_spill] sm:$0xff]  ;;  %v16300_v1 = vld [vmem:[#allocation57_spill] sm:$0xff] }
 0xd8d   : > { %v6275_v17 = vpop.permute.xlu0 %6274  ;;  %v7203_v38 = vpop.f32.mrf.mxu2 }
 0xd8e   : > { %v6415_v5 = vpop.permute.xlu1 %6414  ;;  %v6516_v50 = vsel %vm1824_vm10, %v14766_v59, %v6275_v17  ;;  %v7477_v54 = vmul.f32 %v14936_v4, %v7382_v14  ;;  %v16302_v17 = vld [vmem:[#allocation177_spill] sm:$0xff] }
 0xd8f   : > { %v6563_v41 = vsel %vm6518_vm5, %v6514_v15, %v6415_v5  ;;  %v8102_v35 = vpop.permute.xlu2 %8101  ;;  %v16301_v15 = vld [vmem:[#allocation145_spill] sm:$0xff] }
 0xd90   : > { %v6688_v60 = vrot.slane %v6563_v41, 1  ;;  %v6864_v19 = vrot.slane %v6563_v41, 2  ;;  %7927 = vmatpush.xpose.msk.msra.mxu3 %vm6518_vm5, %v7552_v58  ;;  %v8104_v23 = vunpack.i.h.bf16 %v8102_v35  ;;  %v8103_v44 = vunpack.i.l.bf16 %v8102_v35 }
 0xd91   : > { %v7263_v58 = vadd.f32 %v16300_v1, %v16299_v39  ;;  %v7379_v5 = vadd.f32 %v16301_v15, %v7266_v3 }
 0xd92   : > { %v6865_v32 = vsel %vm16295_vm9, %v6862_v33, %v6864_v19  ;;  %v6689_v7 = vsel %vm16296_vm11, %v6686_v40, %v6688_v60  ;;  %v15044_v22 = vsel %vm6518_vm5, %v6516_v50, %v8104_v23  ;;  %v7385_v40 = vadd.f32 %v14675_v6, %v7272_v13 }
 0xd93   : > { %6929 = vrot.lane.b32.xlu1 %v6865_v32, %s8270_s14  ;;  %6753 = vrot.lane.b32.xlu2 %v6689_v7, %s8272_s16  ;;  %v6867_v31 = vrot.slane %v15044_v22, 2  ;;  %v6691_v55 = vrot.slane %v15044_v22, 1  ;;  %v7516_v33 = vadd.f32 %v14944_v57, %v7480_v25  ;;  %v7376_v23 = vadd.f32 %v16302_v17, %v7263_v58  ;;  %v16303_v7 = vld [vmem:[#allocation146_spill] sm:$0xff] }
 0xd94   : > { %7928 = vmatpush.xpose.msk.msra.mxu3 %vm6518_vm5, %v7551_v47  ;;  %v7426_v9 = vpop.f32.mrf.mxu0  ;;  %v7478_v61 = vmul.f32 %v14936_v4, %v7385_v40  ;;  %v7476_v32 = vmul.f32 %v14936_v4, %v7379_v5 }
 0xd95   : > { %v7313_v20 = vpop.f32.mrf.mxu1  ;;  %v7548_v16 = vmax.f32 %v7516_v33, 0.0  ;;  %v7206_v51 = vpop.f32.mrf.mxu2 }
 0xd96   : > { %v7314_v49 = vadd.f32 %v7313_v20, %v7200_v2  ;;  %v6273_v48 = vpop.permute.xlu1 %6272  ;;  %v7514_v41 = vadd.f32 %v14944_v57, %v7478_v61  ;;  %v7513_v2 = vadd.f32 %v14944_v57, %v7477_v54 }
 0xd97   : > { %v6515_v59 = vsel %vm1824_vm10, %v14797_v52, %v6273_v48  ;;  %v7479_v52 = vmul.f32 %v14936_v4, %v7388_v28  ;;  %v6277_v35 = vpop.permute.xlu2 %6276  ;;  %v7475_v48 = vmul.f32 %v14936_v4, %v7376_v23 }
 0xd98   : > { %v15048_v46 = vadd.f32 %v7426_v9, %v7314_v49  ;;  %v15053_v43 = vsel %vm6518_vm5, %v6515_v59, %v8103_v44  ;;  %7929 = vmatpush.xpose.msk.msra.mxu3 %vm6518_vm5, %v7550_v53  ;;  %v6517_v47 = vsel %vm1824_vm10, %v16303_v7, %v6277_v35  ;;  %v7546_v50 = vmax.f32 %v7514_v41, 0.0 }
 0xd99   : > { %v6690_v37 = vrot.slane %v15053_v43, 1  ;;  %v6866_v30 = vrot.slane %v15053_v43, 2  ;;  %v7515_v24 = vadd.f32 %v14944_v57, %v7479_v52  ;;  %v7512_v53 = vadd.f32 %v14944_v57, %v7476_v32  ;;  %v15116_v52 = vld [vmem:[%s15238_s10] sm:$0xff] }
 0xd9a   : > { %v7545_v25 = vmax.f32 %v7513_v2, 0.0  ;;  %v7511_v11 = vadd.f32 %v14944_v57, %v7475_v48 }
 0xd9b   : > { %v6868_v0 = vsel %vm16297_vm12, %v6866_v30, %v6867_v31  ;;  %v6692_v62 = vsel %vm16282_vm0, %v6690_v37, %v6691_v55 }
 0xd9c   : > { %6931 = vrot.lane.b32.xlu2 %v6868_v0, %s8270_s14  ;;  %6755 = vrot.lane.b32.xlu0 %v6692_v62, %s8272_s16  ;;  %v7543_v40 = vmax.f32 %v7511_v11, 0.0  ;;  %v16306_v0 = vld [vmem:[#allocation187_spill] sm:$0xff] }
 0xd9d   : > { %7930 = vmatpush.xpose.msk.msra.mxu3 %vm6518_vm5, %v7549_v12 }
 0xd9e   : > { %v6746_v29 = vpop.permute.xlu0 %6745  ;;  %v6920_v6 = vpop.permute.xlu1 %6919 }
 0xd9f   : > { %v6993_v56 = vsel %vm6967_vm6, %v16298_v18, %v6746_v29  ;;  %7913 = vmatmul.msk.f32.gmra.mxu0 %vm1824_vm10, %v6920_v6  ;;  %v7024_v21 = vsel %vm6518_vm5, %v14999_v36, %v6920_v6  ;;  %v7547_v36 = vmax.f32 %v7515_v24, 0.0 }
 0xda0   : > { %7223 = vmatmul.f32.gmra.mxu2 %v6993_v56  ;;  %7333 = vmatmul.f32.gmra.mxu1 %v7024_v21  ;;  %v16307_v21 = vld [vmem:[#allocation188_spill] sm:$0xff] }
 0xda1   : > { %7931 = vmatpush.xpose.msk.msra.mxu3 %vm6518_vm5, %v7548_v16 }
 0xda4   : > { %v7429_v60 = vpop.f32.mrf.mxu0  ;;  %7579 = vperm.xlu2 %8038, %v7576_v10  }
 0xda5   : > { %v7316_v19 = vpop.f32.mrf.mxu1  ;;  %7932 = vmatpush.xpose.msk.msra.mxu3 %vm6518_vm5, %v7547_v36 }
 0xda6   : > { %v6922_v27 = vpop.permute.xlu0 %6921  ;;  %v7317_v26 = vadd.f32 %v7316_v19, %v7203_v38  ;;  %v6421_v45 = vpop.permute.xlu1 %6420 }
 0xda7   : > { %v7025_v42 = vsel %vm6518_vm5, %v6746_v29, %v6922_v27  ;;  %v6566_v20 = vsel %vm6518_vm5, %v6517_v47, %v6421_v45  ;;  %7914 = vmatmul.msk.f32.gmra.mxu0 %vm1824_vm10, %v6922_v27 }
 0xda8   : > { %v15096_v44 = vadd.f32 %v7429_v60, %v7317_v26  ;;  %v6693_v49 = vrot.slane %v6566_v20, 1  ;;  %v6869_v13 = vrot.slane %v6566_v20, 2  ;;  %7336 = vmatmul.f32.gmra.mxu1 %v7025_v42 }
 0xda9   : > { %7933 = vmatpush.xpose.msk.msra.mxu3 %vm6518_vm5, %v7546_v50 }
 0xdaa   : > { %v6694_v28 = vsel %vm16304_vm2, %v6691_v55, %v6693_v49  ;;  %v6870_v9 = vsel %vm16305_vm4, %v6867_v31, %v6869_v13  ;;  %v7544_v31 = vmax.f32 %v7512_v53, 0.0 }
 0xdab   : > { %6757 = vrot.lane.b32.xlu1 %v6694_v28, %s8272_s16  ;;  %6933 = vrot.lane.b32.xlu0 %v6870_v9, %s8270_s14  ;;  %s7958_s14 = sshll.u32 %s16309_s22, 4 }
 0xdac   : > { %v7432_v30 = vpop.f32.mrf.mxu0  ;;  %s15160_s19 = scalar_lea.vmem %s15240_s12, %s7958_s14 }
 0xdad   : > { %v7319_v59 = vpop.f32.mrf.mxu1  ;;  %7934 = vmatpush.xpose.msk.msra.mxu3 %vm6518_vm5, %v7545_v25 }
 0xdae   : > { %v7320_v37 = vadd.f32 %v7319_v59, %v7206_v51 }
 0xdb0   : > { %v15109_v55 = vadd.f32 %v7432_v30, %v7320_v37 }
 0xdb1   : > { %7935 = vmatpush.xpose.msk.msra.mxu3 %vm6518_vm5, %v7544_v31 }
 0xdb5   : > { %7936 = vmatpush.xpose.msk.msra.mxu3 %vm6518_vm5, %v7543_v40 }
 0xdb8   : > { %7937 = vmatmul.msk.f32.vlgmr.msra.gmra.mxu3 %vm6518_vm5, %v15116_v52 }
 0xdc5   : > { %v6748_v33 = vpop.permute.xlu2 %6747 }
 0xdc6   : > { %v6994_v62 = vsel %vm6967_vm6, %v16306_v0, %v6748_v33 }
 0xdc7   : > { %7226 = vmatmul.f32.gmra.mxu2 %v6994_v62 }
 0xdcd   : > { %v6926_v61 = vpop.permute.xlu2 %6925 }
 0xddb   : > { %v7435_v18 = vpop.f32.mrf.mxu0 }
 0xddc   : > { %v7322_v29 = vpop.f32.mrf.mxu1 }
 0xddd   : > { %v6924_v12 = vpop.permute.xlu1 %6923 }
 0xdde   : > { %v7209_v3 = vpop.f32.mrf.mxu2  ;;  %7915 = vmatmul.msk.f32.gmra.mxu0 %vm1824_vm10, %v6924_v12  ;;  %v7026_v14 = vsel %vm6518_vm5, %v6748_v33, %v6924_v12 }
 0xddf   : > { %v7323_v6 = vadd.f32 %v7322_v29, %v7209_v3  ;;  %7339 = vmatmul.f32.gmra.mxu1 %v7026_v14 }
 0xde1   : > { %v15124_v56 = vadd.f32 %v7435_v18, %v7323_v6 }
 0xde5   : > { %v6750_v24 = vpop.permute.xlu0 %6749 }
 0xde6   : > { %7916 = vmatmul.msk.f32.gmra.mxu0 %vm1824_vm10, %v6926_v61  ;;  %v6995_v16 = vsel %vm6967_vm6, %v16307_v21, %v6750_v24  ;;  %v7027_v10 = vsel %vm6518_vm5, %v6750_v24, %v6926_v61  ;;  %v7212_v39 = vpop.f32.mrf.mxu2 }
 0xde7   : > { %7229 = vmatmul.f32.gmra.mxu2 %v6995_v16  ;;  %7342 = vmatmul.f32.gmra.mxu1 %v7027_v10 }
 0xdeb   : > { %v7438_v15 = vpop.f32.mrf.mxu0 }
 0xdec   : > { %v7325_v1 = vpop.f32.mrf.mxu1 }
 0xded   : > { %v7326_v58 = vadd.f32 %v7325_v1, %v7212_v39  ;;  %v6754_v17 = vpop.permute.xlu2 %6753 }
 0xdee   : > { %v6997_v42 = vsel %vm6967_vm6, %v14997_v63, %v6754_v17 }
 0xdef   : > { %v15130_v5 = vadd.f32 %v7438_v15, %v7326_v58 }
 0xdf6   : > { %v6932_v20 = vpop.permute.xlu2 %6931 }
 0xdf7   : > { %v7215_v38 = vpop.f32.mrf.mxu2 }
 0xdfb   : > { %v7441_v54 = vpop.f32.mrf.mxu0 }
 0xdfc   : > { %v7328_v41 = vpop.f32.mrf.mxu1 }
 0xdfd   : > { %v7329_v35 = vadd.f32 %v7328_v41, %v7215_v38  ;;  %v6928_v36 = vpop.permute.xlu0 %6927  ;;  %v6752_v60 = vpop.permute.xlu1 %6751 }
 0xdfe   : > { %7917 = vmatmul.msk.f32.gmra.mxu0 %vm1824_vm10, %v6928_v36  ;;  %v6996_v19 = vsel %vm6967_vm6, %v14984_v8, %v6752_v60  ;;  %v7028_v27 = vsel %vm6518_vm5, %v6752_v60, %v6928_v36  ;;  %v15155_v33 = vpop.permute.xlu2 %7579 }
 0xdff   : > { %v15136_v26 = vadd.f32 %v7441_v54, %v7329_v35  ;;  %7232 = vmatmul.f32.gmra.mxu2 %v6996_v19  ;;  %7345 = vmatmul.f32.gmra.mxu1 %v7028_v27  ;;  %v7218_v23 = vpop.f32.mrf.mxu2 }
 0xe03   : > { %v7444_v45 = vpop.f32.mrf.mxu0 }
 0xe04   : > { %v7331_v32 = vpop.f32.mrf.mxu1 }
 0xe05   : > { %v7332_v7 = vadd.f32 %v7331_v32, %v7218_v23  ;;  %v6930_v47 = vpop.permute.xlu1 %6929 }
 0xe06   : > { %7918 = vmatmul.msk.f32.gmra.mxu0 %vm1824_vm10, %v6930_v47  ;;  %v7029_v2 = vsel %vm6518_vm5, %v6754_v17, %v6930_v47 }
 0xe07   : > { %v15142_v8 = vadd.f32 %v7444_v45, %v7332_v7  ;;  %7235 = vmatmul.f32.gmra.mxu2 %v6997_v42  ;;  %7348 = vmatmul.f32.gmra.mxu1 %v7029_v2 }
 0xe0c   : > { %v7221_v28 = vpop.f32.mrf.mxu2 }
 0xe0e   : > { %7919 = vmatmul.msk.f32.gmra.mxu0 %vm1824_vm10, %v6932_v20  ;;  %v6756_v50 = vpop.permute.xlu0 %6755 }
 0xe0f   : > { %v6998_v49 = vsel %vm6967_vm6, %v15053_v43, %v6756_v50  ;;  %v7030_v13 = vsel %vm6518_vm5, %v6756_v50, %v6932_v20 }
 0xe10   : > { %7238 = vmatmul.f32.gmra.mxu2 %v6998_v49  ;;  %7351 = vmatmul.f32.gmra.mxu1 %v7030_v13 }
 0xe1c   : > { %v7447_v48 = vpop.f32.mrf.mxu0 }
 0xe1d   : > { %v6758_v9 = vpop.permute.xlu1 %6757  ;;  %v6934_v63 = vpop.permute.xlu0 %6933 }
 0xe1e   : > { %v7334_v53 = vpop.f32.mrf.mxu1  ;;  %7920 = vmatmul.msk.f32.gmra.mxu0 %vm1824_vm10, %v6934_v63  ;;  %v6999_v25 = vsel %vm6967_vm6, %v15044_v22, %v6758_v9  ;;  %v7031_v51 = vsel %vm6518_vm5, %v6758_v9, %v6934_v63 }
 0xe1f   : > { %v7335_v59 = vadd.f32 %v7334_v53, %v7221_v28  ;;  %7241 = vmatmul.f32.gmra.mxu2 %v6999_v25  ;;  %7354 = vmatmul.f32.gmra.mxu1 %v7031_v51 }
 0xe21   : > { %v15152_v43 = vadd.f32 %v7447_v48, %v7335_v59 }
 0xe23   : > { %v7224_v37 = vpop.f32.mrf.mxu2 }
 0xe24   : > { %v7450_v31 = vpop.f32.mrf.mxu0 }
 0xe26   : > { %v7337_v30 = vpop.f32.mrf.mxu1 }
 0xe27   : > { %v7338_v11 = vadd.f32 %v7337_v30, %v7224_v37 }
 0xe29   : > { %v7451_v40 = vadd.f32 %v7450_v31, %v7338_v11 }
 0xe2b   : > { %v7500_v30 = vmul.f32 %v14936_v4, %v7451_v40  ;;  %v7497_v40 = vmul.f32 %v14936_v4, %v15136_v26  ;;  %v7494_v26 = vmul.f32 %v14936_v4, %v15109_v55 }
 0xe3b   : > { %v7698_v22 = vpop.f32.mrf.mxu3 }
 0xe3c   : > { %v7699_v0 = vadd.f32 %v7698_v22, %v15155_v33  ;;  %v7499_v22 = vmul.f32 %v14936_v4, %v15152_v43  ;;  %v7496_v43 = vmul.f32 %v14936_v4, %v15130_v5  ;;  %v7493_v5 = vmul.f32 %v14936_v4, %v15096_v44 }
 0xe3e   : > { %7721 = vst [vmem:[%s15160_s19] sm:$0xff] %v7699_v0  ;;  %v7536_v0 = vadd.f32 %v14944_v57, %v7500_v30 }
 0xe4a   : > { %v7227_v12 = vpop.f32.mrf.mxu2 }
 0xe5b   : > { %v7453_v29 = vpop.f32.mrf.mxu0 }
 0xe5c   : > { %v7340_v62 = vpop.f32.mrf.mxu1 }
 0xe5d   : > { %v7341_v50 = vadd.f32 %v7340_v62, %v7227_v12  ;;  %v7498_v12 = vmul.f32 %v14936_v4, %v15142_v8  ;;  %v7495_v8 = vmul.f32 %v14936_v4, %v15124_v56  ;;  %v7492_v56 = vmul.f32 %v14936_v4, %v15048_v46 }
 0xe5f   : > { %v7454_v63 = vadd.f32 %v7453_v29, %v7341_v50  ;;  %v7535_v29 = vadd.f32 %v14944_v57, %v7499_v22 }
 0xe61   : > { %v7501_v51 = vmul.f32 %v14936_v4, %v7454_v63 }
 0xe63   : > { %v7456_v6 = vpop.f32.mrf.mxu0  ;;  %v7537_v11 = vadd.f32 %v14944_v57, %v7501_v51 }
 0xe64   : > { %v7343_v3 = vpop.f32.mrf.mxu1 }
 0xe65   : > { %v7569_v62 = vmax.f32 %v7537_v11, 0.0 }
 0xe6a   : > { %v7230_v14 = vpop.f32.mrf.mxu2 }
 0xe6b   : > { %v7344_v47 = vadd.f32 %v7343_v3, %v7230_v14  ;;  %v7568_v3 = vmax.f32 %v7536_v0, 0.0  ;;  %v7534_v14 = vadd.f32 %v14944_v57, %v7498_v12 }
 0xe6d   : > { %v7457_v49 = vadd.f32 %v7456_v6, %v7344_v47  ;;  %v7567_v6 = vmax.f32 %v7535_v29, 0.0 }
 0xe6f   : > { %v7502_v48 = vmul.f32 %v14936_v4, %v7457_v49 }
 0xe71   : > { %v7538_v59 = vadd.f32 %v14944_v57, %v7502_v48 }
 0xe73   : > { %v7570_v31 = vmax.f32 %v7538_v59, 0.0 }
 0xe7b   : > { %v7459_v24 = vpop.f32.mrf.mxu0 }
 0xe7c   : > { %v7346_v18 = vpop.f32.mrf.mxu1 }
 0xe82   : > { %v7233_v61 = vpop.f32.mrf.mxu2 }
 0xe83   : > { %v7462_v10 = vpop.f32.mrf.mxu0  ;;  %v7347_v27 = vadd.f32 %v7346_v18, %v7233_v61  ;;  %v7533_v18 = vadd.f32 %v14944_v57, %v7497_v40  ;;  %v7566_v61 = vmax.f32 %v7534_v14, 0.0 }
 0xe84   : > { %v7349_v21 = vpop.f32.mrf.mxu1 }
 0xe85   : > { %v7460_v45 = vadd.f32 %v7459_v24, %v7347_v27  ;;  %v7532_v24 = vadd.f32 %v14944_v57, %v7496_v43 }
 0xe87   : > { %v7503_v13 = vmul.f32 %v14936_v4, %v7460_v45 }
 0xe89   : > { %v7539_v53 = vadd.f32 %v14944_v57, %v7503_v13 }
 0xe8a   : > { %v7236_v16 = vpop.f32.mrf.mxu2 }
 0xe8b   : > { %v7465_v58 = vpop.f32.mrf.mxu0  ;;  %v7350_v41 = vadd.f32 %v7349_v21, %v7236_v16  ;;  %v7571_v37 = vmax.f32 %v7539_v53, 0.0  ;;  %v7565_v21 = vmax.f32 %v7533_v18, 0.0  ;;  %v7531_v16 = vadd.f32 %v14944_v57, %v7495_v8 }
 0xe8d   : > { %v7352_v39 = vpop.f32.mrf.mxu1  ;;  %v7463_v17 = vadd.f32 %v7462_v10, %v7350_v41  ;;  %v7564_v10 = vmax.f32 %v7532_v24, 0.0 }
 0xe8f   : > { %v7504_v42 = vmul.f32 %v14936_v4, %v7463_v17 }
 0xe91   : > { %v7540_v28 = vadd.f32 %v14944_v57, %v7504_v42 }
 0xe93   : > { %v7239_v1 = vpop.f32.mrf.mxu2  ;;  %v7572_v25 = vmax.f32 %v7540_v28, 0.0 }
 0xe94   : > { %v7353_v15 = vadd.f32 %v7352_v39, %v7239_v1  ;;  %v7530_v39 = vadd.f32 %v14944_v57, %v7494_v26  ;;  %v7563_v1 = vmax.f32 %v7531_v16, 0.0 }
 0xe96   : > { %v7466_v35 = vadd.f32 %v7465_v58, %v7353_v15  ;;  %v7529_v58 = vadd.f32 %v14944_v57, %v7493_v5  ;;  %v7562_v55 = vmax.f32 %v7530_v39, 0.0  ;;  %v7491_v15 = vmul.f32 %v14936_v4, %v14976_v34 }
 0xe98   : > { %v7505_v23 = vmul.f32 %v14936_v4, %v7466_v35  ;;  %v7561_v44 = vmax.f32 %v7529_v58, 0.0 }
 0xe9a   : > { %v7541_v2 = vadd.f32 %v14944_v57, %v7505_v23 }
 0xe9b   : > { %v7468_v60 = vpop.f32.mrf.mxu0 }
 0xe9c   : > { %v7355_v38 = vpop.f32.mrf.mxu1  ;;  %v7573_v9 = vmax.f32 %v7541_v2, 0.0 }
 0xea2   : > { %v7242_v54 = vpop.f32.mrf.mxu2 }
 0xea3   : > { %v7356_v36 = vadd.f32 %v7355_v38, %v7242_v54  ;;  %v7528_v38 = vadd.f32 %v14944_v57, %v7492_v56  ;;  %v7527_v54 = vadd.f32 %v14944_v57, %v7491_v15 }
 0xea5   : > { %v7469_v19 = vadd.f32 %v7468_v60, %v7356_v36  ;;  %v7560_v41 = vmax.f32 %v7528_v38, 0.0  ;;  %v7559_v46 = vmax.f32 %v7527_v54, 0.0 }
 0xea7   : > { %v7506_v32 = vmul.f32 %v14936_v4, %v7469_v19 }
 0xea9   : > { %v7542_v7 = vadd.f32 %v14944_v57, %v7506_v32 }
 0xeab   : > { %v7574_v20 = vmax.f32 %v7542_v7, 0.0 }
 0xead   : > { %7938 = vmatpush.xpose.msk.msrb.mxu2 %vm6518_vm5, %v7574_v20 }
 0xeb1   : > { %7939 = vmatpush.xpose.msk.msrb.mxu2 %vm6518_vm5, %v7573_v9 }
 0xeb5   : > { %7940 = vmatpush.xpose.msk.msrb.mxu2 %vm6518_vm5, %v7572_v25 }
 0xeb9   : > { %7941 = vmatpush.xpose.msk.msrb.mxu2 %vm6518_vm5, %v7571_v37 }
 0xebd   : > { %7942 = vmatpush.xpose.msk.msrb.mxu2 %vm6518_vm5, %v7570_v31 }
 0xec1   : > { %7943 = vmatpush.xpose.msk.msrb.mxu2 %vm6518_vm5, %v7569_v62 }
 0xec5   : > { %7944 = vmatpush.xpose.msk.msrb.mxu2 %vm6518_vm5, %v7568_v3 }
 0xec9   : > { %7945 = vmatpush.xpose.msk.msrb.mxu2 %vm6518_vm5, %v7567_v6 }
 0xecd   : > { %7946 = vmatpush.xpose.msk.msrb.mxu2 %vm6518_vm5, %v7566_v61 }
 0xed1   : > { %7947 = vmatpush.xpose.msk.msrb.mxu2 %vm6518_vm5, %v7565_v21 }
 0xed5   : > { %7948 = vmatpush.xpose.msk.msrb.mxu2 %vm6518_vm5, %v7564_v10 }
 0xed9   : > { %7949 = vmatpush.xpose.msk.msrb.mxu2 %vm6518_vm5, %v7563_v1 }
 0xedd   : > { %7950 = vmatpush.xpose.msk.msrb.mxu2 %vm6518_vm5, %v7562_v55 }
 0xee1   : > { %7951 = vmatpush.xpose.msk.msrb.mxu2 %vm6518_vm5, %v7561_v44 }
 0xee5   : > { %7952 = vmatpush.xpose.msk.msrb.mxu2 %vm6518_vm5, %v7560_v41 }
 0xee9   : > { %7953 = vmatpush.xpose.msk.msrb.mxu2 %vm6518_vm5, %v7559_v46 }
 0xeec   : > { %7954 = vmatmul.msk.f32.vlgmr.msrb.gmra.mxu2 %vm6518_vm5, %v15116_v52 }
 0xf6f   : > { %v7718_v35 = vpop.f32.mrf.mxu2 }
 0xf70   : > { %v7719_v36 = vadd.f32 %v7718_v35, %v15155_v33 }
 0xf72   : > { %7722 = vst [vmem:[%s15160_s19 + $0x8] sm:$0xff] %v7719_v36 }
 0xf73 PF: > { %s22_s21 = sadd.s32 1, %s8251_s21  }
 0xf74   : > { %p19_p4 = scmp.ge.s32.totalorder %s22_s21, 4  }
 0xf76   :  { %21 = sbr.rel (!%p19_p4) target bundleno = 1 (0x1), region = 98 }

</bundles_post_ra>
